<compile_context>
chip_gen: v5e
topology: v5e:2x2
jax: 0.10.0
libtpu: 0.0.40
codegen_flags: <defaults>
</compile_context>

<pallas_src>
import functools
import math

import jax
import jax.numpy as jnp
from jax import lax
from jax.experimental import pallas as pl
from jax.experimental.pallas import tpu as pltpu


# ---------------------------------------------------------------------------
# Pallas kernel 1: fused matmul  y = act((x @ w) * scale + shift [+ residual])
# ---------------------------------------------------------------------------
def _mm_kernel(x_ref, w_ref, sc_ref, sh_ref, *rest, act, has_res):
    if has_res:
        r_ref, o_ref = rest
    else:
        (o_ref,) = rest
    y = jnp.dot(x_ref[...], w_ref[...], preferred_element_type=jnp.float32)
    y = y * sc_ref[...] + sh_ref[...]          # folded eval-mode BatchNorm (+bias)
    if has_res:
        y = y + r_ref[...].astype(jnp.float32)  # fused block residual add (bf16 in)
    if act == "relu":
        y = jnp.maximum(y, 0.0)
    elif act == "relu20":                      # nn.Hardtanh(0, 20)
        y = jnp.clip(y, 0.0, 20.0)
    o_ref[...] = y.astype(o_ref.dtype)


@functools.lru_cache(maxsize=None)
def _make_matmul(M, K, N, TM, act, has_res, out_dtype_name):
    grid_m = pl.cdiv(M, TM)                    # ragged tail handled by Pallas masking
    in_specs = [
        pl.BlockSpec((TM, K), lambda i: (i, 0)),
        pl.BlockSpec((K, N), lambda i: (0, 0)),   # weights stay VMEM-resident
        pl.BlockSpec((1, N), lambda i: (0, 0)),
        pl.BlockSpec((1, N), lambda i: (0, 0)),
    ]
    if has_res:
        in_specs.append(pl.BlockSpec((TM, N), lambda i: (i, 0)))
    return pl.pallas_call(
        functools.partial(_mm_kernel, act=act, has_res=has_res),
        out_shape=jax.ShapeDtypeStruct((M, N), jnp.dtype(out_dtype_name)),
        grid=(grid_m,),
        in_specs=in_specs,
        out_specs=pl.BlockSpec((TM, N), lambda i: (i, 0)),
        compiler_params=pltpu.CompilerParams(
            dimension_semantics=("parallel",),
            vmem_limit_bytes=48 * 1024 * 1024),   # explicit budget, fits v7x 64 MiB
    )


def matmul_fused(x, w, bias=None, scale=None, shift=None, res=None, act="none",
                 out_dtype=jnp.bfloat16):
    """act((x @ w) * scale + shift + bias*scale [+ res]); bf16 MXU, f32 accum."""
    M, K = x.shape
    N = w.shape[1]
    scale = jnp.ones((N,), jnp.float32) if scale is None else scale.astype(jnp.float32)
    shift = jnp.zeros((N,), jnp.float32) if shift is None else shift.astype(jnp.float32)
    if bias is not None:                       # fold bias into the affine shift
        shift = shift + bias.astype(jnp.float32) * scale

    # M tiles of 512 (v6e/v7x roofline sweet spot); ragged tail is masked by
    # Pallas (no wrapper-side pad / slice passes over HBM).
    TM = M if M <= 512 else 512

    args = [x.astype(jnp.bfloat16), w.astype(jnp.bfloat16),
            scale.reshape(1, N), shift.reshape(1, N)]
    if res is not None:
        args.append(res)                       # bf16 residual, upcast in-kernel
    return _make_matmul(M, K, N, TM, act, res is not None,
                        jnp.dtype(out_dtype).name)(*args)


# ---------------------------------------------------------------------------
# Pallas kernel 2: bidirectional LSTM recurrence (gate order i, f, g, o)
#   - input projection (both directions) hoisted outside as one bf16 matmul
#   - fwd and bwd chains interleaved; ONE MXU dot per step via block-diag Whh
#   - BN(width) + Hardtanh(0,20) applied per step, stored straight to output
#     halves (no scratch, no epilogue pass)
# TODO(synk): v7x-only follow-ups not implemented: sharding fwd/bwd across the
#             2 TensorCores and streaming g in time chunks for very long T.
# ---------------------------------------------------------------------------
def _bilstm_kernel(g_ref, whh_ref, sc_ref, sh_ref, o_ref, *, T, B, H):
    W = 2 * H
    G4 = 4 * H
    whh = whh_ref[...]                          # (2H, 8H) bf16, block-diagonal
    sc = sc_ref[...]                            # (1, W) f32
    sh = sh_ref[...]
    sc_f, sh_f = sc[:, :H], sh[:, :H]
    sc_b, sh_b = sc[:, H:], sh[:, H:]

    def gates(pre, c):
        i_g = jax.nn.sigmoid(pre[:, 0:H])
        f_g = jax.nn.sigmoid(pre[:, H:2 * H])
        g_g = jnp.tanh(pre[:, 2 * H:3 * H])
        o_g = jax.nn.sigmoid(pre[:, 3 * H:4 * H])
        c = f_g * c + i_g * g_g
        h = o_g * jnp.tanh(c)
        return h, c

    def body(s, carry):
        hf, cf, hb, cb = carry
        tb = T - 1 - s
        # single fused recurrent matmul for both directions (bf16 MXU, f32 acc)
        zin = jnp.concatenate([hf, hb], axis=-1).astype(jnp.bfloat16)   # (B, 2H)
        z = jnp.dot(zin, whh, preferred_element_type=jnp.float32)       # (B, 8H)
        pre_f = g_ref[s, :, 0:G4].astype(jnp.float32) + z[:, :G4]
        pre_b = g_ref[tb, :, G4:2 * G4].astype(jnp.float32) + z[:, G4:]
        hf, cf = gates(pre_f, cf)
        hb, cb = gates(pre_b, cb)
        # fused BN(width) + Hardtanh(0,20), direct per-step stores
        o_ref[s, :, 0:H] = jnp.clip(hf * sc_f + sh_f, 0.0, 20.0).astype(o_ref.dtype)
        o_ref[tb, :, H:W] = jnp.clip(hb * sc_b + sh_b, 0.0, 20.0).astype(o_ref.dtype)
        return hf, cf, hb, cb

    z0 = jnp.zeros((B, H), jnp.float32)
    lax.fori_loop(0, T, body, (z0, z0, z0, z0))


@functools.lru_cache(maxsize=None)
def _make_bilstm(T, B, W):
    H = W // 2
    return pl.pallas_call(
        functools.partial(_bilstm_kernel, T=T, B=B, H=H),
        out_shape=jax.ShapeDtypeStruct((T, B, W), jnp.bfloat16),
    )


def bilstm_block(p, x_tbw):
    """nn.LSTM(W, W//2, bidirectional, batch_first) + BN(W) + Hardtanh(0,20)."""
    T, B, W = x_tbw.shape
    # hoisted input projection for BOTH directions: one bf16 MXU matmul, bf16 out
    g = matmul_fused(x_tbw.reshape(T * B, W), p["wih_cat"], bias=p["b_cat"])
    g = g.reshape(T, B, 4 * W)
    return _make_bilstm(T, B, W)(
        g, p["whh_cat"].astype(jnp.bfloat16),
        p["bnl_scale"].reshape(1, W).astype(jnp.float32),
        p["bnl_shift"].reshape(1, W).astype(jnp.float32))


# ---------------------------------------------------------------------------
# Pallas kernel 3: TSTP pooling (mean + unbiased std over time)
# TODO(synk): pooling_layers.TSTP is not included in the spec; standard
#             wespeaker TSTP (mean, sqrt(var_unbiased + 1e-7)) is assumed.
# TODO(synk): at reference sizes, grid over batch / accumulate over T-chunks
#             instead of one whole-array VMEM block (v7x VMEM budget).
# ---------------------------------------------------------------------------
def _tstp_kernel(x_ref, o_ref, *, T):
    x = x_ref[...].astype(jnp.float32)               # (T, B, C)
    mean = jnp.sum(x, axis=0) / T                    # (B, C)
    var = jnp.sum((x - mean[None]) ** 2, axis=0) / max(T - 1, 1)
    std = jnp.sqrt(var + 1e-7)
    o_ref[...] = jnp.concatenate([mean, std], axis=-1)


@functools.lru_cache(maxsize=None)
def _make_tstp(T, B, C):
    return pl.pallas_call(
        functools.partial(_tstp_kernel, T=T),
        out_shape=jax.ShapeDtypeStruct((B, 2 * C), jnp.float32),
    )


# ---------------------------------------------------------------------------
# Front end (torch.no_grad block): PreEmphasis + MelSpectrogram, in plain JAX.
# TODO(synk): FFT-based mel spectrogram has no Pallas equivalent; kept in JAX.
# ---------------------------------------------------------------------------
def make_mel_fb(n_freqs=257, n_mels=80, sr=16000.0, fmin=20.0, fmax=7600.0):
    def hz_to_mel(f):
        return 2595.0 * jnp.log10(1.0 + f / 700.0)

    def mel_to_hz(m):
        return 700.0 * (10.0 ** (m / 2595.0) - 1.0)

    all_freqs = jnp.linspace(0.0, sr / 2, n_freqs)
    m_pts = jnp.linspace(hz_to_mel(fmin), hz_to_mel(fmax), n_mels + 2)
    f_pts = mel_to_hz(m_pts)
    f_diff = f_pts[1:] - f_pts[:-1]
    slopes = f_pts[None, :] - all_freqs[:, None]
    down = -slopes[:, :-2] / f_diff[:-1]
    up = slopes[:, 2:] / f_diff[1:]
    return jnp.maximum(0.0, jnp.minimum(down, up)).astype(jnp.float32)  # (257, 80)


def mel_features(wav, mel_fb):
    """wav (B, L) -> mel power spectrogram, (B, T, 80)."""
    # PreEmphasis: reflect pad 1 on the left, conv with [-0.97, 1.0]
    pad = jnp.concatenate([wav[:, 1:2], wav], axis=1)
    emph = pad[:, 1:] - 0.97 * pad[:, :-1]
    n_fft, hop, win_len = 512, 160, 400
    x = jnp.pad(emph, ((0, 0), (n_fft // 2, n_fft // 2)), mode="reflect")
    L = emph.shape[1]
    T = 1 + L // hop
    n = jnp.arange(win_len)
    win = 0.54 - 0.46 * jnp.cos(2.0 * jnp.pi * n / win_len)     # periodic hamming
    win = jnp.pad(win, ((n_fft - win_len) // 2, (n_fft - win_len) // 2))
    idx = jnp.arange(T)[:, None] * hop + jnp.arange(n_fft)[None, :]
    frames = x[:, idx] * win[None, None, :]                     # (B, T, 512)
    spec = jnp.abs(jnp.fft.rfft(frames, axis=-1)) ** 2          # power=2.0
    return jnp.einsum("btf,fm->btm", spec, mel_fb)              # (B, T, 80)


# ---------------------------------------------------------------------------
# Model blocks (BasicBlockRes2Net_1d_LSTM, scale=2 -> one BiLSTM branch)
# ---------------------------------------------------------------------------
def basic_block(bcfg, p, x_tbc):
    in_planes, planes, stride, has_sc = bcfg
    width = planes // 2                       # int(floor(planes * 32/64))
    xs = x_tbc[::stride] if stride > 1 else x_tbc
    Ts, B, _ = xs.shape
    x2d = xs.reshape(Ts * B, in_planes)

    # conv1 (1x1, stride) -> bn1 -> Hardtanh(0,20), fused, bf16 out
    out = matmul_fused(x2d, p["conv1_w"],
                       scale=p["bn1_scale"], shift=p["bn1_shift"],
                       act="relu20").reshape(Ts, B, planes)

    # Res2Net branch: BiLSTM (+ fused BN + Hardtanh) on the first half channels
    sp = bilstm_block(p, out[:, :, :width])                    # (Ts, B, width)
    cat = jnp.concatenate([sp, out[:, :, width:]], axis=-1)    # (Ts, B, planes)

    # shortcut (bf16 either way)
    if has_sc:
        res = matmul_fused(x2d, p["sc_w"],
                           scale=p["sc_bn_scale"], shift=p["sc_bn_shift"])
    else:
        res = x2d                             # identity: in_planes == 2*planes

    # conv3 -> bn3 -> (+residual) -> Hardtanh(0,20), all fused in one kernel
    out = matmul_fused(cat.reshape(Ts * B, planes), p["conv3_w"],
                       scale=p["bn3_scale"], shift=p["bn3_shift"],
                       res=res, act="relu20")
    return out.reshape(Ts, B, 2 * planes)


def res2net_forward(cfg, params, wav, aug=False):
    # ---- feature front end (torch.no_grad block) ----
    feat = mel_features(wav, params["mel_fb"])        # (B, T, 80)
    feat = jnp.log(feat + 1e-6)
    feat = feat - jnp.mean(feat, axis=1, keepdims=True)   # CMN over time
    # TODO(synk): FbankAug random time/freq masking (aug=True path) not implemented.
    x = jnp.transpose(feat, (1, 0, 2))                # time-major (T, B, 80)
    T, B, F = x.shape

    # conv1 (k=3, pad=1, bias=False) + bn1 + F.relu, via small im2col + fused matmul
    # TODO(synk): k=3 conv uses a tiny im2col (3*80 cols) instead of in-kernel
    #             shifted dots; negligible at this layer's size.
    xp = jnp.pad(x, ((1, 1), (0, 0), (0, 0)))
    cols = jnp.concatenate([xp[0:T], xp[1:T + 1], xp[2:T + 2]], axis=-1)
    C0 = params["conv1_w"].shape[1]
    out = matmul_fused(cols.reshape(T * B, 3 * F), params["conv1_w"],
                       scale=params["bn1_scale"], shift=params["bn1_shift"],
                       act="relu").reshape(T, B, C0)

    # layer1..layer4
    for layer_cfg, layer_p in zip(cfg, params["layers"]):
        for bcfg, bp in zip(layer_cfg, layer_p):
            out = basic_block(bcfg, bp, out)

    # TSTP pooling + seg_1 embedding (two_emb_layer=False -> return embed_a)
    Tl, Bl, C = out.shape
    stats = _make_tstp(Tl, Bl, C)(out)                # (B, 2C), f32
    emb = matmul_fused(stats, params["seg1_w"], bias=params["seg1_b"],
                       out_dtype=jnp.float32)
    return emb                                        # (B, embedding_size)


# ---------------------------------------------------------------------------
# Static architecture config + deterministic parameter init
# ---------------------------------------------------------------------------
def make_config(m_channels, num_blocks):
    cfg = []
    in_planes = m_channels
    planes_list = (m_channels, m_channels * 2, m_channels * 4, m_channels * 8)
    first_strides = (1, 2, 2, 2)
    for planes, nb, s0 in zip(planes_list, num_blocks, first_strides):
        layer = []
        for bi in range(nb):
            stride = s0 if bi == 0 else 1
            has_sc = (stride != 1) or (in_planes != 2 * planes)
            layer.append((in_planes, planes, stride, has_sc))
            in_planes = 2 * planes
        cfg.append(tuple(layer))
    return tuple(cfg)


def init_params(key, cfg, feat_dim=80, embedding_size=192):
    keys = iter(jax.random.split(key, 4096))

    def nk():
        return next(keys)

    def w_init(shape, fan_in):
        return jax.random.normal(nk(), shape, jnp.float32) / math.sqrt(fan_in)

    def bn_init(n):                          # eval-mode BN folded to scale/shift
        gamma = 1.0 + 0.1 * jax.random.normal(nk(), (n,), jnp.float32)
        beta = 0.1 * jax.random.normal(nk(), (n,), jnp.float32)
        mean = 0.1 * jax.random.normal(nk(), (n,), jnp.float32)
        var = 1.0 + 0.1 * jnp.abs(jax.random.normal(nk(), (n,), jnp.float32))
        scale = gamma / jnp.sqrt(var + 1e-5)
        shift = beta - mean * scale
        return scale, shift

    def lstm_init(width):
        H = width // 2
        k = 1.0 / math.sqrt(H)

        def u(shape):
            return jax.random.uniform(nk(), shape, jnp.float32, -k, k)

        # stored transposed vs PyTorch (4H, in) -> (in, 4H); gate order i,f,g,o
        wih_f, wih_b = u((width, 4 * H)), u((width, 4 * H))
        b_f = u((4 * H,)) + u((4 * H,))      # b_ih + b_hh
        b_b = u((4 * H,)) + u((4 * H,))
        whh_f, whh_b = u((H, 4 * H)), u((H, 4 * H))
        zero = jnp.zeros((H, 4 * H), jnp.float32)
        # block-diagonal recurrent weight -> ONE MXU dot per step in the kernel
        whh_cat = jnp.concatenate(
            [jnp.concatenate([whh_f, zero], axis=1),
             jnp.concatenate([zero, whh_b], axis=1)], axis=0).astype(jnp.bfloat16)
        return {"wih_cat": jnp.concatenate([wih_f, wih_b], axis=1),   # (W, 8H)
                "b_cat": jnp.concatenate([b_f, b_b]),                 # (8H,)
                "whh_cat": whh_cat}                                   # (2H, 8H) bf16

    m_channels = cfg[0][0][0]
    params = {"mel_fb": make_mel_fb(n_mels=feat_dim)}
    params["conv1_w"] = w_init((3 * feat_dim, m_channels), 3 * feat_dim)
    params["bn1_scale"], params["bn1_shift"] = bn_init(m_channels)

    layers = []
    for layer_cfg in cfg:
        lp = []
        for (in_planes, planes, stride, has_sc) in layer_cfg:
            width = planes // 2
            p = {"conv1_w": w_init((in_planes, planes), in_planes)}
            p["bn1_scale"], p["bn1_shift"] = bn_init(planes)
            p.update(lstm_init(width))
            p["bnl_scale"], p["bnl_shift"] = bn_init(width)
            p["conv3_w"] = w_init((planes, 2 * planes), planes)
            p["bn3_scale"], p["bn3_shift"] = bn_init(2 * planes)
            if has_sc:
                p["sc_w"] = w_init((in_planes, 2 * planes), in_planes)
                p["sc_bn_scale"], p["sc_bn_shift"] = bn_init(2 * planes)
            lp.append(p)
        layers.append(lp)
    params["layers"] = layers

    stats_dim = 4 * cfg[-1][-1][1]           # 2 * (2 * planes_last)
    # NOTE: reference hardcodes Linear(4096, emb) (= 32*m_channels at 128);
    # here the in-dim follows the scaled-down channel width.
    params["seg1_w"] = w_init((stats_dim, embedding_size), stats_dim)
    params["seg1_b"] = 0.01 * jax.random.normal(nk(), (embedding_size,), jnp.float32)
    return params


# ---------------------------------------------------------------------------
if __name__ == "__main__":
    key = jax.random.PRNGKey(0)
    pkey, xkey = jax.random.split(key)

    m_channels = 16                 # scaled-down width (reference default: 128)
    num_blocks = (2, 2, 2, 2)       # scaled-down depth (reference default: 3,4,6,3)
    B = 2
    L = 32 * 160                    # 5120 samples -> 33 mel frames

    cfg = make_config(m_channels, num_blocks)
    params = init_params(pkey, cfg)
    wav = 0.1 * jax.random.normal(xkey, (B, L), jnp.float32)

    fwd = jax.jit(functools.partial(res2net_forward, cfg))
    out = fwd(params, wav)
    out = jax.block_until_ready(out)

    assert out.shape == (B, 192), out.shape
    assert bool(jnp.all(jnp.isfinite(out)))
    print("KERNEL_OK")
</pallas_src>

<mosaic_0001>
module attributes {stable_mosaic.version = 11 : i64} {
  func.func @_mm_kernel(%arg0: i32, %arg1: memref<66x240xbf16, #tpu.memory_space<vmem>>, %arg2: memref<240x16xbf16, #tpu.memory_space<vmem>>, %arg3: memref<1x16xf32, #tpu.memory_space<vmem>>, %arg4: memref<1x16xf32, #tpu.memory_space<vmem>>, %arg5: memref<66x16xbf16, #tpu.memory_space<vmem>>) attributes {dimension_semantics = [#tpu.dimension_semantics<parallel>], iteration_bounds = array<i64: 1>, scalar_prefetch = 0 : i64, scratch_operands = 0 : i64, tpu.core_type = #tpu.core_type<tc>, window_params = [{transform_indices = @transform_0, window_bounds = array<i64: 66, 240>}, {pipeline_mode = #tpu.pipeline_mode<synchronous>, transform_indices = @transform_1, window_bounds = array<i64: 240, 16>}, {pipeline_mode = #tpu.pipeline_mode<synchronous>, transform_indices = @transform_2, window_bounds = array<i64: 1, 16>}, {pipeline_mode = #tpu.pipeline_mode<synchronous>, transform_indices = @transform_3, window_bounds = array<i64: 1, 16>}, {transform_indices = @transform_4, window_bounds = array<i64: 66, 16>}]} {
    %c0 = arith.constant 0 : index
    %c0_0 = arith.constant 0 : index
    %0 = vector.load %arg1[%c0, %c0_0] : memref<66x240xbf16, #tpu.memory_space<vmem>>, vector<66x240xbf16>
    %c0_1 = arith.constant 0 : index
    %c0_2 = arith.constant 0 : index
    %1 = vector.load %arg2[%c0_1, %c0_2] : memref<240x16xbf16, #tpu.memory_space<vmem>>, vector<240x16xbf16>
    %cst = arith.constant dense<0.000000e+00> : vector<66x16xf32>
    %2 = tpu.matmul %0, %1, %cst {dimension_numbers = #tpu.dot_dimension_numbers<[1], [0], [0], [1], [0, 0, 1, 1], [], []>} : vector<66x240xbf16>, vector<240x16xbf16>, vector<66x16xf32> -> vector<66x16xf32>
    %c0_3 = arith.constant 0 : index
    %c0_4 = arith.constant 0 : index
    %3 = vector.load %arg3[%c0_3, %c0_4] : memref<1x16xf32, #tpu.memory_space<vmem>>, vector<1x16xf32>
    %4 = vector.broadcast %3 : vector<1x16xf32> to vector<66x16xf32>
    %5 = arith.mulf %2, %4 : vector<66x16xf32>
    %c0_5 = arith.constant 0 : index
    %c0_6 = arith.constant 0 : index
    %6 = vector.load %arg4[%c0_5, %c0_6] : memref<1x16xf32, #tpu.memory_space<vmem>>, vector<1x16xf32>
    %7 = vector.broadcast %6 : vector<1x16xf32> to vector<66x16xf32>
    %8 = arith.addf %5, %7 : vector<66x16xf32>
    %cst_7 = arith.constant 0.000000e+00 : f32
    %9 = vector.broadcast %cst_7 : f32 to vector<66x16xf32>
    %10 = arith.maximumf %8, %9 : vector<66x16xf32>
    %11 = arith.truncf %10 : vector<66x16xf32> to vector<66x16xbf16>
    %c0_8 = arith.constant 0 : index
    %c0_9 = arith.constant 0 : index
    %12 = vector.load %arg5[%c0_8, %c0_9] : memref<66x16xbf16, #tpu.memory_space<vmem>>, vector<66x16xbf16>
    tpu.vector_store %arg5[%c0_8, %c0_9], %11 {strides = array<i32>} : memref<66x16xbf16, #tpu.memory_space<vmem>>, vector<66x16xbf16>,
    return
  }
  func.func @transform_0(%arg0: i32) -> (i32, i32) {
    %c0_i32 = arith.constant 0 : i32
    %c0_i32_0 = arith.constant 0 : i32
    return %arg0, %c0_i32 : i32, i32
  }
  func.func @transform_1(%arg0: i32) -> (i32, i32) {
    %c0_i32 = arith.constant 0 : i32
    %c0_i32_0 = arith.constant 0 : i32
    %c0_i32_1 = arith.constant 0 : i32
    return %c0_i32, %c0_i32_0 : i32, i32
  }
  func.func @transform_2(%arg0: i32) -> (i32, i32) {
    %c0_i32 = arith.constant 0 : i32
    %c0_i32_0 = arith.constant 0 : i32
    %c0_i32_1 = arith.constant 0 : i32
    return %c0_i32, %c0_i32_0 : i32, i32
  }
  func.func @transform_3(%arg0: i32) -> (i32, i32) {
    %c0_i32 = arith.constant 0 : i32
    %c0_i32_0 = arith.constant 0 : i32
    %c0_i32_1 = arith.constant 0 : i32
    return %c0_i32, %c0_i32_0 : i32, i32
  }
  func.func @transform_4(%arg0: i32) -> (i32, i32) {
    %c0_i32 = arith.constant 0 : i32
    %c0_i32_0 = arith.constant 0 : i32
    return %arg0, %c0_i32 : i32, i32
  }
}

module attributes {stable_mosaic.version = 11 : i64} {
  func.func @_mm_kernel(%arg0: i32, %arg1: memref<66x16xbf16, #tpu.memory_space<vmem>>, %arg2: memref<16x16xbf16, #tpu.memory_space<vmem>>, %arg3: memref<1x16xf32, #tpu.memory_space<vmem>>, %arg4: memref<1x16xf32, #tpu.memory_space<vmem>>, %arg5: memref<66x16xbf16, #tpu.memory_space<vmem>>) attributes {dimension_semantics = [#tpu.dimension_semantics<parallel>], iteration_bounds = array<i64: 1>, scalar_prefetch = 0 : i64, scratch_operands = 0 : i64, tpu.core_type = #tpu.core_type<tc>, window_params = [{transform_indices = @transform_0, window_bounds = array<i64: 66, 16>}, {pipeline_mode = #tpu.pipeline_mode<synchronous>, transform_indices = @transform_1, window_bounds = array<i64: 16, 16>}, {pipeline_mode = #tpu.pipeline_mode<synchronous>, transform_indices = @transform_2, window_bounds = array<i64: 1, 16>}, {pipeline_mode = #tpu.pipeline_mode<synchronous>, transform_indices = @transform_3, window_bounds = array<i64: 1, 16>}, {transform_indices = @transform_4, window_bounds = array<i64: 66, 16>}]} {
    %c0 = arith.constant 0 : index
    %c0_0 = arith.constant 0 : index
    %0 = vector.load %arg1[%c0, %c0_0] : memref<66x16xbf16, #tpu.memory_space<vmem>>, vector<66x16xbf16>
    %c0_1 = arith.constant 0 : index
    %c0_2 = arith.constant 0 : index
    %1 = vector.load %arg2[%c0_1, %c0_2] : memref<16x16xbf16, #tpu.memory_space<vmem>>, vector<16x16xbf16>
    %cst = arith.constant dense<0.000000e+00> : vector<66x16xf32>
    %2 = tpu.matmul %0, %1, %cst {dimension_numbers = #tpu.dot_dimension_numbers<[1], [0], [0], [1], [0, 0, 1, 1], [], []>} : vector<66x16xbf16>, vector<16x16xbf16>, vector<66x16xf32> -> vector<66x16xf32>
    %c0_3 = arith.constant 0 : index
    %c0_4 = arith.constant 0 : index
    %3 = vector.load %arg3[%c0_3, %c0_4] : memref<1x16xf32, #tpu.memory_space<vmem>>, vector<1x16xf32>
    %4 = vector.broadcast %3 : vector<1x16xf32> to vector<66x16xf32>
    %5 = arith.mulf %2, %4 : vector<66x16xf32>
    %c0_5 = arith.constant 0 : index
    %c0_6 = arith.constant 0 : index
    %6 = vector.load %arg4[%c0_5, %c0_6] : memref<1x16xf32, #tpu.memory_space<vmem>>, vector<1x16xf32>
    %7 = vector.broadcast %6 : vector<1x16xf32> to vector<66x16xf32>
    %8 = arith.addf %5, %7 : vector<66x16xf32>
    %cst_7 = arith.constant 0.000000e+00 : f32
    %cst_8 = arith.constant 2.000000e+01 : f32
    %9 = vector.broadcast %cst_7 : f32 to vector<66x16xf32>
    %10 = arith.maximumf %9, %8 : vector<66x16xf32>
    %11 = vector.broadcast %cst_8 : f32 to vector<66x16xf32>
    %12 = arith.minimumf %11, %10 : vector<66x16xf32>
    %13 = arith.truncf %12 : vector<66x16xf32> to vector<66x16xbf16>
    %c0_9 = arith.constant 0 : index
    %c0_10 = arith.constant 0 : index
    %14 = vector.load %arg5[%c0_9, %c0_10] : memref<66x16xbf16, #tpu.memory_space<vmem>>, vector<66x16xbf16>
    tpu.vector_store %arg5[%c0_9, %c0_10], %13 {strides = array<i32>} : memref<66x16xbf16, #tpu.memory_space<vmem>>, vector<66x16xbf16>,
    return
  }
  func.func @transform_0(%arg0: i32) -> (i32, i32) {
    %c0_i32 = arith.constant 0 : i32
    %c0_i32_0 = arith.constant 0 : i32
    return %arg0, %c0_i32 : i32, i32
  }
  func.func @transform_1(%arg0: i32) -> (i32, i32) {
    %c0_i32 = arith.constant 0 : i32
    %c0_i32_0 = arith.constant 0 : i32
    %c0_i32_1 = arith.constant 0 : i32
    return %c0_i32, %c0_i32_0 : i32, i32
  }
  func.func @transform_2(%arg0: i32) -> (i32, i32) {
    %c0_i32 = arith.constant 0 : i32
    %c0_i32_0 = arith.constant 0 : i32
    %c0_i32_1 = arith.constant 0 : i32
    return %c0_i32, %c0_i32_0 : i32, i32
  }
  func.func @transform_3(%arg0: i32) -> (i32, i32) {
    %c0_i32 = arith.constant 0 : i32
    %c0_i32_0 = arith.constant 0 : i32
    %c0_i32_1 = arith.constant 0 : i32
    return %c0_i32, %c0_i32_0 : i32, i32
  }
  func.func @transform_4(%arg0: i32) -> (i32, i32) {
    %c0_i32 = arith.constant 0 : i32
    %c0_i32_0 = arith.constant 0 : i32
    return %arg0, %c0_i32 : i32, i32
  }
}

module attributes {stable_mosaic.version = 11 : i64} {
  func.func @_mm_kernel(%arg0: i32, %arg1: memref<66x8xbf16, #tpu.memory_space<vmem>>, %arg2: memref<8x32xbf16, #tpu.memory_space<vmem>>, %arg3: memref<1x32xf32, #tpu.memory_space<vmem>>, %arg4: memref<1x32xf32, #tpu.memory_space<vmem>>, %arg5: memref<66x32xbf16, #tpu.memory_space<vmem>>) attributes {dimension_semantics = [#tpu.dimension_semantics<parallel>], iteration_bounds = array<i64: 1>, scalar_prefetch = 0 : i64, scratch_operands = 0 : i64, tpu.core_type = #tpu.core_type<tc>, window_params = [{transform_indices = @transform_0, window_bounds = array<i64: 66, 8>}, {pipeline_mode = #tpu.pipeline_mode<synchronous>, transform_indices = @transform_1, window_bounds = array<i64: 8, 32>}, {pipeline_mode = #tpu.pipeline_mode<synchronous>, transform_indices = @transform_2, window_bounds = array<i64: 1, 32>}, {pipeline_mode = #tpu.pipeline_mode<synchronous>, transform_indices = @transform_3, window_bounds = array<i64: 1, 32>}, {transform_indices = @transform_4, window_bounds = array<i64: 66, 32>}]} {
    %c0 = arith.constant 0 : index
    %c0_0 = arith.constant 0 : index
    %0 = vector.load %arg1[%c0, %c0_0] : memref<66x8xbf16, #tpu.memory_space<vmem>>, vector<66x8xbf16>
    %c0_1 = arith.constant 0 : index
    %c0_2 = arith.constant 0 : index
    %1 = vector.load %arg2[%c0_1, %c0_2] : memref<8x32xbf16, #tpu.memory_space<vmem>>, vector<8x32xbf16>
    %cst = arith.constant dense<0.000000e+00> : vector<66x32xf32>
    %2 = tpu.matmul %0, %1, %cst {dimension_numbers = #tpu.dot_dimension_numbers<[1], [0], [0], [1], [0, 0, 1, 1], [], []>} : vector<66x8xbf16>, vector<8x32xbf16>, vector<66x32xf32> -> vector<66x32xf32>
    %c0_3 = arith.constant 0 : index
    %c0_4 = arith.constant 0 : index
    %3 = vector.load %arg3[%c0_3, %c0_4] : memref<1x32xf32, #tpu.memory_space<vmem>>, vector<1x32xf32>
    %4 = vector.broadcast %3 : vector<1x32xf32> to vector<66x32xf32>
    %5 = arith.mulf %2, %4 : vector<66x32xf32>
    %c0_5 = arith.constant 0 : index
    %c0_6 = arith.constant 0 : index
    %6 = vector.load %arg4[%c0_5, %c0_6] : memref<1x32xf32, #tpu.memory_space<vmem>>, vector<1x32xf32>
    %7 = vector.broadcast %6 : vector<1x32xf32> to vector<66x32xf32>
    %8 = arith.addf %5, %7 : vector<66x32xf32>
    %9 = arith.truncf %8 : vector<66x32xf32> to vector<66x32xbf16>
    %c0_7 = arith.constant 0 : index
    %c0_8 = arith.constant 0 : index
    %10 = vector.load %arg5[%c0_7, %c0_8] : memref<66x32xbf16, #tpu.memory_space<vmem>>, vector<66x32xbf16>
    tpu.vector_store %arg5[%c0_7, %c0_8], %9 {strides = array<i32>} : memref<66x32xbf16, #tpu.memory_space<vmem>>, vector<66x32xbf16>,
    return
  }
  func.func @transform_0(%arg0: i32) -> (i32, i32) {
    %c0_i32 = arith.constant 0 : i32
    %c0_i32_0 = arith.constant 0 : i32
    return %arg0, %c0_i32 : i32, i32
  }
  func.func @transform_1(%arg0: i32) -> (i32, i32) {
    %c0_i32 = arith.constant 0 : i32
    %c0_i32_0 = arith.constant 0 : i32
    %c0_i32_1 = arith.constant 0 : i32
    return %c0_i32, %c0_i32_0 : i32, i32
  }
  func.func @transform_2(%arg0: i32) -> (i32, i32) {
    %c0_i32 = arith.constant 0 : i32
    %c0_i32_0 = arith.constant 0 : i32
    %c0_i32_1 = arith.constant 0 : i32
    return %c0_i32, %c0_i32_0 : i32, i32
  }
  func.func @transform_3(%arg0: i32) -> (i32, i32) {
    %c0_i32 = arith.constant 0 : i32
    %c0_i32_0 = arith.constant 0 : i32
    %c0_i32_1 = arith.constant 0 : i32
    return %c0_i32, %c0_i32_0 : i32, i32
  }
  func.func @transform_4(%arg0: i32) -> (i32, i32) {
    %c0_i32 = arith.constant 0 : i32
    %c0_i32_0 = arith.constant 0 : i32
    return %arg0, %c0_i32 : i32, i32
  }
}

module attributes {stable_mosaic.version = 11 : i64} {
  func.func @_bilstm_kernel(%arg0: memref<33x2x32xbf16, #tpu.memory_space<vmem>>, %arg1: memref<8x32xbf16, #tpu.memory_space<vmem>>, %arg2: memref<1x8xf32, #tpu.memory_space<vmem>>, %arg3: memref<1x8xf32, #tpu.memory_space<vmem>>, %arg4: memref<33x2x8xbf16, #tpu.memory_space<vmem>>) attributes {dimension_semantics = [], scalar_prefetch = 0 : i64, scratch_operands = 0 : i64, tpu.core_type = #tpu.core_type<tc>} {
    %c0 = arith.constant 0 : index
    %c0_0 = arith.constant 0 : index
    %0 = vector.load %arg1[%c0, %c0_0] : memref<8x32xbf16, #tpu.memory_space<vmem>>, vector<8x32xbf16>
    %c0_1 = arith.constant 0 : index
    %c0_2 = arith.constant 0 : index
    %1 = vector.load %arg2[%c0_1, %c0_2] : memref<1x8xf32, #tpu.memory_space<vmem>>, vector<1x8xf32>
    %c0_3 = arith.constant 0 : index
    %c0_4 = arith.constant 0 : index
    %2 = vector.load %arg3[%c0_3, %c0_4] : memref<1x8xf32, #tpu.memory_space<vmem>>, vector<1x8xf32>
    %3 = vector.extract_strided_slice %1 {offsets = [0, 0], sizes = [1, 4], strides = [1, 1]} : vector<1x8xf32> to vector<1x4xf32>
    %4 = vector.extract_strided_slice %2 {offsets = [0, 0], sizes = [1, 4], strides = [1, 1]} : vector<1x8xf32> to vector<1x4xf32>
    %5 = vector.extract_strided_slice %1 {offsets = [0, 4], sizes = [1, 4], strides = [1, 1]} : vector<1x8xf32> to vector<1x4xf32>
    %6 = vector.extract_strided_slice %2 {offsets = [0, 4], sizes = [1, 4], strides = [1, 1]} : vector<1x8xf32> to vector<1x4xf32>
    %cst = arith.constant 0.000000e+00 : f32
    %7 = vector.broadcast %cst : f32 to vector<2x4xf32>
    %c0_i32 = arith.constant 0 : i32
    %c33_i32 = arith.constant 33 : i32
    %8 = arith.addi %c0_i32, %c33_i32 : i32
    %c1_i32 = arith.constant 1 : i32
    %9:4 = scf.for %arg5 = %c0_i32 to %8 step %c1_i32 iter_args(%arg6 = %7, %arg7 = %7, %arg8 = %7, %arg9 = %7) -> (vector<2x4xf32>, vector<2x4xf32>, vector<2x4xf32>, vector<2x4xf32>)  : i32 {
      %c32_i32 = arith.constant 32 : i32
      %10 = arith.subi %c32_i32, %arg5 : i32
      %11 = tpu.concatenate %arg6, %arg8 in 1 : vector<2x4xf32>, vector<2x4xf32> -> vector<2x8xf32>
      %12 = arith.truncf %11 : vector<2x8xf32> to vector<2x8xbf16>
      %cst_6 = arith.constant dense<0.000000e+00> : vector<2x32xf32>
      %13 = tpu.matmul %12, %0, %cst_6 {dimension_numbers = #tpu.dot_dimension_numbers<[1], [0], [0], [1], [0, 0, 1, 1], [], []>} : vector<2x8xbf16>, vector<8x32xbf16>, vector<2x32xf32> -> vector<2x32xf32>
      %14 = arith.index_cast %arg5 : i32 to index
      %c0_7 = arith.constant 0 : index
      %c0_8 = arith.constant 0 : index
      %15 = vector.load %arg0[%14, %c0_7, %c0_8] : memref<33x2x32xbf16, #tpu.memory_space<vmem>>, vector<1x2x16xbf16>
      %16 = vector.shape_cast %15 : vector<1x2x16xbf16> to vector<2x16xbf16>
      %17 = arith.extf %16 : vector<2x16xbf16> to vector<2x16xf32>
      %18 = vector.extract_strided_slice %13 {offsets = [0, 0], sizes = [2, 16], strides = [1, 1]} : vector<2x32xf32> to vector<2x16xf32>
      %19 = arith.addf %17, %18 : vector<2x16xf32>
      %20 = arith.index_cast %10 : i32 to index
      %c0_9 = arith.constant 0 : index
      %c16 = arith.constant 16 : index
      %21 = vector.load %arg0[%20, %c0_9, %c16] : memref<33x2x32xbf16, #tpu.memory_space<vmem>>, vector<1x2x16xbf16>
      %22 = vector.shape_cast %21 : vector<1x2x16xbf16> to vector<2x16xbf16>
      %23 = arith.extf %22 : vector<2x16xbf16> to vector<2x16xf32>
      %24 = vector.extract_strided_slice %13 {offsets = [0, 16], sizes = [2, 16], strides = [1, 1]} : vector<2x32xf32> to vector<2x16xf32>
      %25 = arith.addf %23, %24 : vector<2x16xf32>
      %26 = vector.extract_strided_slice %19 {offsets = [0, 0], sizes = [2, 4], strides = [1, 1]} : vector<2x16xf32> to vector<2x4xf32>
      %27 = arith.negf %26 : vector<2x4xf32>
      %28 = math.exp %27 : vector<2x4xf32>
      %cst_10 = arith.constant 1.000000e+00 : f32
      %29 = vector.broadcast %cst_10 : f32 to vector<2x4xf32>
      %30 = arith.addf %29, %28 : vector<2x4xf32>
      %31 = arith.divf %29, %30 : vector<2x4xf32>
      %32 = vector.extract_strided_slice %19 {offsets = [0, 4], sizes = [2, 4], strides = [1, 1]} : vector<2x16xf32> to vector<2x4xf32>
      %33 = arith.negf %32 : vector<2x4xf32>
      %34 = math.exp %33 : vector<2x4xf32>
      %cst_11 = arith.constant 1.000000e+00 : f32
      %35 = vector.broadcast %cst_11 : f32 to vector<2x4xf32>
      %36 = arith.addf %35, %34 : vector<2x4xf32>
      %37 = arith.divf %35, %36 : vector<2x4xf32>
      %38 = vector.extract_strided_slice %19 {offsets = [0, 8], sizes = [2, 4], strides = [1, 1]} : vector<2x16xf32> to vector<2x4xf32>
      %39 = math.tanh %38 : vector<2x4xf32>
      %40 = vector.extract_strided_slice %19 {offsets = [0, 12], sizes = [2, 4], strides = [1, 1]} : vector<2x16xf32> to vector<2x4xf32>
      %41 = arith.negf %40 : vector<2x4xf32>
      %42 = math.exp %41 : vector<2x4xf32>
      %cst_12 = arith.constant 1.000000e+00 : f32
      %43 = vector.broadcast %cst_12 : f32 to vector<2x4xf32>
      %44 = arith.addf %43, %42 : vector<2x4xf32>
      %45 = arith.divf %43, %44 : vector<2x4xf32>
      %46 = arith.mulf %37, %arg7 : vector<2x4xf32>
      %47 = arith.mulf %31, %39 : vector<2x4xf32>
      %48 = arith.addf %46, %47 : vector<2x4xf32>
      %49 = math.tanh %48 : vector<2x4xf32>
      %50 = arith.mulf %45, %49 : vector<2x4xf32>
      %51 = vector.extract_strided_slice %25 {offsets = [0, 0], sizes = [2, 4], strides = [1, 1]} : vector<2x16xf32> to vector<2x4xf32>
      %52 = arith.negf %51 : vector<2x4xf32>
      %53 = math.exp %52 : vector<2x4xf32>
      %cst_13 = arith.constant 1.000000e+00 : f32
      %54 = vector.broadcast %cst_13 : f32 to vector<2x4xf32>
      %55 = arith.addf %54, %53 : vector<2x4xf32>
      %56 = arith.divf %54, %55 : vector<2x4xf32>
      %57 = vector.extract_strided_slice %25 {offsets = [0, 4], sizes = [2, 4], strides = [1, 1]} : vector<2x16xf32> to vector<2x4xf32>
      %58 = arith.negf %57 : vector<2x4xf32>
      %59 = math.exp %58 : vector<2x4xf32>
      %cst_14 = arith.constant 1.000000e+00 : f32
      %60 = vector.broadcast %cst_14 : f32 to vector<2x4xf32>
      %61 = arith.addf %60, %59 : vector<2x4xf32>
      %62 = arith.divf %60, %61 : vector<2x4xf32>
      %63 = vector.extract_strided_slice %25 {offsets = [0, 8], sizes = [2, 4], strides = [1, 1]} : vector<2x16xf32> to vector<2x4xf32>
      %64 = math.tanh %63 : vector<2x4xf32>
      %65 = vector.extract_strided_slice %25 {offsets = [0, 12], sizes = [2, 4], strides = [1, 1]} : vector<2x16xf32> to vector<2x4xf32>
      %66 = arith.negf %65 : vector<2x4xf32>
      %67 = math.exp %66 : vector<2x4xf32>
      %cst_15 = arith.constant 1.000000e+00 : f32
      %68 = vector.broadcast %cst_15 : f32 to vector<2x4xf32>
      %69 = arith.addf %68, %67 : vector<2x4xf32>
      %70 = arith.divf %68, %69 : vector<2x4xf32>
      %71 = arith.mulf %62, %arg9 : vector<2x4xf32>
      %72 = arith.mulf %56, %64 : vector<2x4xf32>
      %73 = arith.addf %71, %72 : vector<2x4xf32>
      %74 = math.tanh %73 : vector<2x4xf32>
      %75 = arith.mulf %70, %74 : vector<2x4xf32>
      %76 = vector.broadcast %3 : vector<1x4xf32> to vector<2x4xf32>
      %77 = arith.mulf %50, %76 : vector<2x4xf32>
      %78 = vector.broadcast %4 : vector<1x4xf32> to vector<2x4xf32>
      %79 = arith.addf %77, %78 : vector<2x4xf32>
      %cst_16 = arith.constant 0.000000e+00 : f32
      %cst_17 = arith.constant 2.000000e+01 : f32
      %80 = vector.broadcast %cst_16 : f32 to vector<2x4xf32>
      %81 = arith.maximumf %80, %79 : vector<2x4xf32>
      %82 = vector.broadcast %cst_17 : f32 to vector<2x4xf32>
      %83 = arith.minimumf %82, %81 : vector<2x4xf32>
      %84 = arith.truncf %83 : vector<2x4xf32> to vector<2x4xbf16>
      %85 = arith.index_cast %arg5 : i32 to index
      %c0_18 = arith.constant 0 : index
      %c0_19 = arith.constant 0 : index
      %86 = vector.load %arg4[%85, %c0_18, %c0_19] : memref<33x2x8xbf16, #tpu.memory_space<vmem>>, vector<1x2x4xbf16>
      %87 = vector.shape_cast %86 : vector<1x2x4xbf16> to vector<2x4xbf16>
      %88 = vector.shape_cast %84 : vector<2x4xbf16> to vector<1x2x4xbf16>
      tpu.vector_store %arg4[%85, %c0_18, %c0_19], %88 {strides = array<i32>} : memref<33x2x8xbf16, #tpu.memory_space<vmem>>, vector<1x2x4xbf16>,
      %89 = vector.broadcast %5 : vector<1x4xf32> to vector<2x4xf32>
      %90 = arith.mulf %75, %89 : vector<2x4xf32>
      %91 = vector.broadcast %6 : vector<1x4xf32> to vector<2x4xf32>
      %92 = arith.addf %90, %91 : vector<2x4xf32>
      %cst_20 = arith.constant 0.000000e+00 : f32
      %cst_21 = arith.constant 2.000000e+01 : f32
      %93 = vector.broadcast %cst_20 : f32 to vector<2x4xf32>
      %94 = arith.maximumf %93, %92 : vector<2x4xf32>
      %95 = vector.broadcast %cst_21 : f32 to vector<2x4xf32>
      %96 = arith.minimumf %95, %94 : vector<2x4xf32>
      %97 = arith.truncf %96 : vector<2x4xf32> to vector<2x4xbf16>
      %98 = arith.index_cast %10 : i32 to index
      %c0_22 = arith.constant 0 : index
      %c4 = arith.constant 4 : index
      %99 = vector.load %arg4[%98, %c0_22, %c4] : memref<33x2x8xbf16, #tpu.memory_space<vmem>>, vector<1x2x4xbf16>
      %100 = vector.shape_cast %99 : vector<1x2x4xbf16> to vector<2x4xbf16>
      %101 = vector.shape_cast %97 : vector<2x4xbf16> to vector<1x2x4xbf16>
      tpu.vector_store %arg4[%98, %c0_22, %c4], %101 {strides = array<i32>} : memref<33x2x8xbf16, #tpu.memory_space<vmem>>, vector<1x2x4xbf16>,
      scf.yield %50, %48, %75, %73 : vector<2x4xf32>, vector<2x4xf32>, vector<2x4xf32>, vector<2x4xf32>
    }
    %c33_i32_5 = arith.constant 33 : i32
    return
  }
}

module attributes {stable_mosaic.version = 11 : i64} {
  func.func @_mm_kernel(%arg0: i32, %arg1: memref<66x16xbf16, #tpu.memory_space<vmem>>, %arg2: memref<16x32xbf16, #tpu.memory_space<vmem>>, %arg3: memref<1x32xf32, #tpu.memory_space<vmem>>, %arg4: memref<1x32xf32, #tpu.memory_space<vmem>>, %arg5: memref<66x32xbf16, #tpu.memory_space<vmem>>) attributes {dimension_semantics = [#tpu.dimension_semantics<parallel>], iteration_bounds = array<i64: 1>, scalar_prefetch = 0 : i64, scratch_operands = 0 : i64, tpu.core_type = #tpu.core_type<tc>, window_params = [{transform_indices = @transform_0, window_bounds = array<i64: 66, 16>}, {pipeline_mode = #tpu.pipeline_mode<synchronous>, transform_indices = @transform_1, window_bounds = array<i64: 16, 32>}, {pipeline_mode = #tpu.pipeline_mode<synchronous>, transform_indices = @transform_2, window_bounds = array<i64: 1, 32>}, {pipeline_mode = #tpu.pipeline_mode<synchronous>, transform_indices = @transform_3, window_bounds = array<i64: 1, 32>}, {transform_indices = @transform_4, window_bounds = array<i64: 66, 32>}]} {
    %c0 = arith.constant 0 : index
    %c0_0 = arith.constant 0 : index
    %0 = vector.load %arg1[%c0, %c0_0] : memref<66x16xbf16, #tpu.memory_space<vmem>>, vector<66x16xbf16>
    %c0_1 = arith.constant 0 : index
    %c0_2 = arith.constant 0 : index
    %1 = vector.load %arg2[%c0_1, %c0_2] : memref<16x32xbf16, #tpu.memory_space<vmem>>, vector<16x32xbf16>
    %cst = arith.constant dense<0.000000e+00> : vector<66x32xf32>
    %2 = tpu.matmul %0, %1, %cst {dimension_numbers = #tpu.dot_dimension_numbers<[1], [0], [0], [1], [0, 0, 1, 1], [], []>} : vector<66x16xbf16>, vector<16x32xbf16>, vector<66x32xf32> -> vector<66x32xf32>
    %c0_3 = arith.constant 0 : index
    %c0_4 = arith.constant 0 : index
    %3 = vector.load %arg3[%c0_3, %c0_4] : memref<1x32xf32, #tpu.memory_space<vmem>>, vector<1x32xf32>
    %4 = vector.broadcast %3 : vector<1x32xf32> to vector<66x32xf32>
    %5 = arith.mulf %2, %4 : vector<66x32xf32>
    %c0_5 = arith.constant 0 : index
    %c0_6 = arith.constant 0 : index
    %6 = vector.load %arg4[%c0_5, %c0_6] : memref<1x32xf32, #tpu.memory_space<vmem>>, vector<1x32xf32>
    %7 = vector.broadcast %6 : vector<1x32xf32> to vector<66x32xf32>
    %8 = arith.addf %5, %7 : vector<66x32xf32>
    %9 = arith.truncf %8 : vector<66x32xf32> to vector<66x32xbf16>
    %c0_7 = arith.constant 0 : index
    %c0_8 = arith.constant 0 : index
    %10 = vector.load %arg5[%c0_7, %c0_8] : memref<66x32xbf16, #tpu.memory_space<vmem>>, vector<66x32xbf16>
    tpu.vector_store %arg5[%c0_7, %c0_8], %9 {strides = array<i32>} : memref<66x32xbf16, #tpu.memory_space<vmem>>, vector<66x32xbf16>,
    return
  }
  func.func @transform_0(%arg0: i32) -> (i32, i32) {
    %c0_i32 = arith.constant 0 : i32
    %c0_i32_0 = arith.constant 0 : i32
    return %arg0, %c0_i32 : i32, i32
  }
  func.func @transform_1(%arg0: i32) -> (i32, i32) {
    %c0_i32 = arith.constant 0 : i32
    %c0_i32_0 = arith.constant 0 : i32
    %c0_i32_1 = arith.constant 0 : i32
    return %c0_i32, %c0_i32_0 : i32, i32
  }
  func.func @transform_2(%arg0: i32) -> (i32, i32) {
    %c0_i32 = arith.constant 0 : i32
    %c0_i32_0 = arith.constant 0 : i32
    %c0_i32_1 = arith.constant 0 : i32
    return %c0_i32, %c0_i32_0 : i32, i32
  }
  func.func @transform_3(%arg0: i32) -> (i32, i32) {
    %c0_i32 = arith.constant 0 : i32
    %c0_i32_0 = arith.constant 0 : i32
    %c0_i32_1 = arith.constant 0 : i32
    return %c0_i32, %c0_i32_0 : i32, i32
  }
  func.func @transform_4(%arg0: i32) -> (i32, i32) {
    %c0_i32 = arith.constant 0 : i32
    %c0_i32_0 = arith.constant 0 : i32
    return %arg0, %c0_i32 : i32, i32
  }
}

module attributes {stable_mosaic.version = 11 : i64} {
  func.func @_mm_kernel(%arg0: i32, %arg1: memref<66x16xbf16, #tpu.memory_space<vmem>>, %arg2: memref<16x32xbf16, #tpu.memory_space<vmem>>, %arg3: memref<1x32xf32, #tpu.memory_space<vmem>>, %arg4: memref<1x32xf32, #tpu.memory_space<vmem>>, %arg5: memref<66x32xbf16, #tpu.memory_space<vmem>>, %arg6: memref<66x32xbf16, #tpu.memory_space<vmem>>) attributes {dimension_semantics = [#tpu.dimension_semantics<parallel>], iteration_bounds = array<i64: 1>, scalar_prefetch = 0 : i64, scratch_operands = 0 : i64, tpu.core_type = #tpu.core_type<tc>, window_params = [{transform_indices = @transform_0, window_bounds = array<i64: 66, 16>}, {pipeline_mode = #tpu.pipeline_mode<synchronous>, transform_indices = @transform_1, window_bounds = array<i64: 16, 32>}, {pipeline_mode = #tpu.pipeline_mode<synchronous>, transform_indices = @transform_2, window_bounds = array<i64: 1, 32>}, {pipeline_mode = #tpu.pipeline_mode<synchronous>, transform_indices = @transform_3, window_bounds = array<i64: 1, 32>}, {transform_indices = @transform_4, window_bounds = array<i64: 66, 32>}, {transform_indices = @transform_5, window_bounds = array<i64: 66, 32>}]} {
    %c0 = arith.constant 0 : index
    %c0_0 = arith.constant 0 : index
    %0 = vector.load %arg1[%c0, %c0_0] : memref<66x16xbf16, #tpu.memory_space<vmem>>, vector<66x16xbf16>
    %c0_1 = arith.constant 0 : index
    %c0_2 = arith.constant 0 : index
    %1 = vector.load %arg2[%c0_1, %c0_2] : memref<16x32xbf16, #tpu.memory_space<vmem>>, vector<16x32xbf16>
    %cst = arith.constant dense<0.000000e+00> : vector<66x32xf32>
    %2 = tpu.matmul %0, %1, %cst {dimension_numbers = #tpu.dot_dimension_numbers<[1], [0], [0], [1], [0, 0, 1, 1], [], []>} : vector<66x16xbf16>, vector<16x32xbf16>, vector<66x32xf32> -> vector<66x32xf32>
    %c0_3 = arith.constant 0 : index
    %c0_4 = arith.constant 0 : index
    %3 = vector.load %arg3[%c0_3, %c0_4] : memref<1x32xf32, #tpu.memory_space<vmem>>, vector<1x32xf32>
    %4 = vector.broadcast %3 : vector<1x32xf32> to vector<66x32xf32>
    %5 = arith.mulf %2, %4 : vector<66x32xf32>
    %c0_5 = arith.constant 0 : index
    %c0_6 = arith.constant 0 : index
    %6 = vector.load %arg4[%c0_5, %c0_6] : memref<1x32xf32, #tpu.memory_space<vmem>>, vector<1x32xf32>
    %7 = vector.broadcast %6 : vector<1x32xf32> to vector<66x32xf32>
    %8 = arith.addf %5, %7 : vector<66x32xf32>
    %c0_7 = arith.constant 0 : index
    %c0_8 = arith.constant 0 : index
    %9 = vector.load %arg5[%c0_7, %c0_8] : memref<66x32xbf16, #tpu.memory_space<vmem>>, vector<66x32xbf16>
    %10 = arith.extf %9 : vector<66x32xbf16> to vector<66x32xf32>
    %11 = arith.addf %8, %10 : vector<66x32xf32>
    %cst_9 = arith.constant 0.000000e+00 : f32
    %cst_10 = arith.constant 2.000000e+01 : f32
    %12 = vector.broadcast %cst_9 : f32 to vector<66x32xf32>
    %13 = arith.maximumf %12, %11 : vector<66x32xf32>
    %14 = vector.broadcast %cst_10 : f32 to vector<66x32xf32>
    %15 = arith.minimumf %14, %13 : vector<66x32xf32>
    %16 = arith.truncf %15 : vector<66x32xf32> to vector<66x32xbf16>
    %c0_11 = arith.constant 0 : index
    %c0_12 = arith.constant 0 : index
    %17 = vector.load %arg6[%c0_11, %c0_12] : memref<66x32xbf16, #tpu.memory_space<vmem>>, vector<66x32xbf16>
    tpu.vector_store %arg6[%c0_11, %c0_12], %16 {strides = array<i32>} : memref<66x32xbf16, #tpu.memory_space<vmem>>, vector<66x32xbf16>,
    return
  }
  func.func @transform_0(%arg0: i32) -> (i32, i32) {
    %c0_i32 = arith.constant 0 : i32
    %c0_i32_0 = arith.constant 0 : i32
    return %arg0, %c0_i32 : i32, i32
  }
  func.func @transform_1(%arg0: i32) -> (i32, i32) {
    %c0_i32 = arith.constant 0 : i32
    %c0_i32_0 = arith.constant 0 : i32
    %c0_i32_1 = arith.constant 0 : i32
    return %c0_i32, %c0_i32_0 : i32, i32
  }
  func.func @transform_2(%arg0: i32) -> (i32, i32) {
    %c0_i32 = arith.constant 0 : i32
    %c0_i32_0 = arith.constant 0 : i32
    %c0_i32_1 = arith.constant 0 : i32
    return %c0_i32, %c0_i32_0 : i32, i32
  }
  func.func @transform_3(%arg0: i32) -> (i32, i32) {
    %c0_i32 = arith.constant 0 : i32
    %c0_i32_0 = arith.constant 0 : i32
    %c0_i32_1 = arith.constant 0 : i32
    return %c0_i32, %c0_i32_0 : i32, i32
  }
  func.func @transform_4(%arg0: i32) -> (i32, i32) {
    %c0_i32 = arith.constant 0 : i32
    %c0_i32_0 = arith.constant 0 : i32
    return %arg0, %c0_i32 : i32, i32
  }
  func.func @transform_5(%arg0: i32) -> (i32, i32) {
    %c0_i32 = arith.constant 0 : i32
    %c0_i32_0 = arith.constant 0 : i32
    return %arg0, %c0_i32 : i32, i32
  }
}

module attributes {stable_mosaic.version = 11 : i64} {
  func.func @_mm_kernel(%arg0: i32, %arg1: memref<66x32xbf16, #tpu.memory_space<vmem>>, %arg2: memref<32x16xbf16, #tpu.memory_space<vmem>>, %arg3: memref<1x16xf32, #tpu.memory_space<vmem>>, %arg4: memref<1x16xf32, #tpu.memory_space<vmem>>, %arg5: memref<66x16xbf16, #tpu.memory_space<vmem>>) attributes {dimension_semantics = [#tpu.dimension_semantics<parallel>], iteration_bounds = array<i64: 1>, scalar_prefetch = 0 : i64, scratch_operands = 0 : i64, tpu.core_type = #tpu.core_type<tc>, window_params = [{transform_indices = @transform_0, window_bounds = array<i64: 66, 32>}, {pipeline_mode = #tpu.pipeline_mode<synchronous>, transform_indices = @transform_1, window_bounds = array<i64: 32, 16>}, {pipeline_mode = #tpu.pipeline_mode<synchronous>, transform_indices = @transform_2, window_bounds = array<i64: 1, 16>}, {pipeline_mode = #tpu.pipeline_mode<synchronous>, transform_indices = @transform_3, window_bounds = array<i64: 1, 16>}, {transform_indices = @transform_4, window_bounds = array<i64: 66, 16>}]} {
    %c0 = arith.constant 0 : index
    %c0_0 = arith.constant 0 : index
    %0 = vector.load %arg1[%c0, %c0_0] : memref<66x32xbf16, #tpu.memory_space<vmem>>, vector<66x32xbf16>
    %c0_1 = arith.constant 0 : index
    %c0_2 = arith.constant 0 : index
    %1 = vector.load %arg2[%c0_1, %c0_2] : memref<32x16xbf16, #tpu.memory_space<vmem>>, vector<32x16xbf16>
    %cst = arith.constant dense<0.000000e+00> : vector<66x16xf32>
    %2 = tpu.matmul %0, %1, %cst {dimension_numbers = #tpu.dot_dimension_numbers<[1], [0], [0], [1], [0, 0, 1, 1], [], []>} : vector<66x32xbf16>, vector<32x16xbf16>, vector<66x16xf32> -> vector<66x16xf32>
    %c0_3 = arith.constant 0 : index
    %c0_4 = arith.constant 0 : index
    %3 = vector.load %arg3[%c0_3, %c0_4] : memref<1x16xf32, #tpu.memory_space<vmem>>, vector<1x16xf32>
    %4 = vector.broadcast %3 : vector<1x16xf32> to vector<66x16xf32>
    %5 = arith.mulf %2, %4 : vector<66x16xf32>
    %c0_5 = arith.constant 0 : index
    %c0_6 = arith.constant 0 : index
    %6 = vector.load %arg4[%c0_5, %c0_6] : memref<1x16xf32, #tpu.memory_space<vmem>>, vector<1x16xf32>
    %7 = vector.broadcast %6 : vector<1x16xf32> to vector<66x16xf32>
    %8 = arith.addf %5, %7 : vector<66x16xf32>
    %cst_7 = arith.constant 0.000000e+00 : f32
    %cst_8 = arith.constant 2.000000e+01 : f32
    %9 = vector.broadcast %cst_7 : f32 to vector<66x16xf32>
    %10 = arith.maximumf %9, %8 : vector<66x16xf32>
    %11 = vector.broadcast %cst_8 : f32 to vector<66x16xf32>
    %12 = arith.minimumf %11, %10 : vector<66x16xf32>
    %13 = arith.truncf %12 : vector<66x16xf32> to vector<66x16xbf16>
    %c0_9 = arith.constant 0 : index
    %c0_10 = arith.constant 0 : index
    %14 = vector.load %arg5[%c0_9, %c0_10] : memref<66x16xbf16, #tpu.memory_space<vmem>>, vector<66x16xbf16>
    tpu.vector_store %arg5[%c0_9, %c0_10], %13 {strides = array<i32>} : memref<66x16xbf16, #tpu.memory_space<vmem>>, vector<66x16xbf16>,
    return
  }
  func.func @transform_0(%arg0: i32) -> (i32, i32) {
    %c0_i32 = arith.constant 0 : i32
    %c0_i32_0 = arith.constant 0 : i32
    return %arg0, %c0_i32 : i32, i32
  }
  func.func @transform_1(%arg0: i32) -> (i32, i32) {
    %c0_i32 = arith.constant 0 : i32
    %c0_i32_0 = arith.constant 0 : i32
    %c0_i32_1 = arith.constant 0 : i32
    return %c0_i32, %c0_i32_0 : i32, i32
  }
  func.func @transform_2(%arg0: i32) -> (i32, i32) {
    %c0_i32 = arith.constant 0 : i32
    %c0_i32_0 = arith.constant 0 : i32
    %c0_i32_1 = arith.constant 0 : i32
    return %c0_i32, %c0_i32_0 : i32, i32
  }
  func.func @transform_3(%arg0: i32) -> (i32, i32) {
    %c0_i32 = arith.constant 0 : i32
    %c0_i32_0 = arith.constant 0 : i32
    %c0_i32_1 = arith.constant 0 : i32
    return %c0_i32, %c0_i32_0 : i32, i32
  }
  func.func @transform_4(%arg0: i32) -> (i32, i32) {
    %c0_i32 = arith.constant 0 : i32
    %c0_i32_0 = arith.constant 0 : i32
    return %arg0, %c0_i32 : i32, i32
  }
}

module attributes {stable_mosaic.version = 11 : i64} {
  func.func @_bilstm_kernel(%arg0: memref<17x2x64xbf16, #tpu.memory_space<vmem>>, %arg1: memref<16x64xbf16, #tpu.memory_space<vmem>>, %arg2: memref<1x16xf32, #tpu.memory_space<vmem>>, %arg3: memref<1x16xf32, #tpu.memory_space<vmem>>, %arg4: memref<17x2x16xbf16, #tpu.memory_space<vmem>>) attributes {dimension_semantics = [], scalar_prefetch = 0 : i64, scratch_operands = 0 : i64, tpu.core_type = #tpu.core_type<tc>} {
    %c0 = arith.constant 0 : index
    %c0_0 = arith.constant 0 : index
    %0 = vector.load %arg1[%c0, %c0_0] : memref<16x64xbf16, #tpu.memory_space<vmem>>, vector<16x64xbf16>
    %c0_1 = arith.constant 0 : index
    %c0_2 = arith.constant 0 : index
    %1 = vector.load %arg2[%c0_1, %c0_2] : memref<1x16xf32, #tpu.memory_space<vmem>>, vector<1x16xf32>
    %c0_3 = arith.constant 0 : index
    %c0_4 = arith.constant 0 : index
    %2 = vector.load %arg3[%c0_3, %c0_4] : memref<1x16xf32, #tpu.memory_space<vmem>>, vector<1x16xf32>
    %3 = vector.extract_strided_slice %1 {offsets = [0, 0], sizes = [1, 8], strides = [1, 1]} : vector<1x16xf32> to vector<1x8xf32>
    %4 = vector.extract_strided_slice %2 {offsets = [0, 0], sizes = [1, 8], strides = [1, 1]} : vector<1x16xf32> to vector<1x8xf32>
    %5 = vector.extract_strided_slice %1 {offsets = [0, 8], sizes = [1, 8], strides = [1, 1]} : vector<1x16xf32> to vector<1x8xf32>
    %6 = vector.extract_strided_slice %2 {offsets = [0, 8], sizes = [1, 8], strides = [1, 1]} : vector<1x16xf32> to vector<1x8xf32>
    %cst = arith.constant 0.000000e+00 : f32
    %7 = vector.broadcast %cst : f32 to vector<2x8xf32>
    %c0_i32 = arith.constant 0 : i32
    %c17_i32 = arith.constant 17 : i32
    %8 = arith.addi %c0_i32, %c17_i32 : i32
    %c1_i32 = arith.constant 1 : i32
    %9:4 = scf.for %arg5 = %c0_i32 to %8 step %c1_i32 iter_args(%arg6 = %7, %arg7 = %7, %arg8 = %7, %arg9 = %7) -> (vector<2x8xf32>, vector<2x8xf32>, vector<2x8xf32>, vector<2x8xf32>)  : i32 {
      %c16_i32 = arith.constant 16 : i32
      %10 = arith.subi %c16_i32, %arg5 : i32
      %11 = tpu.concatenate %arg6, %arg8 in 1 : vector<2x8xf32>, vector<2x8xf32> -> vector<2x16xf32>
      %12 = arith.truncf %11 : vector<2x16xf32> to vector<2x16xbf16>
      %cst_6 = arith.constant dense<0.000000e+00> : vector<2x64xf32>
      %13 = tpu.matmul %12, %0, %cst_6 {dimension_numbers = #tpu.dot_dimension_numbers<[1], [0], [0], [1], [0, 0, 1, 1], [], []>} : vector<2x16xbf16>, vector<16x64xbf16>, vector<2x64xf32> -> vector<2x64xf32>
      %14 = arith.index_cast %arg5 : i32 to index
      %c0_7 = arith.constant 0 : index
      %c0_8 = arith.constant 0 : index
      %15 = vector.load %arg0[%14, %c0_7, %c0_8] : memref<17x2x64xbf16, #tpu.memory_space<vmem>>, vector<1x2x32xbf16>
      %16 = vector.shape_cast %15 : vector<1x2x32xbf16> to vector<2x32xbf16>
      %17 = arith.extf %16 : vector<2x32xbf16> to vector<2x32xf32>
      %18 = vector.extract_strided_slice %13 {offsets = [0, 0], sizes = [2, 32], strides = [1, 1]} : vector<2x64xf32> to vector<2x32xf32>
      %19 = arith.addf %17, %18 : vector<2x32xf32>
      %20 = arith.index_cast %10 : i32 to index
      %c0_9 = arith.constant 0 : index
      %c32 = arith.constant 32 : index
      %21 = vector.load %arg0[%20, %c0_9, %c32] : memref<17x2x64xbf16, #tpu.memory_space<vmem>>, vector<1x2x32xbf16>
      %22 = vector.shape_cast %21 : vector<1x2x32xbf16> to vector<2x32xbf16>
      %23 = arith.extf %22 : vector<2x32xbf16> to vector<2x32xf32>
      %24 = vector.extract_strided_slice %13 {offsets = [0, 32], sizes = [2, 32], strides = [1, 1]} : vector<2x64xf32> to vector<2x32xf32>
      %25 = arith.addf %23, %24 : vector<2x32xf32>
      %26 = vector.extract_strided_slice %19 {offsets = [0, 0], sizes = [2, 8], strides = [1, 1]} : vector<2x32xf32> to vector<2x8xf32>
      %27 = arith.negf %26 : vector<2x8xf32>
      %28 = math.exp %27 : vector<2x8xf32>
      %cst_10 = arith.constant 1.000000e+00 : f32
      %29 = vector.broadcast %cst_10 : f32 to vector<2x8xf32>
      %30 = arith.addf %29, %28 : vector<2x8xf32>
      %31 = arith.divf %29, %30 : vector<2x8xf32>
      %32 = vector.extract_strided_slice %19 {offsets = [0, 8], sizes = [2, 8], strides = [1, 1]} : vector<2x32xf32> to vector<2x8xf32>
      %33 = arith.negf %32 : vector<2x8xf32>
      %34 = math.exp %33 : vector<2x8xf32>
      %cst_11 = arith.constant 1.000000e+00 : f32
      %35 = vector.broadcast %cst_11 : f32 to vector<2x8xf32>
      %36 = arith.addf %35, %34 : vector<2x8xf32>
      %37 = arith.divf %35, %36 : vector<2x8xf32>
      %38 = vector.extract_strided_slice %19 {offsets = [0, 16], sizes = [2, 8], strides = [1, 1]} : vector<2x32xf32> to vector<2x8xf32>
      %39 = math.tanh %38 : vector<2x8xf32>
      %40 = vector.extract_strided_slice %19 {offsets = [0, 24], sizes = [2, 8], strides = [1, 1]} : vector<2x32xf32> to vector<2x8xf32>
      %41 = arith.negf %40 : vector<2x8xf32>
      %42 = math.exp %41 : vector<2x8xf32>
      %cst_12 = arith.constant 1.000000e+00 : f32
      %43 = vector.broadcast %cst_12 : f32 to vector<2x8xf32>
      %44 = arith.addf %43, %42 : vector<2x8xf32>
      %45 = arith.divf %43, %44 : vector<2x8xf32>
      %46 = arith.mulf %37, %arg7 : vector<2x8xf32>
      %47 = arith.mulf %31, %39 : vector<2x8xf32>
      %48 = arith.addf %46, %47 : vector<2x8xf32>
      %49 = math.tanh %48 : vector<2x8xf32>
      %50 = arith.mulf %45, %49 : vector<2x8xf32>
      %51 = vector.extract_strided_slice %25 {offsets = [0, 0], sizes = [2, 8], strides = [1, 1]} : vector<2x32xf32> to vector<2x8xf32>
      %52 = arith.negf %51 : vector<2x8xf32>
      %53 = math.exp %52 : vector<2x8xf32>
      %cst_13 = arith.constant 1.000000e+00 : f32
      %54 = vector.broadcast %cst_13 : f32 to vector<2x8xf32>
      %55 = arith.addf %54, %53 : vector<2x8xf32>
      %56 = arith.divf %54, %55 : vector<2x8xf32>
      %57 = vector.extract_strided_slice %25 {offsets = [0, 8], sizes = [2, 8], strides = [1, 1]} : vector<2x32xf32> to vector<2x8xf32>
      %58 = arith.negf %57 : vector<2x8xf32>
      %59 = math.exp %58 : vector<2x8xf32>
      %cst_14 = arith.constant 1.000000e+00 : f32
      %60 = vector.broadcast %cst_14 : f32 to vector<2x8xf32>
      %61 = arith.addf %60, %59 : vector<2x8xf32>
      %62 = arith.divf %60, %61 : vector<2x8xf32>
      %63 = vector.extract_strided_slice %25 {offsets = [0, 16], sizes = [2, 8], strides = [1, 1]} : vector<2x32xf32> to vector<2x8xf32>
      %64 = math.tanh %63 : vector<2x8xf32>
      %65 = vector.extract_strided_slice %25 {offsets = [0, 24], sizes = [2, 8], strides = [1, 1]} : vector<2x32xf32> to vector<2x8xf32>
      %66 = arith.negf %65 : vector<2x8xf32>
      %67 = math.exp %66 : vector<2x8xf32>
      %cst_15 = arith.constant 1.000000e+00 : f32
      %68 = vector.broadcast %cst_15 : f32 to vector<2x8xf32>
      %69 = arith.addf %68, %67 : vector<2x8xf32>
      %70 = arith.divf %68, %69 : vector<2x8xf32>
      %71 = arith.mulf %62, %arg9 : vector<2x8xf32>
      %72 = arith.mulf %56, %64 : vector<2x8xf32>
      %73 = arith.addf %71, %72 : vector<2x8xf32>
      %74 = math.tanh %73 : vector<2x8xf32>
      %75 = arith.mulf %70, %74 : vector<2x8xf32>
      %76 = vector.broadcast %3 : vector<1x8xf32> to vector<2x8xf32>
      %77 = arith.mulf %50, %76 : vector<2x8xf32>
      %78 = vector.broadcast %4 : vector<1x8xf32> to vector<2x8xf32>
      %79 = arith.addf %77, %78 : vector<2x8xf32>
      %cst_16 = arith.constant 0.000000e+00 : f32
      %cst_17 = arith.constant 2.000000e+01 : f32
      %80 = vector.broadcast %cst_16 : f32 to vector<2x8xf32>
      %81 = arith.maximumf %80, %79 : vector<2x8xf32>
      %82 = vector.broadcast %cst_17 : f32 to vector<2x8xf32>
      %83 = arith.minimumf %82, %81 : vector<2x8xf32>
      %84 = arith.truncf %83 : vector<2x8xf32> to vector<2x8xbf16>
      %85 = arith.index_cast %arg5 : i32 to index
      %c0_18 = arith.constant 0 : index
      %c0_19 = arith.constant 0 : index
      %86 = vector.load %arg4[%85, %c0_18, %c0_19] : memref<17x2x16xbf16, #tpu.memory_space<vmem>>, vector<1x2x8xbf16>
      %87 = vector.shape_cast %86 : vector<1x2x8xbf16> to vector<2x8xbf16>
      %88 = vector.shape_cast %84 : vector<2x8xbf16> to vector<1x2x8xbf16>
      tpu.vector_store %arg4[%85, %c0_18, %c0_19], %88 {strides = array<i32>} : memref<17x2x16xbf16, #tpu.memory_space<vmem>>, vector<1x2x8xbf16>,
      %89 = vector.broadcast %5 : vector<1x8xf32> to vector<2x8xf32>
      %90 = arith.mulf %75, %89 : vector<2x8xf32>
      %91 = vector.broadcast %6 : vector<1x8xf32> to vector<2x8xf32>
      %92 = arith.addf %90, %91 : vector<2x8xf32>
      %cst_20 = arith.constant 0.000000e+00 : f32
      %cst_21 = arith.constant 2.000000e+01 : f32
      %93 = vector.broadcast %cst_20 : f32 to vector<2x8xf32>
      %94 = arith.maximumf %93, %92 : vector<2x8xf32>
      %95 = vector.broadcast %cst_21 : f32 to vector<2x8xf32>
      %96 = arith.minimumf %95, %94 : vector<2x8xf32>
      %97 = arith.truncf %96 : vector<2x8xf32> to vector<2x8xbf16>
      %98 = arith.index_cast %10 : i32 to index
      %c0_22 = arith.constant 0 : index
      %c8 = arith.constant 8 : index
      %99 = vector.load %arg4[%98, %c0_22, %c8] : memref<17x2x16xbf16, #tpu.memory_space<vmem>>, vector<1x2x8xbf16>
      %100 = vector.shape_cast %99 : vector<1x2x8xbf16> to vector<2x8xbf16>
      %101 = vector.shape_cast %97 : vector<2x8xbf16> to vector<1x2x8xbf16>
      tpu.vector_store %arg4[%98, %c0_22, %c8], %101 {strides = array<i32>} : memref<17x2x16xbf16, #tpu.memory_space<vmem>>, vector<1x2x8xbf16>,
      scf.yield %50, %48, %75, %73 : vector<2x8xf32>, vector<2x8xf32>, vector<2x8xf32>, vector<2x8xf32>
    }
    %c17_i32_5 = arith.constant 17 : i32
    return
  }
}

module attributes {stable_mosaic.version = 11 : i64} {
  func.func @_mm_kernel(%arg0: i32, %arg1: memref<34x32xbf16, #tpu.memory_space<vmem>>, %arg2: memref<32x32xbf16, #tpu.memory_space<vmem>>, %arg3: memref<1x32xf32, #tpu.memory_space<vmem>>, %arg4: memref<1x32xf32, #tpu.memory_space<vmem>>, %arg5: memref<34x32xbf16, #tpu.memory_space<vmem>>) attributes {dimension_semantics = [#tpu.dimension_semantics<parallel>], iteration_bounds = array<i64: 1>, scalar_prefetch = 0 : i64, scratch_operands = 0 : i64, tpu.core_type = #tpu.core_type<tc>, window_params = [{transform_indices = @transform_0, window_bounds = array<i64: 34, 32>}, {pipeline_mode = #tpu.pipeline_mode<synchronous>, transform_indices = @transform_1, window_bounds = array<i64: 32, 32>}, {pipeline_mode = #tpu.pipeline_mode<synchronous>, transform_indices = @transform_2, window_bounds = array<i64: 1, 32>}, {pipeline_mode = #tpu.pipeline_mode<synchronous>, transform_indices = @transform_3, window_bounds = array<i64: 1, 32>}, {transform_indices = @transform_4, window_bounds = array<i64: 34, 32>}]} {
    %c0 = arith.constant 0 : index
    %c0_0 = arith.constant 0 : index
    %0 = vector.load %arg1[%c0, %c0_0] : memref<34x32xbf16, #tpu.memory_space<vmem>>, vector<34x32xbf16>
    %c0_1 = arith.constant 0 : index
    %c0_2 = arith.constant 0 : index
    %1 = vector.load %arg2[%c0_1, %c0_2] : memref<32x32xbf16, #tpu.memory_space<vmem>>, vector<32x32xbf16>
    %cst = arith.constant dense<0.000000e+00> : vector<34x32xf32>
    %2 = tpu.matmul %0, %1, %cst {dimension_numbers = #tpu.dot_dimension_numbers<[1], [0], [0], [1], [0, 0, 1, 1], [], []>} : vector<34x32xbf16>, vector<32x32xbf16>, vector<34x32xf32> -> vector<34x32xf32>
    %c0_3 = arith.constant 0 : index
    %c0_4 = arith.constant 0 : index
    %3 = vector.load %arg3[%c0_3, %c0_4] : memref<1x32xf32, #tpu.memory_space<vmem>>, vector<1x32xf32>
    %4 = vector.broadcast %3 : vector<1x32xf32> to vector<34x32xf32>
    %5 = arith.mulf %2, %4 : vector<34x32xf32>
    %c0_5 = arith.constant 0 : index
    %c0_6 = arith.constant 0 : index
    %6 = vector.load %arg4[%c0_5, %c0_6] : memref<1x32xf32, #tpu.memory_space<vmem>>, vector<1x32xf32>
    %7 = vector.broadcast %6 : vector<1x32xf32> to vector<34x32xf32>
    %8 = arith.addf %5, %7 : vector<34x32xf32>
    %cst_7 = arith.constant 0.000000e+00 : f32
    %cst_8 = arith.constant 2.000000e+01 : f32
    %9 = vector.broadcast %cst_7 : f32 to vector<34x32xf32>
    %10 = arith.maximumf %9, %8 : vector<34x32xf32>
    %11 = vector.broadcast %cst_8 : f32 to vector<34x32xf32>
    %12 = arith.minimumf %11, %10 : vector<34x32xf32>
    %13 = arith.truncf %12 : vector<34x32xf32> to vector<34x32xbf16>
    %c0_9 = arith.constant 0 : index
    %c0_10 = arith.constant 0 : index
    %14 = vector.load %arg5[%c0_9, %c0_10] : memref<34x32xbf16, #tpu.memory_space<vmem>>, vector<34x32xbf16>
    tpu.vector_store %arg5[%c0_9, %c0_10], %13 {strides = array<i32>} : memref<34x32xbf16, #tpu.memory_space<vmem>>, vector<34x32xbf16>,
    return
  }
  func.func @transform_0(%arg0: i32) -> (i32, i32) {
    %c0_i32 = arith.constant 0 : i32
    %c0_i32_0 = arith.constant 0 : i32
    return %arg0, %c0_i32 : i32, i32
  }
  func.func @transform_1(%arg0: i32) -> (i32, i32) {
    %c0_i32 = arith.constant 0 : i32
    %c0_i32_0 = arith.constant 0 : i32
    %c0_i32_1 = arith.constant 0 : i32
    return %c0_i32, %c0_i32_0 : i32, i32
  }
  func.func @transform_2(%arg0: i32) -> (i32, i32) {
    %c0_i32 = arith.constant 0 : i32
    %c0_i32_0 = arith.constant 0 : i32
    %c0_i32_1 = arith.constant 0 : i32
    return %c0_i32, %c0_i32_0 : i32, i32
  }
  func.func @transform_3(%arg0: i32) -> (i32, i32) {
    %c0_i32 = arith.constant 0 : i32
    %c0_i32_0 = arith.constant 0 : i32
    %c0_i32_1 = arith.constant 0 : i32
    return %c0_i32, %c0_i32_0 : i32, i32
  }
  func.func @transform_4(%arg0: i32) -> (i32, i32) {
    %c0_i32 = arith.constant 0 : i32
    %c0_i32_0 = arith.constant 0 : i32
    return %arg0, %c0_i32 : i32, i32
  }
}

module attributes {stable_mosaic.version = 11 : i64} {
  func.func @_mm_kernel(%arg0: i32, %arg1: memref<34x16xbf16, #tpu.memory_space<vmem>>, %arg2: memref<16x64xbf16, #tpu.memory_space<vmem>>, %arg3: memref<1x64xf32, #tpu.memory_space<vmem>>, %arg4: memref<1x64xf32, #tpu.memory_space<vmem>>, %arg5: memref<34x64xbf16, #tpu.memory_space<vmem>>) attributes {dimension_semantics = [#tpu.dimension_semantics<parallel>], iteration_bounds = array<i64: 1>, scalar_prefetch = 0 : i64, scratch_operands = 0 : i64, tpu.core_type = #tpu.core_type<tc>, window_params = [{transform_indices = @transform_0, window_bounds = array<i64: 34, 16>}, {pipeline_mode = #tpu.pipeline_mode<synchronous>, transform_indices = @transform_1, window_bounds = array<i64: 16, 64>}, {pipeline_mode = #tpu.pipeline_mode<synchronous>, transform_indices = @transform_2, window_bounds = array<i64: 1, 64>}, {pipeline_mode = #tpu.pipeline_mode<synchronous>, transform_indices = @transform_3, window_bounds = array<i64: 1, 64>}, {transform_indices = @transform_4, window_bounds = array<i64: 34, 64>}]} {
    %c0 = arith.constant 0 : index
    %c0_0 = arith.constant 0 : index
    %0 = vector.load %arg1[%c0, %c0_0] : memref<34x16xbf16, #tpu.memory_space<vmem>>, vector<34x16xbf16>
    %c0_1 = arith.constant 0 : index
    %c0_2 = arith.constant 0 : index
    %1 = vector.load %arg2[%c0_1, %c0_2] : memref<16x64xbf16, #tpu.memory_space<vmem>>, vector<16x64xbf16>
    %cst = arith.constant dense<0.000000e+00> : vector<34x64xf32>
    %2 = tpu.matmul %0, %1, %cst {dimension_numbers = #tpu.dot_dimension_numbers<[1], [0], [0], [1], [0, 0, 1, 1], [], []>} : vector<34x16xbf16>, vector<16x64xbf16>, vector<34x64xf32> -> vector<34x64xf32>
    %c0_3 = arith.constant 0 : index
    %c0_4 = arith.constant 0 : index
    %3 = vector.load %arg3[%c0_3, %c0_4] : memref<1x64xf32, #tpu.memory_space<vmem>>, vector<1x64xf32>
    %4 = vector.broadcast %3 : vector<1x64xf32> to vector<34x64xf32>
    %5 = arith.mulf %2, %4 : vector<34x64xf32>
    %c0_5 = arith.constant 0 : index
    %c0_6 = arith.constant 0 : index
    %6 = vector.load %arg4[%c0_5, %c0_6] : memref<1x64xf32, #tpu.memory_space<vmem>>, vector<1x64xf32>
    %7 = vector.broadcast %6 : vector<1x64xf32> to vector<34x64xf32>
    %8 = arith.addf %5, %7 : vector<34x64xf32>
    %9 = arith.truncf %8 : vector<34x64xf32> to vector<34x64xbf16>
    %c0_7 = arith.constant 0 : index
    %c0_8 = arith.constant 0 : index
    %10 = vector.load %arg5[%c0_7, %c0_8] : memref<34x64xbf16, #tpu.memory_space<vmem>>, vector<34x64xbf16>
    tpu.vector_store %arg5[%c0_7, %c0_8], %9 {strides = array<i32>} : memref<34x64xbf16, #tpu.memory_space<vmem>>, vector<34x64xbf16>,
    return
  }
  func.func @transform_0(%arg0: i32) -> (i32, i32) {
    %c0_i32 = arith.constant 0 : i32
    %c0_i32_0 = arith.constant 0 : i32
    return %arg0, %c0_i32 : i32, i32
  }
  func.func @transform_1(%arg0: i32) -> (i32, i32) {
    %c0_i32 = arith.constant 0 : i32
    %c0_i32_0 = arith.constant 0 : i32
    %c0_i32_1 = arith.constant 0 : i32
    return %c0_i32, %c0_i32_0 : i32, i32
  }
  func.func @transform_2(%arg0: i32) -> (i32, i32) {
    %c0_i32 = arith.constant 0 : i32
    %c0_i32_0 = arith.constant 0 : i32
    %c0_i32_1 = arith.constant 0 : i32
    return %c0_i32, %c0_i32_0 : i32, i32
  }
  func.func @transform_3(%arg0: i32) -> (i32, i32) {
    %c0_i32 = arith.constant 0 : i32
    %c0_i32_0 = arith.constant 0 : i32
    %c0_i32_1 = arith.constant 0 : i32
    return %c0_i32, %c0_i32_0 : i32, i32
  }
  func.func @transform_4(%arg0: i32) -> (i32, i32) {
    %c0_i32 = arith.constant 0 : i32
    %c0_i32_0 = arith.constant 0 : i32
    return %arg0, %c0_i32 : i32, i32
  }
}

module attributes {stable_mosaic.version = 11 : i64} {
  func.func @_mm_kernel(%arg0: i32, %arg1: memref<34x32xbf16, #tpu.memory_space<vmem>>, %arg2: memref<32x64xbf16, #tpu.memory_space<vmem>>, %arg3: memref<1x64xf32, #tpu.memory_space<vmem>>, %arg4: memref<1x64xf32, #tpu.memory_space<vmem>>, %arg5: memref<34x64xbf16, #tpu.memory_space<vmem>>) attributes {dimension_semantics = [#tpu.dimension_semantics<parallel>], iteration_bounds = array<i64: 1>, scalar_prefetch = 0 : i64, scratch_operands = 0 : i64, tpu.core_type = #tpu.core_type<tc>, window_params = [{transform_indices = @transform_0, window_bounds = array<i64: 34, 32>}, {pipeline_mode = #tpu.pipeline_mode<synchronous>, transform_indices = @transform_1, window_bounds = array<i64: 32, 64>}, {pipeline_mode = #tpu.pipeline_mode<synchronous>, transform_indices = @transform_2, window_bounds = array<i64: 1, 64>}, {pipeline_mode = #tpu.pipeline_mode<synchronous>, transform_indices = @transform_3, window_bounds = array<i64: 1, 64>}, {transform_indices = @transform_4, window_bounds = array<i64: 34, 64>}]} {
    %c0 = arith.constant 0 : index
    %c0_0 = arith.constant 0 : index
    %0 = vector.load %arg1[%c0, %c0_0] : memref<34x32xbf16, #tpu.memory_space<vmem>>, vector<34x32xbf16>
    %c0_1 = arith.constant 0 : index
    %c0_2 = arith.constant 0 : index
    %1 = vector.load %arg2[%c0_1, %c0_2] : memref<32x64xbf16, #tpu.memory_space<vmem>>, vector<32x64xbf16>
    %cst = arith.constant dense<0.000000e+00> : vector<34x64xf32>
    %2 = tpu.matmul %0, %1, %cst {dimension_numbers = #tpu.dot_dimension_numbers<[1], [0], [0], [1], [0, 0, 1, 1], [], []>} : vector<34x32xbf16>, vector<32x64xbf16>, vector<34x64xf32> -> vector<34x64xf32>
    %c0_3 = arith.constant 0 : index
    %c0_4 = arith.constant 0 : index
    %3 = vector.load %arg3[%c0_3, %c0_4] : memref<1x64xf32, #tpu.memory_space<vmem>>, vector<1x64xf32>
    %4 = vector.broadcast %3 : vector<1x64xf32> to vector<34x64xf32>
    %5 = arith.mulf %2, %4 : vector<34x64xf32>
    %c0_5 = arith.constant 0 : index
    %c0_6 = arith.constant 0 : index
    %6 = vector.load %arg4[%c0_5, %c0_6] : memref<1x64xf32, #tpu.memory_space<vmem>>, vector<1x64xf32>
    %7 = vector.broadcast %6 : vector<1x64xf32> to vector<34x64xf32>
    %8 = arith.addf %5, %7 : vector<34x64xf32>
    %9 = arith.truncf %8 : vector<34x64xf32> to vector<34x64xbf16>
    %c0_7 = arith.constant 0 : index
    %c0_8 = arith.constant 0 : index
    %10 = vector.load %arg5[%c0_7, %c0_8] : memref<34x64xbf16, #tpu.memory_space<vmem>>, vector<34x64xbf16>
    tpu.vector_store %arg5[%c0_7, %c0_8], %9 {strides = array<i32>} : memref<34x64xbf16, #tpu.memory_space<vmem>>, vector<34x64xbf16>,
    return
  }
  func.func @transform_0(%arg0: i32) -> (i32, i32) {
    %c0_i32 = arith.constant 0 : i32
    %c0_i32_0 = arith.constant 0 : i32
    return %arg0, %c0_i32 : i32, i32
  }
  func.func @transform_1(%arg0: i32) -> (i32, i32) {
    %c0_i32 = arith.constant 0 : i32
    %c0_i32_0 = arith.constant 0 : i32
    %c0_i32_1 = arith.constant 0 : i32
    return %c0_i32, %c0_i32_0 : i32, i32
  }
  func.func @transform_2(%arg0: i32) -> (i32, i32) {
    %c0_i32 = arith.constant 0 : i32
    %c0_i32_0 = arith.constant 0 : i32
    %c0_i32_1 = arith.constant 0 : i32
    return %c0_i32, %c0_i32_0 : i32, i32
  }
  func.func @transform_3(%arg0: i32) -> (i32, i32) {
    %c0_i32 = arith.constant 0 : i32
    %c0_i32_0 = arith.constant 0 : i32
    %c0_i32_1 = arith.constant 0 : i32
    return %c0_i32, %c0_i32_0 : i32, i32
  }
  func.func @transform_4(%arg0: i32) -> (i32, i32) {
    %c0_i32 = arith.constant 0 : i32
    %c0_i32_0 = arith.constant 0 : i32
    return %arg0, %c0_i32 : i32, i32
  }
}

module attributes {stable_mosaic.version = 11 : i64} {
  func.func @_mm_kernel(%arg0: i32, %arg1: memref<34x32xbf16, #tpu.memory_space<vmem>>, %arg2: memref<32x64xbf16, #tpu.memory_space<vmem>>, %arg3: memref<1x64xf32, #tpu.memory_space<vmem>>, %arg4: memref<1x64xf32, #tpu.memory_space<vmem>>, %arg5: memref<34x64xbf16, #tpu.memory_space<vmem>>, %arg6: memref<34x64xbf16, #tpu.memory_space<vmem>>) attributes {dimension_semantics = [#tpu.dimension_semantics<parallel>], iteration_bounds = array<i64: 1>, scalar_prefetch = 0 : i64, scratch_operands = 0 : i64, tpu.core_type = #tpu.core_type<tc>, window_params = [{transform_indices = @transform_0, window_bounds = array<i64: 34, 32>}, {pipeline_mode = #tpu.pipeline_mode<synchronous>, transform_indices = @transform_1, window_bounds = array<i64: 32, 64>}, {pipeline_mode = #tpu.pipeline_mode<synchronous>, transform_indices = @transform_2, window_bounds = array<i64: 1, 64>}, {pipeline_mode = #tpu.pipeline_mode<synchronous>, transform_indices = @transform_3, window_bounds = array<i64: 1, 64>}, {transform_indices = @transform_4, window_bounds = array<i64: 34, 64>}, {transform_indices = @transform_5, window_bounds = array<i64: 34, 64>}]} {
    %c0 = arith.constant 0 : index
    %c0_0 = arith.constant 0 : index
    %0 = vector.load %arg1[%c0, %c0_0] : memref<34x32xbf16, #tpu.memory_space<vmem>>, vector<34x32xbf16>
    %c0_1 = arith.constant 0 : index
    %c0_2 = arith.constant 0 : index
    %1 = vector.load %arg2[%c0_1, %c0_2] : memref<32x64xbf16, #tpu.memory_space<vmem>>, vector<32x64xbf16>
    %cst = arith.constant dense<0.000000e+00> : vector<34x64xf32>
    %2 = tpu.matmul %0, %1, %cst {dimension_numbers = #tpu.dot_dimension_numbers<[1], [0], [0], [1], [0, 0, 1, 1], [], []>} : vector<34x32xbf16>, vector<32x64xbf16>, vector<34x64xf32> -> vector<34x64xf32>
    %c0_3 = arith.constant 0 : index
    %c0_4 = arith.constant 0 : index
    %3 = vector.load %arg3[%c0_3, %c0_4] : memref<1x64xf32, #tpu.memory_space<vmem>>, vector<1x64xf32>
    %4 = vector.broadcast %3 : vector<1x64xf32> to vector<34x64xf32>
    %5 = arith.mulf %2, %4 : vector<34x64xf32>
    %c0_5 = arith.constant 0 : index
    %c0_6 = arith.constant 0 : index
    %6 = vector.load %arg4[%c0_5, %c0_6] : memref<1x64xf32, #tpu.memory_space<vmem>>, vector<1x64xf32>
    %7 = vector.broadcast %6 : vector<1x64xf32> to vector<34x64xf32>
    %8 = arith.addf %5, %7 : vector<34x64xf32>
    %c0_7 = arith.constant 0 : index
    %c0_8 = arith.constant 0 : index
    %9 = vector.load %arg5[%c0_7, %c0_8] : memref<34x64xbf16, #tpu.memory_space<vmem>>, vector<34x64xbf16>
    %10 = arith.extf %9 : vector<34x64xbf16> to vector<34x64xf32>
    %11 = arith.addf %8, %10 : vector<34x64xf32>
    %cst_9 = arith.constant 0.000000e+00 : f32
    %cst_10 = arith.constant 2.000000e+01 : f32
    %12 = vector.broadcast %cst_9 : f32 to vector<34x64xf32>
    %13 = arith.maximumf %12, %11 : vector<34x64xf32>
    %14 = vector.broadcast %cst_10 : f32 to vector<34x64xf32>
    %15 = arith.minimumf %14, %13 : vector<34x64xf32>
    %16 = arith.truncf %15 : vector<34x64xf32> to vector<34x64xbf16>
    %c0_11 = arith.constant 0 : index
    %c0_12 = arith.constant 0 : index
    %17 = vector.load %arg6[%c0_11, %c0_12] : memref<34x64xbf16, #tpu.memory_space<vmem>>, vector<34x64xbf16>
    tpu.vector_store %arg6[%c0_11, %c0_12], %16 {strides = array<i32>} : memref<34x64xbf16, #tpu.memory_space<vmem>>, vector<34x64xbf16>,
    return
  }
  func.func @transform_0(%arg0: i32) -> (i32, i32) {
    %c0_i32 = arith.constant 0 : i32
    %c0_i32_0 = arith.constant 0 : i32
    return %arg0, %c0_i32 : i32, i32
  }
  func.func @transform_1(%arg0: i32) -> (i32, i32) {
    %c0_i32 = arith.constant 0 : i32
    %c0_i32_0 = arith.constant 0 : i32
    %c0_i32_1 = arith.constant 0 : i32
    return %c0_i32, %c0_i32_0 : i32, i32
  }
  func.func @transform_2(%arg0: i32) -> (i32, i32) {
    %c0_i32 = arith.constant 0 : i32
    %c0_i32_0 = arith.constant 0 : i32
    %c0_i32_1 = arith.constant 0 : i32
    return %c0_i32, %c0_i32_0 : i32, i32
  }
  func.func @transform_3(%arg0: i32) -> (i32, i32) {
    %c0_i32 = arith.constant 0 : i32
    %c0_i32_0 = arith.constant 0 : i32
    %c0_i32_1 = arith.constant 0 : i32
    return %c0_i32, %c0_i32_0 : i32, i32
  }
  func.func @transform_4(%arg0: i32) -> (i32, i32) {
    %c0_i32 = arith.constant 0 : i32
    %c0_i32_0 = arith.constant 0 : i32
    return %arg0, %c0_i32 : i32, i32
  }
  func.func @transform_5(%arg0: i32) -> (i32, i32) {
    %c0_i32 = arith.constant 0 : i32
    %c0_i32_0 = arith.constant 0 : i32
    return %arg0, %c0_i32 : i32, i32
  }
}

module attributes {stable_mosaic.version = 11 : i64} {
  func.func @_mm_kernel(%arg0: i32, %arg1: memref<34x64xbf16, #tpu.memory_space<vmem>>, %arg2: memref<64x32xbf16, #tpu.memory_space<vmem>>, %arg3: memref<1x32xf32, #tpu.memory_space<vmem>>, %arg4: memref<1x32xf32, #tpu.memory_space<vmem>>, %arg5: memref<34x32xbf16, #tpu.memory_space<vmem>>) attributes {dimension_semantics = [#tpu.dimension_semantics<parallel>], iteration_bounds = array<i64: 1>, scalar_prefetch = 0 : i64, scratch_operands = 0 : i64, tpu.core_type = #tpu.core_type<tc>, window_params = [{transform_indices = @transform_0, window_bounds = array<i64: 34, 64>}, {pipeline_mode = #tpu.pipeline_mode<synchronous>, transform_indices = @transform_1, window_bounds = array<i64: 64, 32>}, {pipeline_mode = #tpu.pipeline_mode<synchronous>, transform_indices = @transform_2, window_bounds = array<i64: 1, 32>}, {pipeline_mode = #tpu.pipeline_mode<synchronous>, transform_indices = @transform_3, window_bounds = array<i64: 1, 32>}, {transform_indices = @transform_4, window_bounds = array<i64: 34, 32>}]} {
    %c0 = arith.constant 0 : index
    %c0_0 = arith.constant 0 : index
    %0 = vector.load %arg1[%c0, %c0_0] : memref<34x64xbf16, #tpu.memory_space<vmem>>, vector<34x64xbf16>
    %c0_1 = arith.constant 0 : index
    %c0_2 = arith.constant 0 : index
    %1 = vector.load %arg2[%c0_1, %c0_2] : memref<64x32xbf16, #tpu.memory_space<vmem>>, vector<64x32xbf16>
    %cst = arith.constant dense<0.000000e+00> : vector<34x32xf32>
    %2 = tpu.matmul %0, %1, %cst {dimension_numbers = #tpu.dot_dimension_numbers<[1], [0], [0], [1], [0, 0, 1, 1], [], []>} : vector<34x64xbf16>, vector<64x32xbf16>, vector<34x32xf32> -> vector<34x32xf32>
    %c0_3 = arith.constant 0 : index
    %c0_4 = arith.constant 0 : index
    %3 = vector.load %arg3[%c0_3, %c0_4] : memref<1x32xf32, #tpu.memory_space<vmem>>, vector<1x32xf32>
    %4 = vector.broadcast %3 : vector<1x32xf32> to vector<34x32xf32>
    %5 = arith.mulf %2, %4 : vector<34x32xf32>
    %c0_5 = arith.constant 0 : index
    %c0_6 = arith.constant 0 : index
    %6 = vector.load %arg4[%c0_5, %c0_6] : memref<1x32xf32, #tpu.memory_space<vmem>>, vector<1x32xf32>
    %7 = vector.broadcast %6 : vector<1x32xf32> to vector<34x32xf32>
    %8 = arith.addf %5, %7 : vector<34x32xf32>
    %cst_7 = arith.constant 0.000000e+00 : f32
    %cst_8 = arith.constant 2.000000e+01 : f32
    %9 = vector.broadcast %cst_7 : f32 to vector<34x32xf32>
    %10 = arith.maximumf %9, %8 : vector<34x32xf32>
    %11 = vector.broadcast %cst_8 : f32 to vector<34x32xf32>
    %12 = arith.minimumf %11, %10 : vector<34x32xf32>
    %13 = arith.truncf %12 : vector<34x32xf32> to vector<34x32xbf16>
    %c0_9 = arith.constant 0 : index
    %c0_10 = arith.constant 0 : index
    %14 = vector.load %arg5[%c0_9, %c0_10] : memref<34x32xbf16, #tpu.memory_space<vmem>>, vector<34x32xbf16>
    tpu.vector_store %arg5[%c0_9, %c0_10], %13 {strides = array<i32>} : memref<34x32xbf16, #tpu.memory_space<vmem>>, vector<34x32xbf16>,
    return
  }
  func.func @transform_0(%arg0: i32) -> (i32, i32) {
    %c0_i32 = arith.constant 0 : i32
    %c0_i32_0 = arith.constant 0 : i32
    return %arg0, %c0_i32 : i32, i32
  }
  func.func @transform_1(%arg0: i32) -> (i32, i32) {
    %c0_i32 = arith.constant 0 : i32
    %c0_i32_0 = arith.constant 0 : i32
    %c0_i32_1 = arith.constant 0 : i32
    return %c0_i32, %c0_i32_0 : i32, i32
  }
  func.func @transform_2(%arg0: i32) -> (i32, i32) {
    %c0_i32 = arith.constant 0 : i32
    %c0_i32_0 = arith.constant 0 : i32
    %c0_i32_1 = arith.constant 0 : i32
    return %c0_i32, %c0_i32_0 : i32, i32
  }
  func.func @transform_3(%arg0: i32) -> (i32, i32) {
    %c0_i32 = arith.constant 0 : i32
    %c0_i32_0 = arith.constant 0 : i32
    %c0_i32_1 = arith.constant 0 : i32
    return %c0_i32, %c0_i32_0 : i32, i32
  }
  func.func @transform_4(%arg0: i32) -> (i32, i32) {
    %c0_i32 = arith.constant 0 : i32
    %c0_i32_0 = arith.constant 0 : i32
    return %arg0, %c0_i32 : i32, i32
  }
}

module attributes {stable_mosaic.version = 11 : i64} {
  func.func @_mm_kernel(%arg0: i32, %arg1: memref<18x64xbf16, #tpu.memory_space<vmem>>, %arg2: memref<64x64xbf16, #tpu.memory_space<vmem>>, %arg3: memref<1x64xf32, #tpu.memory_space<vmem>>, %arg4: memref<1x64xf32, #tpu.memory_space<vmem>>, %arg5: memref<18x64xbf16, #tpu.memory_space<vmem>>) attributes {dimension_semantics = [#tpu.dimension_semantics<parallel>], iteration_bounds = array<i64: 1>, scalar_prefetch = 0 : i64, scratch_operands = 0 : i64, tpu.core_type = #tpu.core_type<tc>, window_params = [{transform_indices = @transform_0, window_bounds = array<i64: 18, 64>}, {pipeline_mode = #tpu.pipeline_mode<synchronous>, transform_indices = @transform_1, window_bounds = array<i64: 64, 64>}, {pipeline_mode = #tpu.pipeline_mode<synchronous>, transform_indices = @transform_2, window_bounds = array<i64: 1, 64>}, {pipeline_mode = #tpu.pipeline_mode<synchronous>, transform_indices = @transform_3, window_bounds = array<i64: 1, 64>}, {transform_indices = @transform_4, window_bounds = array<i64: 18, 64>}]} {
    %c0 = arith.constant 0 : index
    %c0_0 = arith.constant 0 : index
    %0 = vector.load %arg1[%c0, %c0_0] : memref<18x64xbf16, #tpu.memory_space<vmem>>, vector<18x64xbf16>
    %c0_1 = arith.constant 0 : index
    %c0_2 = arith.constant 0 : index
    %1 = vector.load %arg2[%c0_1, %c0_2] : memref<64x64xbf16, #tpu.memory_space<vmem>>, vector<64x64xbf16>
    %cst = arith.constant dense<0.000000e+00> : vector<18x64xf32>
    %2 = tpu.matmul %0, %1, %cst {dimension_numbers = #tpu.dot_dimension_numbers<[1], [0], [0], [1], [0, 0, 1, 1], [], []>} : vector<18x64xbf16>, vector<64x64xbf16>, vector<18x64xf32> -> vector<18x64xf32>
    %c0_3 = arith.constant 0 : index
    %c0_4 = arith.constant 0 : index
    %3 = vector.load %arg3[%c0_3, %c0_4] : memref<1x64xf32, #tpu.memory_space<vmem>>, vector<1x64xf32>
    %4 = vector.broadcast %3 : vector<1x64xf32> to vector<18x64xf32>
    %5 = arith.mulf %2, %4 : vector<18x64xf32>
    %c0_5 = arith.constant 0 : index
    %c0_6 = arith.constant 0 : index
    %6 = vector.load %arg4[%c0_5, %c0_6] : memref<1x64xf32, #tpu.memory_space<vmem>>, vector<1x64xf32>
    %7 = vector.broadcast %6 : vector<1x64xf32> to vector<18x64xf32>
    %8 = arith.addf %5, %7 : vector<18x64xf32>
    %cst_7 = arith.constant 0.000000e+00 : f32
    %cst_8 = arith.constant 2.000000e+01 : f32
    %9 = vector.broadcast %cst_7 : f32 to vector<18x64xf32>
    %10 = arith.maximumf %9, %8 : vector<18x64xf32>
    %11 = vector.broadcast %cst_8 : f32 to vector<18x64xf32>
    %12 = arith.minimumf %11, %10 : vector<18x64xf32>
    %13 = arith.truncf %12 : vector<18x64xf32> to vector<18x64xbf16>
    %c0_9 = arith.constant 0 : index
    %c0_10 = arith.constant 0 : index
    %14 = vector.load %arg5[%c0_9, %c0_10] : memref<18x64xbf16, #tpu.memory_space<vmem>>, vector<18x64xbf16>
    tpu.vector_store %arg5[%c0_9, %c0_10], %13 {strides = array<i32>} : memref<18x64xbf16, #tpu.memory_space<vmem>>, vector<18x64xbf16>,
    return
  }
  func.func @transform_0(%arg0: i32) -> (i32, i32) {
    %c0_i32 = arith.constant 0 : i32
    %c0_i32_0 = arith.constant 0 : i32
    return %arg0, %c0_i32 : i32, i32
  }
  func.func @transform_1(%arg0: i32) -> (i32, i32) {
    %c0_i32 = arith.constant 0 : i32
    %c0_i32_0 = arith.constant 0 : i32
    %c0_i32_1 = arith.constant 0 : i32
    return %c0_i32, %c0_i32_0 : i32, i32
  }
  func.func @transform_2(%arg0: i32) -> (i32, i32) {
    %c0_i32 = arith.constant 0 : i32
    %c0_i32_0 = arith.constant 0 : i32
    %c0_i32_1 = arith.constant 0 : i32
    return %c0_i32, %c0_i32_0 : i32, i32
  }
  func.func @transform_3(%arg0: i32) -> (i32, i32) {
    %c0_i32 = arith.constant 0 : i32
    %c0_i32_0 = arith.constant 0 : i32
    %c0_i32_1 = arith.constant 0 : i32
    return %c0_i32, %c0_i32_0 : i32, i32
  }
  func.func @transform_4(%arg0: i32) -> (i32, i32) {
    %c0_i32 = arith.constant 0 : i32
    %c0_i32_0 = arith.constant 0 : i32
    return %arg0, %c0_i32 : i32, i32
  }
}

module attributes {stable_mosaic.version = 11 : i64} {
  func.func @_mm_kernel(%arg0: i32, %arg1: memref<18x32xbf16, #tpu.memory_space<vmem>>, %arg2: memref<32x128xbf16, #tpu.memory_space<vmem>>, %arg3: memref<1x128xf32, #tpu.memory_space<vmem>>, %arg4: memref<1x128xf32, #tpu.memory_space<vmem>>, %arg5: memref<18x128xbf16, #tpu.memory_space<vmem>>) attributes {dimension_semantics = [#tpu.dimension_semantics<parallel>], iteration_bounds = array<i64: 1>, scalar_prefetch = 0 : i64, scratch_operands = 0 : i64, tpu.core_type = #tpu.core_type<tc>, window_params = [{transform_indices = @transform_0, window_bounds = array<i64: 18, 32>}, {pipeline_mode = #tpu.pipeline_mode<synchronous>, transform_indices = @transform_1, window_bounds = array<i64: 32, 128>}, {pipeline_mode = #tpu.pipeline_mode<synchronous>, transform_indices = @transform_2, window_bounds = array<i64: 1, 128>}, {pipeline_mode = #tpu.pipeline_mode<synchronous>, transform_indices = @transform_3, window_bounds = array<i64: 1, 128>}, {transform_indices = @transform_4, window_bounds = array<i64: 18, 128>}]} {
    %c0 = arith.constant 0 : index
    %c0_0 = arith.constant 0 : index
    %0 = vector.load %arg1[%c0, %c0_0] : memref<18x32xbf16, #tpu.memory_space<vmem>>, vector<18x32xbf16>
    %c0_1 = arith.constant 0 : index
    %c0_2 = arith.constant 0 : index
    %1 = vector.load %arg2[%c0_1, %c0_2] : memref<32x128xbf16, #tpu.memory_space<vmem>>, vector<32x128xbf16>
    %cst = arith.constant dense<0.000000e+00> : vector<18x128xf32>
    %2 = tpu.matmul %0, %1, %cst {dimension_numbers = #tpu.dot_dimension_numbers<[1], [0], [0], [1], [0, 0, 1, 1], [], []>} : vector<18x32xbf16>, vector<32x128xbf16>, vector<18x128xf32> -> vector<18x128xf32>
    %c0_3 = arith.constant 0 : index
    %c0_4 = arith.constant 0 : index
    %3 = vector.load %arg3[%c0_3, %c0_4] : memref<1x128xf32, #tpu.memory_space<vmem>>, vector<1x128xf32>
    %4 = vector.broadcast %3 : vector<1x128xf32> to vector<18x128xf32>
    %5 = arith.mulf %2, %4 : vector<18x128xf32>
    %c0_5 = arith.constant 0 : index
    %c0_6 = arith.constant 0 : index
    %6 = vector.load %arg4[%c0_5, %c0_6] : memref<1x128xf32, #tpu.memory_space<vmem>>, vector<1x128xf32>
    %7 = vector.broadcast %6 : vector<1x128xf32> to vector<18x128xf32>
    %8 = arith.addf %5, %7 : vector<18x128xf32>
    %9 = arith.truncf %8 : vector<18x128xf32> to vector<18x128xbf16>
    %c0_7 = arith.constant 0 : index
    %c0_8 = arith.constant 0 : index
    %10 = vector.load %arg5[%c0_7, %c0_8] : memref<18x128xbf16, #tpu.memory_space<vmem>>, vector<18x128xbf16>
    tpu.vector_store %arg5[%c0_7, %c0_8], %9 {strides = array<i32>} : memref<18x128xbf16, #tpu.memory_space<vmem>>, vector<18x128xbf16>,
    return
  }
  func.func @transform_0(%arg0: i32) -> (i32, i32) {
    %c0_i32 = arith.constant 0 : i32
    %c0_i32_0 = arith.constant 0 : i32
    return %arg0, %c0_i32 : i32, i32
  }
  func.func @transform_1(%arg0: i32) -> (i32, i32) {
    %c0_i32 = arith.constant 0 : i32
    %c0_i32_0 = arith.constant 0 : i32
    %c0_i32_1 = arith.constant 0 : i32
    return %c0_i32, %c0_i32_0 : i32, i32
  }
  func.func @transform_2(%arg0: i32) -> (i32, i32) {
    %c0_i32 = arith.constant 0 : i32
    %c0_i32_0 = arith.constant 0 : i32
    %c0_i32_1 = arith.constant 0 : i32
    return %c0_i32, %c0_i32_0 : i32, i32
  }
  func.func @transform_3(%arg0: i32) -> (i32, i32) {
    %c0_i32 = arith.constant 0 : i32
    %c0_i32_0 = arith.constant 0 : i32
    %c0_i32_1 = arith.constant 0 : i32
    return %c0_i32, %c0_i32_0 : i32, i32
  }
  func.func @transform_4(%arg0: i32) -> (i32, i32) {
    %c0_i32 = arith.constant 0 : i32
    %c0_i32_0 = arith.constant 0 : i32
    return %arg0, %c0_i32 : i32, i32
  }
}

module attributes {stable_mosaic.version = 11 : i64} {
  func.func @_mm_kernel(%arg0: i32, %arg1: memref<18x64xbf16, #tpu.memory_space<vmem>>, %arg2: memref<64x128xbf16, #tpu.memory_space<vmem>>, %arg3: memref<1x128xf32, #tpu.memory_space<vmem>>, %arg4: memref<1x128xf32, #tpu.memory_space<vmem>>, %arg5: memref<18x128xbf16, #tpu.memory_space<vmem>>) attributes {dimension_semantics = [#tpu.dimension_semantics<parallel>], iteration_bounds = array<i64: 1>, scalar_prefetch = 0 : i64, scratch_operands = 0 : i64, tpu.core_type = #tpu.core_type<tc>, window_params = [{transform_indices = @transform_0, window_bounds = array<i64: 18, 64>}, {pipeline_mode = #tpu.pipeline_mode<synchronous>, transform_indices = @transform_1, window_bounds = array<i64: 64, 128>}, {pipeline_mode = #tpu.pipeline_mode<synchronous>, transform_indices = @transform_2, window_bounds = array<i64: 1, 128>}, {pipeline_mode = #tpu.pipeline_mode<synchronous>, transform_indices = @transform_3, window_bounds = array<i64: 1, 128>}, {transform_indices = @transform_4, window_bounds = array<i64: 18, 128>}]} {
    %c0 = arith.constant 0 : index
    %c0_0 = arith.constant 0 : index
    %0 = vector.load %arg1[%c0, %c0_0] : memref<18x64xbf16, #tpu.memory_space<vmem>>, vector<18x64xbf16>
    %c0_1 = arith.constant 0 : index
    %c0_2 = arith.constant 0 : index
    %1 = vector.load %arg2[%c0_1, %c0_2] : memref<64x128xbf16, #tpu.memory_space<vmem>>, vector<64x128xbf16>
    %cst = arith.constant dense<0.000000e+00> : vector<18x128xf32>
    %2 = tpu.matmul %0, %1, %cst {dimension_numbers = #tpu.dot_dimension_numbers<[1], [0], [0], [1], [0, 0, 1, 1], [], []>} : vector<18x64xbf16>, vector<64x128xbf16>, vector<18x128xf32> -> vector<18x128xf32>
    %c0_3 = arith.constant 0 : index
    %c0_4 = arith.constant 0 : index
    %3 = vector.load %arg3[%c0_3, %c0_4] : memref<1x128xf32, #tpu.memory_space<vmem>>, vector<1x128xf32>
    %4 = vector.broadcast %3 : vector<1x128xf32> to vector<18x128xf32>
    %5 = arith.mulf %2, %4 : vector<18x128xf32>
    %c0_5 = arith.constant 0 : index
    %c0_6 = arith.constant 0 : index
    %6 = vector.load %arg4[%c0_5, %c0_6] : memref<1x128xf32, #tpu.memory_space<vmem>>, vector<1x128xf32>
    %7 = vector.broadcast %6 : vector<1x128xf32> to vector<18x128xf32>
    %8 = arith.addf %5, %7 : vector<18x128xf32>
    %9 = arith.truncf %8 : vector<18x128xf32> to vector<18x128xbf16>
    %c0_7 = arith.constant 0 : index
    %c0_8 = arith.constant 0 : index
    %10 = vector.load %arg5[%c0_7, %c0_8] : memref<18x128xbf16, #tpu.memory_space<vmem>>, vector<18x128xbf16>
    tpu.vector_store %arg5[%c0_7, %c0_8], %9 {strides = array<i32>} : memref<18x128xbf16, #tpu.memory_space<vmem>>, vector<18x128xbf16>,
    return
  }
  func.func @transform_0(%arg0: i32) -> (i32, i32) {
    %c0_i32 = arith.constant 0 : i32
    %c0_i32_0 = arith.constant 0 : i32
    return %arg0, %c0_i32 : i32, i32
  }
  func.func @transform_1(%arg0: i32) -> (i32, i32) {
    %c0_i32 = arith.constant 0 : i32
    %c0_i32_0 = arith.constant 0 : i32
    %c0_i32_1 = arith.constant 0 : i32
    return %c0_i32, %c0_i32_0 : i32, i32
  }
  func.func @transform_2(%arg0: i32) -> (i32, i32) {
    %c0_i32 = arith.constant 0 : i32
    %c0_i32_0 = arith.constant 0 : i32
    %c0_i32_1 = arith.constant 0 : i32
    return %c0_i32, %c0_i32_0 : i32, i32
  }
  func.func @transform_3(%arg0: i32) -> (i32, i32) {
    %c0_i32 = arith.constant 0 : i32
    %c0_i32_0 = arith.constant 0 : i32
    %c0_i32_1 = arith.constant 0 : i32
    return %c0_i32, %c0_i32_0 : i32, i32
  }
  func.func @transform_4(%arg0: i32) -> (i32, i32) {
    %c0_i32 = arith.constant 0 : i32
    %c0_i32_0 = arith.constant 0 : i32
    return %arg0, %c0_i32 : i32, i32
  }
}

module attributes {stable_mosaic.version = 11 : i64} {
  func.func @_bilstm_kernel(%arg0: memref<9x2x128xbf16, #tpu.memory_space<vmem>>, %arg1: memref<32x128xbf16, #tpu.memory_space<vmem>>, %arg2: memref<1x32xf32, #tpu.memory_space<vmem>>, %arg3: memref<1x32xf32, #tpu.memory_space<vmem>>, %arg4: memref<9x2x32xbf16, #tpu.memory_space<vmem>>) attributes {dimension_semantics = [], scalar_prefetch = 0 : i64, scratch_operands = 0 : i64, tpu.core_type = #tpu.core_type<tc>} {
    %c0 = arith.constant 0 : index
    %c0_0 = arith.constant 0 : index
    %0 = vector.load %arg1[%c0, %c0_0] : memref<32x128xbf16, #tpu.memory_space<vmem>>, vector<32x128xbf16>
    %c0_1 = arith.constant 0 : index
    %c0_2 = arith.constant 0 : index
    %1 = vector.load %arg2[%c0_1, %c0_2] : memref<1x32xf32, #tpu.memory_space<vmem>>, vector<1x32xf32>
    %c0_3 = arith.constant 0 : index
    %c0_4 = arith.constant 0 : index
    %2 = vector.load %arg3[%c0_3, %c0_4] : memref<1x32xf32, #tpu.memory_space<vmem>>, vector<1x32xf32>
    %3 = vector.extract_strided_slice %1 {offsets = [0, 0], sizes = [1, 16], strides = [1, 1]} : vector<1x32xf32> to vector<1x16xf32>
    %4 = vector.extract_strided_slice %2 {offsets = [0, 0], sizes = [1, 16], strides = [1, 1]} : vector<1x32xf32> to vector<1x16xf32>
    %5 = vector.extract_strided_slice %1 {offsets = [0, 16], sizes = [1, 16], strides = [1, 1]} : vector<1x32xf32> to vector<1x16xf32>
    %6 = vector.extract_strided_slice %2 {offsets = [0, 16], sizes = [1, 16], strides = [1, 1]} : vector<1x32xf32> to vector<1x16xf32>
    %cst = arith.constant 0.000000e+00 : f32
    %7 = vector.broadcast %cst : f32 to vector<2x16xf32>
    %c0_i32 = arith.constant 0 : i32
    %c9_i32 = arith.constant 9 : i32
    %8 = arith.addi %c0_i32, %c9_i32 : i32
    %c1_i32 = arith.constant 1 : i32
    %9:4 = scf.for %arg5 = %c0_i32 to %8 step %c1_i32 iter_args(%arg6 = %7, %arg7 = %7, %arg8 = %7, %arg9 = %7) -> (vector<2x16xf32>, vector<2x16xf32>, vector<2x16xf32>, vector<2x16xf32>)  : i32 {
      %c8_i32 = arith.constant 8 : i32
      %10 = arith.subi %c8_i32, %arg5 : i32
      %11 = tpu.concatenate %arg6, %arg8 in 1 : vector<2x16xf32>, vector<2x16xf32> -> vector<2x32xf32>
      %12 = arith.truncf %11 : vector<2x32xf32> to vector<2x32xbf16>
      %cst_6 = arith.constant dense<0.000000e+00> : vector<2x128xf32>
      %13 = tpu.matmul %12, %0, %cst_6 {dimension_numbers = #tpu.dot_dimension_numbers<[1], [0], [0], [1], [0, 0, 1, 1], [], []>} : vector<2x32xbf16>, vector<32x128xbf16>, vector<2x128xf32> -> vector<2x128xf32>
      %14 = arith.index_cast %arg5 : i32 to index
      %c0_7 = arith.constant 0 : index
      %c0_8 = arith.constant 0 : index
      %15 = vector.load %arg0[%14, %c0_7, %c0_8] : memref<9x2x128xbf16, #tpu.memory_space<vmem>>, vector<1x2x64xbf16>
      %16 = vector.shape_cast %15 : vector<1x2x64xbf16> to vector<2x64xbf16>
      %17 = arith.extf %16 : vector<2x64xbf16> to vector<2x64xf32>
      %18 = vector.extract_strided_slice %13 {offsets = [0, 0], sizes = [2, 64], strides = [1, 1]} : vector<2x128xf32> to vector<2x64xf32>
      %19 = arith.addf %17, %18 : vector<2x64xf32>
      %20 = arith.index_cast %10 : i32 to index
      %c0_9 = arith.constant 0 : index
      %c64 = arith.constant 64 : index
      %21 = vector.load %arg0[%20, %c0_9, %c64] : memref<9x2x128xbf16, #tpu.memory_space<vmem>>, vector<1x2x64xbf16>
      %22 = vector.shape_cast %21 : vector<1x2x64xbf16> to vector<2x64xbf16>
      %23 = arith.extf %22 : vector<2x64xbf16> to vector<2x64xf32>
      %24 = vector.extract_strided_slice %13 {offsets = [0, 64], sizes = [2, 64], strides = [1, 1]} : vector<2x128xf32> to vector<2x64xf32>
      %25 = arith.addf %23, %24 : vector<2x64xf32>
      %26 = vector.extract_strided_slice %19 {offsets = [0, 0], sizes = [2, 16], strides = [1, 1]} : vector<2x64xf32> to vector<2x16xf32>
      %27 = arith.negf %26 : vector<2x16xf32>
      %28 = math.exp %27 : vector<2x16xf32>
      %cst_10 = arith.constant 1.000000e+00 : f32
      %29 = vector.broadcast %cst_10 : f32 to vector<2x16xf32>
      %30 = arith.addf %29, %28 : vector<2x16xf32>
      %31 = arith.divf %29, %30 : vector<2x16xf32>
      %32 = vector.extract_strided_slice %19 {offsets = [0, 16], sizes = [2, 16], strides = [1, 1]} : vector<2x64xf32> to vector<2x16xf32>
      %33 = arith.negf %32 : vector<2x16xf32>
      %34 = math.exp %33 : vector<2x16xf32>
      %cst_11 = arith.constant 1.000000e+00 : f32
      %35 = vector.broadcast %cst_11 : f32 to vector<2x16xf32>
      %36 = arith.addf %35, %34 : vector<2x16xf32>
      %37 = arith.divf %35, %36 : vector<2x16xf32>
      %38 = vector.extract_strided_slice %19 {offsets = [0, 32], sizes = [2, 16], strides = [1, 1]} : vector<2x64xf32> to vector<2x16xf32>
      %39 = math.tanh %38 : vector<2x16xf32>
      %40 = vector.extract_strided_slice %19 {offsets = [0, 48], sizes = [2, 16], strides = [1, 1]} : vector<2x64xf32> to vector<2x16xf32>
      %41 = arith.negf %40 : vector<2x16xf32>
      %42 = math.exp %41 : vector<2x16xf32>
      %cst_12 = arith.constant 1.000000e+00 : f32
      %43 = vector.broadcast %cst_12 : f32 to vector<2x16xf32>
      %44 = arith.addf %43, %42 : vector<2x16xf32>
      %45 = arith.divf %43, %44 : vector<2x16xf32>
      %46 = arith.mulf %37, %arg7 : vector<2x16xf32>
      %47 = arith.mulf %31, %39 : vector<2x16xf32>
      %48 = arith.addf %46, %47 : vector<2x16xf32>
      %49 = math.tanh %48 : vector<2x16xf32>
      %50 = arith.mulf %45, %49 : vector<2x16xf32>
      %51 = vector.extract_strided_slice %25 {offsets = [0, 0], sizes = [2, 16], strides = [1, 1]} : vector<2x64xf32> to vector<2x16xf32>
      %52 = arith.negf %51 : vector<2x16xf32>
      %53 = math.exp %52 : vector<2x16xf32>
      %cst_13 = arith.constant 1.000000e+00 : f32
      %54 = vector.broadcast %cst_13 : f32 to vector<2x16xf32>
      %55 = arith.addf %54, %53 : vector<2x16xf32>
      %56 = arith.divf %54, %55 : vector<2x16xf32>
      %57 = vector.extract_strided_slice %25 {offsets = [0, 16], sizes = [2, 16], strides = [1, 1]} : vector<2x64xf32> to vector<2x16xf32>
      %58 = arith.negf %57 : vector<2x16xf32>
      %59 = math.exp %58 : vector<2x16xf32>
      %cst_14 = arith.constant 1.000000e+00 : f32
      %60 = vector.broadcast %cst_14 : f32 to vector<2x16xf32>
      %61 = arith.addf %60, %59 : vector<2x16xf32>
      %62 = arith.divf %60, %61 : vector<2x16xf32>
      %63 = vector.extract_strided_slice %25 {offsets = [0, 32], sizes = [2, 16], strides = [1, 1]} : vector<2x64xf32> to vector<2x16xf32>
      %64 = math.tanh %63 : vector<2x16xf32>
      %65 = vector.extract_strided_slice %25 {offsets = [0, 48], sizes = [2, 16], strides = [1, 1]} : vector<2x64xf32> to vector<2x16xf32>
      %66 = arith.negf %65 : vector<2x16xf32>
      %67 = math.exp %66 : vector<2x16xf32>
      %cst_15 = arith.constant 1.000000e+00 : f32
      %68 = vector.broadcast %cst_15 : f32 to vector<2x16xf32>
      %69 = arith.addf %68, %67 : vector<2x16xf32>
      %70 = arith.divf %68, %69 : vector<2x16xf32>
      %71 = arith.mulf %62, %arg9 : vector<2x16xf32>
      %72 = arith.mulf %56, %64 : vector<2x16xf32>
      %73 = arith.addf %71, %72 : vector<2x16xf32>
      %74 = math.tanh %73 : vector<2x16xf32>
      %75 = arith.mulf %70, %74 : vector<2x16xf32>
      %76 = vector.broadcast %3 : vector<1x16xf32> to vector<2x16xf32>
      %77 = arith.mulf %50, %76 : vector<2x16xf32>
      %78 = vector.broadcast %4 : vector<1x16xf32> to vector<2x16xf32>
      %79 = arith.addf %77, %78 : vector<2x16xf32>
      %cst_16 = arith.constant 0.000000e+00 : f32
      %cst_17 = arith.constant 2.000000e+01 : f32
      %80 = vector.broadcast %cst_16 : f32 to vector<2x16xf32>
      %81 = arith.maximumf %80, %79 : vector<2x16xf32>
      %82 = vector.broadcast %cst_17 : f32 to vector<2x16xf32>
      %83 = arith.minimumf %82, %81 : vector<2x16xf32>
      %84 = arith.truncf %83 : vector<2x16xf32> to vector<2x16xbf16>
      %85 = arith.index_cast %arg5 : i32 to index
      %c0_18 = arith.constant 0 : index
      %c0_19 = arith.constant 0 : index
      %86 = vector.load %arg4[%85, %c0_18, %c0_19] : memref<9x2x32xbf16, #tpu.memory_space<vmem>>, vector<1x2x16xbf16>
      %87 = vector.shape_cast %86 : vector<1x2x16xbf16> to vector<2x16xbf16>
      %88 = vector.shape_cast %84 : vector<2x16xbf16> to vector<1x2x16xbf16>
      tpu.vector_store %arg4[%85, %c0_18, %c0_19], %88 {strides = array<i32>} : memref<9x2x32xbf16, #tpu.memory_space<vmem>>, vector<1x2x16xbf16>,
      %89 = vector.broadcast %5 : vector<1x16xf32> to vector<2x16xf32>
      %90 = arith.mulf %75, %89 : vector<2x16xf32>
      %91 = vector.broadcast %6 : vector<1x16xf32> to vector<2x16xf32>
      %92 = arith.addf %90, %91 : vector<2x16xf32>
      %cst_20 = arith.constant 0.000000e+00 : f32
      %cst_21 = arith.constant 2.000000e+01 : f32
      %93 = vector.broadcast %cst_20 : f32 to vector<2x16xf32>
      %94 = arith.maximumf %93, %92 : vector<2x16xf32>
      %95 = vector.broadcast %cst_21 : f32 to vector<2x16xf32>
      %96 = arith.minimumf %95, %94 : vector<2x16xf32>
      %97 = arith.truncf %96 : vector<2x16xf32> to vector<2x16xbf16>
      %98 = arith.index_cast %10 : i32 to index
      %c0_22 = arith.constant 0 : index
      %c16 = arith.constant 16 : index
      %99 = vector.load %arg4[%98, %c0_22, %c16] : memref<9x2x32xbf16, #tpu.memory_space<vmem>>, vector<1x2x16xbf16>
      %100 = vector.shape_cast %99 : vector<1x2x16xbf16> to vector<2x16xbf16>
      %101 = vector.shape_cast %97 : vector<2x16xbf16> to vector<1x2x16xbf16>
      tpu.vector_store %arg4[%98, %c0_22, %c16], %101 {strides = array<i32>} : memref<9x2x32xbf16, #tpu.memory_space<vmem>>, vector<1x2x16xbf16>,
      scf.yield %50, %48, %75, %73 : vector<2x16xf32>, vector<2x16xf32>, vector<2x16xf32>, vector<2x16xf32>
    }
    %c9_i32_5 = arith.constant 9 : i32
    return
  }
}

module attributes {stable_mosaic.version = 11 : i64} {
  func.func @_mm_kernel(%arg0: i32, %arg1: memref<18x64xbf16, #tpu.memory_space<vmem>>, %arg2: memref<64x128xbf16, #tpu.memory_space<vmem>>, %arg3: memref<1x128xf32, #tpu.memory_space<vmem>>, %arg4: memref<1x128xf32, #tpu.memory_space<vmem>>, %arg5: memref<18x128xbf16, #tpu.memory_space<vmem>>, %arg6: memref<18x128xbf16, #tpu.memory_space<vmem>>) attributes {dimension_semantics = [#tpu.dimension_semantics<parallel>], iteration_bounds = array<i64: 1>, scalar_prefetch = 0 : i64, scratch_operands = 0 : i64, tpu.core_type = #tpu.core_type<tc>, window_params = [{transform_indices = @transform_0, window_bounds = array<i64: 18, 64>}, {pipeline_mode = #tpu.pipeline_mode<synchronous>, transform_indices = @transform_1, window_bounds = array<i64: 64, 128>}, {pipeline_mode = #tpu.pipeline_mode<synchronous>, transform_indices = @transform_2, window_bounds = array<i64: 1, 128>}, {pipeline_mode = #tpu.pipeline_mode<synchronous>, transform_indices = @transform_3, window_bounds = array<i64: 1, 128>}, {transform_indices = @transform_4, window_bounds = array<i64: 18, 128>}, {transform_indices = @transform_5, window_bounds = array<i64: 18, 128>}]} {
    %c0 = arith.constant 0 : index
    %c0_0 = arith.constant 0 : index
    %0 = vector.load %arg1[%c0, %c0_0] : memref<18x64xbf16, #tpu.memory_space<vmem>>, vector<18x64xbf16>
    %c0_1 = arith.constant 0 : index
    %c0_2 = arith.constant 0 : index
    %1 = vector.load %arg2[%c0_1, %c0_2] : memref<64x128xbf16, #tpu.memory_space<vmem>>, vector<64x128xbf16>
    %cst = arith.constant dense<0.000000e+00> : vector<18x128xf32>
    %2 = tpu.matmul %0, %1, %cst {dimension_numbers = #tpu.dot_dimension_numbers<[1], [0], [0], [1], [0, 0, 1, 1], [], []>} : vector<18x64xbf16>, vector<64x128xbf16>, vector<18x128xf32> -> vector<18x128xf32>
    %c0_3 = arith.constant 0 : index
    %c0_4 = arith.constant 0 : index
    %3 = vector.load %arg3[%c0_3, %c0_4] : memref<1x128xf32, #tpu.memory_space<vmem>>, vector<1x128xf32>
    %4 = vector.broadcast %3 : vector<1x128xf32> to vector<18x128xf32>
    %5 = arith.mulf %2, %4 : vector<18x128xf32>
    %c0_5 = arith.constant 0 : index
    %c0_6 = arith.constant 0 : index
    %6 = vector.load %arg4[%c0_5, %c0_6] : memref<1x128xf32, #tpu.memory_space<vmem>>, vector<1x128xf32>
    %7 = vector.broadcast %6 : vector<1x128xf32> to vector<18x128xf32>
    %8 = arith.addf %5, %7 : vector<18x128xf32>
    %c0_7 = arith.constant 0 : index
    %c0_8 = arith.constant 0 : index
    %9 = vector.load %arg5[%c0_7, %c0_8] : memref<18x128xbf16, #tpu.memory_space<vmem>>, vector<18x128xbf16>
    %10 = arith.extf %9 : vector<18x128xbf16> to vector<18x128xf32>
    %11 = arith.addf %8, %10 : vector<18x128xf32>
    %cst_9 = arith.constant 0.000000e+00 : f32
    %cst_10 = arith.constant 2.000000e+01 : f32
    %12 = vector.broadcast %cst_9 : f32 to vector<18x128xf32>
    %13 = arith.maximumf %12, %11 : vector<18x128xf32>
    %14 = vector.broadcast %cst_10 : f32 to vector<18x128xf32>
    %15 = arith.minimumf %14, %13 : vector<18x128xf32>
    %16 = arith.truncf %15 : vector<18x128xf32> to vector<18x128xbf16>
    %c0_11 = arith.constant 0 : index
    %c0_12 = arith.constant 0 : index
    %17 = vector.load %arg6[%c0_11, %c0_12] : memref<18x128xbf16, #tpu.memory_space<vmem>>, vector<18x128xbf16>
    tpu.vector_store %arg6[%c0_11, %c0_12], %16 {strides = array<i32>} : memref<18x128xbf16, #tpu.memory_space<vmem>>, vector<18x128xbf16>,
    return
  }
  func.func @transform_0(%arg0: i32) -> (i32, i32) {
    %c0_i32 = arith.constant 0 : i32
    %c0_i32_0 = arith.constant 0 : i32
    return %arg0, %c0_i32 : i32, i32
  }
  func.func @transform_1(%arg0: i32) -> (i32, i32) {
    %c0_i32 = arith.constant 0 : i32
    %c0_i32_0 = arith.constant 0 : i32
    %c0_i32_1 = arith.constant 0 : i32
    return %c0_i32, %c0_i32_0 : i32, i32
  }
  func.func @transform_2(%arg0: i32) -> (i32, i32) {
    %c0_i32 = arith.constant 0 : i32
    %c0_i32_0 = arith.constant 0 : i32
    %c0_i32_1 = arith.constant 0 : i32
    return %c0_i32, %c0_i32_0 : i32, i32
  }
  func.func @transform_3(%arg0: i32) -> (i32, i32) {
    %c0_i32 = arith.constant 0 : i32
    %c0_i32_0 = arith.constant 0 : i32
    %c0_i32_1 = arith.constant 0 : i32
    return %c0_i32, %c0_i32_0 : i32, i32
  }
  func.func @transform_4(%arg0: i32) -> (i32, i32) {
    %c0_i32 = arith.constant 0 : i32
    %c0_i32_0 = arith.constant 0 : i32
    return %arg0, %c0_i32 : i32, i32
  }
  func.func @transform_5(%arg0: i32) -> (i32, i32) {
    %c0_i32 = arith.constant 0 : i32
    %c0_i32_0 = arith.constant 0 : i32
    return %arg0, %c0_i32 : i32, i32
  }
}

module attributes {stable_mosaic.version = 11 : i64} {
  func.func @_mm_kernel(%arg0: i32, %arg1: memref<18x128xbf16, #tpu.memory_space<vmem>>, %arg2: memref<128x64xbf16, #tpu.memory_space<vmem>>, %arg3: memref<1x64xf32, #tpu.memory_space<vmem>>, %arg4: memref<1x64xf32, #tpu.memory_space<vmem>>, %arg5: memref<18x64xbf16, #tpu.memory_space<vmem>>) attributes {dimension_semantics = [#tpu.dimension_semantics<parallel>], iteration_bounds = array<i64: 1>, scalar_prefetch = 0 : i64, scratch_operands = 0 : i64, tpu.core_type = #tpu.core_type<tc>, window_params = [{transform_indices = @transform_0, window_bounds = array<i64: 18, 128>}, {pipeline_mode = #tpu.pipeline_mode<synchronous>, transform_indices = @transform_1, window_bounds = array<i64: 128, 64>}, {pipeline_mode = #tpu.pipeline_mode<synchronous>, transform_indices = @transform_2, window_bounds = array<i64: 1, 64>}, {pipeline_mode = #tpu.pipeline_mode<synchronous>, transform_indices = @transform_3, window_bounds = array<i64: 1, 64>}, {transform_indices = @transform_4, window_bounds = array<i64: 18, 64>}]} {
    %c0 = arith.constant 0 : index
    %c0_0 = arith.constant 0 : index
    %0 = vector.load %arg1[%c0, %c0_0] : memref<18x128xbf16, #tpu.memory_space<vmem>>, vector<18x128xbf16>
    %c0_1 = arith.constant 0 : index
    %c0_2 = arith.constant 0 : index
    %1 = vector.load %arg2[%c0_1, %c0_2] : memref<128x64xbf16, #tpu.memory_space<vmem>>, vector<128x64xbf16>
    %cst = arith.constant dense<0.000000e+00> : vector<18x64xf32>
    %2 = tpu.matmul %0, %1, %cst {dimension_numbers = #tpu.dot_dimension_numbers<[1], [0], [0], [1], [0, 0, 1, 1], [], []>} : vector<18x128xbf16>, vector<128x64xbf16>, vector<18x64xf32> -> vector<18x64xf32>
    %c0_3 = arith.constant 0 : index
    %c0_4 = arith.constant 0 : index
    %3 = vector.load %arg3[%c0_3, %c0_4] : memref<1x64xf32, #tpu.memory_space<vmem>>, vector<1x64xf32>
    %4 = vector.broadcast %3 : vector<1x64xf32> to vector<18x64xf32>
    %5 = arith.mulf %2, %4 : vector<18x64xf32>
    %c0_5 = arith.constant 0 : index
    %c0_6 = arith.constant 0 : index
    %6 = vector.load %arg4[%c0_5, %c0_6] : memref<1x64xf32, #tpu.memory_space<vmem>>, vector<1x64xf32>
    %7 = vector.broadcast %6 : vector<1x64xf32> to vector<18x64xf32>
    %8 = arith.addf %5, %7 : vector<18x64xf32>
    %cst_7 = arith.constant 0.000000e+00 : f32
    %cst_8 = arith.constant 2.000000e+01 : f32
    %9 = vector.broadcast %cst_7 : f32 to vector<18x64xf32>
    %10 = arith.maximumf %9, %8 : vector<18x64xf32>
    %11 = vector.broadcast %cst_8 : f32 to vector<18x64xf32>
    %12 = arith.minimumf %11, %10 : vector<18x64xf32>
    %13 = arith.truncf %12 : vector<18x64xf32> to vector<18x64xbf16>
    %c0_9 = arith.constant 0 : index
    %c0_10 = arith.constant 0 : index
    %14 = vector.load %arg5[%c0_9, %c0_10] : memref<18x64xbf16, #tpu.memory_space<vmem>>, vector<18x64xbf16>
    tpu.vector_store %arg5[%c0_9, %c0_10], %13 {strides = array<i32>} : memref<18x64xbf16, #tpu.memory_space<vmem>>, vector<18x64xbf16>,
    return
  }
  func.func @transform_0(%arg0: i32) -> (i32, i32) {
    %c0_i32 = arith.constant 0 : i32
    %c0_i32_0 = arith.constant 0 : i32
    return %arg0, %c0_i32 : i32, i32
  }
  func.func @transform_1(%arg0: i32) -> (i32, i32) {
    %c0_i32 = arith.constant 0 : i32
    %c0_i32_0 = arith.constant 0 : i32
    %c0_i32_1 = arith.constant 0 : i32
    return %c0_i32, %c0_i32_0 : i32, i32
  }
  func.func @transform_2(%arg0: i32) -> (i32, i32) {
    %c0_i32 = arith.constant 0 : i32
    %c0_i32_0 = arith.constant 0 : i32
    %c0_i32_1 = arith.constant 0 : i32
    return %c0_i32, %c0_i32_0 : i32, i32
  }
  func.func @transform_3(%arg0: i32) -> (i32, i32) {
    %c0_i32 = arith.constant 0 : i32
    %c0_i32_0 = arith.constant 0 : i32
    %c0_i32_1 = arith.constant 0 : i32
    return %c0_i32, %c0_i32_0 : i32, i32
  }
  func.func @transform_4(%arg0: i32) -> (i32, i32) {
    %c0_i32 = arith.constant 0 : i32
    %c0_i32_0 = arith.constant 0 : i32
    return %arg0, %c0_i32 : i32, i32
  }
}

module attributes {stable_mosaic.version = 11 : i64} {
  func.func @_mm_kernel(%arg0: i32, %arg1: memref<10x128xbf16, #tpu.memory_space<vmem>>, %arg2: memref<128x128xbf16, #tpu.memory_space<vmem>>, %arg3: memref<1x128xf32, #tpu.memory_space<vmem>>, %arg4: memref<1x128xf32, #tpu.memory_space<vmem>>, %arg5: memref<10x128xbf16, #tpu.memory_space<vmem>>) attributes {dimension_semantics = [#tpu.dimension_semantics<parallel>], iteration_bounds = array<i64: 1>, scalar_prefetch = 0 : i64, scratch_operands = 0 : i64, tpu.core_type = #tpu.core_type<tc>, window_params = [{transform_indices = @transform_0, window_bounds = array<i64: 10, 128>}, {pipeline_mode = #tpu.pipeline_mode<synchronous>, transform_indices = @transform_1, window_bounds = array<i64: 128, 128>}, {pipeline_mode = #tpu.pipeline_mode<synchronous>, transform_indices = @transform_2, window_bounds = array<i64: 1, 128>}, {pipeline_mode = #tpu.pipeline_mode<synchronous>, transform_indices = @transform_3, window_bounds = array<i64: 1, 128>}, {transform_indices = @transform_4, window_bounds = array<i64: 10, 128>}]} {
    %c0 = arith.constant 0 : index
    %c0_0 = arith.constant 0 : index
    %0 = vector.load %arg1[%c0, %c0_0] : memref<10x128xbf16, #tpu.memory_space<vmem>>, vector<10x128xbf16>
    %c0_1 = arith.constant 0 : index
    %c0_2 = arith.constant 0 : index
    %1 = vector.load %arg2[%c0_1, %c0_2] : memref<128x128xbf16, #tpu.memory_space<vmem>>, vector<128x128xbf16>
    %cst = arith.constant dense<0.000000e+00> : vector<10x128xf32>
    %2 = tpu.matmul %0, %1, %cst {dimension_numbers = #tpu.dot_dimension_numbers<[1], [0], [0], [1], [0, 0, 1, 1], [], []>} : vector<10x128xbf16>, vector<128x128xbf16>, vector<10x128xf32> -> vector<10x128xf32>
    %c0_3 = arith.constant 0 : index
    %c0_4 = arith.constant 0 : index
    %3 = vector.load %arg3[%c0_3, %c0_4] : memref<1x128xf32, #tpu.memory_space<vmem>>, vector<1x128xf32>
    %4 = vector.broadcast %3 : vector<1x128xf32> to vector<10x128xf32>
    %5 = arith.mulf %2, %4 : vector<10x128xf32>
    %c0_5 = arith.constant 0 : index
    %c0_6 = arith.constant 0 : index
    %6 = vector.load %arg4[%c0_5, %c0_6] : memref<1x128xf32, #tpu.memory_space<vmem>>, vector<1x128xf32>
    %7 = vector.broadcast %6 : vector<1x128xf32> to vector<10x128xf32>
    %8 = arith.addf %5, %7 : vector<10x128xf32>
    %cst_7 = arith.constant 0.000000e+00 : f32
    %cst_8 = arith.constant 2.000000e+01 : f32
    %9 = vector.broadcast %cst_7 : f32 to vector<10x128xf32>
    %10 = arith.maximumf %9, %8 : vector<10x128xf32>
    %11 = vector.broadcast %cst_8 : f32 to vector<10x128xf32>
    %12 = arith.minimumf %11, %10 : vector<10x128xf32>
    %13 = arith.truncf %12 : vector<10x128xf32> to vector<10x128xbf16>
    %c0_9 = arith.constant 0 : index
    %c0_10 = arith.constant 0 : index
    %14 = vector.load %arg5[%c0_9, %c0_10] : memref<10x128xbf16, #tpu.memory_space<vmem>>, vector<10x128xbf16>
    tpu.vector_store %arg5[%c0_9, %c0_10], %13 {strides = array<i32>} : memref<10x128xbf16, #tpu.memory_space<vmem>>, vector<10x128xbf16>,
    return
  }
  func.func @transform_0(%arg0: i32) -> (i32, i32) {
    %c0_i32 = arith.constant 0 : i32
    %c0_i32_0 = arith.constant 0 : i32
    return %arg0, %c0_i32 : i32, i32
  }
  func.func @transform_1(%arg0: i32) -> (i32, i32) {
    %c0_i32 = arith.constant 0 : i32
    %c0_i32_0 = arith.constant 0 : i32
    %c0_i32_1 = arith.constant 0 : i32
    return %c0_i32, %c0_i32_0 : i32, i32
  }
  func.func @transform_2(%arg0: i32) -> (i32, i32) {
    %c0_i32 = arith.constant 0 : i32
    %c0_i32_0 = arith.constant 0 : i32
    %c0_i32_1 = arith.constant 0 : i32
    return %c0_i32, %c0_i32_0 : i32, i32
  }
  func.func @transform_3(%arg0: i32) -> (i32, i32) {
    %c0_i32 = arith.constant 0 : i32
    %c0_i32_0 = arith.constant 0 : i32
    %c0_i32_1 = arith.constant 0 : i32
    return %c0_i32, %c0_i32_0 : i32, i32
  }
  func.func @transform_4(%arg0: i32) -> (i32, i32) {
    %c0_i32 = arith.constant 0 : i32
    %c0_i32_0 = arith.constant 0 : i32
    return %arg0, %c0_i32 : i32, i32
  }
}

module attributes {stable_mosaic.version = 11 : i64} {
  func.func @_mm_kernel(%arg0: i32, %arg1: memref<10x64xbf16, #tpu.memory_space<vmem>>, %arg2: memref<64x256xbf16, #tpu.memory_space<vmem>>, %arg3: memref<1x256xf32, #tpu.memory_space<vmem>>, %arg4: memref<1x256xf32, #tpu.memory_space<vmem>>, %arg5: memref<10x256xbf16, #tpu.memory_space<vmem>>) attributes {dimension_semantics = [#tpu.dimension_semantics<parallel>], iteration_bounds = array<i64: 1>, scalar_prefetch = 0 : i64, scratch_operands = 0 : i64, tpu.core_type = #tpu.core_type<tc>, window_params = [{transform_indices = @transform_0, window_bounds = array<i64: 10, 64>}, {pipeline_mode = #tpu.pipeline_mode<synchronous>, transform_indices = @transform_1, window_bounds = array<i64: 64, 256>}, {pipeline_mode = #tpu.pipeline_mode<synchronous>, transform_indices = @transform_2, window_bounds = array<i64: 1, 256>}, {pipeline_mode = #tpu.pipeline_mode<synchronous>, transform_indices = @transform_3, window_bounds = array<i64: 1, 256>}, {transform_indices = @transform_4, window_bounds = array<i64: 10, 256>}]} {
    %c0 = arith.constant 0 : index
    %c0_0 = arith.constant 0 : index
    %0 = vector.load %arg1[%c0, %c0_0] : memref<10x64xbf16, #tpu.memory_space<vmem>>, vector<10x64xbf16>
    %c0_1 = arith.constant 0 : index
    %c0_2 = arith.constant 0 : index
    %1 = vector.load %arg2[%c0_1, %c0_2] : memref<64x256xbf16, #tpu.memory_space<vmem>>, vector<64x256xbf16>
    %cst = arith.constant dense<0.000000e+00> : vector<10x256xf32>
    %2 = tpu.matmul %0, %1, %cst {dimension_numbers = #tpu.dot_dimension_numbers<[1], [0], [0], [1], [0, 0, 1, 1], [], []>} : vector<10x64xbf16>, vector<64x256xbf16>, vector<10x256xf32> -> vector<10x256xf32>
    %c0_3 = arith.constant 0 : index
    %c0_4 = arith.constant 0 : index
    %3 = vector.load %arg3[%c0_3, %c0_4] : memref<1x256xf32, #tpu.memory_space<vmem>>, vector<1x256xf32>
    %4 = vector.broadcast %3 : vector<1x256xf32> to vector<10x256xf32>
    %5 = arith.mulf %2, %4 : vector<10x256xf32>
    %c0_5 = arith.constant 0 : index
    %c0_6 = arith.constant 0 : index
    %6 = vector.load %arg4[%c0_5, %c0_6] : memref<1x256xf32, #tpu.memory_space<vmem>>, vector<1x256xf32>
    %7 = vector.broadcast %6 : vector<1x256xf32> to vector<10x256xf32>
    %8 = arith.addf %5, %7 : vector<10x256xf32>
    %9 = arith.truncf %8 : vector<10x256xf32> to vector<10x256xbf16>
    %c0_7 = arith.constant 0 : index
    %c0_8 = arith.constant 0 : index
    %10 = vector.load %arg5[%c0_7, %c0_8] : memref<10x256xbf16, #tpu.memory_space<vmem>>, vector<10x256xbf16>
    tpu.vector_store %arg5[%c0_7, %c0_8], %9 {strides = array<i32>} : memref<10x256xbf16, #tpu.memory_space<vmem>>, vector<10x256xbf16>,
    return
  }
  func.func @transform_0(%arg0: i32) -> (i32, i32) {
    %c0_i32 = arith.constant 0 : i32
    %c0_i32_0 = arith.constant 0 : i32
    return %arg0, %c0_i32 : i32, i32
  }
  func.func @transform_1(%arg0: i32) -> (i32, i32) {
    %c0_i32 = arith.constant 0 : i32
    %c0_i32_0 = arith.constant 0 : i32
    %c0_i32_1 = arith.constant 0 : i32
    return %c0_i32, %c0_i32_0 : i32, i32
  }
  func.func @transform_2(%arg0: i32) -> (i32, i32) {
    %c0_i32 = arith.constant 0 : i32
    %c0_i32_0 = arith.constant 0 : i32
    %c0_i32_1 = arith.constant 0 : i32
    return %c0_i32, %c0_i32_0 : i32, i32
  }
  func.func @transform_3(%arg0: i32) -> (i32, i32) {
    %c0_i32 = arith.constant 0 : i32
    %c0_i32_0 = arith.constant 0 : i32
    %c0_i32_1 = arith.constant 0 : i32
    return %c0_i32, %c0_i32_0 : i32, i32
  }
  func.func @transform_4(%arg0: i32) -> (i32, i32) {
    %c0_i32 = arith.constant 0 : i32
    %c0_i32_0 = arith.constant 0 : i32
    return %arg0, %c0_i32 : i32, i32
  }
}

module attributes {stable_mosaic.version = 11 : i64} {
  func.func @_mm_kernel(%arg0: i32, %arg1: memref<10x128xbf16, #tpu.memory_space<vmem>>, %arg2: memref<128x256xbf16, #tpu.memory_space<vmem>>, %arg3: memref<1x256xf32, #tpu.memory_space<vmem>>, %arg4: memref<1x256xf32, #tpu.memory_space<vmem>>, %arg5: memref<10x256xbf16, #tpu.memory_space<vmem>>, %arg6: memref<10x256xbf16, #tpu.memory_space<vmem>>) attributes {dimension_semantics = [#tpu.dimension_semantics<parallel>], iteration_bounds = array<i64: 1>, scalar_prefetch = 0 : i64, scratch_operands = 0 : i64, tpu.core_type = #tpu.core_type<tc>, window_params = [{transform_indices = @transform_0, window_bounds = array<i64: 10, 128>}, {pipeline_mode = #tpu.pipeline_mode<synchronous>, transform_indices = @transform_1, window_bounds = array<i64: 128, 256>}, {pipeline_mode = #tpu.pipeline_mode<synchronous>, transform_indices = @transform_2, window_bounds = array<i64: 1, 256>}, {pipeline_mode = #tpu.pipeline_mode<synchronous>, transform_indices = @transform_3, window_bounds = array<i64: 1, 256>}, {transform_indices = @transform_4, window_bounds = array<i64: 10, 256>}, {transform_indices = @transform_5, window_bounds = array<i64: 10, 256>}]} {
    %c0 = arith.constant 0 : index
    %c0_0 = arith.constant 0 : index
    %0 = vector.load %arg1[%c0, %c0_0] : memref<10x128xbf16, #tpu.memory_space<vmem>>, vector<10x128xbf16>
    %c0_1 = arith.constant 0 : index
    %c0_2 = arith.constant 0 : index
    %1 = vector.load %arg2[%c0_1, %c0_2] : memref<128x256xbf16, #tpu.memory_space<vmem>>, vector<128x256xbf16>
    %cst = arith.constant dense<0.000000e+00> : vector<10x256xf32>
    %2 = tpu.matmul %0, %1, %cst {dimension_numbers = #tpu.dot_dimension_numbers<[1], [0], [0], [1], [0, 0, 1, 1], [], []>} : vector<10x128xbf16>, vector<128x256xbf16>, vector<10x256xf32> -> vector<10x256xf32>
    %c0_3 = arith.constant 0 : index
    %c0_4 = arith.constant 0 : index
    %3 = vector.load %arg3[%c0_3, %c0_4] : memref<1x256xf32, #tpu.memory_space<vmem>>, vector<1x256xf32>
    %4 = vector.broadcast %3 : vector<1x256xf32> to vector<10x256xf32>
    %5 = arith.mulf %2, %4 : vector<10x256xf32>
    %c0_5 = arith.constant 0 : index
    %c0_6 = arith.constant 0 : index
    %6 = vector.load %arg4[%c0_5, %c0_6] : memref<1x256xf32, #tpu.memory_space<vmem>>, vector<1x256xf32>
    %7 = vector.broadcast %6 : vector<1x256xf32> to vector<10x256xf32>
    %8 = arith.addf %5, %7 : vector<10x256xf32>
    %c0_7 = arith.constant 0 : index
    %c0_8 = arith.constant 0 : index
    %9 = vector.load %arg5[%c0_7, %c0_8] : memref<10x256xbf16, #tpu.memory_space<vmem>>, vector<10x256xbf16>
    %10 = arith.extf %9 : vector<10x256xbf16> to vector<10x256xf32>
    %11 = arith.addf %8, %10 : vector<10x256xf32>
    %cst_9 = arith.constant 0.000000e+00 : f32
    %cst_10 = arith.constant 2.000000e+01 : f32
    %12 = vector.broadcast %cst_9 : f32 to vector<10x256xf32>
    %13 = arith.maximumf %12, %11 : vector<10x256xf32>
    %14 = vector.broadcast %cst_10 : f32 to vector<10x256xf32>
    %15 = arith.minimumf %14, %13 : vector<10x256xf32>
    %16 = arith.truncf %15 : vector<10x256xf32> to vector<10x256xbf16>
    %c0_11 = arith.constant 0 : index
    %c0_12 = arith.constant 0 : index
    %17 = vector.load %arg6[%c0_11, %c0_12] : memref<10x256xbf16, #tpu.memory_space<vmem>>, vector<10x256xbf16>
    tpu.vector_store %arg6[%c0_11, %c0_12], %16 {strides = array<i32>} : memref<10x256xbf16, #tpu.memory_space<vmem>>, vector<10x256xbf16>,
    return
  }
  func.func @transform_0(%arg0: i32) -> (i32, i32) {
    %c0_i32 = arith.constant 0 : i32
    %c0_i32_0 = arith.constant 0 : i32
    return %arg0, %c0_i32 : i32, i32
  }
  func.func @transform_1(%arg0: i32) -> (i32, i32) {
    %c0_i32 = arith.constant 0 : i32
    %c0_i32_0 = arith.constant 0 : i32
    %c0_i32_1 = arith.constant 0 : i32
    return %c0_i32, %c0_i32_0 : i32, i32
  }
  func.func @transform_2(%arg0: i32) -> (i32, i32) {
    %c0_i32 = arith.constant 0 : i32
    %c0_i32_0 = arith.constant 0 : i32
    %c0_i32_1 = arith.constant 0 : i32
    return %c0_i32, %c0_i32_0 : i32, i32
  }
  func.func @transform_3(%arg0: i32) -> (i32, i32) {
    %c0_i32 = arith.constant 0 : i32
    %c0_i32_0 = arith.constant 0 : i32
    %c0_i32_1 = arith.constant 0 : i32
    return %c0_i32, %c0_i32_0 : i32, i32
  }
  func.func @transform_4(%arg0: i32) -> (i32, i32) {
    %c0_i32 = arith.constant 0 : i32
    %c0_i32_0 = arith.constant 0 : i32
    return %arg0, %c0_i32 : i32, i32
  }
  func.func @transform_5(%arg0: i32) -> (i32, i32) {
    %c0_i32 = arith.constant 0 : i32
    %c0_i32_0 = arith.constant 0 : i32
    return %arg0, %c0_i32 : i32, i32
  }
}

module attributes {stable_mosaic.version = 11 : i64} {
  func.func @_bilstm_kernel(%arg0: memref<5x2x256xbf16, #tpu.memory_space<vmem>>, %arg1: memref<64x256xbf16, #tpu.memory_space<vmem>>, %arg2: memref<1x64xf32, #tpu.memory_space<vmem>>, %arg3: memref<1x64xf32, #tpu.memory_space<vmem>>, %arg4: memref<5x2x64xbf16, #tpu.memory_space<vmem>>) attributes {dimension_semantics = [], scalar_prefetch = 0 : i64, scratch_operands = 0 : i64, tpu.core_type = #tpu.core_type<tc>} {
    %c0 = arith.constant 0 : index
    %c0_0 = arith.constant 0 : index
    %0 = vector.load %arg1[%c0, %c0_0] : memref<64x256xbf16, #tpu.memory_space<vmem>>, vector<64x256xbf16>
    %c0_1 = arith.constant 0 : index
    %c0_2 = arith.constant 0 : index
    %1 = vector.load %arg2[%c0_1, %c0_2] : memref<1x64xf32, #tpu.memory_space<vmem>>, vector<1x64xf32>
    %c0_3 = arith.constant 0 : index
    %c0_4 = arith.constant 0 : index
    %2 = vector.load %arg3[%c0_3, %c0_4] : memref<1x64xf32, #tpu.memory_space<vmem>>, vector<1x64xf32>
    %3 = vector.extract_strided_slice %1 {offsets = [0, 0], sizes = [1, 32], strides = [1, 1]} : vector<1x64xf32> to vector<1x32xf32>
    %4 = vector.extract_strided_slice %2 {offsets = [0, 0], sizes = [1, 32], strides = [1, 1]} : vector<1x64xf32> to vector<1x32xf32>
    %5 = vector.extract_strided_slice %1 {offsets = [0, 32], sizes = [1, 32], strides = [1, 1]} : vector<1x64xf32> to vector<1x32xf32>
    %6 = vector.extract_strided_slice %2 {offsets = [0, 32], sizes = [1, 32], strides = [1, 1]} : vector<1x64xf32> to vector<1x32xf32>
    %cst = arith.constant 0.000000e+00 : f32
    %7 = vector.broadcast %cst : f32 to vector<2x32xf32>
    %c0_i32 = arith.constant 0 : i32
    %c5_i32 = arith.constant 5 : i32
    %8 = arith.addi %c0_i32, %c5_i32 : i32
    %c1_i32 = arith.constant 1 : i32
    %9:4 = scf.for %arg5 = %c0_i32 to %8 step %c1_i32 iter_args(%arg6 = %7, %arg7 = %7, %arg8 = %7, %arg9 = %7) -> (vector<2x32xf32>, vector<2x32xf32>, vector<2x32xf32>, vector<2x32xf32>)  : i32 {
      %c4_i32 = arith.constant 4 : i32
      %10 = arith.subi %c4_i32, %arg5 : i32
      %11 = tpu.concatenate %arg6, %arg8 in 1 : vector<2x32xf32>, vector<2x32xf32> -> vector<2x64xf32>
      %12 = arith.truncf %11 : vector<2x64xf32> to vector<2x64xbf16>
      %cst_6 = arith.constant dense<0.000000e+00> : vector<2x256xf32>
      %13 = tpu.matmul %12, %0, %cst_6 {dimension_numbers = #tpu.dot_dimension_numbers<[1], [0], [0], [1], [0, 0, 1, 1], [], []>} : vector<2x64xbf16>, vector<64x256xbf16>, vector<2x256xf32> -> vector<2x256xf32>
      %14 = arith.index_cast %arg5 : i32 to index
      %c0_7 = arith.constant 0 : index
      %c0_8 = arith.constant 0 : index
      %15 = vector.load %arg0[%14, %c0_7, %c0_8] : memref<5x2x256xbf16, #tpu.memory_space<vmem>>, vector<1x2x128xbf16>
      %16 = vector.shape_cast %15 : vector<1x2x128xbf16> to vector<2x128xbf16>
      %17 = arith.extf %16 : vector<2x128xbf16> to vector<2x128xf32>
      %18 = vector.extract_strided_slice %13 {offsets = [0, 0], sizes = [2, 128], strides = [1, 1]} : vector<2x256xf32> to vector<2x128xf32>
      %19 = arith.addf %17, %18 : vector<2x128xf32>
      %20 = arith.index_cast %10 : i32 to index
      %c0_9 = arith.constant 0 : index
      %c128 = arith.constant 128 : index
      %21 = vector.load %arg0[%20, %c0_9, %c128] : memref<5x2x256xbf16, #tpu.memory_space<vmem>>, vector<1x2x128xbf16>
      %22 = vector.shape_cast %21 : vector<1x2x128xbf16> to vector<2x128xbf16>
      %23 = arith.extf %22 : vector<2x128xbf16> to vector<2x128xf32>
      %24 = vector.extract_strided_slice %13 {offsets = [0, 128], sizes = [2, 128], strides = [1, 1]} : vector<2x256xf32> to vector<2x128xf32>
      %25 = arith.addf %23, %24 : vector<2x128xf32>
      %26 = vector.extract_strided_slice %19 {offsets = [0, 0], sizes = [2, 32], strides = [1, 1]} : vector<2x128xf32> to vector<2x32xf32>
      %27 = arith.negf %26 : vector<2x32xf32>
      %28 = math.exp %27 : vector<2x32xf32>
      %cst_10 = arith.constant 1.000000e+00 : f32
      %29 = vector.broadcast %cst_10 : f32 to vector<2x32xf32>
      %30 = arith.addf %29, %28 : vector<2x32xf32>
      %31 = arith.divf %29, %30 : vector<2x32xf32>
      %32 = vector.extract_strided_slice %19 {offsets = [0, 32], sizes = [2, 32], strides = [1, 1]} : vector<2x128xf32> to vector<2x32xf32>
      %33 = arith.negf %32 : vector<2x32xf32>
      %34 = math.exp %33 : vector<2x32xf32>
      %cst_11 = arith.constant 1.000000e+00 : f32
      %35 = vector.broadcast %cst_11 : f32 to vector<2x32xf32>
      %36 = arith.addf %35, %34 : vector<2x32xf32>
      %37 = arith.divf %35, %36 : vector<2x32xf32>
      %38 = vector.extract_strided_slice %19 {offsets = [0, 64], sizes = [2, 32], strides = [1, 1]} : vector<2x128xf32> to vector<2x32xf32>
      %39 = math.tanh %38 : vector<2x32xf32>
      %40 = vector.extract_strided_slice %19 {offsets = [0, 96], sizes = [2, 32], strides = [1, 1]} : vector<2x128xf32> to vector<2x32xf32>
      %41 = arith.negf %40 : vector<2x32xf32>
      %42 = math.exp %41 : vector<2x32xf32>
      %cst_12 = arith.constant 1.000000e+00 : f32
      %43 = vector.broadcast %cst_12 : f32 to vector<2x32xf32>
      %44 = arith.addf %43, %42 : vector<2x32xf32>
      %45 = arith.divf %43, %44 : vector<2x32xf32>
      %46 = arith.mulf %37, %arg7 : vector<2x32xf32>
      %47 = arith.mulf %31, %39 : vector<2x32xf32>
      %48 = arith.addf %46, %47 : vector<2x32xf32>
      %49 = math.tanh %48 : vector<2x32xf32>
      %50 = arith.mulf %45, %49 : vector<2x32xf32>
      %51 = vector.extract_strided_slice %25 {offsets = [0, 0], sizes = [2, 32], strides = [1, 1]} : vector<2x128xf32> to vector<2x32xf32>
      %52 = arith.negf %51 : vector<2x32xf32>
      %53 = math.exp %52 : vector<2x32xf32>
      %cst_13 = arith.constant 1.000000e+00 : f32
      %54 = vector.broadcast %cst_13 : f32 to vector<2x32xf32>
      %55 = arith.addf %54, %53 : vector<2x32xf32>
      %56 = arith.divf %54, %55 : vector<2x32xf32>
      %57 = vector.extract_strided_slice %25 {offsets = [0, 32], sizes = [2, 32], strides = [1, 1]} : vector<2x128xf32> to vector<2x32xf32>
      %58 = arith.negf %57 : vector<2x32xf32>
      %59 = math.exp %58 : vector<2x32xf32>
      %cst_14 = arith.constant 1.000000e+00 : f32
      %60 = vector.broadcast %cst_14 : f32 to vector<2x32xf32>
      %61 = arith.addf %60, %59 : vector<2x32xf32>
      %62 = arith.divf %60, %61 : vector<2x32xf32>
      %63 = vector.extract_strided_slice %25 {offsets = [0, 64], sizes = [2, 32], strides = [1, 1]} : vector<2x128xf32> to vector<2x32xf32>
      %64 = math.tanh %63 : vector<2x32xf32>
      %65 = vector.extract_strided_slice %25 {offsets = [0, 96], sizes = [2, 32], strides = [1, 1]} : vector<2x128xf32> to vector<2x32xf32>
      %66 = arith.negf %65 : vector<2x32xf32>
      %67 = math.exp %66 : vector<2x32xf32>
      %cst_15 = arith.constant 1.000000e+00 : f32
      %68 = vector.broadcast %cst_15 : f32 to vector<2x32xf32>
      %69 = arith.addf %68, %67 : vector<2x32xf32>
      %70 = arith.divf %68, %69 : vector<2x32xf32>
      %71 = arith.mulf %62, %arg9 : vector<2x32xf32>
      %72 = arith.mulf %56, %64 : vector<2x32xf32>
      %73 = arith.addf %71, %72 : vector<2x32xf32>
      %74 = math.tanh %73 : vector<2x32xf32>
      %75 = arith.mulf %70, %74 : vector<2x32xf32>
      %76 = vector.broadcast %3 : vector<1x32xf32> to vector<2x32xf32>
      %77 = arith.mulf %50, %76 : vector<2x32xf32>
      %78 = vector.broadcast %4 : vector<1x32xf32> to vector<2x32xf32>
      %79 = arith.addf %77, %78 : vector<2x32xf32>
      %cst_16 = arith.constant 0.000000e+00 : f32
      %cst_17 = arith.constant 2.000000e+01 : f32
      %80 = vector.broadcast %cst_16 : f32 to vector<2x32xf32>
      %81 = arith.maximumf %80, %79 : vector<2x32xf32>
      %82 = vector.broadcast %cst_17 : f32 to vector<2x32xf32>
      %83 = arith.minimumf %82, %81 : vector<2x32xf32>
      %84 = arith.truncf %83 : vector<2x32xf32> to vector<2x32xbf16>
      %85 = arith.index_cast %arg5 : i32 to index
      %c0_18 = arith.constant 0 : index
      %c0_19 = arith.constant 0 : index
      %86 = vector.load %arg4[%85, %c0_18, %c0_19] : memref<5x2x64xbf16, #tpu.memory_space<vmem>>, vector<1x2x32xbf16>
      %87 = vector.shape_cast %86 : vector<1x2x32xbf16> to vector<2x32xbf16>
      %88 = vector.shape_cast %84 : vector<2x32xbf16> to vector<1x2x32xbf16>
      tpu.vector_store %arg4[%85, %c0_18, %c0_19], %88 {strides = array<i32>} : memref<5x2x64xbf16, #tpu.memory_space<vmem>>, vector<1x2x32xbf16>,
      %89 = vector.broadcast %5 : vector<1x32xf32> to vector<2x32xf32>
      %90 = arith.mulf %75, %89 : vector<2x32xf32>
      %91 = vector.broadcast %6 : vector<1x32xf32> to vector<2x32xf32>
      %92 = arith.addf %90, %91 : vector<2x32xf32>
      %cst_20 = arith.constant 0.000000e+00 : f32
      %cst_21 = arith.constant 2.000000e+01 : f32
      %93 = vector.broadcast %cst_20 : f32 to vector<2x32xf32>
      %94 = arith.maximumf %93, %92 : vector<2x32xf32>
      %95 = vector.broadcast %cst_21 : f32 to vector<2x32xf32>
      %96 = arith.minimumf %95, %94 : vector<2x32xf32>
      %97 = arith.truncf %96 : vector<2x32xf32> to vector<2x32xbf16>
      %98 = arith.index_cast %10 : i32 to index
      %c0_22 = arith.constant 0 : index
      %c32 = arith.constant 32 : index
      %99 = vector.load %arg4[%98, %c0_22, %c32] : memref<5x2x64xbf16, #tpu.memory_space<vmem>>, vector<1x2x32xbf16>
      %100 = vector.shape_cast %99 : vector<1x2x32xbf16> to vector<2x32xbf16>
      %101 = vector.shape_cast %97 : vector<2x32xbf16> to vector<1x2x32xbf16>
      tpu.vector_store %arg4[%98, %c0_22, %c32], %101 {strides = array<i32>} : memref<5x2x64xbf16, #tpu.memory_space<vmem>>, vector<1x2x32xbf16>,
      scf.yield %50, %48, %75, %73 : vector<2x32xf32>, vector<2x32xf32>, vector<2x32xf32>, vector<2x32xf32>
    }
    %c5_i32_5 = arith.constant 5 : i32
    return
  }
}

module attributes {stable_mosaic.version = 11 : i64} {
  func.func @_mm_kernel(%arg0: i32, %arg1: memref<10x128xbf16, #tpu.memory_space<vmem>>, %arg2: memref<128x256xbf16, #tpu.memory_space<vmem>>, %arg3: memref<1x256xf32, #tpu.memory_space<vmem>>, %arg4: memref<1x256xf32, #tpu.memory_space<vmem>>, %arg5: memref<10x256xbf16, #tpu.memory_space<vmem>>) attributes {dimension_semantics = [#tpu.dimension_semantics<parallel>], iteration_bounds = array<i64: 1>, scalar_prefetch = 0 : i64, scratch_operands = 0 : i64, tpu.core_type = #tpu.core_type<tc>, window_params = [{transform_indices = @transform_0, window_bounds = array<i64: 10, 128>}, {pipeline_mode = #tpu.pipeline_mode<synchronous>, transform_indices = @transform_1, window_bounds = array<i64: 128, 256>}, {pipeline_mode = #tpu.pipeline_mode<synchronous>, transform_indices = @transform_2, window_bounds = array<i64: 1, 256>}, {pipeline_mode = #tpu.pipeline_mode<synchronous>, transform_indices = @transform_3, window_bounds = array<i64: 1, 256>}, {transform_indices = @transform_4, window_bounds = array<i64: 10, 256>}]} {
    %c0 = arith.constant 0 : index
    %c0_0 = arith.constant 0 : index
    %0 = vector.load %arg1[%c0, %c0_0] : memref<10x128xbf16, #tpu.memory_space<vmem>>, vector<10x128xbf16>
    %c0_1 = arith.constant 0 : index
    %c0_2 = arith.constant 0 : index
    %1 = vector.load %arg2[%c0_1, %c0_2] : memref<128x256xbf16, #tpu.memory_space<vmem>>, vector<128x256xbf16>
    %cst = arith.constant dense<0.000000e+00> : vector<10x256xf32>
    %2 = tpu.matmul %0, %1, %cst {dimension_numbers = #tpu.dot_dimension_numbers<[1], [0], [0], [1], [0, 0, 1, 1], [], []>} : vector<10x128xbf16>, vector<128x256xbf16>, vector<10x256xf32> -> vector<10x256xf32>
    %c0_3 = arith.constant 0 : index
    %c0_4 = arith.constant 0 : index
    %3 = vector.load %arg3[%c0_3, %c0_4] : memref<1x256xf32, #tpu.memory_space<vmem>>, vector<1x256xf32>
    %4 = vector.broadcast %3 : vector<1x256xf32> to vector<10x256xf32>
    %5 = arith.mulf %2, %4 : vector<10x256xf32>
    %c0_5 = arith.constant 0 : index
    %c0_6 = arith.constant 0 : index
    %6 = vector.load %arg4[%c0_5, %c0_6] : memref<1x256xf32, #tpu.memory_space<vmem>>, vector<1x256xf32>
    %7 = vector.broadcast %6 : vector<1x256xf32> to vector<10x256xf32>
    %8 = arith.addf %5, %7 : vector<10x256xf32>
    %9 = arith.truncf %8 : vector<10x256xf32> to vector<10x256xbf16>
    %c0_7 = arith.constant 0 : index
    %c0_8 = arith.constant 0 : index
    %10 = vector.load %arg5[%c0_7, %c0_8] : memref<10x256xbf16, #tpu.memory_space<vmem>>, vector<10x256xbf16>
    tpu.vector_store %arg5[%c0_7, %c0_8], %9 {strides = array<i32>} : memref<10x256xbf16, #tpu.memory_space<vmem>>, vector<10x256xbf16>,
    return
  }
  func.func @transform_0(%arg0: i32) -> (i32, i32) {
    %c0_i32 = arith.constant 0 : i32
    %c0_i32_0 = arith.constant 0 : i32
    return %arg0, %c0_i32 : i32, i32
  }
  func.func @transform_1(%arg0: i32) -> (i32, i32) {
    %c0_i32 = arith.constant 0 : i32
    %c0_i32_0 = arith.constant 0 : i32
    %c0_i32_1 = arith.constant 0 : i32
    return %c0_i32, %c0_i32_0 : i32, i32
  }
  func.func @transform_2(%arg0: i32) -> (i32, i32) {
    %c0_i32 = arith.constant 0 : i32
    %c0_i32_0 = arith.constant 0 : i32
    %c0_i32_1 = arith.constant 0 : i32
    return %c0_i32, %c0_i32_0 : i32, i32
  }
  func.func @transform_3(%arg0: i32) -> (i32, i32) {
    %c0_i32 = arith.constant 0 : i32
    %c0_i32_0 = arith.constant 0 : i32
    %c0_i32_1 = arith.constant 0 : i32
    return %c0_i32, %c0_i32_0 : i32, i32
  }
  func.func @transform_4(%arg0: i32) -> (i32, i32) {
    %c0_i32 = arith.constant 0 : i32
    %c0_i32_0 = arith.constant 0 : i32
    return %arg0, %c0_i32 : i32, i32
  }
}

module attributes {stable_mosaic.version = 11 : i64} {
  func.func @_mm_kernel(%arg0: i32, %arg1: memref<10x256xbf16, #tpu.memory_space<vmem>>, %arg2: memref<256x128xbf16, #tpu.memory_space<vmem>>, %arg3: memref<1x128xf32, #tpu.memory_space<vmem>>, %arg4: memref<1x128xf32, #tpu.memory_space<vmem>>, %arg5: memref<10x128xbf16, #tpu.memory_space<vmem>>) attributes {dimension_semantics = [#tpu.dimension_semantics<parallel>], iteration_bounds = array<i64: 1>, scalar_prefetch = 0 : i64, scratch_operands = 0 : i64, tpu.core_type = #tpu.core_type<tc>, window_params = [{transform_indices = @transform_0, window_bounds = array<i64: 10, 256>}, {pipeline_mode = #tpu.pipeline_mode<synchronous>, transform_indices = @transform_1, window_bounds = array<i64: 256, 128>}, {pipeline_mode = #tpu.pipeline_mode<synchronous>, transform_indices = @transform_2, window_bounds = array<i64: 1, 128>}, {pipeline_mode = #tpu.pipeline_mode<synchronous>, transform_indices = @transform_3, window_bounds = array<i64: 1, 128>}, {transform_indices = @transform_4, window_bounds = array<i64: 10, 128>}]} {
    %c0 = arith.constant 0 : index
    %c0_0 = arith.constant 0 : index
    %0 = vector.load %arg1[%c0, %c0_0] : memref<10x256xbf16, #tpu.memory_space<vmem>>, vector<10x256xbf16>
    %c0_1 = arith.constant 0 : index
    %c0_2 = arith.constant 0 : index
    %1 = vector.load %arg2[%c0_1, %c0_2] : memref<256x128xbf16, #tpu.memory_space<vmem>>, vector<256x128xbf16>
    %cst = arith.constant dense<0.000000e+00> : vector<10x128xf32>
    %2 = tpu.matmul %0, %1, %cst {dimension_numbers = #tpu.dot_dimension_numbers<[1], [0], [0], [1], [0, 0, 1, 1], [], []>} : vector<10x256xbf16>, vector<256x128xbf16>, vector<10x128xf32> -> vector<10x128xf32>
    %c0_3 = arith.constant 0 : index
    %c0_4 = arith.constant 0 : index
    %3 = vector.load %arg3[%c0_3, %c0_4] : memref<1x128xf32, #tpu.memory_space<vmem>>, vector<1x128xf32>
    %4 = vector.broadcast %3 : vector<1x128xf32> to vector<10x128xf32>
    %5 = arith.mulf %2, %4 : vector<10x128xf32>
    %c0_5 = arith.constant 0 : index
    %c0_6 = arith.constant 0 : index
    %6 = vector.load %arg4[%c0_5, %c0_6] : memref<1x128xf32, #tpu.memory_space<vmem>>, vector<1x128xf32>
    %7 = vector.broadcast %6 : vector<1x128xf32> to vector<10x128xf32>
    %8 = arith.addf %5, %7 : vector<10x128xf32>
    %cst_7 = arith.constant 0.000000e+00 : f32
    %cst_8 = arith.constant 2.000000e+01 : f32
    %9 = vector.broadcast %cst_7 : f32 to vector<10x128xf32>
    %10 = arith.maximumf %9, %8 : vector<10x128xf32>
    %11 = vector.broadcast %cst_8 : f32 to vector<10x128xf32>
    %12 = arith.minimumf %11, %10 : vector<10x128xf32>
    %13 = arith.truncf %12 : vector<10x128xf32> to vector<10x128xbf16>
    %c0_9 = arith.constant 0 : index
    %c0_10 = arith.constant 0 : index
    %14 = vector.load %arg5[%c0_9, %c0_10] : memref<10x128xbf16, #tpu.memory_space<vmem>>, vector<10x128xbf16>
    tpu.vector_store %arg5[%c0_9, %c0_10], %13 {strides = array<i32>} : memref<10x128xbf16, #tpu.memory_space<vmem>>, vector<10x128xbf16>,
    return
  }
  func.func @transform_0(%arg0: i32) -> (i32, i32) {
    %c0_i32 = arith.constant 0 : i32
    %c0_i32_0 = arith.constant 0 : i32
    return %arg0, %c0_i32 : i32, i32
  }
  func.func @transform_1(%arg0: i32) -> (i32, i32) {
    %c0_i32 = arith.constant 0 : i32
    %c0_i32_0 = arith.constant 0 : i32
    %c0_i32_1 = arith.constant 0 : i32
    return %c0_i32, %c0_i32_0 : i32, i32
  }
  func.func @transform_2(%arg0: i32) -> (i32, i32) {
    %c0_i32 = arith.constant 0 : i32
    %c0_i32_0 = arith.constant 0 : i32
    %c0_i32_1 = arith.constant 0 : i32
    return %c0_i32, %c0_i32_0 : i32, i32
  }
  func.func @transform_3(%arg0: i32) -> (i32, i32) {
    %c0_i32 = arith.constant 0 : i32
    %c0_i32_0 = arith.constant 0 : i32
    %c0_i32_1 = arith.constant 0 : i32
    return %c0_i32, %c0_i32_0 : i32, i32
  }
  func.func @transform_4(%arg0: i32) -> (i32, i32) {
    %c0_i32 = arith.constant 0 : i32
    %c0_i32_0 = arith.constant 0 : i32
    return %arg0, %c0_i32 : i32, i32
  }
}

module attributes {stable_mosaic.version = 11 : i64} {
  func.func @_mm_kernel(%arg0: i32, %arg1: memref<10x64xbf16, #tpu.memory_space<vmem>>, %arg2: memref<64x256xbf16, #tpu.memory_space<vmem>>, %arg3: memref<1x256xf32, #tpu.memory_space<vmem>>, %arg4: memref<1x256xf32, #tpu.memory_space<vmem>>, %arg5: memref<10x256xbf16, #tpu.memory_space<vmem>>) attributes {dimension_semantics = [#tpu.dimension_semantics<parallel>], iteration_bounds = array<i64: 1>, scalar_prefetch = 0 : i64, scratch_operands = 0 : i64, tpu.core_type = #tpu.core_type<tc>, window_params = [{transform_indices = @transform_0, window_bounds = array<i64: 10, 64>}, {pipeline_mode = #tpu.pipeline_mode<synchronous>, transform_indices = @transform_1, window_bounds = array<i64: 64, 256>}, {pipeline_mode = #tpu.pipeline_mode<synchronous>, transform_indices = @transform_2, window_bounds = array<i64: 1, 256>}, {pipeline_mode = #tpu.pipeline_mode<synchronous>, transform_indices = @transform_3, window_bounds = array<i64: 1, 256>}, {transform_indices = @transform_4, window_bounds = array<i64: 10, 256>}]} {
    %c0 = arith.constant 0 : index
    %c0_0 = arith.constant 0 : index
    %0 = vector.load %arg1[%c0, %c0_0] : memref<10x64xbf16, #tpu.memory_space<vmem>>, vector<10x64xbf16>
    %c0_1 = arith.constant 0 : index
    %c0_2 = arith.constant 0 : index
    %1 = vector.load %arg2[%c0_1, %c0_2] : memref<64x256xbf16, #tpu.memory_space<vmem>>, vector<64x256xbf16>
    %cst = arith.constant dense<0.000000e+00> : vector<10x256xf32>
    %2 = tpu.matmul %0, %1, %cst {dimension_numbers = #tpu.dot_dimension_numbers<[1], [0], [0], [1], [0, 0, 1, 1], [], []>} : vector<10x64xbf16>, vector<64x256xbf16>, vector<10x256xf32> -> vector<10x256xf32>
    %c0_3 = arith.constant 0 : index
    %c0_4 = arith.constant 0 : index
    %3 = vector.load %arg3[%c0_3, %c0_4] : memref<1x256xf32, #tpu.memory_space<vmem>>, vector<1x256xf32>
    %4 = vector.broadcast %3 : vector<1x256xf32> to vector<10x256xf32>
    %5 = arith.mulf %2, %4 : vector<10x256xf32>
    %c0_5 = arith.constant 0 : index
    %c0_6 = arith.constant 0 : index
    %6 = vector.load %arg4[%c0_5, %c0_6] : memref<1x256xf32, #tpu.memory_space<vmem>>, vector<1x256xf32>
    %7 = vector.broadcast %6 : vector<1x256xf32> to vector<10x256xf32>
    %8 = arith.addf %5, %7 : vector<10x256xf32>
    %9 = arith.truncf %8 : vector<10x256xf32> to vector<10x256xbf16>
    %c0_7 = arith.constant 0 : index
    %c0_8 = arith.constant 0 : index
    %10 = vector.load %arg5[%c0_7, %c0_8] : memref<10x256xbf16, #tpu.memory_space<vmem>>, vector<10x256xbf16>
    tpu.vector_store %arg5[%c0_7, %c0_8], %9 {strides = array<i32>} : memref<10x256xbf16, #tpu.memory_space<vmem>>, vector<10x256xbf16>,
    return
  }
  func.func @transform_0(%arg0: i32) -> (i32, i32) {
    %c0_i32 = arith.constant 0 : i32
    %c0_i32_0 = arith.constant 0 : i32
    return %arg0, %c0_i32 : i32, i32
  }
  func.func @transform_1(%arg0: i32) -> (i32, i32) {
    %c0_i32 = arith.constant 0 : i32
    %c0_i32_0 = arith.constant 0 : i32
    %c0_i32_1 = arith.constant 0 : i32
    return %c0_i32, %c0_i32_0 : i32, i32
  }
  func.func @transform_2(%arg0: i32) -> (i32, i32) {
    %c0_i32 = arith.constant 0 : i32
    %c0_i32_0 = arith.constant 0 : i32
    %c0_i32_1 = arith.constant 0 : i32
    return %c0_i32, %c0_i32_0 : i32, i32
  }
  func.func @transform_3(%arg0: i32) -> (i32, i32) {
    %c0_i32 = arith.constant 0 : i32
    %c0_i32_0 = arith.constant 0 : i32
    %c0_i32_1 = arith.constant 0 : i32
    return %c0_i32, %c0_i32_0 : i32, i32
  }
  func.func @transform_4(%arg0: i32) -> (i32, i32) {
    %c0_i32 = arith.constant 0 : i32
    %c0_i32_0 = arith.constant 0 : i32
    return %arg0, %c0_i32 : i32, i32
  }
}

module attributes {stable_mosaic.version = 11 : i64} {
  func.func @_tstp_kernel(%arg0: memref<5x2x256xbf16, #tpu.memory_space<vmem>>, %arg1: memref<2x512xf32, #tpu.memory_space<vmem>>) attributes {dimension_semantics = [], scalar_prefetch = 0 : i64, scratch_operands = 0 : i64, tpu.core_type = #tpu.core_type<tc>} {
    %c0 = arith.constant 0 : index
    %c0_0 = arith.constant 0 : index
    %c0_1 = arith.constant 0 : index
    %0 = vector.load %arg0[%c0, %c0_0, %c0_1] : memref<5x2x256xbf16, #tpu.memory_space<vmem>>, vector<5x2x256xbf16>
    %1 = arith.extf %0 : vector<5x2x256xbf16> to vector<5x2x256xf32>
    %cst = arith.constant dense<0.000000e+00> : vector<2x256xf32>
    %2 = vector.multi_reduction <add>, %1, %cst [0] : vector<5x2x256xf32> to vector<2x256xf32>
    %cst_2 = arith.constant 5.000000e+00 : f32
    %3 = vector.broadcast %cst_2 : f32 to vector<2x256xf32>
    %4 = arith.divf %2, %3 : vector<2x256xf32>
    %5 = vector.shape_cast %4 : vector<2x256xf32> to vector<1x2x256xf32>
    %6 = vector.broadcast %5 : vector<1x2x256xf32> to vector<5x2x256xf32>
    %7 = arith.subf %1, %6 : vector<5x2x256xf32>
    %8 = arith.mulf %7, %7 : vector<5x2x256xf32>
    %cst_3 = arith.constant dense<0.000000e+00> : vector<2x256xf32>
    %9 = vector.multi_reduction <add>, %8, %cst_3 [0] : vector<5x2x256xf32> to vector<2x256xf32>
    %cst_4 = arith.constant 4.000000e+00 : f32
    %10 = vector.broadcast %cst_4 : f32 to vector<2x256xf32>
    %11 = arith.divf %9, %10 : vector<2x256xf32>
    %cst_5 = arith.constant 1.000000e-07 : f32
    %12 = vector.broadcast %cst_5 : f32 to vector<2x256xf32>
    %13 = arith.addf %11, %12 : vector<2x256xf32>
    %14 = math.sqrt %13 : vector<2x256xf32>
    %15 = tpu.concatenate %4, %14 in 1 : vector<2x256xf32>, vector<2x256xf32> -> vector<2x512xf32>
    %c0_6 = arith.constant 0 : index
    %c0_7 = arith.constant 0 : index
    %16 = vector.load %arg1[%c0_6, %c0_7] : memref<2x512xf32, #tpu.memory_space<vmem>>, vector<2x512xf32>
    tpu.vector_store %arg1[%c0_6, %c0_7], %15 {strides = array<i32>} : memref<2x512xf32, #tpu.memory_space<vmem>>, vector<2x512xf32>,
    return
  }
}

module attributes {stable_mosaic.version = 11 : i64} {
  func.func @_mm_kernel(%arg0: i32, %arg1: memref<2x512xbf16, #tpu.memory_space<vmem>>, %arg2: memref<512x192xbf16, #tpu.memory_space<vmem>>, %arg3: memref<1x192xf32, #tpu.memory_space<vmem>>, %arg4: memref<1x192xf32, #tpu.memory_space<vmem>>, %arg5: memref<2x192xf32, #tpu.memory_space<vmem>>) attributes {dimension_semantics = [#tpu.dimension_semantics<parallel>], iteration_bounds = array<i64: 1>, scalar_prefetch = 0 : i64, scratch_operands = 0 : i64, tpu.core_type = #tpu.core_type<tc>, window_params = [{transform_indices = @transform_0, window_bounds = array<i64: 2, 512>}, {pipeline_mode = #tpu.pipeline_mode<synchronous>, transform_indices = @transform_1, window_bounds = array<i64: 512, 192>}, {pipeline_mode = #tpu.pipeline_mode<synchronous>, transform_indices = @transform_2, window_bounds = array<i64: 1, 192>}, {pipeline_mode = #tpu.pipeline_mode<synchronous>, transform_indices = @transform_3, window_bounds = array<i64: 1, 192>}, {transform_indices = @transform_4, window_bounds = array<i64: 2, 192>}]} {
    %c0 = arith.constant 0 : index
    %c0_0 = arith.constant 0 : index
    %0 = vector.load %arg1[%c0, %c0_0] : memref<2x512xbf16, #tpu.memory_space<vmem>>, vector<2x512xbf16>
    %c0_1 = arith.constant 0 : index
    %c0_2 = arith.constant 0 : index
    %1 = vector.load %arg2[%c0_1, %c0_2] : memref<512x192xbf16, #tpu.memory_space<vmem>>, vector<512x192xbf16>
    %cst = arith.constant dense<0.000000e+00> : vector<2x192xf32>
    %2 = tpu.matmul %0, %1, %cst {dimension_numbers = #tpu.dot_dimension_numbers<[1], [0], [0], [1], [0, 0, 1, 1], [], []>} : vector<2x512xbf16>, vector<512x192xbf16>, vector<2x192xf32> -> vector<2x192xf32>
    %c0_3 = arith.constant 0 : index
    %c0_4 = arith.constant 0 : index
    %3 = vector.load %arg3[%c0_3, %c0_4] : memref<1x192xf32, #tpu.memory_space<vmem>>, vector<1x192xf32>
    %4 = vector.broadcast %3 : vector<1x192xf32> to vector<2x192xf32>
    %5 = arith.mulf %2, %4 : vector<2x192xf32>
    %c0_5 = arith.constant 0 : index
    %c0_6 = arith.constant 0 : index
    %6 = vector.load %arg4[%c0_5, %c0_6] : memref<1x192xf32, #tpu.memory_space<vmem>>, vector<1x192xf32>
    %7 = vector.broadcast %6 : vector<1x192xf32> to vector<2x192xf32>
    %8 = arith.addf %5, %7 : vector<2x192xf32>
    %c0_7 = arith.constant 0 : index
    %c0_8 = arith.constant 0 : index
    %9 = vector.load %arg5[%c0_7, %c0_8] : memref<2x192xf32, #tpu.memory_space<vmem>>, vector<2x192xf32>
    tpu.vector_store %arg5[%c0_7, %c0_8], %8 {strides = array<i32>} : memref<2x192xf32, #tpu.memory_space<vmem>>, vector<2x192xf32>,
    return
  }
  func.func @transform_0(%arg0: i32) -> (i32, i32) {
    %c0_i32 = arith.constant 0 : i32
    %c0_i32_0 = arith.constant 0 : i32
    return %arg0, %c0_i32 : i32, i32
  }
  func.func @transform_1(%arg0: i32) -> (i32, i32) {
    %c0_i32 = arith.constant 0 : i32
    %c0_i32_0 = arith.constant 0 : i32
    %c0_i32_1 = arith.constant 0 : i32
    return %c0_i32, %c0_i32_0 : i32, i32
  }
  func.func @transform_2(%arg0: i32) -> (i32, i32) {
    %c0_i32 = arith.constant 0 : i32
    %c0_i32_0 = arith.constant 0 : i32
    %c0_i32_1 = arith.constant 0 : i32
    return %c0_i32, %c0_i32_0 : i32, i32
  }
  func.func @transform_3(%arg0: i32) -> (i32, i32) {
    %c0_i32 = arith.constant 0 : i32
    %c0_i32_0 = arith.constant 0 : i32
    %c0_i32_1 = arith.constant 0 : i32
    return %c0_i32, %c0_i32_0 : i32, i32
  }
  func.func @transform_4(%arg0: i32) -> (i32, i32) {
    %c0_i32 = arith.constant 0 : i32
    %c0_i32_0 = arith.constant 0 : i32
    return %arg0, %c0_i32 : i32, i32
  }
}

</mosaic_0001>

<bundles_post_ra>
// kernel: res2net_forward.39
= control target key start
LH: loop header
LB: loop body
LE: loop exit
PB: predicated region body
PF: predicated region fallthrough
CT: control target
= control target key end

     0   :  { %9 = vsyncpa [#allocation3], 0  ;;  %s742_s0 = inlined_call_operand.vmem [shape: bf16[66,240], index: 0, kind: input, shape index: {}]   ;;  %s743_s1 = inlined_call_operand.vmem [shape: bf16[240,16], index: 1, kind: input, shape index: {}]   ;;  %s744_s2 = inlined_call_operand.hbm [shape: f32[1,16], index: 2, kind: input, shape index: {}]   ;;  %s745_s3 = inlined_call_operand.hbm [shape: f32[1,16], index: 3, kind: input, shape index: {}]   ;;  %s746_s4 = inlined_call_operand.vmem [shape: bf16[66,16], index: 4, kind: output, shape index: {}]  }
   0x1   :  { %s20_s17 = sshll.u32 %s744_s2, 4  ;;  %s21_s17 = int_to_ptr.hbm [resolvable:$true] %s20_s17 }
   0x2   :  { %10 = vsyncpa [#allocation5], 0  ;;  %s551_s18 = smov [#allocation2]   ;;  %s31_s22 = sshll.u32 %s745_s3, 4  ;;  %s32_s22 = int_to_ptr.hbm [resolvable:$true] %s31_s22 }
   0x3   :  { %s22_s19 = sshll.u32 %s551_s18, 4  ;;  %s552_s23 = smov [#allocation4]   ;;  %s23_s19 = int_to_ptr.vmem [resolvable:$true] %s22_s19 }
   0x4   :  { %25 = dma.hbm_to_vmem [thread:$0]  %s21_s17, 16, %s23_s19, [#allocation3]  }
   0x5   :  { %s33_s24 = sshll.u32 %s552_s23, 4  ;;  %s34_s24 = int_to_ptr.vmem [resolvable:$true] %s33_s24 }
   0x6   :  { %36 = dma.hbm_to_vmem [thread:$0]  %s32_s22, 16, %s34_s24, [#allocation5]  }
   0x7   :  { %547 = dma.done.wait [#allocation3], 16  }
   0x8   :  { %548 = vsyncadd [#allocation3], 4294967280 }
   0x9   :  { %549 = dma.done.wait [#allocation5], 16  }
   0xa   :  { %550 = vsyncadd [#allocation5], 4294967280  ;;  %v472_v0 = vld [vmem:[%s743_s1 + $0x38] sm:$0xff]  ;;  %v479_v1 = vld [vmem:[%s743_s1 + $0x70] sm:$0xff]  ;;  %vm217_vm0 = vcmask 916480   ;;  %vm343_vm1 = vcmask 125952  }
   0xb   :  { %233 = vmatpush.bf16.msra.mxu0 %v472_v0  ;;  %480 = vmatpush.bf16.msra.mxu2 %v472_v0  ;;  %v471_v2 = vld [vmem:[%s743_s1 + $0x30] sm:$0xff]  ;;  %v478_v3 = vld [vmem:[%s743_s1 + $0x68] sm:$0xff]  ;;  %v477_v5 = vld [vmem:[%s743_s1 + $0x60] sm:$0xff]  ;;  %vm352_vm2 = vcmask 122880  }
   0xc   :  { %267 = vmatpush.bf16.msra.mxu1 %v479_v1  ;;  %488 = vmatpush.bf16.msra.mxu3 %v479_v1  ;;  %v470_v4 = vld [vmem:[%s743_s1 + $0x28] sm:$0xff]  ;;  %v469_v6 = vld [vmem:[%s743_s1 + $0x20] sm:$0xff]  ;;  %v476_v7 = vld [vmem:[%s743_s1 + $0x58] sm:$0xff] }
   0xd   :  { %v468_v8 = vld [vmem:[%s743_s1 + $0x18] sm:$0xff]  ;;  %v475_v9 = vld [vmem:[%s743_s1 + $0x50] sm:$0xff]  ;;  %v474_v11 = vld [vmem:[%s743_s1 + $0x48] sm:$0xff] }
   0xe   :  { %v467_v10 = vld [vmem:[%s743_s1 + $0x10] sm:$0xff]  ;;  %v466_v12 = vld [vmem:[%s743_s1 + $0x8] sm:$0xff]  ;;  %v473_v13 = vld [vmem:[%s743_s1 + $0x40] sm:$0xff] }
   0xf   :  { %234 = vmatpush.bf16.msra.mxu0 %v471_v2  ;;  %481 = vmatpush.bf16.msra.mxu2 %v471_v2  ;;  %v457_v14 = vld [vmem:[%s742_s0 + $0x4] sm:$0xf]  ;;  %v364_v15 = vld [vmem:[%s742_s0 + $0x8] sm:$0xf0]  ;;  %v463_v16 = vld [vmem:[%s742_s0 + $0x34] sm:$0xf] }
  0x10   :  { %268 = vmatpush.bf16.msra.mxu1 %v478_v3  ;;  %489 = vmatpush.bf16.msra.mxu3 %v478_v3  ;;  %v388_v17 = vld [vmem:[%s742_s0 + $0x38] sm:$0xf0]  ;;  %v367_v18 = vor.u32 %v457_v14, %v364_v15  ;;  %v465_v19 = vld [vmem:[%s743_s1] sm:$0xff]  ;;  %v458_v21 = vld [vmem:[%s742_s0 + $0x4] sm:$0xf0] }
  0x11   :  { %v362_v20 = vld [vmem:[%s742_s0] sm:$0xf]  ;;  %v462_v23 = vld [vmem:[%s742_s0 + $0x24] sm:$0xf0]  ;;  %v391_v24 = vor.u32 %v463_v16, %v388_v17  ;;  %v459_v28 = vld [vmem:[%s742_s0 + $0x14] sm:$0xf] }
  0x12   :  { %v378_v22 = vld [vmem:[%s742_s0 + $0x20] sm:$0xf]  ;;  %v363_v25 = vor.u32 %v458_v21, %v362_v20  ;;  %v372_v29 = vld [vmem:[%s742_s0 + $0x18] sm:$0xf0]  ;;  %v370_v32 = vld [vmem:[%s742_s0 + $0x10] sm:$0xf] }
  0x13   :  { %235 = vmatpush.bf16.msra.mxu0 %v470_v4  ;;  %482 = vmatpush.bf16.msra.mxu2 %v470_v4  ;;  %v379_v26 = vor.u32 %v462_v23, %v378_v22  ;;  %v54_v27 = vld [vmem:[%s742_s0 + $0x40] sm:$0x11]  ;;  %v375_v31 = vor.u32 %v459_v28, %v372_v29  ;;  %v460_v33 = vld [vmem:[%s742_s0 + $0x14] sm:$0xf0]  ;;  %v386_v34 = vld [vmem:[%s742_s0 + $0x30] sm:$0xf] }
  0x14   :  { %269 = vmatpush.bf16.msra.mxu1 %v477_v5  ;;  %490 = vmatpush.bf16.msra.mxu3 %v477_v5  ;;  %v111_v30 = vunpack.c.h.b16 %v54_v27  ;;  %v464_v35 = vld [vmem:[%s742_s0 + $0x34] sm:$0xf0]  ;;  %v371_v37 = vor.u32 %v460_v33, %v370_v32  ;;  %v461_v39 = vld [vmem:[%s742_s0 + $0x24] sm:$0xf]  ;;  %v380_v40 = vld [vmem:[%s742_s0 + $0x28] sm:$0xf0]  ;;  %v110_v42 = vunpack.c.l.b16 %v54_v27 }
  0x15   :  { %v387_v38 = vor.u32 %v464_v35, %v386_v34  ;;  %v383_v41 = vor.u32 %v461_v39, %v380_v40  ;;  %v685_v45 = vld [vmem:[#allocation2] ss:$0 sm:$0xff]  ;;  %v687_v48 = vld [vmem:[#allocation4] ss:$0 sm:$0xff] }
  0x16   :  { %v121_v36 = vpack.c.b16 %v111_v30, %v111_v30  ;;  %v120_v43 = vpack.c.b16 %v110_v42, %v110_v42 }
  0x17   :  { %236 = vmatpush.bf16.msra.mxu0 %v469_v6  ;;  %483 = vmatpush.bf16.msra.mxu2 %v469_v6 }
  0x18   :  { %270 = vmatpush.bf16.msra.mxu1 %v476_v7  ;;  %491 = vmatpush.bf16.msra.mxu3 %v476_v7 }
  0x1b   :  { %237 = vmatpush.bf16.msra.mxu0 %v468_v8  ;;  %484 = vmatpush.bf16.msra.mxu2 %v468_v8 }
  0x1c   :  { %271 = vmatpush.bf16.msra.mxu1 %v475_v9  ;;  %492 = vmatpush.bf16.msra.mxu3 %v475_v9 }
  0x1f   :  { %238 = vmatpush.bf16.msra.mxu0 %v467_v10  ;;  %485 = vmatpush.bf16.msra.mxu2 %v467_v10 }
  0x20   :  { %272 = vmatpush.bf16.msra.mxu1 %v474_v11  ;;  %493 = vmatpush.bf16.msra.mxu3 %v474_v11 }
  0x23   :  { %239 = vmatpush.bf16.msra.mxu0 %v466_v12  ;;  %486 = vmatpush.bf16.msra.mxu2 %v466_v12 }
  0x24   :  { %273 = vmatpush.bf16.msra.mxu1 %v473_v13  ;;  %494 = vmatpush.bf16.msra.mxu3 %v473_v13 }
  0x27   :  { %452 = vmatmul.msk.bf16.vlgmr.msra.gmra.mxu1 %vm217_vm0, %v367_v18  ;;  %240 = vmatpush.bf16.msra.mxu0 %v465_v19 }
  0x28   :  { %487 = vmatpush.bf16.msra.mxu2 %v465_v19  ;;  %455 = vmatmul.msk.bf16.vlgmr.msra.gmra.mxu3 %vm217_vm0, %v391_v24 }
  0x2a   :  { %241 = vmatmul.bf16.vlgmr.msra.gmra.mxu0 %v363_v25 }
  0x2b   :  { %251 = vmatmul.bf16.vlgmr.msra.gmra.mxu2 %v379_v26 }
  0x37   :  { %453 = vmatmul.msk.bf16.gmra.mxu1 %vm217_vm0, %v375_v31 }
  0x38   :  { %456 = vmatmul.msk.bf16.gmra.mxu3 %vm217_vm0, %v121_v36 }
  0x3a   :  { %246 = vmatmul.bf16.gmra.mxu0 %v371_v37 }
  0x3b   :  { %256 = vmatmul.bf16.gmra.mxu2 %v387_v38 }
  0x47   :  { %454 = vmatmul.msk.bf16.gmra.mxu1 %vm217_vm0, %v383_v41 }
  0x4b   :  { %261 = vmatmul.bf16.gmra.mxu2 %v120_v43 }
  0xa4   :  { %v275_v44 = vpop.f32.mrf.mxu1 }
  0xa7   :  { %v242_v46 = vpop.f32.mrf.mxu0 }
  0xa8   :  { %v276_v47 = vadd.f32 %v275_v44, %v242_v46 }
  0xaa   :  { %v303_v49 = vmul.f32 %v685_v45, %v276_v47 }
  0xab   :  { %v290_v50 = vpop.f32.mrf.mxu3 }
  0xac   :  { %v316_v51 = vadd.f32 %v687_v48, %v303_v49  ;;  %v277_v52 = vpop.f32.mrf.mxu1 }
  0xae   :  { %v325_v53 = vmax.f32 %v316_v51, 0.0  ;;  %v252_v54 = vpop.f32.mrf.mxu2 }
  0xaf   :  { %v244_v55 = vpop.f32.mrf.mxu0 }
  0xb0   :  { %v334_v56 = vpack.c.bf16 %v325_v53, %v325_v53  ;;  %v278_v57 = vadd.f32 %v277_v52, %v244_v55 }
  0xb2   :  { %344 = vst.msk [vmem:[%s746_s4] sm:$0xf] %vm343_vm1, %v334_v56  ;;  %v304_v58 = vmul.f32 %v685_v45, %v278_v57 }
  0xb3   :  { %v292_v59 = vpop.f32.mrf.mxu3 }
  0xb4   :  { %v317_v60 = vadd.f32 %v687_v48, %v304_v58  ;;  %v280_v61 = vpop.f32.mrf.mxu1 }
  0xb6   :  { %v326_v62 = vmax.f32 %v317_v60, 0.0  ;;  %v254_v63 = vpop.f32.mrf.mxu2 }
  0xb7   :  { %v247_v0 = vpop.f32.mrf.mxu0 }
  0xb8   :  { %v335_v1 = vpack.c.bf16 %v326_v62, %v326_v62  ;;  %v281_v2 = vadd.f32 %v280_v61, %v247_v0 }
  0xba   :  { %345 = vst.msk [vmem:[%s746_s4 + $0x4] sm:$0xf] %vm343_vm1, %v335_v1  ;;  %v305_v3 = vmul.f32 %v685_v45, %v281_v2 }
  0xbb   :  { %v295_v4 = vpop.f32.mrf.mxu3 }
  0xbc   :  { %v318_v5 = vadd.f32 %v687_v48, %v305_v3  ;;  %v282_v6 = vpop.f32.mrf.mxu1 }
  0xbe   :  { %v327_v7 = vmax.f32 %v318_v5, 0.0  ;;  %v257_v8 = vpop.f32.mrf.mxu2 }
  0xbf   :  { %v291_v9 = vadd.f32 %v290_v50, %v257_v8  ;;  %v249_v10 = vpop.f32.mrf.mxu0 }
  0xc0   :  { %v336_v11 = vpack.c.bf16 %v327_v7, %v327_v7  ;;  %v283_v12 = vadd.f32 %v282_v6, %v249_v10 }
  0xc1   :  { %v309_v13 = vmul.f32 %v685_v45, %v291_v9 }
  0xc2   :  { %346 = vst.msk [vmem:[%s746_s4 + $0x8] sm:$0xf] %vm343_vm1, %v336_v11  ;;  %v306_v14 = vmul.f32 %v685_v45, %v283_v12 }
  0xc3   :  { %v322_v15 = vadd.f32 %v687_v48, %v309_v13  ;;  %v297_v16 = vpop.f32.mrf.mxu3 }
  0xc4   :  { %v319_v17 = vadd.f32 %v687_v48, %v306_v14  ;;  %v285_v18 = vpop.f32.mrf.mxu1 }
  0xc5   :  { %v331_v19 = vmax.f32 %v322_v15, 0.0  ;;  %v286_v20 = vadd.f32 %v285_v18, %v252_v54 }
  0xc6   :  { %v328_v21 = vmax.f32 %v319_v17, 0.0  ;;  %v259_v22 = vpop.f32.mrf.mxu2 }
  0xc7   :  { %v340_v23 = vpack.c.bf16 %v331_v19, %v331_v19  ;;  %v307_v24 = vmul.f32 %v685_v45, %v286_v20  ;;  %v293_v25 = vadd.f32 %v292_v59, %v259_v22 }
  0xc8   :  { %v337_v26 = vpack.c.bf16 %v328_v21, %v328_v21 }
  0xc9   :  { %350 = vst.msk [vmem:[%s746_s4 + $0x18] sm:$0xf] %vm343_vm1, %v340_v23  ;;  %v320_v27 = vadd.f32 %v687_v48, %v307_v24  ;;  %v310_v28 = vmul.f32 %v685_v45, %v293_v25 }
  0xca   :  { %347 = vst.msk [vmem:[%s746_s4 + $0xc] sm:$0xf] %vm343_vm1, %v337_v26 }
  0xcb   :  { %v329_v29 = vmax.f32 %v320_v27, 0.0  ;;  %v323_v30 = vadd.f32 %v687_v48, %v310_v28 }
  0xcc   :  { %v287_v31 = vpop.f32.mrf.mxu1 }
  0xcd   :  { %v338_v32 = vpack.c.bf16 %v329_v29, %v329_v29  ;;  %v332_v33 = vmax.f32 %v323_v30, 0.0  ;;  %v288_v34 = vadd.f32 %v287_v31, %v254_v63 }
  0xce   :  { %v262_v35 = vpop.f32.mrf.mxu2 }
  0xcf   :  { %348 = vst.msk [vmem:[%s746_s4 + $0x10] sm:$0xf] %vm343_vm1, %v338_v32  ;;  %v341_v36 = vpack.c.bf16 %v332_v33, %v332_v33  ;;  %v308_v37 = vmul.f32 %v685_v45, %v288_v34  ;;  %v296_v38 = vadd.f32 %v295_v4, %v262_v35 }
  0xd1   :  { %351 = vst.msk [vmem:[%s746_s4 + $0x1c] sm:$0xf] %vm343_vm1, %v341_v36  ;;  %v321_v39 = vadd.f32 %v687_v48, %v308_v37  ;;  %v311_v40 = vmul.f32 %v685_v45, %v296_v38 }
  0xd3   :  { %v330_v41 = vmax.f32 %v321_v39, 0.0  ;;  %v324_v42 = vadd.f32 %v687_v48, %v311_v40 }
  0xd5   :  { %v339_v43 = vpack.c.bf16 %v330_v41, %v330_v41  ;;  %v333_v44 = vmax.f32 %v324_v42, 0.0 }
  0xd6   :  { %v264_v46 = vpop.f32.mrf.mxu2 }
  0xd7   :  { %349 = vst.msk [vmem:[%s746_s4 + $0x14] sm:$0xf] %vm343_vm1, %v339_v43  ;;  %v342_v47 = vpack.c.bf16 %v333_v44, %v333_v44 }
  0xd9   :  { %353 = vst.msk [vmem:[%s746_s4 + $0x20] sm:$0x1] %vm352_vm2, %v342_v47 }
  0xda   :  { %358 = vsyncpa [#allocation3], 1 }
  0xdb   :  { %359 = vsyncpa [#allocation5], 1 }

// kernel: res2net_forward.40
= control target key start
LH: loop header
LB: loop body
LE: loop exit
PB: predicated region body
PF: predicated region fallthrough
CT: control target
= control target key end

     0   :  { %9 = vsyncpa [#allocation3], 0  ;;  %s380_s0 = inlined_call_operand.vmem [shape: bf16[66,16], index: 0, kind: input, shape index: {}]   ;;  %s381_s1 = inlined_call_operand.vmem [shape: bf16[16,16], index: 1, kind: input, shape index: {}]   ;;  %s382_s2 = inlined_call_operand.hbm [shape: f32[1,16], index: 2, kind: input, shape index: {}]   ;;  %s383_s3 = inlined_call_operand.hbm [shape: f32[1,16], index: 3, kind: input, shape index: {}]   ;;  %s384_s4 = inlined_call_operand.vmem [shape: bf16[66,16], index: 4, kind: output, shape index: {}]  }
   0x1   :  { %s20_s17 = sshll.u32 %s382_s2, 4  ;;  %s21_s17 = int_to_ptr.hbm [resolvable:$true] %s20_s17 }
   0x2   :  { %10 = vsyncpa [#allocation5], 0  ;;  %s294_s18 = smov [#allocation2]   ;;  %s31_s22 = sshll.u32 %s383_s3, 4  ;;  %s32_s22 = int_to_ptr.hbm [resolvable:$true] %s31_s22 }
   0x3   :  { %s22_s19 = sshll.u32 %s294_s18, 4  ;;  %s295_s23 = smov [#allocation4]   ;;  %s23_s19 = int_to_ptr.vmem [resolvable:$true] %s22_s19 }
   0x4   :  { %25 = dma.hbm_to_vmem [thread:$0]  %s21_s17, 16, %s23_s19, [#allocation3]  }
   0x5   :  { %s33_s24 = sshll.u32 %s295_s23, 4  ;;  %s34_s24 = int_to_ptr.vmem [resolvable:$true] %s33_s24 }
   0x6   :  { %36 = dma.hbm_to_vmem [thread:$0]  %s32_s22, 16, %s34_s24, [#allocation5]  }
   0x7   :  { %290 = dma.done.wait [#allocation3], 16  }
   0x8   :  { %291 = vsyncadd [#allocation3], 4294967280 }
   0x9   :  { %292 = dma.done.wait [#allocation5], 16  }
   0xa   :  { %293 = vsyncadd [#allocation5], 4294967280  ;;  %v234_v0 = vld [vmem:[%s381_s1] sm:$0xff]  ;;  %v232_v1 = vld [vmem:[%s380_s0 + $0x10] sm:$0xff]  ;;  %vm86_vm0 = vcmask 130048   ;;  %vm188_vm1 = vcmask 125952  }
   0xb   :  { %v230_v2 = vld [vmem:[%s380_s0] sm:$0xff]  ;;  %236 = vmatpush.bf16.msra.mxu2 %v234_v0  ;;  %109 = vmatpush.bf16.msra.mxu0 %v234_v0  ;;  %v231_v4 = vld [vmem:[%s380_s0 + $0x8] sm:$0xff]  ;;  %v233_v7 = vld [vmem:[%s380_s0 + $0x18] sm:$0xff]  ;;  %vm197_vm2 = vcmask 122880  }
   0xc   :  { %v54_v3 = vld [vmem:[%s380_s0 + $0x20] sm:$0x1]  ;;  %235 = vmatpush.bf16.msra.mxu1 %v234_v0  ;;  %237 = vmatpush.bf16.msra.mxu3 %v234_v0  ;;  %v241_v10 = vld [vmem:[#allocation4] ss:$0 sm:$0xff] }
   0xd   :  { %v74_v5 = vunpack.c.l.b16 %v54_v3  ;;  %v240_v8 = vld [vmem:[#allocation2] ss:$0 sm:$0xff] }
   0xe   :  { %227 = vmatmul.msk.bf16.vlgmr.msra.gmra.mxu2 %vm86_vm0, %v232_v1  ;;  %225 = vmatmul.msk.bf16.vlgmr.msra.gmra.mxu0 %vm86_vm0, %v230_v2 }
   0xf   :  { %v79_v6 = vpack.c.b16 %v74_v5, %v74_v5  ;;  %226 = vmatmul.msk.bf16.vlgmr.msra.gmra.mxu1 %vm86_vm0, %v231_v4 }
  0x11   :  { %229 = vmatmul.msk.bf16.vlgmr.msra.gmra.mxu3 %vm86_vm0, %v79_v6 }
  0x1e   :  { %228 = vmatmul.msk.bf16.gmra.mxu2 %vm86_vm0, %v233_v7 }
  0x8b   :  { %v111_v9 = vpop.f32.mrf.mxu0 }
  0x8c   :  { %v139_v11 = vmul.f32 %v240_v8, %v111_v9  ;;  %v116_v12 = vpop.f32.mrf.mxu1 }
  0x8d   :  { %v141_v13 = vmul.f32 %v240_v8, %v116_v12 }
  0x8e   :  { %v152_v14 = vadd.f32 %v241_v10, %v139_v11 }
  0x8f   :  { %v154_v15 = vadd.f32 %v241_v10, %v141_v13 }
  0x90   :  { %v161_v16 = vmax.f32 %v152_v14, 0.0 }
  0x91   :  { %v121_v17 = vpop.f32.mrf.mxu2  ;;  %v163_v18 = vmax.f32 %v154_v15, 0.0 }
  0x92   :  { %v143_v19 = vmul.f32 %v240_v8, %v121_v17  ;;  %v170_v20 = vmin.f32 %v161_v16, 20.0 }
  0x93   :  { %v172_v22 = vmin.f32 %v163_v18, 20.0  ;;  %v113_v23 = vpop.f32.mrf.mxu0 }
  0x94   :  { %v131_v21 = vpop.f32.mrf.mxu3  ;;  %v156_v25 = vadd.f32 %v241_v10, %v143_v19  ;;  %v179_v26 = vpack.c.bf16 %v170_v20, %v170_v20  ;;  %v140_v27 = vmul.f32 %v240_v8, %v113_v23  ;;  %v118_v28 = vpop.f32.mrf.mxu1 }
  0x95   :  { %v147_v24 = vmul.f32 %v240_v8, %v131_v21  ;;  %v181_v29 = vpack.c.bf16 %v172_v22, %v172_v22  ;;  %v142_v30 = vmul.f32 %v240_v8, %v118_v28 }
  0x96   :  { %v165_v32 = vmax.f32 %v156_v25, 0.0  ;;  %189 = vst.msk [vmem:[%s384_s4] sm:$0xf] %vm188_vm1, %v179_v26  ;;  %v153_v33 = vadd.f32 %v241_v10, %v140_v27 }
  0x97   :  { %v160_v31 = vadd.f32 %v241_v10, %v147_v24  ;;  %191 = vst.msk [vmem:[%s384_s4 + $0x8] sm:$0xf] %vm188_vm1, %v181_v29  ;;  %v155_v34 = vadd.f32 %v241_v10, %v142_v30 }
  0x98   :  { %v174_v36 = vmin.f32 %v165_v32, 20.0  ;;  %v162_v37 = vmax.f32 %v153_v33, 0.0 }
  0x99   :  { %v169_v35 = vmax.f32 %v160_v31, 0.0  ;;  %v123_v38 = vpop.f32.mrf.mxu2  ;;  %v164_v39 = vmax.f32 %v155_v34, 0.0 }
  0x9a   :  { %v183_v41 = vpack.c.bf16 %v174_v36, %v174_v36  ;;  %v144_v42 = vmul.f32 %v240_v8, %v123_v38  ;;  %v171_v43 = vmin.f32 %v162_v37, 20.0 }
  0x9b   :  { %v178_v40 = vmin.f32 %v169_v35, 20.0  ;;  %v173_v45 = vmin.f32 %v164_v39, 20.0 }
  0x9c   :  { %v133_v44 = vpop.f32.mrf.mxu3  ;;  %193 = vst.msk [vmem:[%s384_s4 + $0x10] sm:$0xf] %vm188_vm1, %v183_v41  ;;  %v157_v47 = vadd.f32 %v241_v10, %v144_v42  ;;  %v180_v48 = vpack.c.bf16 %v171_v43, %v171_v43 }
  0x9d   :  { %v187_v46 = vpack.c.bf16 %v178_v40, %v178_v40  ;;  %v182_v49 = vpack.c.bf16 %v173_v45, %v173_v45 }
  0x9e   :  { %v166_v50 = vmax.f32 %v157_v47, 0.0  ;;  %190 = vst.msk [vmem:[%s384_s4 + $0x4] sm:$0xf] %vm188_vm1, %v180_v48 }
  0x9f   :  { %198 = vst.msk [vmem:[%s384_s4 + $0x20] sm:$0x1] %vm197_vm2, %v187_v46 }
  0xa0   :  { %192 = vst.msk [vmem:[%s384_s4 + $0xc] sm:$0xf] %vm188_vm1, %v182_v49  ;;  %v175_v51 = vmin.f32 %v166_v50, 20.0 }
  0xa1   :  { %v126_v52 = vpop.f32.mrf.mxu2 }
  0xa2   :  { %v184_v53 = vpack.c.bf16 %v175_v51, %v175_v51  ;;  %v145_v54 = vmul.f32 %v240_v8, %v126_v52 }
  0xa4   :  { %194 = vst.msk [vmem:[%s384_s4 + $0x14] sm:$0xf] %vm188_vm1, %v184_v53  ;;  %v158_v55 = vadd.f32 %v241_v10, %v145_v54 }
  0xa6   :  { %v167_v56 = vmax.f32 %v158_v55, 0.0 }
  0xa8   :  { %v176_v57 = vmin.f32 %v167_v56, 20.0 }
  0xa9   :  { %v128_v58 = vpop.f32.mrf.mxu2 }
  0xaa   :  { %v185_v59 = vpack.c.bf16 %v176_v57, %v176_v57  ;;  %v146_v60 = vmul.f32 %v240_v8, %v128_v58 }
  0xac   :  { %195 = vst.msk [vmem:[%s384_s4 + $0x18] sm:$0xf] %vm188_vm1, %v185_v59  ;;  %v159_v61 = vadd.f32 %v241_v10, %v146_v60 }
  0xae   :  { %v168_v62 = vmax.f32 %v159_v61, 0.0 }
  0xb0   :  { %v177_v63 = vmin.f32 %v168_v62, 20.0 }
  0xb2   :  { %v186_v0 = vpack.c.bf16 %v177_v63, %v177_v63 }
  0xb4   :  { %196 = vst.msk [vmem:[%s384_s4 + $0x1c] sm:$0xf] %vm188_vm1, %v186_v0 }
  0xb5   :  { %203 = vsyncpa [#allocation3], 1 }
  0xb6   :  { %204 = vsyncpa [#allocation5], 1 }

// kernel: res2net_forward.41
= control target key start
LH: loop header
LB: loop body
LE: loop exit
PB: predicated region body
PF: predicated region fallthrough
CT: control target
= control target key end

     0   :  { %9 = vsyncpa [#allocation3], 0  ;;  %s226_s18 = smov [#allocation2]   ;;  %s311_s0 = inlined_call_operand.vmem [shape: bf16[66,8], index: 0, kind: input, shape index: {}]   ;;  %s312_s1 = inlined_call_operand.vmem [shape: bf16[8,32], index: 1, kind: input, shape index: {}]   ;;  %s313_s2 = inlined_call_operand.vmem [shape: f32[1,32], index: 2, kind: input, shape index: {}]   ;;  %s314_s3 = inlined_call_operand.hbm [shape: f32[1,32], index: 3, kind: input, shape index: {}]   ;;  %s315_s4 = inlined_call_operand.vmem [shape: bf16[66,32], index: 4, kind: output, shape index: {}]  }
   0x1   :  { %s21_s17 = sshll.u32 %s314_s3, 4  ;;  %s23_s19 = sshll.u32 %s226_s18, 4  ;;  %s22_s17 = int_to_ptr.hbm [resolvable:$true] %s21_s17  ;;  %s24_s19 = int_to_ptr.vmem [resolvable:$true] %s23_s19 }
   0x2   :  { %26 = dma.hbm_to_vmem [thread:$0]  %s22_s17, 16, %s24_s19, [#allocation3]  }
   0x3   :  { %224 = dma.done.wait [#allocation3], 16  }
   0x4   :  { %225 = vsyncadd [#allocation3], 4294967280  ;;  %vm81_vm0 = vcmask 1043456   ;;  %v41_v0 = vld [vmem:[%s312_s1] sm:$0xf]  ;;  %v192_v2 = vld [vmem:[%s311_s0 + $0x10] sm:$0xff] }
   0x5   :  { %v83_v1 = vsel %vm81_vm0, %v41_v0, 0  ;;  %v190_v3 = vld [vmem:[%s311_s0] sm:$0xff]  ;;  %vm65_vm1 = vcmask 64512   ;;  %v191_v5 = vld [vmem:[%s311_s0 + $0x8] sm:$0xff]  ;;  %v193_v8 = vld [vmem:[%s311_s0 + $0x18] sm:$0xff]  ;;  %vm153_vm2 = vcmask 257024  }
   0x6   :  { %v40_v4 = vld [vmem:[%s311_s0 + $0x20] sm:$0x1]  ;;  %195 = vmatpush.bf16.msra.mxu2 %v83_v1  ;;  %92 = vmatpush.bf16.msra.mxu0 %v83_v1  ;;  %vm162_vm3 = vcmask 253952  }
   0x7   :  { %v59_v6 = vunpack.c.l.b16 %v40_v4  ;;  %194 = vmatpush.bf16.msra.mxu1 %v83_v1  ;;  %196 = vmatpush.bf16.msra.mxu3 %v83_v1  ;;  %v198_v9 = vld [vmem:[%s313_s2] ss:$0 sm:$0xff] }
   0x8   :  { %v199_v11 = vld [vmem:[#allocation2] ss:$0 sm:$0xff] }
   0x9   :  { %v64_v7 = vpack.c.b16 %v59_v6, %v59_v6  ;;  %187 = vmatmul.msk.bf16.vlgmr.msra.gmra.mxu2 %vm65_vm1, %v192_v2  ;;  %185 = vmatmul.msk.bf16.vlgmr.msra.gmra.mxu0 %vm65_vm1, %v190_v3 }
   0xa   :  { %186 = vmatmul.msk.bf16.vlgmr.msra.gmra.mxu1 %vm65_vm1, %v191_v5 }
   0xb   :  { %189 = vmatmul.msk.bf16.vlgmr.msra.gmra.mxu3 %vm65_vm1, %v64_v7 }
  0x19   :  { %188 = vmatmul.msk.bf16.gmra.mxu2 %vm65_vm1, %v193_v8 }
  0x86   :  { %v94_v10 = vpop.f32.mrf.mxu0 }
  0x87   :  { %v122_v12 = vmul.f32 %v198_v9, %v94_v10  ;;  %v99_v13 = vpop.f32.mrf.mxu1 }
  0x88   :  { %v124_v14 = vmul.f32 %v198_v9, %v99_v13 }
  0x89   :  { %v135_v15 = vadd.f32 %v199_v11, %v122_v12 }
  0x8a   :  { %v137_v16 = vadd.f32 %v199_v11, %v124_v14 }
  0x8b   :  { %v144_v17 = vpack.c.bf16 %v135_v15, %v135_v15 }
  0x8c   :  { %v104_v18 = vpop.f32.mrf.mxu2  ;;  %v146_v19 = vpack.c.bf16 %v137_v16, %v137_v16 }
  0x8d   :  { %v126_v20 = vmul.f32 %v198_v9, %v104_v18  ;;  %154 = vst.msk [vmem:[%s315_s4] sm:$0xf] %vm153_vm2, %v144_v17 }
  0x8e   :  { %v114_v21 = vpop.f32.mrf.mxu3  ;;  %156 = vst.msk [vmem:[%s315_s4 + $0x8] sm:$0xf] %vm153_vm2, %v146_v19  ;;  %v96_v23 = vpop.f32.mrf.mxu0 }
  0x8f   :  { %v130_v22 = vmul.f32 %v198_v9, %v114_v21  ;;  %v139_v24 = vadd.f32 %v199_v11, %v126_v20  ;;  %v123_v25 = vmul.f32 %v198_v9, %v96_v23  ;;  %v101_v26 = vpop.f32.mrf.mxu1 }
  0x90   :  { %v125_v28 = vmul.f32 %v198_v9, %v101_v26 }
  0x91   :  { %v143_v27 = vadd.f32 %v199_v11, %v130_v22  ;;  %v148_v29 = vpack.c.bf16 %v139_v24, %v139_v24  ;;  %v136_v30 = vadd.f32 %v199_v11, %v123_v25 }
  0x92   :  { %v138_v32 = vadd.f32 %v199_v11, %v125_v28 }
  0x93   :  { %v152_v31 = vpack.c.bf16 %v143_v27, %v143_v27  ;;  %158 = vst.msk [vmem:[%s315_s4 + $0x10] sm:$0xf] %vm153_vm2, %v148_v29  ;;  %v145_v33 = vpack.c.bf16 %v136_v30, %v136_v30 }
  0x94   :  { %v106_v34 = vpop.f32.mrf.mxu2  ;;  %v147_v35 = vpack.c.bf16 %v138_v32, %v138_v32 }
  0x95   :  { %163 = vst.msk [vmem:[%s315_s4 + $0x20] sm:$0x1] %vm162_vm3, %v152_v31  ;;  %v127_v36 = vmul.f32 %v198_v9, %v106_v34 }
  0x96   :  { %155 = vst.msk [vmem:[%s315_s4 + $0x4] sm:$0xf] %vm153_vm2, %v145_v33  ;;  %v116_v37 = vpop.f32.mrf.mxu3 }
  0x97   :  { %157 = vst.msk [vmem:[%s315_s4 + $0xc] sm:$0xf] %vm153_vm2, %v147_v35  ;;  %v140_v38 = vadd.f32 %v199_v11, %v127_v36 }
  0x99   :  { %v149_v39 = vpack.c.bf16 %v140_v38, %v140_v38 }
  0x9b   :  { %159 = vst.msk [vmem:[%s315_s4 + $0x14] sm:$0xf] %vm153_vm2, %v149_v39 }
  0x9c   :  { %v109_v40 = vpop.f32.mrf.mxu2 }
  0x9d   :  { %v128_v41 = vmul.f32 %v198_v9, %v109_v40 }
  0x9f   :  { %v141_v42 = vadd.f32 %v199_v11, %v128_v41 }
  0xa1   :  { %v150_v43 = vpack.c.bf16 %v141_v42, %v141_v42 }
  0xa3   :  { %160 = vst.msk [vmem:[%s315_s4 + $0x18] sm:$0xf] %vm153_vm2, %v150_v43 }
  0xa4   :  { %v111_v44 = vpop.f32.mrf.mxu2 }
  0xa5   :  { %v129_v45 = vmul.f32 %v198_v9, %v111_v44 }
  0xa7   :  { %v142_v46 = vadd.f32 %v199_v11, %v129_v45 }
  0xa9   :  { %v151_v47 = vpack.c.bf16 %v142_v46, %v142_v46 }
  0xab   :  { %161 = vst.msk [vmem:[%s315_s4 + $0x1c] sm:$0xf] %vm153_vm2, %v151_v47 }
  0xac   :  { %168 = vsyncpa [#allocation3], 1 }

// kernel: res2net_forward.42
= control target key start
LH: loop header
LB: loop body
LE: loop exit
PB: predicated region body
PF: predicated region fallthrough
CT: control target
= control target key end

     0   :  { %9 = vsyncpa [#allocation3], 0  ;;  %s525_s0 = inlined_call_operand.vmem [shape: bf16[33,2,32], index: 0, kind: input, shape index: {}]   ;;  %s526_s1 = inlined_call_operand.vmem [shape: bf16[8,32], index: 1, kind: input, shape index: {}]   ;;  %s527_s2 = inlined_call_operand.hbm [shape: f32[1,8], index: 2, kind: input, shape index: {}]   ;;  %s528_s3 = inlined_call_operand.hbm [shape: f32[1,8], index: 3, kind: input, shape index: {}]   ;;  %s529_s4 = inlined_call_operand.vmem [shape: bf16[33,2,8], index: 4, kind: output, shape index: {}]  }
   0x1   :  { %s20_s17 = sshll.u32 %s527_s2, 4  ;;  %s21_s17 = int_to_ptr.hbm [resolvable:$true] %s20_s17 }
   0x2   :  { %10 = vsyncpa [#allocation5], 0  ;;  %s416_s18 = smov [#allocation2]   ;;  %s31_s22 = sshll.u32 %s528_s3, 4  ;;  %s32_s22 = int_to_ptr.hbm [resolvable:$true] %s31_s22 }
   0x3   :  { %s22_s19 = sshll.u32 %s416_s18, 4  ;;  %s417_s23 = smov [#allocation4]   ;;  %s23_s19 = int_to_ptr.vmem [resolvable:$true] %s22_s19 }
   0x4   :  { %25 = dma.hbm_to_vmem [thread:$0]  %s21_s17, 16, %s23_s19, [#allocation3]  }
   0x5   :  { %s33_s24 = sshll.u32 %s417_s23, 4  ;;  %s34_s24 = int_to_ptr.vmem [resolvable:$true] %s33_s24 }
   0x6   :  { %36 = dma.hbm_to_vmem [thread:$0]  %s32_s22, 16, %s34_s24, [#allocation5]  }
   0x7   :  { %392 = dma.done.wait [#allocation3], 16  }
   0x8   :  { %393 = vsyncadd [#allocation3], 4294967280 }
   0x9   :  { %394 = dma.done.wait [#allocation5], 16  }
   0xa   :  { %395 = vsyncadd [#allocation5], 4294967280  ;;  %v459_v0 = vld [vmem:[%s526_s1] sm:$0xf]  ;;  %v461_v1 = vld [vmem:[#allocation2] sm:$0x1] }
   0xb   :  { %v463_v2 = vld [vmem:[#allocation4] sm:$0x1]  ;;  %v465_v3 = vmov 0.0   ;;  %v467_v4 = vmov 0.0   ;;  %v469_v5 = vmov 0.0   ;;  %v471_v6 = vmov 0.0  }
   0xc   :  { %s473_s3 = smov 0  }
   0xd LB: > { %61 = vst [vmem:[#allocation1] ss:$4 sm:$0xff] %v410_v6  ;;  %s418_s1 = smov 116   ;;  %s419_s26 = smov 104   ;;  %vm79_vm0 = vcmask 1043456   ;;  %vm72_vm1 = vcmask 31744   ;;  %s414_s3 = sphi %s473_s3, %s54_s3   ;;  %v410_v6 = vphi %v471_v6, %v530_v6   ;;  %v406_v5 = vphi %v469_v5, %v134_v5   ;;  %v402_v4 = vphi %v467_v4, %v177_v4   ;;  %v398_v3 = vphi %v465_v3, %v171_v3  }
   0xe   : > { %v81_v9 = vsel %vm79_vm0, %v459_v0, 0  ;;  %vm75_vm2 = vcmask 64512   ;;  %s96_s29 = scalar_lea.vmem %s525_s0, %s414_s3  ;;  %s59_s30 = ssub.s32 32, %s414_s3  ;;  %v179_v54 = vperm.slane %v461_v1, 0  ;;  %v185_v55 = vperm.slane %v463_v2, 0 }
   0xf   : > { %90 = vmatpush.bf16.msra.mxu0 %v81_v9  ;;  %v97_v14 = vld [vmem:[%s96_s29] sm:$0x1]  ;;  %s100_s7 = scalar_lea.vmem %s525_s0, %s59_s30  ;;  %s420_s8 = smov 120   ;;  %vm195_vm11 = vcmask 1040384   ;;  %vm204_vm12 = vcmask 24576   ;;  %vm227_vm13 = vcmask 57376  }
  0x10   : > { %v98_v15 = vunpack.c.l.bf16 %v97_v14  ;;  %v101_v17 = vld [vmem:[%s100_s7] sm:$0x1]  ;;  %s421_s9 = smov 4   ;;  %s422_s10 = smov 12  }
  0x11   : > { %v102_v19 = vunpack.c.l.bf16 %v101_v17  ;;  %s423_s11 = smov 24   ;;  %s424_s12 = smov 8  }
  0x12   : > { %s203_s15 = scalar_lea.vmem %s529_s4, %s414_s3  ;;  %s226_s18 = scalar_lea.vmem %s529_s4, %s59_s30 }
  0x13   : > { %s54_s3 = sadd.s32 1, %s414_s3  }
  0x14   : > { %v62_v7 = vld.sshfl [vmem:[#allocation1] sm:$0xff pattern:$0x73625140]  ;;  %p51_p0 = scmp.ge.s32.totalorder %s54_s3, 33  }
  0x15   : > { %63 = vrot.lane.b32.xlu0 %v62_v7, %s418_s1  ;;  %67 = vst [vmem:[#allocation1] ss:$4 sm:$0xff] %v402_v4 }
  0x1c   : > { %v68_v8 = vld.sshfl [vmem:[#allocation1] sm:$0xff pattern:$0x73625140] }
  0x1d   : > { %69 = vrot.lane.b32.xlu0 %v68_v8, %s419_s26 }
  0x87   : > { %v64_v10 = vpop.permute.xlu0 %63 }
  0x8f   : > { %v70_v11 = vpop.permute.xlu0 %69 }
  0x90   : > { %v73_v12 = vsel %vm72_vm1, %v64_v10, %v70_v11 }
  0x91   : > { %v74_v13 = vpack.c.bf16 %v73_v12, %v73_v12 }
  0x93   : > { %256 = vmatmul.msk.bf16.vlgmr.msra.gmra.mxu0 %vm75_vm2, %v74_v13 }
 0x110   : > { %v92_v16 = vpop.f32.mrf.mxu0 }
 0x111   : > { %v99_v18 = vadd.f32 %v98_v15, %v92_v16  ;;  %v103_v20 = vadd.f32 %v102_v19, %v92_v16 }
 0x113   : > { %308 = vtanh.f32 %v99_v18  ;;  %v257_v24 = vmul.f32 -1.442695, %v99_v18  ;;  %v258_v25 = vmul.f32 -1.442695, %v103_v20 }
 0x114   : > { %310 = vtanh.f32 %v103_v20 }
 0x115   : > { %312 = vpow2.f32 %v257_v24 }
 0x116   : > { %314 = vpow2.f32 %v258_v25 }
 0x118   : > { %v94_v21 = vpop.f32.mrf.mxu0 }
 0x119   : > { %v309_v22 = vpop.eup %308 }
 0x11a   : > { %126 = vrot.lane.b32.xlu1 %v309_v22, %s420_s8  ;;  %v311_v23 = vpop.eup %310 }
 0x11b   : > { %v313_v26 = vpop.eup %312 }
 0x11c   : > { %v107_v27 = vadd.f32 1.0, %v313_v26  ;;  %v315_v28 = vpop.eup %314 }
 0x11d   : > { %v144_v29 = vadd.f32 1.0, %v315_v28 }
 0x11e   : > { %316 = vrcp.f32 %v107_v27  ;;  %v119_v38 = vand.u32 2147483648, %v107_v27  ;;  %vm113_vm4 = vweird.f32 %v107_v27  ;;  %v117_v39 = vand.u32 2147483647, %v107_v27 }
 0x11f   : > { %318 = vrcp.f32 %v144_v29  ;;  %v156_v47 = vand.u32 2147483648, %v144_v29  ;;  %vm150_vm8 = vweird.f32 %v144_v29  ;;  %v154_v48 = vand.u32 2147483647, %v144_v29 }
 0x120   : > { %v120_v42 = vor.u32 1.1754944e-38, %v119_v38  ;;  %vm118_vm6 = vcmp.eq.f32.partialorder %v117_v39, 8.507059e+37 }
 0x121   : > { %v157_v50 = vor.u32 1.1754944e-38, %v156_v47  ;;  %vm155_vm10 = vcmp.eq.f32.partialorder %v154_v48, 8.507059e+37 }
 0x122   : > { %163 = vrot.lane.b32.xlu1 %v311_v23, %s420_s8 }
 0x124   : > { %v317_v30 = vpop.eup %316 }
 0x125   : > { %v109_v31 = vmul.f32 %v317_v30, %v107_v27  ;;  %v319_v33 = vpop.eup %318  ;;  %vm114_vm3 = vweird.f32 %v317_v30 }
 0x126   : > { %v146_v35 = vmul.f32 %v319_v33, %v144_v29  ;;  %vm115_vm5 = vmor %vm113_vm4, %vm114_vm3  ;;  %vm151_vm7 = vweird.f32 %v319_v33 }
 0x127   : > { %v110_v32 = vsub.f32 1.0, %v109_v31  ;;  %vm152_vm9 = vmor %vm150_vm8, %vm151_vm7 }
 0x128   : > { %v147_v37 = vsub.f32 1.0, %v146_v35 }
 0x129   : > { %v111_v34 = vmul.f32 %v317_v30, %v110_v32 }
 0x12a   : > { %v148_v41 = vmul.f32 %v319_v33, %v147_v37 }
 0x12b   : > { %v112_v36 = vadd.f32 %v317_v30, %v111_v34 }
 0x12c   : > { %v149_v46 = vadd.f32 %v319_v33, %v148_v41 }
 0x12d   : > { %v116_v40 = vsel %vm115_vm5, %v317_v30, %v112_v36 }
 0x12e   : > { %v121_v44 = vsel %vm118_vm6, %v120_v42, %v116_v40  ;;  %v153_v49 = vsel %vm152_vm9, %v319_v33, %v149_v46 }
 0x12f   : > { %v158_v51 = vsel %vm155_vm10, %v157_v50, %v153_v49  ;;  %v124_v56 = vmul.f32 %v406_v5, %v121_v44 }
 0x130   : > { %v161_v58 = vmul.f32 %v398_v3, %v158_v51 }
 0x18c   : > { %v127_v43 = vpop.permute.xlu1 %126 }
 0x18d   : > { %v129_v45 = vmul.f32 %v127_v43, %v121_v44 }
 0x18f   : > { %131 = vrot.lane.b32.xlu2 %v129_v45, %s421_s9 }
 0x194   : > { %v164_v52 = vpop.permute.xlu1 %163 }
 0x195   : > { %v166_v53 = vmul.f32 %v164_v52, %v158_v51 }
 0x197   : > { %168 = vrot.lane.b32.xlu2 %v166_v53, %s421_s9 }
 0x19f   : > { %180 = vrot.lane.b32.xlu2 %v179_v54, %s422_s10 }
 0x1a7   : > { %210 = vrot.lane.b32.xlu2 %v185_v55, %s423_s11 }
 0x1e9   : > { %v132_v57 = vpop.permute.xlu2 %131 }
 0x1ea   : > { %v134_v5 = vadd.f32 %v132_v57, %v124_v56  }
 0x1ec   : > { %320 = vtanh.f32 %v134_v5 }
 0x1f1   : > { %v169_v59 = vpop.permute.xlu2 %168 }
 0x1f2   : > { %v321_v60 = vpop.eup %320  ;;  %v171_v3 = vadd.f32 %v169_v59, %v161_v58  }
 0x1f3   : > { %137 = vrot.lane.b32.xlu0 %v321_v60, %s424_s12 }
 0x1f4   : > { %322 = vtanh.f32 %v171_v3 }
 0x1f9   : > { %v181_v63 = vpop.permute.xlu2 %180 }
 0x1fa   : > { %v323_v61 = vpop.eup %322 }
 0x1fb   : > { %174 = vrot.lane.b32.xlu1 %v323_v61, %s424_s12  ;;  %206 = vrot.lane.b32.xlu0 %v179_v54, %s423_s11 }
 0x201   : > { %v211_v7 = vpop.permute.xlu2 %210 }
 0x203   : > { %186 = vrot.lane.b32.xlu1 %v185_v55, %s422_s10 }
 0x265   : > { %v138_v62 = vpop.permute.xlu0 %137 }
 0x266   : > { %v140_v8 = vmul.f32 %v138_v62, %v121_v44  }
 0x268   : > { %v183_v11 = vmul.f32 %v181_v63, %v140_v8 }
 0x26d   : > { %v175_v4 = vpop.permute.xlu1 %174  ;;  %v207_v6 = vpop.permute.xlu0 %206 }
 0x26e   : > { %v177_v4 = vmul.f32 %v175_v4, %v158_v51  }
 0x270   : > { %v209_v9 = vmul.f32 %v207_v6, %v177_v4  ;;  %v530_v6 = vmov %v140_v8 }
 0x272   : > { %v213_v10 = vadd.f32 %v211_v7, %v209_v9 }
 0x274   : > { %v214_v12 = vmax.f32 %v213_v10, 0.0 }
 0x275   : > { %v187_v13 = vpop.permute.xlu1 %186 }
 0x276   : > { %v215_v14 = vmin.f32 %v214_v12, 20.0  ;;  %v189_v15 = vadd.f32 %v187_v13, %v183_v11 }
 0x278   : > { %v216_v16 = vpack.c.bf16 %v215_v14, %v215_v14  ;;  %v190_v17 = vmax.f32 %v189_v15, 0.0 }
 0x27a   : > { %v218_v18 = vrot.slane %v216_v16, 3  ;;  %v191_v19 = vmin.f32 %v190_v17, 20.0 }
 0x27c   : > { %v192_v20 = vpack.c.bf16 %v191_v19, %v191_v19  ;;  %v221_v21 = vsel %vm195_vm11, %v216_v16, %v218_v18 }
 0x27d   : > { %223 = vrot.lane.b32.xlu1 %v221_v21, %s419_s26 }
 0x27e   : > { %v194_v22 = vrot.slane %v192_v20, 3 }
 0x280   : > { %v198_v23 = vsel %vm195_vm11, %v192_v20, %v194_v22 }
 0x281   : > { %200 = vrot.lane.b32.xlu0 %v198_v23, %s418_s1 }
 0x2ef   : > { %v224_v25 = vpop.permute.xlu1 %223 }
 0x2f1   :  { %53 = sbr.rel (!%p51_p0) target bundleno = 13 (0xd), region = 55 }
 0x2f3   : > { %v201_v24 = vpop.permute.xlu0 %200 }
 0x2f4   : > { %205 = vst.msk [vmem:[%s203_s15] sm:$0x1] %vm204_vm12, %v201_v24 }
 0x2f5   : > { %228 = vst.msk [vmem:[%s226_s18] sm:$0x1] %vm227_vm13, %v224_v25 }
 0x2f6   :  { %233 = vsyncpa [#allocation3], 1 }
 0x2f7   :  { %234 = vsyncpa [#allocation5], 1 }

// kernel: res2net_forward.43
= control target key start
LH: loop header
LB: loop body
LE: loop exit
PB: predicated region body
PF: predicated region fallthrough
CT: control target
= control target key end

     0   :  { %9 = vsyncpa [#allocation3], 0  ;;  %s362_s0 = inlined_call_operand.vmem [shape: bf16[66,16], index: 0, kind: input, shape index: {}]   ;;  %s363_s1 = inlined_call_operand.vmem [shape: bf16[16,32], index: 1, kind: input, shape index: {}]   ;;  %s364_s2 = inlined_call_operand.hbm [shape: f32[1,32], index: 2, kind: input, shape index: {}]   ;;  %s365_s3 = inlined_call_operand.hbm [shape: f32[1,32], index: 3, kind: input, shape index: {}]   ;;  %s366_s4 = inlined_call_operand.vmem [shape: bf16[66,32], index: 4, kind: output, shape index: {}]  }
   0x1   :  { %s20_s17 = sshll.u32 %s364_s2, 4  ;;  %s21_s17 = int_to_ptr.hbm [resolvable:$true] %s20_s17 }
   0x2   :  { %10 = vsyncpa [#allocation5], 0  ;;  %s276_s18 = smov [#allocation2]   ;;  %s31_s22 = sshll.u32 %s365_s3, 4  ;;  %s32_s22 = int_to_ptr.hbm [resolvable:$true] %s31_s22 }
   0x3   :  { %s22_s19 = sshll.u32 %s276_s18, 4  ;;  %s277_s23 = smov [#allocation4]   ;;  %s23_s19 = int_to_ptr.vmem [resolvable:$true] %s22_s19 }
   0x4   :  { %25 = dma.hbm_to_vmem [thread:$0]  %s21_s17, 16, %s23_s19, [#allocation3]  }
   0x5   :  { %s33_s24 = sshll.u32 %s277_s23, 4  ;;  %s34_s24 = int_to_ptr.vmem [resolvable:$true] %s33_s24 }
   0x6   :  { %36 = dma.hbm_to_vmem [thread:$0]  %s32_s22, 16, %s34_s24, [#allocation5]  }
   0x7   :  { %272 = dma.done.wait [#allocation3], 16  }
   0x8   :  { %273 = vsyncadd [#allocation3], 4294967280 }
   0x9   :  { %274 = dma.done.wait [#allocation5], 16  }
   0xa   :  { %275 = vsyncadd [#allocation5], 4294967280  ;;  %v216_v0 = vld [vmem:[%s363_s1] sm:$0xff]  ;;  %v214_v1 = vld [vmem:[%s362_s0 + $0x10] sm:$0xff]  ;;  %vm86_vm0 = vcmask 130048   ;;  %vm170_vm1 = vcmask 257024  }
   0xb   :  { %v212_v2 = vld [vmem:[%s362_s0] sm:$0xff]  ;;  %218 = vmatpush.bf16.msra.mxu2 %v216_v0  ;;  %109 = vmatpush.bf16.msra.mxu0 %v216_v0  ;;  %v213_v4 = vld [vmem:[%s362_s0 + $0x8] sm:$0xff]  ;;  %v215_v7 = vld [vmem:[%s362_s0 + $0x18] sm:$0xff]  ;;  %vm179_vm2 = vcmask 253952  }
   0xc   :  { %v54_v3 = vld [vmem:[%s362_s0 + $0x20] sm:$0x1]  ;;  %217 = vmatpush.bf16.msra.mxu1 %v216_v0  ;;  %219 = vmatpush.bf16.msra.mxu3 %v216_v0  ;;  %v223_v10 = vld [vmem:[#allocation4] ss:$0 sm:$0xff] }
   0xd   :  { %v74_v5 = vunpack.c.l.b16 %v54_v3  ;;  %v222_v8 = vld [vmem:[#allocation2] ss:$0 sm:$0xff] }
   0xe   :  { %209 = vmatmul.msk.bf16.vlgmr.msra.gmra.mxu2 %vm86_vm0, %v214_v1  ;;  %207 = vmatmul.msk.bf16.vlgmr.msra.gmra.mxu0 %vm86_vm0, %v212_v2 }
   0xf   :  { %v79_v6 = vpack.c.b16 %v74_v5, %v74_v5  ;;  %208 = vmatmul.msk.bf16.vlgmr.msra.gmra.mxu1 %vm86_vm0, %v213_v4 }
  0x11   :  { %211 = vmatmul.msk.bf16.vlgmr.msra.gmra.mxu3 %vm86_vm0, %v79_v6 }
  0x1e   :  { %210 = vmatmul.msk.bf16.gmra.mxu2 %vm86_vm0, %v215_v7 }
  0x8b   :  { %v111_v9 = vpop.f32.mrf.mxu0 }
  0x8c   :  { %v139_v11 = vmul.f32 %v222_v8, %v111_v9  ;;  %v116_v12 = vpop.f32.mrf.mxu1 }
  0x8d   :  { %v141_v13 = vmul.f32 %v222_v8, %v116_v12 }
  0x8e   :  { %v152_v14 = vadd.f32 %v223_v10, %v139_v11 }
  0x8f   :  { %v154_v15 = vadd.f32 %v223_v10, %v141_v13 }
  0x90   :  { %v161_v16 = vpack.c.bf16 %v152_v14, %v152_v14 }
  0x91   :  { %v121_v17 = vpop.f32.mrf.mxu2  ;;  %v163_v18 = vpack.c.bf16 %v154_v15, %v154_v15 }
  0x92   :  { %v143_v19 = vmul.f32 %v222_v8, %v121_v17  ;;  %171 = vst.msk [vmem:[%s366_s4] sm:$0xf] %vm170_vm1, %v161_v16 }
  0x93   :  { %173 = vst.msk [vmem:[%s366_s4 + $0x8] sm:$0xf] %vm170_vm1, %v163_v18  ;;  %v113_v22 = vpop.f32.mrf.mxu0 }
  0x94   :  { %v131_v20 = vpop.f32.mrf.mxu3  ;;  %v156_v23 = vadd.f32 %v223_v10, %v143_v19  ;;  %v140_v24 = vmul.f32 %v222_v8, %v113_v22  ;;  %v118_v25 = vpop.f32.mrf.mxu1 }
  0x95   :  { %v147_v21 = vmul.f32 %v222_v8, %v131_v20  ;;  %v142_v27 = vmul.f32 %v222_v8, %v118_v25 }
  0x96   :  { %v165_v28 = vpack.c.bf16 %v156_v23, %v156_v23  ;;  %v153_v29 = vadd.f32 %v223_v10, %v140_v24 }
  0x97   :  { %v160_v26 = vadd.f32 %v223_v10, %v147_v21  ;;  %v155_v31 = vadd.f32 %v223_v10, %v142_v27 }
  0x98   :  { %175 = vst.msk [vmem:[%s366_s4 + $0x10] sm:$0xf] %vm170_vm1, %v165_v28  ;;  %v162_v32 = vpack.c.bf16 %v153_v29, %v153_v29 }
  0x99   :  { %v169_v30 = vpack.c.bf16 %v160_v26, %v160_v26  ;;  %v123_v33 = vpop.f32.mrf.mxu2  ;;  %v164_v34 = vpack.c.bf16 %v155_v31, %v155_v31 }
  0x9a   :  { %v144_v35 = vmul.f32 %v222_v8, %v123_v33  ;;  %172 = vst.msk [vmem:[%s366_s4 + $0x4] sm:$0xf] %vm170_vm1, %v162_v32 }
  0x9b   :  { %180 = vst.msk [vmem:[%s366_s4 + $0x20] sm:$0x1] %vm179_vm2, %v169_v30 }
  0x9c   :  { %v133_v36 = vpop.f32.mrf.mxu3  ;;  %174 = vst.msk [vmem:[%s366_s4 + $0xc] sm:$0xf] %vm170_vm1, %v164_v34  ;;  %v157_v37 = vadd.f32 %v223_v10, %v144_v35 }
  0x9e   :  { %v166_v38 = vpack.c.bf16 %v157_v37, %v157_v37 }
  0xa0   :  { %176 = vst.msk [vmem:[%s366_s4 + $0x14] sm:$0xf] %vm170_vm1, %v166_v38 }
  0xa1   :  { %v126_v39 = vpop.f32.mrf.mxu2 }
  0xa2   :  { %v145_v40 = vmul.f32 %v222_v8, %v126_v39 }
  0xa4   :  { %v158_v41 = vadd.f32 %v223_v10, %v145_v40 }
  0xa6   :  { %v167_v42 = vpack.c.bf16 %v158_v41, %v158_v41 }
  0xa8   :  { %177 = vst.msk [vmem:[%s366_s4 + $0x18] sm:$0xf] %vm170_vm1, %v167_v42 }
  0xa9   :  { %v128_v43 = vpop.f32.mrf.mxu2 }
  0xaa   :  { %v146_v44 = vmul.f32 %v222_v8, %v128_v43 }
  0xac   :  { %v159_v45 = vadd.f32 %v223_v10, %v146_v44 }
  0xae   :  { %v168_v46 = vpack.c.bf16 %v159_v45, %v159_v45 }
  0xb0   :  { %178 = vst.msk [vmem:[%s366_s4 + $0x1c] sm:$0xf] %vm170_vm1, %v168_v46 }
  0xb1   :  { %185 = vsyncpa [#allocation3], 1 }
  0xb2   :  { %186 = vsyncpa [#allocation5], 1 }

// kernel: res2net_forward.44
= control target key start
LH: loop header
LB: loop body
LE: loop exit
PB: predicated region body
PF: predicated region fallthrough
CT: control target
= control target key end

     0   :  { %10 = vsyncpa [#allocation3], 0  ;;  %s471_s0 = inlined_call_operand.vmem [shape: bf16[66,16], index: 0, kind: input, shape index: {}]   ;;  %s472_s1 = inlined_call_operand.vmem [shape: bf16[16,32], index: 1, kind: input, shape index: {}]   ;;  %s473_s2 = inlined_call_operand.hbm [shape: f32[1,32], index: 2, kind: input, shape index: {}]   ;;  %s474_s3 = inlined_call_operand.hbm [shape: f32[1,32], index: 3, kind: input, shape index: {}]   ;;  %s475_s4 = inlined_call_operand.vmem [shape: bf16[66,32], index: 4, kind: input, shape index: {}]   ;;  %s476_s5 = inlined_call_operand.vmem [shape: bf16[66,32], index: 5, kind: output, shape index: {}]  }
   0x1   :  { %s21_s20 = sshll.u32 %s473_s2, 4  ;;  %s22_s20 = int_to_ptr.hbm [resolvable:$true] %s21_s20 }
   0x2   :  { %11 = vsyncpa [#allocation5], 0  ;;  %s343_s21 = smov [#allocation2]   ;;  %s32_s25 = sshll.u32 %s474_s3, 4  ;;  %s33_s25 = int_to_ptr.hbm [resolvable:$true] %s32_s25 }
   0x3   :  { %s23_s22 = sshll.u32 %s343_s21, 4  ;;  %s344_s26 = smov [#allocation4]   ;;  %s24_s22 = int_to_ptr.vmem [resolvable:$true] %s23_s22 }
   0x4   :  { %26 = dma.hbm_to_vmem [thread:$0]  %s22_s20, 16, %s24_s22, [#allocation3]  }
   0x5   :  { %s34_s27 = sshll.u32 %s344_s26, 4  ;;  %s35_s27 = int_to_ptr.vmem [resolvable:$true] %s34_s27 }
   0x6   :  { %37 = dma.hbm_to_vmem [thread:$0]  %s33_s25, 16, %s35_s27, [#allocation5]  }
   0x7   :  { %339 = dma.done.wait [#allocation3], 16  }
   0x8   :  { %340 = vsyncadd [#allocation3], 4294967280 }
   0x9   :  { %341 = dma.done.wait [#allocation5], 16  }
   0xa   :  { %342 = vsyncadd [#allocation5], 4294967280  ;;  %v264_v0 = vld [vmem:[%s472_s1] sm:$0xff]  ;;  %v262_v1 = vld [vmem:[%s471_s0 + $0x10] sm:$0xff]  ;;  %vm89_vm0 = vcmask 130048   ;;  %vm218_vm1 = vcmask 257024  }
   0xb   :  { %v260_v2 = vld [vmem:[%s471_s0] sm:$0xff]  ;;  %285 = vmatpush.bf16.msra.mxu2 %v264_v0  ;;  %112 = vmatpush.bf16.msra.mxu0 %v264_v0  ;;  %v261_v4 = vld [vmem:[%s471_s0 + $0x8] sm:$0xff]  ;;  %v263_v7 = vld [vmem:[%s471_s0 + $0x18] sm:$0xff]  ;;  %vm227_vm2 = vcmask 253952  }
   0xc   :  { %v57_v3 = vld [vmem:[%s471_s0 + $0x20] sm:$0x1]  ;;  %284 = vmatpush.bf16.msra.mxu1 %v264_v0  ;;  %286 = vmatpush.bf16.msra.mxu3 %v264_v0  ;;  %v281_v10 = vld [vmem:[%s475_s4 + $0x8] sm:$0xff]   ;;  %v407_v12 = vld [vmem:[#allocation4] ss:$0 sm:$0xff] }
   0xd   :  { %v77_v5 = vunpack.c.l.b16 %v57_v3  ;;  %v266_v8 = vld [vmem:[%s475_s4] sm:$0xff]   ;;  %v271_v17 = vunpack.c.l.bf16 %v281_v10  ;;  %v282_v19 = vld [vmem:[%s475_s4 + $0x10] sm:$0xff]   ;;  %v272_v40 = vunpack.c.h.bf16 %v281_v10 }
   0xe   :  { %257 = vmatmul.msk.bf16.vlgmr.msra.gmra.mxu2 %vm89_vm0, %v262_v1  ;;  %255 = vmatmul.msk.bf16.vlgmr.msra.gmra.mxu0 %vm89_vm0, %v260_v2  ;;  %v402_v9 = vld [vmem:[#allocation2] ss:$0 sm:$0xff]  ;;  %v267_v14 = vunpack.c.l.bf16 %v266_v8  ;;  %v275_v26 = vunpack.c.l.bf16 %v282_v19  ;;  %v268_v36 = vunpack.c.h.bf16 %v266_v8  ;;  %v276_v55 = vunpack.c.h.bf16 %v282_v19 }
   0xf   :  { %v82_v6 = vpack.c.b16 %v77_v5, %v77_v5  ;;  %256 = vmatmul.msk.bf16.vlgmr.msra.gmra.mxu1 %vm89_vm0, %v261_v4  ;;  %v172_v22 = vld [vmem:[%s475_s4 + $0x20] sm:$0x1]  ;;  %v283_v4 = vld [vmem:[%s475_s4 + $0x18] sm:$0xff]  }
  0x10   :  { %v181_v32 = vunpack.c.l.bf16 %v172_v22  ;;  %v279_v10 = vunpack.c.l.bf16 %v283_v4  ;;  %v280_v19 = vunpack.c.h.bf16 %v283_v4 }
  0x11   :  { %259 = vmatmul.msk.bf16.vlgmr.msra.gmra.mxu3 %vm89_vm0, %v82_v6 }
  0x1e   :  { %258 = vmatmul.msk.bf16.gmra.mxu2 %vm89_vm0, %v263_v7 }
  0x8b   :  { %v114_v11 = vpop.f32.mrf.mxu0 }
  0x8c   :  { %v142_v13 = vmul.f32 %v402_v9, %v114_v11  ;;  %v119_v15 = vpop.f32.mrf.mxu1 }
  0x8d   :  { %v144_v16 = vmul.f32 %v402_v9, %v119_v15 }
  0x8e   :  { %v155_v18 = vadd.f32 %v407_v12, %v142_v13 }
  0x8f   :  { %v157_v20 = vadd.f32 %v407_v12, %v144_v16 }
  0x90   :  { %v182_v21 = vadd.f32 %v267_v14, %v155_v18 }
  0x91   :  { %v124_v23 = vpop.f32.mrf.mxu2  ;;  %v184_v24 = vadd.f32 %v271_v17, %v157_v20 }
  0x92   :  { %v146_v25 = vmul.f32 %v402_v9, %v124_v23  ;;  %v191_v27 = vmax.f32 %v182_v21, 0.0 }
  0x93   :  { %v193_v29 = vmax.f32 %v184_v24, 0.0  ;;  %v116_v30 = vpop.f32.mrf.mxu0 }
  0x94   :  { %v134_v28 = vpop.f32.mrf.mxu3  ;;  %v159_v33 = vadd.f32 %v407_v12, %v146_v25  ;;  %v200_v34 = vmin.f32 %v191_v27, 20.0  ;;  %v143_v35 = vmul.f32 %v402_v9, %v116_v30  ;;  %v121_v37 = vpop.f32.mrf.mxu1 }
  0x95   :  { %v150_v31 = vmul.f32 %v402_v9, %v134_v28  ;;  %v202_v38 = vmin.f32 %v193_v29, 20.0  ;;  %v145_v39 = vmul.f32 %v402_v9, %v121_v37 }
  0x96   :  { %v186_v42 = vadd.f32 %v275_v26, %v159_v33  ;;  %v209_v43 = vpack.c.bf16 %v200_v34, %v200_v34  ;;  %v156_v44 = vadd.f32 %v407_v12, %v143_v35 }
  0x97   :  { %v163_v41 = vadd.f32 %v407_v12, %v150_v31  ;;  %v211_v45 = vpack.c.bf16 %v202_v38, %v202_v38  ;;  %v158_v46 = vadd.f32 %v407_v12, %v145_v39 }
  0x98   :  { %v195_v48 = vmax.f32 %v186_v42, 0.0  ;;  %219 = vst.msk [vmem:[%s476_s5] sm:$0xf] %vm218_vm1, %v209_v43  ;;  %v183_v49 = vadd.f32 %v268_v36, %v156_v44 }
  0x99   :  { %v190_v47 = vadd.f32 %v181_v32, %v163_v41  ;;  %221 = vst.msk [vmem:[%s476_s5 + $0x8] sm:$0xf] %vm218_vm1, %v211_v45  ;;  %v126_v50 = vpop.f32.mrf.mxu2  ;;  %v185_v51 = vadd.f32 %v272_v40, %v158_v46 }
  0x9a   :  { %v204_v53 = vmin.f32 %v195_v48, 20.0  ;;  %v147_v54 = vmul.f32 %v402_v9, %v126_v50  ;;  %v192_v56 = vmax.f32 %v183_v49, 0.0 }
  0x9b   :  { %v199_v52 = vmax.f32 %v190_v47, 0.0  ;;  %v194_v58 = vmax.f32 %v185_v51, 0.0 }
  0x9c   :  { %v136_v57 = vpop.f32.mrf.mxu3  ;;  %v213_v60 = vpack.c.bf16 %v204_v53, %v204_v53  ;;  %v160_v61 = vadd.f32 %v407_v12, %v147_v54  ;;  %v201_v62 = vmin.f32 %v192_v56, 20.0 }
  0x9d   :  { %v208_v59 = vmin.f32 %v199_v52, 20.0  ;;  %v203_v63 = vmin.f32 %v194_v58, 20.0 }
  0x9e   :  { %223 = vst.msk [vmem:[%s476_s5 + $0x10] sm:$0xf] %vm218_vm1, %v213_v60  ;;  %v187_v1 = vadd.f32 %v276_v55, %v160_v61  ;;  %v210_v2 = vpack.c.bf16 %v201_v62, %v201_v62 }
  0x9f   :  { %v217_v0 = vpack.c.bf16 %v208_v59, %v208_v59  ;;  %v212_v3 = vpack.c.bf16 %v203_v63, %v203_v63 }
  0xa0   :  { %v196_v5 = vmax.f32 %v187_v1, 0.0  ;;  %220 = vst.msk [vmem:[%s476_s5 + $0x4] sm:$0xf] %vm218_vm1, %v210_v2 }
  0xa1   :  { %228 = vst.msk [vmem:[%s476_s5 + $0x20] sm:$0x1] %vm227_vm2, %v217_v0  ;;  %v129_v6 = vpop.f32.mrf.mxu2 }
  0xa2   :  { %222 = vst.msk [vmem:[%s476_s5 + $0xc] sm:$0xf] %vm218_vm1, %v212_v3  ;;  %v205_v7 = vmin.f32 %v196_v5, 20.0  ;;  %v148_v8 = vmul.f32 %v402_v9, %v129_v6 }
  0xa4   :  { %v214_v11 = vpack.c.bf16 %v205_v7, %v205_v7  ;;  %v161_v13 = vadd.f32 %v407_v12, %v148_v8 }
  0xa6   :  { %224 = vst.msk [vmem:[%s476_s5 + $0x14] sm:$0xf] %vm218_vm1, %v214_v11  ;;  %v188_v14 = vadd.f32 %v279_v10, %v161_v13 }
  0xa8   :  { %v197_v15 = vmax.f32 %v188_v14, 0.0 }
  0xa9   :  { %v131_v16 = vpop.f32.mrf.mxu2 }
  0xaa   :  { %v206_v17 = vmin.f32 %v197_v15, 20.0  ;;  %v149_v18 = vmul.f32 %v402_v9, %v131_v16 }
  0xac   :  { %v215_v20 = vpack.c.bf16 %v206_v17, %v206_v17  ;;  %v162_v21 = vadd.f32 %v407_v12, %v149_v18 }
  0xae   :  { %225 = vst.msk [vmem:[%s476_s5 + $0x18] sm:$0xf] %vm218_vm1, %v215_v20  ;;  %v189_v22 = vadd.f32 %v280_v19, %v162_v21 }
  0xb0   :  { %v198_v23 = vmax.f32 %v189_v22, 0.0 }
  0xb2   :  { %v207_v24 = vmin.f32 %v198_v23, 20.0 }
  0xb4   :  { %v216_v25 = vpack.c.bf16 %v207_v24, %v207_v24 }
  0xb6   :  { %226 = vst.msk [vmem:[%s476_s5 + $0x1c] sm:$0xf] %vm218_vm1, %v216_v25 }
  0xb7   :  { %233 = vsyncpa [#allocation3], 1 }
  0xb8   :  { %234 = vsyncpa [#allocation5], 1 }

// kernel: res2net_forward.45
= control target key start
LH: loop header
LB: loop body
LE: loop exit
PB: predicated region body
PF: predicated region fallthrough
CT: control target
= control target key end

     0   :  { %9 = vsyncpa [#allocation3], 0  ;;  %s399_s0 = inlined_call_operand.vmem [shape: bf16[66,32], index: 0, kind: input, shape index: {}]   ;;  %s400_s1 = inlined_call_operand.vmem [shape: bf16[32,16], index: 1, kind: input, shape index: {}]   ;;  %s401_s2 = inlined_call_operand.hbm [shape: f32[1,16], index: 2, kind: input, shape index: {}]   ;;  %s402_s3 = inlined_call_operand.hbm [shape: f32[1,16], index: 3, kind: input, shape index: {}]   ;;  %s403_s4 = inlined_call_operand.vmem [shape: bf16[66,16], index: 4, kind: output, shape index: {}]  }
   0x1   :  { %s20_s17 = sshll.u32 %s401_s2, 4  ;;  %s21_s17 = int_to_ptr.hbm [resolvable:$true] %s20_s17 }
   0x2   :  { %10 = vsyncpa [#allocation5], 0  ;;  %s310_s18 = smov [#allocation2]   ;;  %s31_s22 = sshll.u32 %s402_s3, 4  ;;  %s32_s22 = int_to_ptr.hbm [resolvable:$true] %s31_s22 }
   0x3   :  { %s22_s19 = sshll.u32 %s310_s18, 4  ;;  %s311_s23 = smov [#allocation4]   ;;  %s23_s19 = int_to_ptr.vmem [resolvable:$true] %s22_s19 }
   0x4   :  { %25 = dma.hbm_to_vmem [thread:$0]  %s21_s17, 16, %s23_s19, [#allocation3]  }
   0x5   :  { %s33_s24 = sshll.u32 %s311_s23, 4  ;;  %s34_s24 = int_to_ptr.vmem [resolvable:$true] %s33_s24 }
   0x6   :  { %36 = dma.hbm_to_vmem [thread:$0]  %s32_s22, 16, %s34_s24, [#allocation5]  }
   0x7   :  { %306 = dma.done.wait [#allocation3], 16  }
   0x8   :  { %307 = vsyncadd [#allocation3], 4294967280 }
   0x9   :  { %308 = dma.done.wait [#allocation5], 16  }
   0xa   :  { %309 = vsyncadd [#allocation5], 4294967280  ;;  %v247_v0 = vld [vmem:[%s400_s1 + $0x8] sm:$0xff]  ;;  %v246_v1 = vld [vmem:[%s400_s1] sm:$0xff]  ;;  %vm94_vm0 = vcmask 261120   ;;  %vm196_vm1 = vcmask 125952  }
   0xb   :  { %249 = vmatpush.bf16.msra.mxu2 %v247_v0  ;;  %116 = vmatpush.bf16.msra.mxu0 %v247_v0  ;;  %v54_v2 = vld [vmem:[%s399_s0 + $0x20] sm:$0x1]  ;;  %v244_v4 = vld [vmem:[%s399_s0 + $0x10] sm:$0xff]  ;;  %v243_v6 = vld [vmem:[%s399_s0 + $0x8] sm:$0xff]  ;;  %vm205_vm2 = vcmask 122880  }
   0xc   :  { %248 = vmatpush.bf16.msra.mxu1 %v247_v0  ;;  %250 = vmatpush.bf16.msra.mxu3 %v247_v0  ;;  %v76_v3 = vunpack.c.l.b16 %v54_v2  ;;  %v242_v5 = vld [vmem:[%s399_s0] sm:$0xff]  ;;  %v245_v8 = vld [vmem:[%s399_s0 + $0x18] sm:$0xff] }
   0xd   :  { %v256_v9 = vld [vmem:[#allocation2] ss:$0 sm:$0xff]  ;;  %v257_v11 = vld [vmem:[#allocation4] ss:$0 sm:$0xff] }
   0xe   :  { %v81_v7 = vpack.c.b16 %v76_v3, %v76_v3 }
   0xf   :  { %252 = vmatpush.bf16.msra.mxu2 %v246_v1  ;;  %117 = vmatpush.bf16.msra.mxu0 %v246_v1 }
  0x10   :  { %251 = vmatpush.bf16.msra.mxu1 %v246_v1  ;;  %253 = vmatpush.bf16.msra.mxu3 %v246_v1 }
  0x12   :  { %239 = vmatmul.msk.bf16.vlgmr.msra.gmra.mxu2 %vm94_vm0, %v244_v4  ;;  %237 = vmatmul.msk.bf16.vlgmr.msra.gmra.mxu0 %vm94_vm0, %v242_v5 }
  0x13   :  { %238 = vmatmul.msk.bf16.vlgmr.msra.gmra.mxu1 %vm94_vm0, %v243_v6  ;;  %241 = vmatmul.msk.bf16.vlgmr.msra.gmra.mxu3 %vm94_vm0, %v81_v7 }
  0x22   :  { %240 = vmatmul.msk.bf16.gmra.mxu2 %vm94_vm0, %v245_v8 }
  0x8f   :  { %v119_v10 = vpop.f32.mrf.mxu0 }
  0x90   :  { %v147_v12 = vmul.f32 %v256_v9, %v119_v10  ;;  %v124_v13 = vpop.f32.mrf.mxu1 }
  0x91   :  { %v149_v14 = vmul.f32 %v256_v9, %v124_v13 }
  0x92   :  { %v160_v15 = vadd.f32 %v257_v11, %v147_v12 }
  0x93   :  { %v162_v16 = vadd.f32 %v257_v11, %v149_v14 }
  0x94   :  { %v169_v17 = vmax.f32 %v160_v15, 0.0 }
  0x95   :  { %v129_v18 = vpop.f32.mrf.mxu2  ;;  %v171_v19 = vmax.f32 %v162_v16, 0.0 }
  0x96   :  { %v151_v20 = vmul.f32 %v256_v9, %v129_v18  ;;  %v178_v21 = vmin.f32 %v169_v17, 20.0  ;;  %v139_v22 = vpop.f32.mrf.mxu3 }
  0x97   :  { %v180_v23 = vmin.f32 %v171_v19, 20.0  ;;  %v121_v24 = vpop.f32.mrf.mxu0  ;;  %v155_v25 = vmul.f32 %v256_v9, %v139_v22 }
  0x98   :  { %v164_v26 = vadd.f32 %v257_v11, %v151_v20  ;;  %v187_v27 = vpack.c.bf16 %v178_v21, %v178_v21  ;;  %v148_v28 = vmul.f32 %v256_v9, %v121_v24  ;;  %v126_v29 = vpop.f32.mrf.mxu1 }
  0x99   :  { %v189_v30 = vpack.c.bf16 %v180_v23, %v180_v23  ;;  %v150_v31 = vmul.f32 %v256_v9, %v126_v29  ;;  %v168_v32 = vadd.f32 %v257_v11, %v155_v25 }
  0x9a   :  { %v173_v33 = vmax.f32 %v164_v26, 0.0  ;;  %197 = vst.msk [vmem:[%s403_s4] sm:$0xf] %vm196_vm1, %v187_v27  ;;  %v161_v34 = vadd.f32 %v257_v11, %v148_v28 }
  0x9b   :  { %199 = vst.msk [vmem:[%s403_s4 + $0x8] sm:$0xf] %vm196_vm1, %v189_v30  ;;  %v163_v35 = vadd.f32 %v257_v11, %v150_v31  ;;  %v177_v36 = vmax.f32 %v168_v32, 0.0 }
  0x9c   :  { %v182_v37 = vmin.f32 %v173_v33, 20.0  ;;  %v170_v38 = vmax.f32 %v161_v34, 0.0 }
  0x9d   :  { %v131_v39 = vpop.f32.mrf.mxu2  ;;  %v172_v40 = vmax.f32 %v163_v35, 0.0  ;;  %v186_v41 = vmin.f32 %v177_v36, 20.0 }
  0x9e   :  { %v191_v42 = vpack.c.bf16 %v182_v37, %v182_v37  ;;  %v152_v43 = vmul.f32 %v256_v9, %v131_v39  ;;  %v179_v44 = vmin.f32 %v170_v38, 20.0  ;;  %v141_v45 = vpop.f32.mrf.mxu3 }
  0x9f   :  { %v181_v46 = vmin.f32 %v172_v40, 20.0  ;;  %v195_v47 = vpack.c.bf16 %v186_v41, %v186_v41 }
  0xa0   :  { %201 = vst.msk [vmem:[%s403_s4 + $0x10] sm:$0xf] %vm196_vm1, %v191_v42  ;;  %v165_v48 = vadd.f32 %v257_v11, %v152_v43  ;;  %v188_v49 = vpack.c.bf16 %v179_v44, %v179_v44 }
  0xa1   :  { %v190_v50 = vpack.c.bf16 %v181_v46, %v181_v46  ;;  %206 = vst.msk [vmem:[%s403_s4 + $0x20] sm:$0x1] %vm205_vm2, %v195_v47 }
  0xa2   :  { %v174_v51 = vmax.f32 %v165_v48, 0.0  ;;  %198 = vst.msk [vmem:[%s403_s4 + $0x4] sm:$0xf] %vm196_vm1, %v188_v49 }
  0xa3   :  { %200 = vst.msk [vmem:[%s403_s4 + $0xc] sm:$0xf] %vm196_vm1, %v190_v50 }
  0xa4   :  { %v183_v52 = vmin.f32 %v174_v51, 20.0 }
  0xa5   :  { %v134_v53 = vpop.f32.mrf.mxu2 }
  0xa6   :  { %v192_v54 = vpack.c.bf16 %v183_v52, %v183_v52  ;;  %v153_v55 = vmul.f32 %v256_v9, %v134_v53 }
  0xa8   :  { %202 = vst.msk [vmem:[%s403_s4 + $0x14] sm:$0xf] %vm196_vm1, %v192_v54  ;;  %v166_v56 = vadd.f32 %v257_v11, %v153_v55 }
  0xaa   :  { %v175_v57 = vmax.f32 %v166_v56, 0.0 }
  0xac   :  { %v184_v58 = vmin.f32 %v175_v57, 20.0 }
  0xad   :  { %v136_v59 = vpop.f32.mrf.mxu2 }
  0xae   :  { %v193_v60 = vpack.c.bf16 %v184_v58, %v184_v58  ;;  %v154_v61 = vmul.f32 %v256_v9, %v136_v59 }
  0xb0   :  { %203 = vst.msk [vmem:[%s403_s4 + $0x18] sm:$0xf] %vm196_vm1, %v193_v60  ;;  %v167_v62 = vadd.f32 %v257_v11, %v154_v61 }
  0xb2   :  { %v176_v63 = vmax.f32 %v167_v62, 0.0 }
  0xb4   :  { %v185_v0 = vmin.f32 %v176_v63, 20.0 }
  0xb6   :  { %v194_v1 = vpack.c.bf16 %v185_v0, %v185_v0 }
  0xb8   :  { %204 = vst.msk [vmem:[%s403_s4 + $0x1c] sm:$0xf] %vm196_vm1, %v194_v1 }
  0xb9   :  { %211 = vsyncpa [#allocation3], 1 }
  0xba   :  { %212 = vsyncpa [#allocation5], 1 }

// kernel: res2net_forward.51
= control target key start
LH: loop header
LB: loop body
LE: loop exit
PB: predicated region body
PF: predicated region fallthrough
CT: control target
= control target key end

     0   :  { %9 = vsyncpa [#allocation3], 0  ;;  %s539_s0 = inlined_call_operand.vmem [shape: bf16[17,2,64], index: 0, kind: input, shape index: {}]   ;;  %s540_s1 = inlined_call_operand.vmem [shape: bf16[16,64], index: 1, kind: input, shape index: {}]   ;;  %s541_s2 = inlined_call_operand.hbm [shape: f32[1,16], index: 2, kind: input, shape index: {}]   ;;  %s542_s3 = inlined_call_operand.hbm [shape: f32[1,16], index: 3, kind: input, shape index: {}]   ;;  %s543_s4 = inlined_call_operand.vmem [shape: bf16[17,2,16], index: 4, kind: output, shape index: {}]  }
   0x1   :  { %s20_s17 = sshll.u32 %s541_s2, 4  ;;  %s21_s17 = int_to_ptr.hbm [resolvable:$true] %s20_s17 }
   0x2   :  { %10 = vsyncpa [#allocation5], 0  ;;  %s424_s18 = smov [#allocation2]   ;;  %s31_s22 = sshll.u32 %s542_s3, 4  ;;  %s32_s22 = int_to_ptr.hbm [resolvable:$true] %s31_s22 }
   0x3   :  { %s22_s19 = sshll.u32 %s424_s18, 4  ;;  %s425_s23 = smov [#allocation4]   ;;  %s23_s19 = int_to_ptr.vmem [resolvable:$true] %s22_s19 }
   0x4   :  { %25 = dma.hbm_to_vmem [thread:$0]  %s21_s17, 16, %s23_s19, [#allocation3]  }
   0x5   :  { %s33_s24 = sshll.u32 %s425_s23, 4  ;;  %s34_s24 = int_to_ptr.vmem [resolvable:$true] %s33_s24 }
   0x6   :  { %36 = dma.hbm_to_vmem [thread:$0]  %s32_s22, 16, %s34_s24, [#allocation5]  }
   0x7   :  { %400 = dma.done.wait [#allocation3], 16  }
   0x8   :  { %401 = vsyncadd [#allocation3], 4294967280 }
   0x9   :  { %402 = dma.done.wait [#allocation5], 16  }
   0xa   :  { %403 = vsyncadd [#allocation5], 4294967280  ;;  %v467_v0 = vld [vmem:[%s540_s1] sm:$0xf]  ;;  %v472_v1 = vld [vmem:[%s540_s1] sm:$0xf0] }
   0xb   :  { %v474_v2 = vld [vmem:[#allocation2] sm:$0x1]  ;;  %v476_v3 = vld [vmem:[#allocation4] sm:$0x1]  ;;  %v478_v4 = vmov 0.0   ;;  %v480_v5 = vmov 0.0  }
   0xc   :  { %v482_v6 = vmov 0.0   ;;  %v484_v7 = vmov 0.0   ;;  %s486_s3 = smov 0  }
   0xd LB: > { %62 = vst [vmem:[#allocation1] ss:$4 sm:$0xff] %v418_v7  ;;  %s426_s1 = smov 104   ;;  %s427_s28 = smov 80   ;;  %v262_v10 = vor.u32 %v472_v1, %v467_v0  ;;  %vm73_vm0 = vcmask 64512   ;;  %vm82_vm1 = vcmask 130048   ;;  %s422_s3 = sphi %s486_s3, %s55_s3   ;;  %v418_v7 = vphi %v484_v7, %v143_v7   ;;  %v414_v6 = vphi %v482_v6, %v137_v6   ;;  %v410_v5 = vphi %v480_v5, %v544_v5   ;;  %v406_v4 = vphi %v478_v4, %v174_v4  }
   0xe   : > { %s99_s5 = scalar_lea.vmem %s539_s0, %s422_s3  ;;  %s60_s6 = ssub.s32 16, %s422_s3  ;;  %v182_v55 = vperm.slane %v474_v2, 0  ;;  %v188_v56 = vperm.slane %v476_v3, 0  ;;  %vm198_vm10 = vcmask 1040384   ;;  %vm207_vm11 = vcmask 57344  }
   0xf   : > { %93 = vmatpush.bf16.msra.mxu0 %v262_v10  ;;  %v100_v15 = vld [vmem:[%s99_s5] sm:$0x1]  ;;  %s103_s9 = scalar_lea.vmem %s539_s0, %s60_s6  ;;  %s428_s10 = smov 112   ;;  %vm230_vm12 = vcmask 122944  }
  0x10   : > { %v101_v16 = vunpack.c.l.bf16 %v100_v15  ;;  %v104_v18 = vld [vmem:[%s103_s9] sm:$0x1]  ;;  %s429_s11 = smov 8   ;;  %s430_s12 = smov 24  }
  0x11   : > { %v105_v20 = vunpack.c.l.bf16 %v104_v18  ;;  %s431_s13 = smov 48   ;;  %s432_s14 = smov 16  }
  0x12   : > { %s206_s17 = scalar_lea.vmem %s543_s4, %s422_s3  ;;  %s229_s20 = scalar_lea.vmem %s543_s4, %s60_s6 }
  0x13   : > { %s55_s3 = sadd.s32 1, %s422_s3  }
  0x14   : > { %v63_v8 = vld.sshfl [vmem:[#allocation1] sm:$0xff pattern:$0x73625140]  ;;  %p52_p0 = scmp.ge.s32.totalorder %s55_s3, 17  }
  0x15   : > { %64 = vrot.lane.b32.xlu0 %v63_v8, %s426_s1  ;;  %68 = vst [vmem:[#allocation1] ss:$4 sm:$0xff] %v410_v5 }
  0x1c   : > { %v69_v9 = vld.sshfl [vmem:[#allocation1] sm:$0xff pattern:$0x73625140] }
  0x1d   : > { %70 = vrot.lane.b32.xlu0 %v69_v9, %s427_s28 }
  0x87   : > { %v65_v11 = vpop.permute.xlu0 %64 }
  0x8f   : > { %v71_v12 = vpop.permute.xlu0 %70 }
  0x90   : > { %v74_v13 = vsel %vm73_vm0, %v65_v11, %v71_v12 }
  0x91   : > { %v75_v14 = vpack.c.bf16 %v74_v13, %v74_v13 }
  0x93   : > { %263 = vmatmul.msk.bf16.vlgmr.msra.gmra.mxu0 %vm82_vm1, %v75_v14 }
 0x110   : > { %v95_v17 = vpop.f32.mrf.mxu0 }
 0x111   : > { %v102_v19 = vadd.f32 %v101_v16, %v95_v17  ;;  %v106_v21 = vadd.f32 %v105_v20, %v95_v17 }
 0x113   : > { %316 = vtanh.f32 %v102_v19  ;;  %v264_v25 = vmul.f32 -1.442695, %v102_v19  ;;  %v265_v26 = vmul.f32 -1.442695, %v106_v21 }
 0x114   : > { %318 = vtanh.f32 %v106_v21 }
 0x115   : > { %320 = vpow2.f32 %v264_v25 }
 0x116   : > { %322 = vpow2.f32 %v265_v26 }
 0x118   : > { %v97_v22 = vpop.f32.mrf.mxu0 }
 0x119   : > { %v317_v23 = vpop.eup %316 }
 0x11a   : > { %129 = vrot.lane.b32.xlu1 %v317_v23, %s428_s10  ;;  %v319_v24 = vpop.eup %318 }
 0x11b   : > { %v321_v27 = vpop.eup %320 }
 0x11c   : > { %v110_v28 = vadd.f32 1.0, %v321_v27  ;;  %v323_v29 = vpop.eup %322 }
 0x11d   : > { %v147_v30 = vadd.f32 1.0, %v323_v29 }
 0x11e   : > { %324 = vrcp.f32 %v110_v28  ;;  %v122_v39 = vand.u32 2147483648, %v110_v28  ;;  %vm116_vm3 = vweird.f32 %v110_v28  ;;  %v120_v40 = vand.u32 2147483647, %v110_v28 }
 0x11f   : > { %326 = vrcp.f32 %v147_v30  ;;  %v159_v48 = vand.u32 2147483648, %v147_v30  ;;  %vm153_vm7 = vweird.f32 %v147_v30  ;;  %v157_v49 = vand.u32 2147483647, %v147_v30 }
 0x120   : > { %v123_v43 = vor.u32 1.1754944e-38, %v122_v39  ;;  %vm121_vm5 = vcmp.eq.f32.partialorder %v120_v40, 8.507059e+37 }
 0x121   : > { %v160_v51 = vor.u32 1.1754944e-38, %v159_v48  ;;  %vm158_vm9 = vcmp.eq.f32.partialorder %v157_v49, 8.507059e+37 }
 0x122   : > { %166 = vrot.lane.b32.xlu1 %v319_v24, %s428_s10 }
 0x124   : > { %v325_v31 = vpop.eup %324 }
 0x125   : > { %v112_v32 = vmul.f32 %v325_v31, %v110_v28  ;;  %v327_v34 = vpop.eup %326  ;;  %vm117_vm2 = vweird.f32 %v325_v31 }
 0x126   : > { %v149_v36 = vmul.f32 %v327_v34, %v147_v30  ;;  %vm118_vm4 = vmor %vm116_vm3, %vm117_vm2  ;;  %vm154_vm6 = vweird.f32 %v327_v34 }
 0x127   : > { %v113_v33 = vsub.f32 1.0, %v112_v32  ;;  %vm155_vm8 = vmor %vm153_vm7, %vm154_vm6 }
 0x128   : > { %v150_v38 = vsub.f32 1.0, %v149_v36 }
 0x129   : > { %v114_v35 = vmul.f32 %v325_v31, %v113_v33 }
 0x12a   : > { %v151_v42 = vmul.f32 %v327_v34, %v150_v38 }
 0x12b   : > { %v115_v37 = vadd.f32 %v325_v31, %v114_v35 }
 0x12c   : > { %v152_v47 = vadd.f32 %v327_v34, %v151_v42 }
 0x12d   : > { %v119_v41 = vsel %vm118_vm4, %v325_v31, %v115_v37 }
 0x12e   : > { %v124_v45 = vsel %vm121_vm5, %v123_v43, %v119_v41  ;;  %v156_v50 = vsel %vm155_vm8, %v327_v34, %v152_v47 }
 0x12f   : > { %v161_v52 = vsel %vm158_vm9, %v160_v51, %v156_v50  ;;  %v127_v57 = vmul.f32 %v414_v6, %v124_v45 }
 0x130   : > { %v164_v59 = vmul.f32 %v406_v4, %v161_v52 }
 0x18c   : > { %v130_v44 = vpop.permute.xlu1 %129 }
 0x18d   : > { %v132_v46 = vmul.f32 %v130_v44, %v124_v45 }
 0x18f   : > { %134 = vrot.lane.b32.xlu2 %v132_v46, %s429_s11 }
 0x194   : > { %v167_v53 = vpop.permute.xlu1 %166 }
 0x195   : > { %v169_v54 = vmul.f32 %v167_v53, %v161_v52 }
 0x197   : > { %171 = vrot.lane.b32.xlu2 %v169_v54, %s429_s11 }
 0x19f   : > { %183 = vrot.lane.b32.xlu2 %v182_v55, %s430_s12 }
 0x1a7   : > { %213 = vrot.lane.b32.xlu2 %v188_v56, %s431_s13 }
 0x1e9   : > { %v135_v58 = vpop.permute.xlu2 %134 }
 0x1ea   : > { %v137_v6 = vadd.f32 %v135_v58, %v127_v57  }
 0x1ec   : > { %328 = vtanh.f32 %v137_v6 }
 0x1f1   : > { %v172_v60 = vpop.permute.xlu2 %171 }
 0x1f2   : > { %v329_v61 = vpop.eup %328  ;;  %v174_v4 = vadd.f32 %v172_v60, %v164_v59  }
 0x1f3   : > { %140 = vrot.lane.b32.xlu0 %v329_v61, %s432_s14 }
 0x1f4   : > { %330 = vtanh.f32 %v174_v4 }
 0x1f9   : > { %v184_v5 = vpop.permute.xlu2 %183 }
 0x1fa   : > { %v331_v62 = vpop.eup %330 }
 0x1fb   : > { %177 = vrot.lane.b32.xlu1 %v331_v62, %s432_s14  ;;  %209 = vrot.lane.b32.xlu0 %v182_v55, %s431_s13 }
 0x201   : > { %v214_v10 = vpop.permute.xlu2 %213 }
 0x203   : > { %189 = vrot.lane.b32.xlu1 %v188_v56, %s430_s12 }
 0x265   : > { %v141_v63 = vpop.permute.xlu0 %140 }
 0x26d   : > { %v178_v7 = vpop.permute.xlu1 %177  ;;  %v210_v8 = vpop.permute.xlu0 %209 }
 0x26e   : > { %v180_v9 = vmul.f32 %v178_v7, %v161_v52   ;;  %v143_v7 = vmul.f32 %v141_v63, %v124_v45  }
 0x270   : > { %v212_v11 = vmul.f32 %v210_v8, %v180_v9  ;;  %v186_v13 = vmul.f32 %v184_v5, %v143_v7  ;;  %v544_v5 = vmov %v180_v9 }
 0x272   : > { %v216_v12 = vadd.f32 %v214_v10, %v212_v11 }
 0x274   : > { %v217_v14 = vmax.f32 %v216_v12, 0.0 }
 0x275   : > { %v190_v15 = vpop.permute.xlu1 %189 }
 0x276   : > { %v218_v16 = vmin.f32 %v217_v14, 20.0  ;;  %v192_v17 = vadd.f32 %v190_v15, %v186_v13 }
 0x278   : > { %v219_v18 = vpack.c.bf16 %v218_v16, %v218_v16  ;;  %v193_v19 = vmax.f32 %v192_v17, 0.0 }
 0x27a   : > { %v221_v20 = vrot.slane %v219_v18, 3  ;;  %v194_v21 = vmin.f32 %v193_v19, 20.0 }
 0x27c   : > { %v195_v22 = vpack.c.bf16 %v194_v21, %v194_v21  ;;  %v224_v23 = vsel %vm198_vm10, %v219_v18, %v221_v20 }
 0x27d   : > { %226 = vrot.lane.b32.xlu1 %v224_v23, %s427_s28 }
 0x27e   : > { %v197_v24 = vrot.slane %v195_v22, 3 }
 0x280   : > { %v201_v25 = vsel %vm198_vm10, %v195_v22, %v197_v24 }
 0x281   : > { %203 = vrot.lane.b32.xlu0 %v201_v25, %s426_s1 }
 0x2ef   : > { %v227_v27 = vpop.permute.xlu1 %226 }
 0x2f1   :  { %54 = sbr.rel (!%p52_p0) target bundleno = 13 (0xd), region = 55 }
 0x2f3   : > { %v204_v26 = vpop.permute.xlu0 %203 }
 0x2f4   : > { %208 = vst.msk [vmem:[%s206_s17] sm:$0x1] %vm207_vm11, %v204_v26 }
 0x2f5   : > { %231 = vst.msk [vmem:[%s229_s20] sm:$0x1] %vm230_vm12, %v227_v27 }
 0x2f6   :  { %236 = vsyncpa [#allocation3], 1 }
 0x2f7   :  { %237 = vsyncpa [#allocation5], 1 }

// kernel: res2net_forward.49
= control target key start
LH: loop header
LB: loop body
LE: loop exit
PB: predicated region body
PF: predicated region fallthrough
CT: control target
= control target key end

     0   :  { %9 = vsyncpa [#allocation3], 0  ;;  %s309_s0 = inlined_call_operand.vmem [shape: bf16[34,32], index: 0, kind: input, shape index: {}]   ;;  %s310_s1 = inlined_call_operand.vmem [shape: bf16[32,32], index: 1, kind: input, shape index: {}]   ;;  %s311_s2 = inlined_call_operand.hbm [shape: f32[1,32], index: 2, kind: input, shape index: {}]   ;;  %s312_s3 = inlined_call_operand.hbm [shape: f32[1,32], index: 3, kind: input, shape index: {}]   ;;  %s313_s4 = inlined_call_operand.vmem [shape: bf16[34,32], index: 4, kind: output, shape index: {}]  }
   0x1   :  { %s20_s17 = sshll.u32 %s311_s2, 4  ;;  %s21_s17 = int_to_ptr.hbm [resolvable:$true] %s20_s17 }
   0x2   :  { %10 = vsyncpa [#allocation5], 0  ;;  %s242_s18 = smov [#allocation2]   ;;  %s31_s22 = sshll.u32 %s312_s3, 4  ;;  %s32_s22 = int_to_ptr.hbm [resolvable:$true] %s31_s22 }
   0x3   :  { %s22_s19 = sshll.u32 %s242_s18, 4  ;;  %s243_s23 = smov [#allocation4]   ;;  %s23_s19 = int_to_ptr.vmem [resolvable:$true] %s22_s19 }
   0x4   :  { %25 = dma.hbm_to_vmem [thread:$0]  %s21_s17, 16, %s23_s19, [#allocation3]  }
   0x5   :  { %s33_s24 = sshll.u32 %s243_s23, 4  ;;  %s34_s24 = int_to_ptr.vmem [resolvable:$true] %s33_s24 }
   0x6   :  { %36 = dma.hbm_to_vmem [thread:$0]  %s32_s22, 16, %s34_s24, [#allocation5]  }
   0x7   :  { %238 = dma.done.wait [#allocation3], 16  }
   0x8   :  { %239 = vsyncadd [#allocation3], 4294967280 }
   0x9   :  { %240 = dma.done.wait [#allocation5], 16  }
   0xa   :  { %241 = vsyncadd [#allocation5], 4294967280  ;;  %v181_v0 = vld [vmem:[%s310_s1 + $0x8] sm:$0xff]  ;;  %v50_v1 = vld [vmem:[%s309_s0 + $0x10] sm:$0x1]  ;;  %vm80_vm0 = vcmask 261120  }
   0xb   :  { %96 = vmatpush.bf16.msra.mxu0 %v181_v0  ;;  %182 = vmatpush.bf16.msra.mxu1 %v181_v0  ;;  %v180_v2 = vld [vmem:[%s310_s1] sm:$0xff]  ;;  %v64_v3 = vunpack.c.l.b16 %v50_v1  ;;  %v179_v5 = vld [vmem:[%s309_s0 + $0x8] sm:$0xff]  ;;  %vm146_vm1 = vcmask 257024   ;;  %vm151_vm2 = vcmask 253952  }
   0xc   :  { %183 = vmatpush.bf16.msra.mxu2 %v181_v0  ;;  %v178_v4 = vld [vmem:[%s309_s0] sm:$0xff] }
   0xd   :  { %v67_v6 = vpack.c.b16 %v64_v3, %v64_v3  ;;  %v188_v7 = vld [vmem:[#allocation2] ss:$0 sm:$0xff]  ;;  %v189_v8 = vld [vmem:[#allocation4] ss:$0 sm:$0xff] }
   0xf   :  { %97 = vmatpush.bf16.msra.mxu0 %v180_v2  ;;  %184 = vmatpush.bf16.msra.mxu1 %v180_v2 }
  0x10   :  { %185 = vmatpush.bf16.msra.mxu2 %v180_v2 }
  0x12   :  { %175 = vmatmul.msk.bf16.vlgmr.msra.gmra.mxu0 %vm80_vm0, %v178_v4  ;;  %176 = vmatmul.msk.bf16.vlgmr.msra.gmra.mxu1 %vm80_vm0, %v179_v5 }
  0x13   :  { %177 = vmatmul.msk.bf16.vlgmr.msra.gmra.mxu2 %vm80_vm0, %v67_v6 }
  0x8f   :  { %v99_v9 = vpop.f32.mrf.mxu0  ;;  %v104_v10 = vpop.f32.mrf.mxu1 }
  0x90   :  { %v117_v11 = vmul.f32 %v188_v7, %v99_v9  ;;  %v119_v12 = vmul.f32 %v188_v7, %v104_v10 }
  0x92   :  { %v126_v13 = vadd.f32 %v189_v8, %v117_v11  ;;  %v128_v14 = vadd.f32 %v189_v8, %v119_v12 }
  0x94   :  { %v131_v15 = vmax.f32 %v126_v13, 0.0  ;;  %v133_v16 = vmax.f32 %v128_v14, 0.0 }
  0x96   :  { %v136_v17 = vmin.f32 %v131_v15, 20.0  ;;  %v138_v18 = vmin.f32 %v133_v16, 20.0  ;;  %v109_v19 = vpop.f32.mrf.mxu2 }
  0x97   :  { %v121_v20 = vmul.f32 %v188_v7, %v109_v19  ;;  %v101_v21 = vpop.f32.mrf.mxu0  ;;  %v106_v22 = vpop.f32.mrf.mxu1 }
  0x98   :  { %v141_v23 = vpack.c.bf16 %v136_v17, %v136_v17  ;;  %v143_v24 = vpack.c.bf16 %v138_v18, %v138_v18  ;;  %v118_v25 = vmul.f32 %v188_v7, %v101_v21  ;;  %v120_v26 = vmul.f32 %v188_v7, %v106_v22 }
  0x99   :  { %v130_v27 = vadd.f32 %v189_v8, %v121_v20 }
  0x9a   :  { %147 = vst.msk [vmem:[%s313_s4] sm:$0xf] %vm146_vm1, %v141_v23  ;;  %v127_v28 = vadd.f32 %v189_v8, %v118_v25  ;;  %v129_v29 = vadd.f32 %v189_v8, %v120_v26 }
  0x9b   :  { %149 = vst.msk [vmem:[%s313_s4 + $0x8] sm:$0xf] %vm146_vm1, %v143_v24  ;;  %v135_v30 = vmax.f32 %v130_v27, 0.0 }
  0x9c   :  { %v132_v31 = vmax.f32 %v127_v28, 0.0  ;;  %v134_v32 = vmax.f32 %v129_v29, 0.0 }
  0x9d   :  { %v140_v33 = vmin.f32 %v135_v30, 20.0 }
  0x9e   :  { %v137_v34 = vmin.f32 %v132_v31, 20.0  ;;  %v139_v35 = vmin.f32 %v134_v32, 20.0  ;;  %v111_v36 = vpop.f32.mrf.mxu2 }
  0x9f   :  { %v145_v37 = vpack.c.bf16 %v140_v33, %v140_v33 }
  0xa0   :  { %v142_v38 = vpack.c.bf16 %v137_v34, %v137_v34  ;;  %v144_v39 = vpack.c.bf16 %v139_v35, %v139_v35 }
  0xa1   :  { %152 = vst.msk [vmem:[%s313_s4 + $0x10] sm:$0x1] %vm151_vm2, %v145_v37 }
  0xa2   :  { %148 = vst.msk [vmem:[%s313_s4 + $0x4] sm:$0xf] %vm146_vm1, %v142_v38 }
  0xa3   :  { %150 = vst.msk [vmem:[%s313_s4 + $0xc] sm:$0xf] %vm146_vm1, %v144_v39 }
  0xa4   :  { %157 = vsyncpa [#allocation3], 1 }
  0xa5   :  { %158 = vsyncpa [#allocation5], 1 }

// kernel: res2net_forward.50
= control target key start
LH: loop header
LB: loop body
LE: loop exit
PB: predicated region body
PF: predicated region fallthrough
CT: control target
= control target key end

     0   :  { %9 = vsyncpa [#allocation3], 0  ;;  %s175_s18 = smov [#allocation2]   ;;  %s238_s0 = inlined_call_operand.vmem [shape: bf16[34,16], index: 0, kind: input, shape index: {}]   ;;  %s239_s1 = inlined_call_operand.vmem [shape: bf16[16,64], index: 1, kind: input, shape index: {}]   ;;  %s240_s2 = inlined_call_operand.vmem [shape: f32[1,64], index: 2, kind: input, shape index: {}]   ;;  %s241_s3 = inlined_call_operand.hbm [shape: f32[1,64], index: 3, kind: input, shape index: {}]   ;;  %s242_s4 = inlined_call_operand.vmem [shape: bf16[34,64], index: 4, kind: output, shape index: {}]  }
   0x1   :  { %s21_s17 = sshll.u32 %s241_s3, 4  ;;  %s23_s19 = sshll.u32 %s175_s18, 4  ;;  %s22_s17 = int_to_ptr.hbm [resolvable:$true] %s21_s17  ;;  %s24_s19 = int_to_ptr.vmem [resolvable:$true] %s23_s19 }
   0x2   :  { %26 = dma.hbm_to_vmem [thread:$0]  %s22_s17, 16, %s24_s19, [#allocation3]  }
   0x3   :  { %173 = dma.done.wait [#allocation3], 16  }
   0x4   :  { %174 = vsyncadd [#allocation3], 4294967280  ;;  %v143_v0 = vld [vmem:[%s239_s1] sm:$0xff]  ;;  %v142_v2 = vld [vmem:[%s238_s0 + $0x8] sm:$0xff]  ;;  %vm58_vm0 = vcmask 130048   ;;  %vm114_vm1 = vcmask 519168  }
   0x5   :  { %v141_v1 = vld [vmem:[%s238_s0] sm:$0xff]  ;;  %v36_v3 = vld [vmem:[%s238_s0 + $0x10] sm:$0x1]  ;;  %75 = vmatpush.bf16.msra.mxu0 %v143_v0  ;;  %144 = vmatpush.bf16.msra.mxu1 %v143_v0  ;;  %vm119_vm2 = vcmask 516096  }
   0x6   :  { %v48_v4 = vunpack.c.l.b16 %v36_v3  ;;  %145 = vmatpush.bf16.msra.mxu2 %v143_v0  ;;  %v147_v6 = vld [vmem:[%s240_s2] ss:$0 sm:$0xff] }
   0x7   :  { %v148_v7 = vld [vmem:[#allocation2] ss:$0 sm:$0xff] }
   0x8   :  { %v51_v5 = vpack.c.b16 %v48_v4, %v48_v4  ;;  %138 = vmatmul.msk.bf16.vlgmr.msra.gmra.mxu0 %vm58_vm0, %v141_v1  ;;  %139 = vmatmul.msk.bf16.vlgmr.msra.gmra.mxu1 %vm58_vm0, %v142_v2 }
   0xa   :  { %140 = vmatmul.msk.bf16.vlgmr.msra.gmra.mxu2 %vm58_vm0, %v51_v5 }
  0x85   :  { %v77_v8 = vpop.f32.mrf.mxu0  ;;  %v82_v9 = vpop.f32.mrf.mxu1 }
  0x86   :  { %v95_v10 = vmul.f32 %v147_v6, %v77_v8  ;;  %v97_v11 = vmul.f32 %v147_v6, %v82_v9 }
  0x88   :  { %v104_v12 = vadd.f32 %v148_v7, %v95_v10  ;;  %v106_v13 = vadd.f32 %v148_v7, %v97_v11 }
  0x8a   :  { %v109_v14 = vpack.c.bf16 %v104_v12, %v104_v12  ;;  %v111_v15 = vpack.c.bf16 %v106_v13, %v106_v13 }
  0x8c   :  { %115 = vst.msk [vmem:[%s242_s4] sm:$0xf] %vm114_vm1, %v109_v14 }
  0x8d   :  { %v87_v16 = vpop.f32.mrf.mxu2  ;;  %117 = vst.msk [vmem:[%s242_s4 + $0x8] sm:$0xf] %vm114_vm1, %v111_v15  ;;  %v79_v18 = vpop.f32.mrf.mxu0 }
  0x8e   :  { %v99_v17 = vmul.f32 %v147_v6, %v87_v16  ;;  %v84_v19 = vpop.f32.mrf.mxu1  ;;  %v96_v20 = vmul.f32 %v147_v6, %v79_v18 }
  0x8f   :  { %v98_v21 = vmul.f32 %v147_v6, %v84_v19 }
  0x90   :  { %v108_v22 = vadd.f32 %v148_v7, %v99_v17  ;;  %v105_v23 = vadd.f32 %v148_v7, %v96_v20 }
  0x91   :  { %v107_v24 = vadd.f32 %v148_v7, %v98_v21 }
  0x92   :  { %v113_v25 = vpack.c.bf16 %v108_v22, %v108_v22  ;;  %v110_v26 = vpack.c.bf16 %v105_v23, %v105_v23 }
  0x93   :  { %v112_v27 = vpack.c.bf16 %v107_v24, %v107_v24 }
  0x94   :  { %120 = vst.msk [vmem:[%s242_s4 + $0x10] sm:$0x1] %vm119_vm2, %v113_v25 }
  0x95   :  { %116 = vst.msk [vmem:[%s242_s4 + $0x4] sm:$0xf] %vm114_vm1, %v110_v26  ;;  %v89_v28 = vpop.f32.mrf.mxu2 }
  0x96   :  { %118 = vst.msk [vmem:[%s242_s4 + $0xc] sm:$0xf] %vm114_vm1, %v112_v27 }
  0x97   :  { %125 = vsyncpa [#allocation3], 1 }

// kernel: res2net_forward.52
= control target key start
LH: loop header
LB: loop body
LE: loop exit
PB: predicated region body
PF: predicated region fallthrough
CT: control target
= control target key end

     0   :  { %9 = vsyncpa [#allocation3], 0  ;;  %s299_s0 = inlined_call_operand.vmem [shape: bf16[34,32], index: 0, kind: input, shape index: {}]   ;;  %s300_s1 = inlined_call_operand.vmem [shape: bf16[32,64], index: 1, kind: input, shape index: {}]   ;;  %s301_s2 = inlined_call_operand.hbm [shape: f32[1,64], index: 2, kind: input, shape index: {}]   ;;  %s302_s3 = inlined_call_operand.hbm [shape: f32[1,64], index: 3, kind: input, shape index: {}]   ;;  %s303_s4 = inlined_call_operand.vmem [shape: bf16[34,64], index: 4, kind: output, shape index: {}]  }
   0x1   :  { %s20_s17 = sshll.u32 %s301_s2, 4  ;;  %s21_s17 = int_to_ptr.hbm [resolvable:$true] %s20_s17 }
   0x2   :  { %10 = vsyncpa [#allocation5], 0  ;;  %s232_s18 = smov [#allocation2]   ;;  %s31_s22 = sshll.u32 %s302_s3, 4  ;;  %s32_s22 = int_to_ptr.hbm [resolvable:$true] %s31_s22 }
   0x3   :  { %s22_s19 = sshll.u32 %s232_s18, 4  ;;  %s233_s23 = smov [#allocation4]   ;;  %s23_s19 = int_to_ptr.vmem [resolvable:$true] %s22_s19 }
   0x4   :  { %25 = dma.hbm_to_vmem [thread:$0]  %s21_s17, 16, %s23_s19, [#allocation3]  }
   0x5   :  { %s33_s24 = sshll.u32 %s233_s23, 4  ;;  %s34_s24 = int_to_ptr.vmem [resolvable:$true] %s33_s24 }
   0x6   :  { %36 = dma.hbm_to_vmem [thread:$0]  %s32_s22, 16, %s34_s24, [#allocation5]  }
   0x7   :  { %228 = dma.done.wait [#allocation3], 16  }
   0x8   :  { %229 = vsyncadd [#allocation3], 4294967280 }
   0x9   :  { %230 = dma.done.wait [#allocation5], 16  }
   0xa   :  { %231 = vsyncadd [#allocation5], 4294967280  ;;  %v171_v0 = vld [vmem:[%s300_s1 + $0x8] sm:$0xff]  ;;  %v50_v1 = vld [vmem:[%s299_s0 + $0x10] sm:$0x1]  ;;  %vm80_vm0 = vcmask 261120  }
   0xb   :  { %96 = vmatpush.bf16.msra.mxu0 %v171_v0  ;;  %172 = vmatpush.bf16.msra.mxu1 %v171_v0  ;;  %v170_v2 = vld [vmem:[%s300_s1] sm:$0xff]  ;;  %v64_v3 = vunpack.c.l.b16 %v50_v1  ;;  %v169_v5 = vld [vmem:[%s299_s0 + $0x8] sm:$0xff]  ;;  %vm136_vm1 = vcmask 519168   ;;  %vm141_vm2 = vcmask 516096  }
   0xc   :  { %173 = vmatpush.bf16.msra.mxu2 %v171_v0  ;;  %v168_v4 = vld [vmem:[%s299_s0] sm:$0xff] }
   0xd   :  { %v67_v6 = vpack.c.b16 %v64_v3, %v64_v3  ;;  %v178_v7 = vld [vmem:[#allocation2] ss:$0 sm:$0xff]  ;;  %v179_v8 = vld [vmem:[#allocation4] ss:$0 sm:$0xff] }
   0xf   :  { %97 = vmatpush.bf16.msra.mxu0 %v170_v2  ;;  %174 = vmatpush.bf16.msra.mxu1 %v170_v2 }
  0x10   :  { %175 = vmatpush.bf16.msra.mxu2 %v170_v2 }
  0x12   :  { %165 = vmatmul.msk.bf16.vlgmr.msra.gmra.mxu0 %vm80_vm0, %v168_v4  ;;  %166 = vmatmul.msk.bf16.vlgmr.msra.gmra.mxu1 %vm80_vm0, %v169_v5 }
  0x13   :  { %167 = vmatmul.msk.bf16.vlgmr.msra.gmra.mxu2 %vm80_vm0, %v67_v6 }
  0x8f   :  { %v99_v9 = vpop.f32.mrf.mxu0  ;;  %v104_v10 = vpop.f32.mrf.mxu1 }
  0x90   :  { %v117_v11 = vmul.f32 %v178_v7, %v99_v9  ;;  %v119_v12 = vmul.f32 %v178_v7, %v104_v10 }
  0x92   :  { %v126_v13 = vadd.f32 %v179_v8, %v117_v11  ;;  %v128_v14 = vadd.f32 %v179_v8, %v119_v12 }
  0x94   :  { %v131_v15 = vpack.c.bf16 %v126_v13, %v126_v13  ;;  %v133_v16 = vpack.c.bf16 %v128_v14, %v128_v14 }
  0x96   :  { %137 = vst.msk [vmem:[%s303_s4] sm:$0xf] %vm136_vm1, %v131_v15  ;;  %v109_v17 = vpop.f32.mrf.mxu2 }
  0x97   :  { %139 = vst.msk [vmem:[%s303_s4 + $0x8] sm:$0xf] %vm136_vm1, %v133_v16  ;;  %v121_v18 = vmul.f32 %v178_v7, %v109_v17  ;;  %v101_v19 = vpop.f32.mrf.mxu0  ;;  %v106_v20 = vpop.f32.mrf.mxu1 }
  0x98   :  { %v118_v21 = vmul.f32 %v178_v7, %v101_v19  ;;  %v120_v22 = vmul.f32 %v178_v7, %v106_v20 }
  0x99   :  { %v130_v23 = vadd.f32 %v179_v8, %v121_v18 }
  0x9a   :  { %v127_v24 = vadd.f32 %v179_v8, %v118_v21  ;;  %v129_v25 = vadd.f32 %v179_v8, %v120_v22 }
  0x9b   :  { %v135_v26 = vpack.c.bf16 %v130_v23, %v130_v23 }
  0x9c   :  { %v132_v27 = vpack.c.bf16 %v127_v24, %v127_v24  ;;  %v134_v28 = vpack.c.bf16 %v129_v25, %v129_v25 }
  0x9d   :  { %142 = vst.msk [vmem:[%s303_s4 + $0x10] sm:$0x1] %vm141_vm2, %v135_v26 }
  0x9e   :  { %138 = vst.msk [vmem:[%s303_s4 + $0x4] sm:$0xf] %vm136_vm1, %v132_v27  ;;  %v111_v29 = vpop.f32.mrf.mxu2 }
  0x9f   :  { %140 = vst.msk [vmem:[%s303_s4 + $0xc] sm:$0xf] %vm136_vm1, %v134_v28 }
  0xa0   :  { %147 = vsyncpa [#allocation3], 1 }
  0xa1   :  { %148 = vsyncpa [#allocation5], 1 }

// kernel: res2net_forward.53
= control target key start
LH: loop header
LB: loop body
LE: loop exit
PB: predicated region body
PF: predicated region fallthrough
CT: control target
= control target key end

     0   :  { %10 = vsyncpa [#allocation3], 0  ;;  %s350_s0 = inlined_call_operand.vmem [shape: bf16[34,32], index: 0, kind: input, shape index: {}]   ;;  %s351_s1 = inlined_call_operand.vmem [shape: bf16[32,64], index: 1, kind: input, shape index: {}]   ;;  %s352_s2 = inlined_call_operand.hbm [shape: f32[1,64], index: 2, kind: input, shape index: {}]   ;;  %s353_s3 = inlined_call_operand.hbm [shape: f32[1,64], index: 3, kind: input, shape index: {}]   ;;  %s354_s4 = inlined_call_operand.vmem [shape: bf16[34,64], index: 4, kind: input, shape index: {}]   ;;  %s355_s5 = inlined_call_operand.vmem [shape: bf16[34,64], index: 5, kind: output, shape index: {}]  }
   0x1   :  { %s21_s20 = sshll.u32 %s352_s2, 4  ;;  %s22_s20 = int_to_ptr.hbm [resolvable:$true] %s21_s20 }
   0x2   :  { %11 = vsyncpa [#allocation5], 0  ;;  %s269_s21 = smov [#allocation2]   ;;  %s32_s25 = sshll.u32 %s353_s3, 4  ;;  %s33_s25 = int_to_ptr.hbm [resolvable:$true] %s32_s25 }
   0x3   :  { %s23_s22 = sshll.u32 %s269_s21, 4  ;;  %s270_s26 = smov [#allocation4]   ;;  %s24_s22 = int_to_ptr.vmem [resolvable:$true] %s23_s22 }
   0x4   :  { %26 = dma.hbm_to_vmem [thread:$0]  %s22_s20, 16, %s24_s22, [#allocation3]  }
   0x5   :  { %s34_s27 = sshll.u32 %s270_s26, 4  ;;  %s35_s27 = int_to_ptr.vmem [resolvable:$true] %s34_s27 }
   0x6   :  { %37 = dma.hbm_to_vmem [thread:$0]  %s33_s25, 16, %s35_s27, [#allocation5]  }
   0x7   :  { %265 = dma.done.wait [#allocation3], 16  }
   0x8   :  { %266 = vsyncadd [#allocation3], 4294967280 }
   0x9   :  { %267 = dma.done.wait [#allocation5], 16  }
   0xa   :  { %268 = vsyncadd [#allocation5], 4294967280  ;;  %v199_v0 = vld [vmem:[%s351_s1 + $0x8] sm:$0xff]  ;;  %v53_v1 = vld [vmem:[%s350_s0 + $0x10] sm:$0x1]  ;;  %vm83_vm0 = vcmask 261120  }
   0xb   :  { %99 = vmatpush.bf16.msra.mxu0 %v199_v0  ;;  %209 = vmatpush.bf16.msra.mxu1 %v199_v0  ;;  %v198_v2 = vld [vmem:[%s351_s1] sm:$0xff]  ;;  %v67_v3 = vunpack.c.l.b16 %v53_v1  ;;  %v197_v5 = vld [vmem:[%s350_s0 + $0x8] sm:$0xff]  ;;  %v138_v21 = vld [vmem:[%s354_s4 + $0x10] sm:$0x1]  ;;  %vm164_vm1 = vcmask 519168   ;;  %vm169_vm2 = vcmask 516096  }
   0xc   :  { %210 = vmatpush.bf16.msra.mxu2 %v199_v0  ;;  %v196_v4 = vld [vmem:[%s350_s0] sm:$0xff]  ;;  %v208_v9 = vld [vmem:[%s354_s4 + $0x8] sm:$0xff]   ;;  %v143_v26 = vunpack.c.l.bf16 %v138_v21 }
   0xd   :  { %v70_v6 = vpack.c.b16 %v67_v3, %v67_v3  ;;  %v215_v7 = vld [vmem:[#allocation2] ss:$0 sm:$0xff]  ;;  %v216_v10 = vld [vmem:[#allocation4] ss:$0 sm:$0xff]  ;;  %v206_v16 = vunpack.c.l.bf16 %v208_v9  ;;  %v207_v30 = vunpack.c.h.bf16 %v208_v9 }
   0xe   :  { %v201_v8 = vld [vmem:[%s354_s4] sm:$0xff]  }
   0xf   :  { %100 = vmatpush.bf16.msra.mxu0 %v198_v2  ;;  %211 = vmatpush.bf16.msra.mxu1 %v198_v2  ;;  %v202_v14 = vunpack.c.l.bf16 %v201_v8  ;;  %v203_v28 = vunpack.c.h.bf16 %v201_v8 }
  0x10   :  { %212 = vmatpush.bf16.msra.mxu2 %v198_v2 }
  0x12   :  { %193 = vmatmul.msk.bf16.vlgmr.msra.gmra.mxu0 %vm83_vm0, %v196_v4  ;;  %194 = vmatmul.msk.bf16.vlgmr.msra.gmra.mxu1 %vm83_vm0, %v197_v5 }
  0x13   :  { %195 = vmatmul.msk.bf16.vlgmr.msra.gmra.mxu2 %vm83_vm0, %v70_v6 }
  0x8f   :  { %v102_v11 = vpop.f32.mrf.mxu0  ;;  %v107_v12 = vpop.f32.mrf.mxu1 }
  0x90   :  { %v120_v13 = vmul.f32 %v215_v7, %v102_v11  ;;  %v122_v15 = vmul.f32 %v215_v7, %v107_v12 }
  0x92   :  { %v129_v17 = vadd.f32 %v216_v10, %v120_v13  ;;  %v131_v18 = vadd.f32 %v216_v10, %v122_v15 }
  0x94   :  { %v144_v19 = vadd.f32 %v202_v14, %v129_v17  ;;  %v146_v20 = vadd.f32 %v206_v16, %v131_v18 }
  0x96   :  { %v149_v22 = vmax.f32 %v144_v19, 0.0  ;;  %v151_v23 = vmax.f32 %v146_v20, 0.0  ;;  %v112_v24 = vpop.f32.mrf.mxu2 }
  0x97   :  { %v124_v25 = vmul.f32 %v215_v7, %v112_v24  ;;  %v104_v27 = vpop.f32.mrf.mxu0  ;;  %v109_v29 = vpop.f32.mrf.mxu1 }
  0x98   :  { %v154_v31 = vmin.f32 %v149_v22, 20.0  ;;  %v156_v32 = vmin.f32 %v151_v23, 20.0  ;;  %v121_v33 = vmul.f32 %v215_v7, %v104_v27  ;;  %v123_v34 = vmul.f32 %v215_v7, %v109_v29 }
  0x99   :  { %v133_v35 = vadd.f32 %v216_v10, %v124_v25 }
  0x9a   :  { %v159_v36 = vpack.c.bf16 %v154_v31, %v154_v31  ;;  %v161_v37 = vpack.c.bf16 %v156_v32, %v156_v32  ;;  %v130_v38 = vadd.f32 %v216_v10, %v121_v33  ;;  %v132_v39 = vadd.f32 %v216_v10, %v123_v34 }
  0x9b   :  { %v148_v40 = vadd.f32 %v143_v26, %v133_v35 }
  0x9c   :  { %165 = vst.msk [vmem:[%s355_s5] sm:$0xf] %vm164_vm1, %v159_v36  ;;  %v145_v41 = vadd.f32 %v203_v28, %v130_v38  ;;  %v147_v42 = vadd.f32 %v207_v30, %v132_v39 }
  0x9d   :  { %167 = vst.msk [vmem:[%s355_s5 + $0x8] sm:$0xf] %vm164_vm1, %v161_v37  ;;  %v153_v43 = vmax.f32 %v148_v40, 0.0 }
  0x9e   :  { %v150_v44 = vmax.f32 %v145_v41, 0.0  ;;  %v152_v45 = vmax.f32 %v147_v42, 0.0  ;;  %v114_v46 = vpop.f32.mrf.mxu2 }
  0x9f   :  { %v158_v47 = vmin.f32 %v153_v43, 20.0 }
  0xa0   :  { %v155_v48 = vmin.f32 %v150_v44, 20.0  ;;  %v157_v49 = vmin.f32 %v152_v45, 20.0 }
  0xa1   :  { %v163_v50 = vpack.c.bf16 %v158_v47, %v158_v47 }
  0xa2   :  { %v160_v51 = vpack.c.bf16 %v155_v48, %v155_v48  ;;  %v162_v52 = vpack.c.bf16 %v157_v49, %v157_v49 }
  0xa3   :  { %170 = vst.msk [vmem:[%s355_s5 + $0x10] sm:$0x1] %vm169_vm2, %v163_v50 }
  0xa4   :  { %166 = vst.msk [vmem:[%s355_s5 + $0x4] sm:$0xf] %vm164_vm1, %v160_v51 }
  0xa5   :  { %168 = vst.msk [vmem:[%s355_s5 + $0xc] sm:$0xf] %vm164_vm1, %v162_v52 }
  0xa6   :  { %175 = vsyncpa [#allocation3], 1 }
  0xa7   :  { %176 = vsyncpa [#allocation5], 1 }

// kernel: res2net_forward.59
= control target key start
LH: loop header
LB: loop body
LE: loop exit
PB: predicated region body
PF: predicated region fallthrough
CT: control target
= control target key end

     0   :  { %9 = vsyncpa [#allocation3], 0  ;;  %s162_s18 = smov [#allocation2]   ;;  %s212_s0 = inlined_call_operand.vmem [shape: bf16[18,32], index: 0, kind: input, shape index: {}]   ;;  %s213_s1 = inlined_call_operand.vmem [shape: bf16[32,128], index: 1, kind: input, shape index: {}]   ;;  %s214_s2 = inlined_call_operand.vmem [shape: f32[1,128], index: 2, kind: input, shape index: {}]   ;;  %s215_s3 = inlined_call_operand.hbm [shape: f32[1,128], index: 3, kind: input, shape index: {}]   ;;  %s216_s4 = inlined_call_operand.vmem [shape: bf16[18,128], index: 4, kind: output, shape index: {}]  }
   0x1   :  { %s21_s17 = sshll.u32 %s215_s3, 4  ;;  %s23_s19 = sshll.u32 %s162_s18, 4  ;;  %s22_s17 = int_to_ptr.hbm [resolvable:$true] %s21_s17  ;;  %s24_s19 = int_to_ptr.vmem [resolvable:$true] %s23_s19 }
   0x2   :  { %26 = dma.hbm_to_vmem [thread:$0]  %s22_s17, 16, %s24_s19, [#allocation3]  }
   0x3   :  { %160 = dma.done.wait [#allocation3], 16  }
   0x4   :  { %161 = vsyncadd [#allocation3], 4294967280  ;;  %v125_v0 = vld [vmem:[%s213_s1 + $0x8] sm:$0xff]  ;;  %v124_v2 = vld [vmem:[%s213_s1] sm:$0xff]  ;;  %vm59_vm0 = vcmask 261120  }
   0x5   :  { %v34_v1 = vld [vmem:[%s212_s0 + $0x8] sm:$0x1]  ;;  %72 = vmatpush.bf16.msra.mxu0 %v125_v0  ;;  %131 = vmatpush.bf16.msra.mxu1 %v125_v0  ;;  %v123_v4 = vld [vmem:[%s212_s0] sm:$0xff] }
   0x6   :  { %v44_v3 = vunpack.c.l.b16 %v34_v1  ;;  %v134_v6 = vld [vmem:[%s214_s2] ss:$0 sm:$0xff] }
   0x7   :  { %v135_v9 = vld [vmem:[#allocation2] ss:$0 sm:$0xff] }
   0x8   :  { %v46_v5 = vpack.c.b16 %v44_v3, %v44_v3 }
   0x9   :  { %73 = vmatpush.bf16.msra.mxu0 %v124_v2  ;;  %132 = vmatpush.bf16.msra.mxu1 %v124_v2 }
   0xc   :  { %121 = vmatmul.msk.bf16.vlgmr.msra.gmra.mxu0 %vm59_vm0, %v123_v4  ;;  %122 = vmatmul.msk.bf16.vlgmr.msra.gmra.mxu1 %vm59_vm0, %v46_v5 }
  0x89   :  { %v75_v7 = vpop.f32.mrf.mxu0  ;;  %v80_v8 = vpop.f32.mrf.mxu1 }
  0x8a   :  { %v90_v10 = vmul.f32 %v134_v6, %v80_v8  ;;  %v88_v13 = vmul.f32 %v134_v6, %v75_v7 }
  0x8c   :  { %v97_v11 = vadd.f32 %v135_v9, %v90_v10  ;;  %v95_v17 = vadd.f32 %v135_v9, %v88_v13 }
  0x8e   :  { %v100_v12 = vpack.c.bf16 %v97_v11, %v97_v11 }
  0x90   :  { %103 = vst [vmem:[%s216_s4 + $0x8] sm:$0x1] %v100_v12 }
  0x91   :  { %v77_v14 = vpop.f32.mrf.mxu0  ;;  %v82_v15 = vpop.f32.mrf.mxu1 }
  0x92   :  { %v89_v16 = vmul.f32 %v134_v6, %v77_v14 }
  0x94   :  { %v96_v18 = vadd.f32 %v135_v9, %v89_v16 }
  0x96   :  { %v129_v19 = vpack.c.bf16 %v96_v18, %v95_v17 }
  0x98   :  { %130 = vst [vmem:[%s216_s4] sm:$0xff] %v129_v19  }
  0x99   :  { %108 = vsyncpa [#allocation3], 1 }

// kernel: res2net_forward.54
= control target key start
LH: loop header
LB: loop body
LE: loop exit
PB: predicated region body
PF: predicated region fallthrough
CT: control target
= control target key end

     0   :  { %9 = vsyncpa [#allocation3], 0  ;;  %s345_s0 = inlined_call_operand.vmem [shape: bf16[34,64], index: 0, kind: input, shape index: {}]   ;;  %s346_s1 = inlined_call_operand.vmem [shape: bf16[64,32], index: 1, kind: input, shape index: {}]   ;;  %s347_s2 = inlined_call_operand.hbm [shape: f32[1,32], index: 2, kind: input, shape index: {}]   ;;  %s348_s3 = inlined_call_operand.hbm [shape: f32[1,32], index: 3, kind: input, shape index: {}]   ;;  %s349_s4 = inlined_call_operand.vmem [shape: bf16[34,32], index: 4, kind: output, shape index: {}]  }
   0x1   :  { %s20_s17 = sshll.u32 %s347_s2, 4  ;;  %s21_s17 = int_to_ptr.hbm [resolvable:$true] %s20_s17 }
   0x2   :  { %10 = vsyncpa [#allocation5], 0  ;;  %s272_s18 = smov [#allocation2]   ;;  %s31_s22 = sshll.u32 %s348_s3, 4  ;;  %s32_s22 = int_to_ptr.hbm [resolvable:$true] %s31_s22 }
   0x3   :  { %s22_s19 = sshll.u32 %s272_s18, 4  ;;  %s273_s23 = smov [#allocation4]   ;;  %s23_s19 = int_to_ptr.vmem [resolvable:$true] %s22_s19 }
   0x4   :  { %25 = dma.hbm_to_vmem [thread:$0]  %s21_s17, 16, %s23_s19, [#allocation3]  }
   0x5   :  { %s33_s24 = sshll.u32 %s273_s23, 4  ;;  %s34_s24 = int_to_ptr.vmem [resolvable:$true] %s33_s24 }
   0x6   :  { %36 = dma.hbm_to_vmem [thread:$0]  %s32_s22, 16, %s34_s24, [#allocation5]  }
   0x7   :  { %268 = dma.done.wait [#allocation3], 16  }
   0x8   :  { %269 = vsyncadd [#allocation3], 4294967280 }
   0x9   :  { %270 = dma.done.wait [#allocation5], 16  }
   0xa   :  { %271 = vsyncadd [#allocation5], 4294967280  ;;  %v207_v0 = vld [vmem:[%s346_s1 + $0x18] sm:$0xff]  ;;  %v206_v1 = vld [vmem:[%s346_s1 + $0x10] sm:$0xff]  ;;  %vm96_vm0 = vcmask 523264   ;;  %vm162_vm1 = vcmask 257024  }
   0xb   :  { %110 = vmatpush.bf16.msra.mxu0 %v207_v0  ;;  %208 = vmatpush.bf16.msra.mxu1 %v207_v0  ;;  %v205_v2 = vld [vmem:[%s346_s1 + $0x8] sm:$0xff]  ;;  %v50_v3 = vld [vmem:[%s345_s0 + $0x10] sm:$0x1]  ;;  %v204_v4 = vld [vmem:[%s346_s1] sm:$0xff]  ;;  %vm167_vm2 = vcmask 253952  }
   0xc   :  { %209 = vmatpush.bf16.msra.mxu2 %v207_v0  ;;  %v68_v5 = vunpack.c.l.b16 %v50_v3  ;;  %v202_v6 = vld [vmem:[%s345_s0] sm:$0xff]  ;;  %v203_v7 = vld [vmem:[%s345_s0 + $0x8] sm:$0xff] }
   0xd   :  { %v218_v9 = vld [vmem:[#allocation2] ss:$0 sm:$0xff]  ;;  %v219_v10 = vld [vmem:[#allocation4] ss:$0 sm:$0xff] }
   0xe   :  { %v71_v8 = vpack.c.b16 %v68_v5, %v68_v5 }
   0xf   :  { %111 = vmatpush.bf16.msra.mxu0 %v206_v1  ;;  %210 = vmatpush.bf16.msra.mxu1 %v206_v1 }
  0x10   :  { %211 = vmatpush.bf16.msra.mxu2 %v206_v1 }
  0x13   :  { %112 = vmatpush.bf16.msra.mxu0 %v205_v2  ;;  %212 = vmatpush.bf16.msra.mxu1 %v205_v2 }
  0x14   :  { %213 = vmatpush.bf16.msra.mxu2 %v205_v2 }
  0x17   :  { %113 = vmatpush.bf16.msra.mxu0 %v204_v4  ;;  %214 = vmatpush.bf16.msra.mxu1 %v204_v4 }
  0x18   :  { %215 = vmatpush.bf16.msra.mxu2 %v204_v4 }
  0x1a   :  { %199 = vmatmul.msk.bf16.vlgmr.msra.gmra.mxu0 %vm96_vm0, %v202_v6  ;;  %200 = vmatmul.msk.bf16.vlgmr.msra.gmra.mxu1 %vm96_vm0, %v203_v7 }
  0x1b   :  { %201 = vmatmul.msk.bf16.vlgmr.msra.gmra.mxu2 %vm96_vm0, %v71_v8 }
  0x97   :  { %v115_v11 = vpop.f32.mrf.mxu0  ;;  %v120_v12 = vpop.f32.mrf.mxu1 }
  0x98   :  { %v133_v13 = vmul.f32 %v218_v9, %v115_v11  ;;  %v135_v14 = vmul.f32 %v218_v9, %v120_v12 }
  0x9a   :  { %v142_v15 = vadd.f32 %v219_v10, %v133_v13  ;;  %v144_v16 = vadd.f32 %v219_v10, %v135_v14 }
  0x9c   :  { %v147_v17 = vmax.f32 %v142_v15, 0.0  ;;  %v149_v18 = vmax.f32 %v144_v16, 0.0 }
  0x9e   :  { %v152_v19 = vmin.f32 %v147_v17, 20.0  ;;  %v154_v20 = vmin.f32 %v149_v18, 20.0  ;;  %v125_v21 = vpop.f32.mrf.mxu2 }
  0x9f   :  { %v137_v22 = vmul.f32 %v218_v9, %v125_v21  ;;  %v117_v23 = vpop.f32.mrf.mxu0  ;;  %v122_v24 = vpop.f32.mrf.mxu1 }
  0xa0   :  { %v157_v25 = vpack.c.bf16 %v152_v19, %v152_v19  ;;  %v159_v26 = vpack.c.bf16 %v154_v20, %v154_v20  ;;  %v134_v27 = vmul.f32 %v218_v9, %v117_v23  ;;  %v136_v28 = vmul.f32 %v218_v9, %v122_v24 }
  0xa1   :  { %v146_v29 = vadd.f32 %v219_v10, %v137_v22 }
  0xa2   :  { %163 = vst.msk [vmem:[%s349_s4] sm:$0xf] %vm162_vm1, %v157_v25  ;;  %v143_v30 = vadd.f32 %v219_v10, %v134_v27  ;;  %v145_v31 = vadd.f32 %v219_v10, %v136_v28 }
  0xa3   :  { %165 = vst.msk [vmem:[%s349_s4 + $0x8] sm:$0xf] %vm162_vm1, %v159_v26  ;;  %v151_v32 = vmax.f32 %v146_v29, 0.0 }
  0xa4   :  { %v148_v33 = vmax.f32 %v143_v30, 0.0  ;;  %v150_v34 = vmax.f32 %v145_v31, 0.0 }
  0xa5   :  { %v156_v35 = vmin.f32 %v151_v32, 20.0 }
  0xa6   :  { %v153_v36 = vmin.f32 %v148_v33, 20.0  ;;  %v155_v37 = vmin.f32 %v150_v34, 20.0  ;;  %v127_v38 = vpop.f32.mrf.mxu2 }
  0xa7   :  { %v161_v39 = vpack.c.bf16 %v156_v35, %v156_v35 }
  0xa8   :  { %v158_v40 = vpack.c.bf16 %v153_v36, %v153_v36  ;;  %v160_v41 = vpack.c.bf16 %v155_v37, %v155_v37 }
  0xa9   :  { %168 = vst.msk [vmem:[%s349_s4 + $0x10] sm:$0x1] %vm167_vm2, %v161_v39 }
  0xaa   :  { %164 = vst.msk [vmem:[%s349_s4 + $0x4] sm:$0xf] %vm162_vm1, %v158_v40 }
  0xab   :  { %166 = vst.msk [vmem:[%s349_s4 + $0xc] sm:$0xf] %vm162_vm1, %v160_v41 }
  0xac   :  { %173 = vsyncpa [#allocation3], 1 }
  0xad   :  { %174 = vsyncpa [#allocation5], 1 }

// kernel: res2net_forward.58
= control target key start
LH: loop header
LB: loop body
LE: loop exit
PB: predicated region body
PF: predicated region fallthrough
CT: control target
= control target key end

     0   :  { %9 = vsyncpa [#allocation3], 0  ;;  %s295_s0 = inlined_call_operand.vmem [shape: bf16[18,64], index: 0, kind: input, shape index: {}]   ;;  %s296_s1 = inlined_call_operand.vmem [shape: bf16[64,64], index: 1, kind: input, shape index: {}]   ;;  %s297_s2 = inlined_call_operand.hbm [shape: f32[1,64], index: 2, kind: input, shape index: {}]   ;;  %s298_s3 = inlined_call_operand.hbm [shape: f32[1,64], index: 3, kind: input, shape index: {}]   ;;  %s299_s4 = inlined_call_operand.vmem [shape: bf16[18,64], index: 4, kind: output, shape index: {}]  }
   0x1   :  { %s20_s17 = sshll.u32 %s297_s2, 4  ;;  %s21_s17 = int_to_ptr.hbm [resolvable:$true] %s20_s17 }
   0x2   :  { %10 = vsyncpa [#allocation5], 0  ;;  %s235_s18 = smov [#allocation2]   ;;  %s31_s22 = sshll.u32 %s298_s3, 4  ;;  %s32_s22 = int_to_ptr.hbm [resolvable:$true] %s31_s22 }
   0x3   :  { %s22_s19 = sshll.u32 %s235_s18, 4  ;;  %s236_s23 = smov [#allocation4]   ;;  %s23_s19 = int_to_ptr.vmem [resolvable:$true] %s22_s19 }
   0x4   :  { %25 = dma.hbm_to_vmem [thread:$0]  %s21_s17, 16, %s23_s19, [#allocation3]  }
   0x5   :  { %s33_s24 = sshll.u32 %s236_s23, 4  ;;  %s34_s24 = int_to_ptr.vmem [resolvable:$true] %s33_s24 }
   0x6   :  { %36 = dma.hbm_to_vmem [thread:$0]  %s32_s22, 16, %s34_s24, [#allocation5]  }
   0x7   :  { %231 = dma.done.wait [#allocation3], 16  }
   0x8   :  { %232 = vsyncadd [#allocation3], 4294967280 }
   0x9   :  { %233 = dma.done.wait [#allocation5], 16  }
   0xa   :  { %234 = vsyncadd [#allocation5], 4294967280  ;;  %v174_v0 = vld [vmem:[%s296_s1 + $0x18] sm:$0xff]  ;;  %v173_v1 = vld [vmem:[%s296_s1 + $0x10] sm:$0xff]  ;;  %vm89_vm0 = vcmask 523264   ;;  %vm137_vm1 = vcmask 519168  }
   0xb   :  { %100 = vmatpush.bf16.msra.mxu0 %v174_v0  ;;  %175 = vmatpush.bf16.msra.mxu1 %v174_v0  ;;  %v172_v2 = vld [vmem:[%s296_s1 + $0x8] sm:$0xff]  ;;  %v171_v5 = vld [vmem:[%s296_s1] sm:$0xff]  ;;  %vm140_vm2 = vcmask 516096  }
   0xc   :  { %v48_v3 = vld [vmem:[%s295_s0 + $0x8] sm:$0x1]  ;;  %v170_v6 = vld [vmem:[%s295_s0] sm:$0xff] }
   0xd   :  { %v62_v4 = vunpack.c.l.b16 %v48_v3  ;;  %v181_v8 = vld [vmem:[#allocation2] ss:$0 sm:$0xff]  ;;  %v182_v9 = vld [vmem:[#allocation4] ss:$0 sm:$0xff] }
   0xf   :  { %101 = vmatpush.bf16.msra.mxu0 %v173_v1  ;;  %176 = vmatpush.bf16.msra.mxu1 %v173_v1  ;;  %v64_v7 = vpack.c.b16 %v62_v4, %v62_v4 }
  0x13   :  { %102 = vmatpush.bf16.msra.mxu0 %v172_v2  ;;  %177 = vmatpush.bf16.msra.mxu1 %v172_v2 }
  0x17   :  { %103 = vmatpush.bf16.msra.mxu0 %v171_v5  ;;  %178 = vmatpush.bf16.msra.mxu1 %v171_v5 }
  0x1a   :  { %168 = vmatmul.msk.bf16.vlgmr.msra.gmra.mxu0 %vm89_vm0, %v170_v6  ;;  %169 = vmatmul.msk.bf16.vlgmr.msra.gmra.mxu1 %vm89_vm0, %v64_v7 }
  0x97   :  { %v105_v10 = vpop.f32.mrf.mxu0  ;;  %v110_v11 = vpop.f32.mrf.mxu1 }
  0x98   :  { %v118_v12 = vmul.f32 %v181_v8, %v105_v10  ;;  %v120_v13 = vmul.f32 %v181_v8, %v110_v11 }
  0x9a   :  { %v125_v14 = vadd.f32 %v182_v9, %v118_v12  ;;  %v127_v15 = vadd.f32 %v182_v9, %v120_v13 }
  0x9c   :  { %v128_v16 = vmax.f32 %v125_v14, 0.0  ;;  %v130_v17 = vmax.f32 %v127_v15, 0.0 }
  0x9e   :  { %v131_v18 = vmin.f32 %v128_v16, 20.0  ;;  %v133_v19 = vmin.f32 %v130_v17, 20.0 }
  0x9f   :  { %v107_v20 = vpop.f32.mrf.mxu0  ;;  %v112_v21 = vpop.f32.mrf.mxu1 }
  0xa0   :  { %v134_v22 = vpack.c.bf16 %v131_v18, %v131_v18  ;;  %v136_v23 = vpack.c.bf16 %v133_v19, %v133_v19  ;;  %v119_v24 = vmul.f32 %v181_v8, %v107_v20 }
  0xa2   :  { %138 = vst.msk [vmem:[%s299_s4] sm:$0xf] %vm137_vm1, %v134_v22  ;;  %v126_v25 = vadd.f32 %v182_v9, %v119_v24 }
  0xa3   :  { %141 = vst.msk [vmem:[%s299_s4 + $0x8] sm:$0x1] %vm140_vm2, %v136_v23 }
  0xa4   :  { %v129_v26 = vmax.f32 %v126_v25, 0.0 }
  0xa6   :  { %v132_v27 = vmin.f32 %v129_v26, 20.0 }
  0xa8   :  { %v135_v28 = vpack.c.bf16 %v132_v27, %v132_v27 }
  0xaa   :  { %139 = vst.msk [vmem:[%s299_s4 + $0x4] sm:$0xf] %vm137_vm1, %v135_v28 }
  0xab   :  { %146 = vsyncpa [#allocation3], 1 }
  0xac   :  { %147 = vsyncpa [#allocation5], 1 }

// kernel: res2net_forward.61
= control target key start
LH: loop header
LB: loop body
LE: loop exit
PB: predicated region body
PF: predicated region fallthrough
CT: control target
= control target key end

     0   :  { %9 = vsyncpa [#allocation3], 0  ;;  %s289_s0 = inlined_call_operand.vmem [shape: bf16[18,64], index: 0, kind: input, shape index: {}]   ;;  %s290_s1 = inlined_call_operand.vmem [shape: bf16[64,128], index: 1, kind: input, shape index: {}]   ;;  %s291_s2 = inlined_call_operand.hbm [shape: f32[1,128], index: 2, kind: input, shape index: {}]   ;;  %s292_s3 = inlined_call_operand.hbm [shape: f32[1,128], index: 3, kind: input, shape index: {}]   ;;  %s293_s4 = inlined_call_operand.vmem [shape: bf16[18,128], index: 4, kind: output, shape index: {}]  }
   0x1   :  { %s20_s17 = sshll.u32 %s291_s2, 4  ;;  %s21_s17 = int_to_ptr.hbm [resolvable:$true] %s20_s17 }
   0x2   :  { %10 = vsyncpa [#allocation5], 0  ;;  %s232_s18 = smov [#allocation2]   ;;  %s31_s22 = sshll.u32 %s292_s3, 4  ;;  %s32_s22 = int_to_ptr.hbm [resolvable:$true] %s31_s22 }
   0x3   :  { %s22_s19 = sshll.u32 %s232_s18, 4  ;;  %s233_s23 = smov [#allocation4]   ;;  %s23_s19 = int_to_ptr.vmem [resolvable:$true] %s22_s19 }
   0x4   :  { %25 = dma.hbm_to_vmem [thread:$0]  %s21_s17, 16, %s23_s19, [#allocation3]  }
   0x5   :  { %s33_s24 = sshll.u32 %s233_s23, 4  ;;  %s34_s24 = int_to_ptr.vmem [resolvable:$true] %s33_s24 }
   0x6   :  { %36 = dma.hbm_to_vmem [thread:$0]  %s32_s22, 16, %s34_s24, [#allocation5]  }
   0x7   :  { %228 = dma.done.wait [#allocation3], 16  }
   0x8   :  { %229 = vsyncadd [#allocation3], 4294967280 }
   0x9   :  { %230 = dma.done.wait [#allocation5], 16  }
   0xa   :  { %231 = vsyncadd [#allocation5], 4294967280  ;;  %v166_v0 = vld [vmem:[%s290_s1 + $0x18] sm:$0xff]  ;;  %v165_v1 = vld [vmem:[%s290_s1 + $0x10] sm:$0xff]  ;;  %vm89_vm0 = vcmask 523264  }
   0xb   :  { %100 = vmatpush.bf16.msra.mxu0 %v166_v0  ;;  %172 = vmatpush.bf16.msra.mxu1 %v166_v0  ;;  %v164_v2 = vld [vmem:[%s290_s1 + $0x8] sm:$0xff]  ;;  %v163_v5 = vld [vmem:[%s290_s1] sm:$0xff] }
   0xc   :  { %v48_v3 = vld [vmem:[%s289_s0 + $0x8] sm:$0x1]  ;;  %v162_v6 = vld [vmem:[%s289_s0] sm:$0xff] }
   0xd   :  { %v62_v4 = vunpack.c.l.b16 %v48_v3  ;;  %v178_v8 = vld [vmem:[#allocation2] ss:$0 sm:$0xff]  ;;  %v179_v11 = vld [vmem:[#allocation4] ss:$0 sm:$0xff] }
   0xf   :  { %101 = vmatpush.bf16.msra.mxu0 %v165_v1  ;;  %173 = vmatpush.bf16.msra.mxu1 %v165_v1  ;;  %v64_v7 = vpack.c.b16 %v62_v4, %v62_v4 }
  0x13   :  { %102 = vmatpush.bf16.msra.mxu0 %v164_v2  ;;  %174 = vmatpush.bf16.msra.mxu1 %v164_v2 }
  0x17   :  { %103 = vmatpush.bf16.msra.mxu0 %v163_v5  ;;  %175 = vmatpush.bf16.msra.mxu1 %v163_v5 }
  0x1a   :  { %160 = vmatmul.msk.bf16.vlgmr.msra.gmra.mxu0 %vm89_vm0, %v162_v6  ;;  %161 = vmatmul.msk.bf16.vlgmr.msra.gmra.mxu1 %vm89_vm0, %v64_v7 }
  0x97   :  { %v105_v9 = vpop.f32.mrf.mxu0  ;;  %v110_v10 = vpop.f32.mrf.mxu1 }
  0x98   :  { %v120_v12 = vmul.f32 %v178_v8, %v110_v10  ;;  %v118_v15 = vmul.f32 %v178_v8, %v105_v9 }
  0x9a   :  { %v127_v13 = vadd.f32 %v179_v11, %v120_v12  ;;  %v125_v19 = vadd.f32 %v179_v11, %v118_v15 }
  0x9c   :  { %v130_v14 = vpack.c.bf16 %v127_v13, %v127_v13 }
  0x9e   :  { %133 = vst [vmem:[%s293_s4 + $0x8] sm:$0x1] %v130_v14 }
  0x9f   :  { %v107_v16 = vpop.f32.mrf.mxu0  ;;  %v112_v17 = vpop.f32.mrf.mxu1 }
  0xa0   :  { %v119_v18 = vmul.f32 %v178_v8, %v107_v16 }
  0xa2   :  { %v126_v20 = vadd.f32 %v179_v11, %v119_v18 }
  0xa4   :  { %v170_v21 = vpack.c.bf16 %v126_v20, %v125_v19 }
  0xa6   :  { %171 = vst [vmem:[%s293_s4] sm:$0xff] %v170_v21  }
  0xa7   :  { %138 = vsyncpa [#allocation3], 1 }
  0xa8   :  { %139 = vsyncpa [#allocation5], 1 }

// kernel: res2net_forward.62
= control target key start
LH: loop header
LB: loop body
LE: loop exit
PB: predicated region body
PF: predicated region fallthrough
CT: control target
= control target key end

     0   :  { %10 = vsyncpa [#allocation3], 0  ;;  %s322_s0 = inlined_call_operand.vmem [shape: bf16[18,64], index: 0, kind: input, shape index: {}]   ;;  %s323_s1 = inlined_call_operand.vmem [shape: bf16[64,128], index: 1, kind: input, shape index: {}]   ;;  %s324_s2 = inlined_call_operand.hbm [shape: f32[1,128], index: 2, kind: input, shape index: {}]   ;;  %s325_s3 = inlined_call_operand.hbm [shape: f32[1,128], index: 3, kind: input, shape index: {}]   ;;  %s326_s4 = inlined_call_operand.vmem [shape: bf16[18,128], index: 4, kind: input, shape index: {}]   ;;  %s327_s5 = inlined_call_operand.vmem [shape: bf16[18,128], index: 5, kind: output, shape index: {}]  }
   0x1   :  { %s21_s20 = sshll.u32 %s324_s2, 4  ;;  %s22_s20 = int_to_ptr.hbm [resolvable:$true] %s21_s20 }
   0x2   :  { %11 = vsyncpa [#allocation5], 0  ;;  %s254_s21 = smov [#allocation2]   ;;  %s32_s25 = sshll.u32 %s325_s3, 4  ;;  %s33_s25 = int_to_ptr.hbm [resolvable:$true] %s32_s25 }
   0x3   :  { %s23_s22 = sshll.u32 %s254_s21, 4  ;;  %s255_s26 = smov [#allocation4]   ;;  %s24_s22 = int_to_ptr.vmem [resolvable:$true] %s23_s22 }
   0x4   :  { %26 = dma.hbm_to_vmem [thread:$0]  %s22_s20, 16, %s24_s22, [#allocation3]  }
   0x5   :  { %s34_s27 = sshll.u32 %s255_s26, 4  ;;  %s35_s27 = int_to_ptr.vmem [resolvable:$true] %s34_s27 }
   0x6   :  { %37 = dma.hbm_to_vmem [thread:$0]  %s33_s25, 16, %s35_s27, [#allocation5]  }
   0x7   :  { %250 = dma.done.wait [#allocation3], 16  }
   0x8   :  { %251 = vsyncadd [#allocation3], 4294967280 }
   0x9   :  { %252 = dma.done.wait [#allocation5], 16  }
   0xa   :  { %253 = vsyncadd [#allocation5], 4294967280  ;;  %v184_v0 = vld [vmem:[%s323_s1 + $0x18] sm:$0xff]  ;;  %v183_v1 = vld [vmem:[%s323_s1 + $0x10] sm:$0xff]  ;;  %vm92_vm0 = vcmask 523264  }
   0xb   :  { %103 = vmatpush.bf16.msra.mxu0 %v184_v0  ;;  %194 = vmatpush.bf16.msra.mxu1 %v184_v0  ;;  %v182_v2 = vld [vmem:[%s323_s1 + $0x8] sm:$0xff]  ;;  %v181_v5 = vld [vmem:[%s323_s1] sm:$0xff] }
   0xc   :  { %v51_v3 = vld [vmem:[%s322_s0 + $0x8] sm:$0x1]  ;;  %v180_v6 = vld [vmem:[%s322_s0] sm:$0xff] }
   0xd   :  { %v65_v4 = vunpack.c.l.b16 %v51_v3  ;;  %v200_v8 = vld [vmem:[#allocation2] ss:$0 sm:$0xff]  ;;  %v133_v9 = vld [vmem:[%s326_s4 + $0x8] sm:$0x1]  ;;  %v201_v13 = vld [vmem:[#allocation4] ss:$0 sm:$0xff] }
   0xe   :  { %v136_v15 = vunpack.c.l.bf16 %v133_v9  ;;  %v186_v16 = vld [vmem:[%s326_s4] sm:$0xff]  }
   0xf   :  { %104 = vmatpush.bf16.msra.mxu0 %v183_v1  ;;  %195 = vmatpush.bf16.msra.mxu1 %v183_v1  ;;  %v67_v7 = vpack.c.b16 %v65_v4, %v65_v4  ;;  %v187_v19 = vunpack.c.l.bf16 %v186_v16  ;;  %v188_v27 = vunpack.c.h.bf16 %v186_v16 }
  0x13   :  { %105 = vmatpush.bf16.msra.mxu0 %v182_v2  ;;  %196 = vmatpush.bf16.msra.mxu1 %v182_v2 }
  0x17   :  { %106 = vmatpush.bf16.msra.mxu0 %v181_v5  ;;  %197 = vmatpush.bf16.msra.mxu1 %v181_v5 }
  0x1a   :  { %178 = vmatmul.msk.bf16.vlgmr.msra.gmra.mxu0 %vm92_vm0, %v180_v6  ;;  %179 = vmatmul.msk.bf16.vlgmr.msra.gmra.mxu1 %vm92_vm0, %v67_v7 }
  0x97   :  { %v108_v10 = vpop.f32.mrf.mxu0  ;;  %v113_v11 = vpop.f32.mrf.mxu1 }
  0x98   :  { %v121_v12 = vmul.f32 %v200_v8, %v108_v10  ;;  %v123_v14 = vmul.f32 %v200_v8, %v113_v11 }
  0x9a   :  { %v130_v17 = vadd.f32 %v201_v13, %v123_v14  ;;  %v128_v18 = vadd.f32 %v201_v13, %v121_v12 }
  0x9c   :  { %v139_v20 = vadd.f32 %v136_v15, %v130_v17  ;;  %v137_v24 = vadd.f32 %v187_v19, %v128_v18 }
  0x9e   :  { %v142_v21 = vmax.f32 %v139_v20, 0.0  ;;  %v140_v30 = vmax.f32 %v137_v24, 0.0 }
  0x9f   :  { %v110_v22 = vpop.f32.mrf.mxu0  ;;  %v115_v23 = vpop.f32.mrf.mxu1 }
  0xa0   :  { %v145_v25 = vmin.f32 %v142_v21, 20.0  ;;  %v122_v26 = vmul.f32 %v200_v8, %v110_v22  ;;  %v143_v33 = vmin.f32 %v140_v30, 20.0 }
  0xa2   :  { %v148_v28 = vpack.c.bf16 %v145_v25, %v145_v25  ;;  %v129_v29 = vadd.f32 %v201_v13, %v122_v26 }
  0xa4   :  { %151 = vst [vmem:[%s327_s5 + $0x8] sm:$0x1] %v148_v28  ;;  %v138_v31 = vadd.f32 %v188_v27, %v129_v29 }
  0xa6   :  { %v141_v32 = vmax.f32 %v138_v31, 0.0 }
  0xa8   :  { %v144_v34 = vmin.f32 %v141_v32, 20.0 }
  0xaa   :  { %v192_v35 = vpack.c.bf16 %v144_v34, %v143_v33 }
  0xac   :  { %193 = vst [vmem:[%s327_s5] sm:$0xff] %v192_v35  }
  0xad   :  { %156 = vsyncpa [#allocation3], 1 }
  0xae   :  { %157 = vsyncpa [#allocation5], 1 }

// kernel: res2net_forward.63
= control target key start
LH: loop header
LB: loop body
LE: loop exit
PB: predicated region body
PF: predicated region fallthrough
CT: control target
= control target key end

     0   :  { %9 = vsyncpa [#allocation3], 0  ;;  %s355_s0 = inlined_call_operand.vmem [shape: bf16[18,128], index: 0, kind: input, shape index: {}]   ;;  %s356_s1 = inlined_call_operand.vmem [shape: bf16[128,64], index: 1, kind: input, shape index: {}]   ;;  %s357_s2 = inlined_call_operand.hbm [shape: f32[1,64], index: 2, kind: input, shape index: {}]   ;;  %s358_s3 = inlined_call_operand.hbm [shape: f32[1,64], index: 3, kind: input, shape index: {}]   ;;  %s359_s4 = inlined_call_operand.vmem [shape: bf16[18,64], index: 4, kind: output, shape index: {}]  }
   0x1   :  { %s20_s17 = sshll.u32 %s357_s2, 4  ;;  %s21_s17 = int_to_ptr.hbm [resolvable:$true] %s20_s17 }
   0x2   :  { %10 = vsyncpa [#allocation5], 0  ;;  %s283_s18 = smov [#allocation2]   ;;  %s31_s22 = sshll.u32 %s358_s3, 4  ;;  %s32_s22 = int_to_ptr.hbm [resolvable:$true] %s31_s22 }
   0x3   :  { %s22_s19 = sshll.u32 %s283_s18, 4  ;;  %s284_s23 = smov [#allocation4]   ;;  %s23_s19 = int_to_ptr.vmem [resolvable:$true] %s22_s19 }
   0x4   :  { %25 = dma.hbm_to_vmem [thread:$0]  %s21_s17, 16, %s23_s19, [#allocation3]  }
   0x5   :  { %s33_s24 = sshll.u32 %s284_s23, 4  ;;  %s34_s24 = int_to_ptr.vmem [resolvable:$true] %s33_s24 }
   0x6   :  { %36 = dma.hbm_to_vmem [thread:$0]  %s32_s22, 16, %s34_s24, [#allocation5]  }
   0x7   :  { %279 = dma.done.wait [#allocation3], 16  }
   0x8   :  { %280 = vsyncadd [#allocation3], 4294967280 }
   0x9   :  { %281 = dma.done.wait [#allocation5], 16  }
   0xa   :  { %282 = vsyncadd [#allocation5], 4294967280  ;;  %v218_v0 = vld [vmem:[%s356_s1 + $0x38] sm:$0xff]  ;;  %v217_v1 = vld [vmem:[%s356_s1 + $0x30] sm:$0xff]  ;;  %vm163_vm0 = vcmask 519168   ;;  %vm166_vm1 = vcmask 516096  }
   0xb   :  { %122 = vmatpush.bf16.msra.mxu0 %v218_v0  ;;  %219 = vmatpush.bf16.msra.mxu1 %v218_v0  ;;  %v216_v2 = vld [vmem:[%s356_s1 + $0x28] sm:$0xff]  ;;  %v215_v3 = vld [vmem:[%s356_s1 + $0x20] sm:$0xff]  ;;  %v214_v4 = vld [vmem:[%s356_s1 + $0x18] sm:$0xff] }
   0xc   :  { %v213_v5 = vld [vmem:[%s356_s1 + $0x10] sm:$0xff]  ;;  %v212_v6 = vld [vmem:[%s356_s1 + $0x8] sm:$0xff]  ;;  %v211_v9 = vld [vmem:[%s356_s1] sm:$0xff] }
   0xd   :  { %v47_v7 = vld [vmem:[%s355_s0 + $0x8] sm:$0x1]  ;;  %v210_v10 = vld [vmem:[%s355_s0] sm:$0xff] }
   0xe   :  { %v69_v8 = vunpack.c.l.b16 %v47_v7  ;;  %v229_v12 = vld [vmem:[#allocation2] ss:$0 sm:$0xff]  ;;  %v230_v13 = vld [vmem:[#allocation4] ss:$0 sm:$0xff] }
   0xf   :  { %123 = vmatpush.bf16.msra.mxu0 %v217_v1  ;;  %220 = vmatpush.bf16.msra.mxu1 %v217_v1 }
  0x10   :  { %v71_v11 = vpack.c.b16 %v69_v8, %v69_v8 }
  0x13   :  { %124 = vmatpush.bf16.msra.mxu0 %v216_v2  ;;  %221 = vmatpush.bf16.msra.mxu1 %v216_v2 }
  0x17   :  { %125 = vmatpush.bf16.msra.mxu0 %v215_v3  ;;  %222 = vmatpush.bf16.msra.mxu1 %v215_v3 }
  0x1b   :  { %126 = vmatpush.bf16.msra.mxu0 %v214_v4  ;;  %223 = vmatpush.bf16.msra.mxu1 %v214_v4 }
  0x1f   :  { %127 = vmatpush.bf16.msra.mxu0 %v213_v5  ;;  %224 = vmatpush.bf16.msra.mxu1 %v213_v5 }
  0x23   :  { %128 = vmatpush.bf16.msra.mxu0 %v212_v6  ;;  %225 = vmatpush.bf16.msra.mxu1 %v212_v6 }
  0x27   :  { %129 = vmatpush.bf16.msra.mxu0 %v211_v9  ;;  %226 = vmatpush.bf16.msra.mxu1 %v211_v9 }
  0x2a   :  { %130 = vmatmul.bf16.vlgmr.msra.gmra.mxu0 %v210_v10  ;;  %135 = vmatmul.bf16.vlgmr.msra.gmra.mxu1 %v71_v11 }
  0xa7   :  { %v131_v14 = vpop.f32.mrf.mxu0  ;;  %v136_v15 = vpop.f32.mrf.mxu1 }
  0xa8   :  { %v144_v16 = vmul.f32 %v229_v12, %v131_v14  ;;  %v146_v17 = vmul.f32 %v229_v12, %v136_v15 }
  0xaa   :  { %v151_v18 = vadd.f32 %v230_v13, %v144_v16  ;;  %v153_v19 = vadd.f32 %v230_v13, %v146_v17 }
  0xac   :  { %v154_v20 = vmax.f32 %v151_v18, 0.0  ;;  %v156_v21 = vmax.f32 %v153_v19, 0.0 }
  0xae   :  { %v157_v22 = vmin.f32 %v154_v20, 20.0  ;;  %v159_v23 = vmin.f32 %v156_v21, 20.0 }
  0xaf   :  { %v133_v24 = vpop.f32.mrf.mxu0  ;;  %v138_v25 = vpop.f32.mrf.mxu1 }
  0xb0   :  { %v160_v26 = vpack.c.bf16 %v157_v22, %v157_v22  ;;  %v162_v27 = vpack.c.bf16 %v159_v23, %v159_v23  ;;  %v145_v28 = vmul.f32 %v229_v12, %v133_v24 }
  0xb2   :  { %164 = vst.msk [vmem:[%s359_s4] sm:$0xf] %vm163_vm0, %v160_v26  ;;  %v152_v29 = vadd.f32 %v230_v13, %v145_v28 }
  0xb3   :  { %167 = vst.msk [vmem:[%s359_s4 + $0x8] sm:$0x1] %vm166_vm1, %v162_v27 }
  0xb4   :  { %v155_v30 = vmax.f32 %v152_v29, 0.0 }
  0xb6   :  { %v158_v31 = vmin.f32 %v155_v30, 20.0 }
  0xb8   :  { %v161_v32 = vpack.c.bf16 %v158_v31, %v158_v31 }
  0xba   :  { %165 = vst.msk [vmem:[%s359_s4 + $0x4] sm:$0xf] %vm163_vm0, %v161_v32 }
  0xbb   :  { %172 = vsyncpa [#allocation3], 1 }
  0xbc   :  { %173 = vsyncpa [#allocation5], 1 }

// kernel: res2net_forward.60
= control target key start
LH: loop header
LB: loop body
LE: loop exit
PB: predicated region body
PF: predicated region fallthrough
CT: control target
= control target key end

     0   :  { %9 = vsyncpa [#allocation3], 0  ;;  %s566_s0 = inlined_call_operand.vmem [shape: bf16[9,2,128], index: 0, kind: input, shape index: {}]   ;;  %s567_s1 = inlined_call_operand.vmem [shape: bf16[32,128], index: 1, kind: input, shape index: {}]   ;;  %s568_s2 = inlined_call_operand.hbm [shape: f32[1,32], index: 2, kind: input, shape index: {}]   ;;  %s569_s3 = inlined_call_operand.hbm [shape: f32[1,32], index: 3, kind: input, shape index: {}]   ;;  %s570_s4 = inlined_call_operand.vmem [shape: bf16[9,2,32], index: 4, kind: output, shape index: {}]  }
   0x1   :  { %s20_s17 = sshll.u32 %s568_s2, 4  ;;  %s21_s17 = int_to_ptr.hbm [resolvable:$true] %s20_s17 }
   0x2   :  { %10 = vsyncpa [#allocation5], 0  ;;  %s435_s18 = smov [#allocation2]   ;;  %s31_s22 = sshll.u32 %s569_s3, 4  ;;  %s32_s22 = int_to_ptr.hbm [resolvable:$true] %s31_s22 }
   0x3   :  { %s22_s19 = sshll.u32 %s435_s18, 4  ;;  %s436_s23 = smov [#allocation4]   ;;  %s23_s19 = int_to_ptr.vmem [resolvable:$true] %s22_s19 }
   0x4   :  { %25 = dma.hbm_to_vmem [thread:$0]  %s21_s17, 16, %s23_s19, [#allocation3]  }
   0x5   :  { %s33_s24 = sshll.u32 %s436_s23, 4  ;;  %s34_s24 = int_to_ptr.vmem [resolvable:$true] %s33_s24 }
   0x6   :  { %36 = dma.hbm_to_vmem [thread:$0]  %s32_s22, 16, %s34_s24, [#allocation5]  }
   0x7   :  { %411 = dma.done.wait [#allocation3], 16  }
   0x8   :  { %412 = vsyncadd [#allocation3], 4294967280 }
   0x9   :  { %413 = dma.done.wait [#allocation5], 16  }
   0xa   :  { %414 = vsyncadd [#allocation5], 4294967280  ;;  %v476_v0 = vld [vmem:[%s567_s1] sm:$0xf]  ;;  %v481_v1 = vld [vmem:[%s567_s1] sm:$0xf0] }
   0xb   :  { %v486_v2 = vld [vmem:[%s567_s1 + $0x8] sm:$0xf]  ;;  %v491_v3 = vld [vmem:[%s567_s1 + $0x8] sm:$0xf0]  ;;  %v497_v6 = vmov 0.0   ;;  %v499_v7 = vmov 0.0  }
   0xc   :  { %v493_v4 = vld [vmem:[#allocation2] sm:$0x1]  ;;  %v495_v5 = vld [vmem:[#allocation4] sm:$0x1]  ;;  %v501_v8 = vmov 0.0   ;;  %v503_v9 = vmov 0.0  }
   0xd   :  { %s505_s5 = smov 0  }
   0xe LB: > { %64 = vst [vmem:[#allocation1] ss:$4 sm:$0xff] %v429_v9  ;;  %s437_s1 = smov 80   ;;  %s438_s6 = smov 32   ;;  %v274_v12 = vor.u32 %v491_v3, %v486_v2  ;;  %v270_v13 = vor.u32 %v481_v1, %v476_v0  ;;  %vm75_vm0 = vcmask 130048   ;;  %vm90_vm1 = vcmask 261120   ;;  %s433_s5 = sphi %s505_s5, %s57_s5   ;;  %v429_v9 = vphi %v503_v9, %v151_v9   ;;  %v425_v8 = vphi %v501_v8, %v145_v8   ;;  %v421_v7 = vphi %v499_v7, %v188_v7   ;;  %v417_v6 = vphi %v497_v6, %v182_v6  }
   0xf   : > { %s107_s9 = scalar_lea.vmem %s566_s0, %s433_s5  ;;  %s62_s10 = ssub.s32 8, %s433_s5  ;;  %v190_v58 = vperm.slane %v493_v4, 0  ;;  %v196_v59 = vperm.slane %v495_v5, 0  ;;  %vm206_vm10 = vcmask 1040384   ;;  %vm215_vm11 = vcmask 122880  }
  0x10   : > { %100 = vmatpush.bf16.msra.mxu0 %v274_v12  ;;  %v108_v18 = vld [vmem:[%s107_s9] sm:$0x1]  ;;  %s111_s13 = scalar_lea.vmem %s566_s0, %s62_s10  ;;  %s439_s14 = smov 96   ;;  %vm238_vm12 = vcmask 254080  }
  0x11   : > { %v109_v19 = vunpack.c.l.bf16 %v108_v18  ;;  %v112_v21 = vld [vmem:[%s111_s13] sm:$0x1]  ;;  %s440_s15 = smov 16   ;;  %s441_s16 = smov 48  }
  0x12   : > { %v113_v23 = vunpack.c.l.bf16 %v112_v21  ;;  %s214_s19 = scalar_lea.vmem %s570_s4, %s433_s5  ;;  %s237_s22 = scalar_lea.vmem %s570_s4, %s62_s10 }
  0x13   : > { %s57_s5 = sadd.s32 1, %s433_s5  }
  0x14   : > { %101 = vmatpush.bf16.msra.mxu0 %v270_v13  ;;  %p54_p0 = scmp.ge.s32.totalorder %s57_s5, 9  }
  0x15   : > { %v65_v10 = vld.sshfl [vmem:[#allocation1] sm:$0xff pattern:$0x73625140] }
  0x16   : > { %66 = vrot.lane.b32.xlu0 %v65_v10, %s437_s1  ;;  %70 = vst [vmem:[#allocation1] ss:$4 sm:$0xff] %v421_v7 }
  0x1d   : > { %v71_v11 = vld.sshfl [vmem:[#allocation1] sm:$0xff pattern:$0x73625140] }
  0x1e   : > { %72 = vrot.lane.b32.xlu0 %v71_v11, %s438_s6 }
  0x88   : > { %v67_v14 = vpop.permute.xlu0 %66 }
  0x90   : > { %v73_v15 = vpop.permute.xlu0 %72 }
  0x91   : > { %v76_v16 = vsel %vm75_vm0, %v67_v14, %v73_v15 }
  0x92   : > { %v77_v17 = vpack.c.bf16 %v76_v16, %v76_v16 }
  0x94   : > { %275 = vmatmul.msk.bf16.vlgmr.msra.gmra.mxu0 %vm90_vm1, %v77_v17 }
 0x111   : > { %v103_v20 = vpop.f32.mrf.mxu0 }
 0x112   : > { %v110_v22 = vadd.f32 %v109_v19, %v103_v20  ;;  %v114_v24 = vadd.f32 %v113_v23, %v103_v20 }
 0x114   : > { %327 = vtanh.f32 %v110_v22  ;;  %v276_v28 = vmul.f32 -1.442695, %v110_v22  ;;  %v277_v29 = vmul.f32 -1.442695, %v114_v24 }
 0x115   : > { %329 = vtanh.f32 %v114_v24 }
 0x116   : > { %331 = vpow2.f32 %v276_v28 }
 0x117   : > { %333 = vpow2.f32 %v277_v29 }
 0x119   : > { %v105_v25 = vpop.f32.mrf.mxu0 }
 0x11a   : > { %v328_v26 = vpop.eup %327 }
 0x11b   : > { %137 = vrot.lane.b32.xlu1 %v328_v26, %s439_s14  ;;  %v330_v27 = vpop.eup %329 }
 0x11c   : > { %v332_v30 = vpop.eup %331 }
 0x11d   : > { %v118_v31 = vadd.f32 1.0, %v332_v30  ;;  %v334_v32 = vpop.eup %333 }
 0x11e   : > { %v155_v33 = vadd.f32 1.0, %v334_v32 }
 0x11f   : > { %335 = vrcp.f32 %v118_v31  ;;  %v130_v42 = vand.u32 2147483648, %v118_v31  ;;  %vm124_vm3 = vweird.f32 %v118_v31  ;;  %v128_v43 = vand.u32 2147483647, %v118_v31 }
 0x120   : > { %337 = vrcp.f32 %v155_v33  ;;  %v167_v51 = vand.u32 2147483648, %v155_v33  ;;  %vm161_vm7 = vweird.f32 %v155_v33  ;;  %v165_v52 = vand.u32 2147483647, %v155_v33 }
 0x121   : > { %v131_v46 = vor.u32 1.1754944e-38, %v130_v42  ;;  %vm129_vm5 = vcmp.eq.f32.partialorder %v128_v43, 8.507059e+37 }
 0x122   : > { %v168_v54 = vor.u32 1.1754944e-38, %v167_v51  ;;  %vm166_vm9 = vcmp.eq.f32.partialorder %v165_v52, 8.507059e+37 }
 0x123   : > { %174 = vrot.lane.b32.xlu1 %v330_v27, %s439_s14 }
 0x125   : > { %v336_v34 = vpop.eup %335 }
 0x126   : > { %v120_v35 = vmul.f32 %v336_v34, %v118_v31  ;;  %v338_v37 = vpop.eup %337  ;;  %vm125_vm2 = vweird.f32 %v336_v34 }
 0x127   : > { %v157_v39 = vmul.f32 %v338_v37, %v155_v33  ;;  %vm126_vm4 = vmor %vm124_vm3, %vm125_vm2  ;;  %vm162_vm6 = vweird.f32 %v338_v37 }
 0x128   : > { %v121_v36 = vsub.f32 1.0, %v120_v35  ;;  %vm163_vm8 = vmor %vm161_vm7, %vm162_vm6 }
 0x129   : > { %v158_v41 = vsub.f32 1.0, %v157_v39 }
 0x12a   : > { %v122_v38 = vmul.f32 %v336_v34, %v121_v36 }
 0x12b   : > { %v159_v45 = vmul.f32 %v338_v37, %v158_v41 }
 0x12c   : > { %v123_v40 = vadd.f32 %v336_v34, %v122_v38 }
 0x12d   : > { %v160_v50 = vadd.f32 %v338_v37, %v159_v45 }
 0x12e   : > { %v127_v44 = vsel %vm126_vm4, %v336_v34, %v123_v40 }
 0x12f   : > { %v132_v48 = vsel %vm129_vm5, %v131_v46, %v127_v44  ;;  %v164_v53 = vsel %vm163_vm8, %v338_v37, %v160_v50 }
 0x130   : > { %v169_v55 = vsel %vm166_vm9, %v168_v54, %v164_v53  ;;  %v135_v60 = vmul.f32 %v425_v8, %v132_v48 }
 0x131   : > { %v172_v62 = vmul.f32 %v417_v6, %v169_v55 }
 0x18d   : > { %v138_v47 = vpop.permute.xlu1 %137 }
 0x18e   : > { %v140_v49 = vmul.f32 %v138_v47, %v132_v48 }
 0x190   : > { %142 = vrot.lane.b32.xlu2 %v140_v49, %s440_s15 }
 0x195   : > { %v175_v56 = vpop.permute.xlu1 %174 }
 0x196   : > { %v177_v57 = vmul.f32 %v175_v56, %v169_v55 }
 0x198   : > { %179 = vrot.lane.b32.xlu2 %v177_v57, %s440_s15 }
 0x1a0   : > { %191 = vrot.lane.b32.xlu2 %v190_v58, %s441_s16 }
 0x1a8   : > { %221 = vrot.lane.b32.xlu2 %v196_v59, %s439_s14 }
 0x1ea   : > { %v143_v61 = vpop.permute.xlu2 %142 }
 0x1eb   : > { %v145_v8 = vadd.f32 %v143_v61, %v135_v60  }
 0x1ed   : > { %339 = vtanh.f32 %v145_v8 }
 0x1f2   : > { %v180_v63 = vpop.permute.xlu2 %179 }
 0x1f3   : > { %v340_v7 = vpop.eup %339  ;;  %v182_v6 = vadd.f32 %v180_v63, %v172_v62  }
 0x1f4   : > { %148 = vrot.lane.b32.xlu0 %v340_v7, %s438_s6 }
 0x1f5   : > { %341 = vtanh.f32 %v182_v6 }
 0x1fa   : > { %v192_v11 = vpop.permute.xlu2 %191 }
 0x1fb   : > { %v342_v9 = vpop.eup %341 }
 0x1fc   : > { %185 = vrot.lane.b32.xlu1 %v342_v9, %s438_s6  ;;  %217 = vrot.lane.b32.xlu0 %v190_v58, %s439_s14 }
 0x202   : > { %v222_v14 = vpop.permute.xlu2 %221 }
 0x204   : > { %197 = vrot.lane.b32.xlu1 %v196_v59, %s441_s16 }
 0x266   : > { %v149_v10 = vpop.permute.xlu0 %148 }
 0x267   : > { %v151_v9 = vmul.f32 %v149_v10, %v132_v48  }
 0x269   : > { %v194_v17 = vmul.f32 %v192_v11, %v151_v9 }
 0x26e   : > { %v186_v12 = vpop.permute.xlu1 %185  ;;  %v218_v13 = vpop.permute.xlu0 %217 }
 0x26f   : > { %v188_v7 = vmul.f32 %v186_v12, %v169_v55  }
 0x271   : > { %v220_v15 = vmul.f32 %v218_v13, %v188_v7 }
 0x273   : > { %v224_v16 = vadd.f32 %v222_v14, %v220_v15 }
 0x275   : > { %v225_v18 = vmax.f32 %v224_v16, 0.0 }
 0x276   : > { %v198_v19 = vpop.permute.xlu1 %197 }
 0x277   : > { %v226_v20 = vmin.f32 %v225_v18, 20.0  ;;  %v200_v21 = vadd.f32 %v198_v19, %v194_v17 }
 0x279   : > { %v227_v22 = vpack.c.bf16 %v226_v20, %v226_v20  ;;  %v201_v23 = vmax.f32 %v200_v21, 0.0 }
 0x27b   : > { %v229_v24 = vrot.slane %v227_v22, 3  ;;  %v202_v25 = vmin.f32 %v201_v23, 20.0 }
 0x27d   : > { %v203_v26 = vpack.c.bf16 %v202_v25, %v202_v25  ;;  %v232_v27 = vsel %vm206_vm10, %v227_v22, %v229_v24 }
 0x27e   : > { %234 = vrot.lane.b32.xlu1 %v232_v27, %s438_s6 }
 0x27f   : > { %v205_v28 = vrot.slane %v203_v26, 3 }
 0x281   : > { %v209_v29 = vsel %vm206_vm10, %v203_v26, %v205_v28 }
 0x282   : > { %211 = vrot.lane.b32.xlu0 %v209_v29, %s437_s1 }
 0x2f0   : > { %v235_v31 = vpop.permute.xlu1 %234 }
 0x2f2   :  { %56 = sbr.rel (!%p54_p0) target bundleno = 14 (0xe), region = 55 }
 0x2f4   : > { %v212_v30 = vpop.permute.xlu0 %211 }
 0x2f5   : > { %216 = vst.msk [vmem:[%s214_s19] sm:$0x1] %vm215_vm11, %v212_v30 }
 0x2f6   : > { %239 = vst.msk [vmem:[%s237_s22] sm:$0x1] %vm238_vm12, %v235_v31 }
 0x2f7   :  { %244 = vsyncpa [#allocation3], 1 }
 0x2f8   :  { %245 = vsyncpa [#allocation5], 1 }

// kernel: res2net_forward.67
= control target key start
LH: loop header
LB: loop body
LE: loop exit
PB: predicated region body
PF: predicated region fallthrough
CT: control target
= control target key end

     0   :  { %9 = vsyncpa [#allocation3], 0  ;;  %s327_s0 = inlined_call_operand.vmem [shape: bf16[10,128], index: 0, kind: input, shape index: {}]   ;;  %s328_s1 = inlined_call_operand.vmem [shape: bf16[128,128], index: 1, kind: input, shape index: {}]   ;;  %s329_s2 = inlined_call_operand.hbm [shape: f32[1,128], index: 2, kind: input, shape index: {}]   ;;  %s330_s3 = inlined_call_operand.hbm [shape: f32[1,128], index: 3, kind: input, shape index: {}]   ;;  %s331_s4 = inlined_call_operand.vmem [shape: bf16[10,128], index: 4, kind: output, shape index: {}]  }
   0x1   :  { %s20_s17 = sshll.u32 %s329_s2, 4  ;;  %s21_s17 = int_to_ptr.hbm [resolvable:$true] %s20_s17 }
   0x2   :  { %10 = vsyncpa [#allocation5], 0  ;;  %s258_s18 = smov [#allocation2]   ;;  %s31_s22 = sshll.u32 %s330_s3, 4  ;;  %s32_s22 = int_to_ptr.hbm [resolvable:$true] %s31_s22 }
   0x3   :  { %s22_s19 = sshll.u32 %s258_s18, 4  ;;  %s259_s23 = smov [#allocation4]   ;;  %s23_s19 = int_to_ptr.vmem [resolvable:$true] %s22_s19 }
   0x4   :  { %25 = dma.hbm_to_vmem [thread:$0]  %s21_s17, 16, %s23_s19, [#allocation3]  }
   0x5   :  { %s33_s24 = sshll.u32 %s259_s23, 4  ;;  %s34_s24 = int_to_ptr.vmem [resolvable:$true] %s33_s24 }
   0x6   :  { %36 = dma.hbm_to_vmem [thread:$0]  %s32_s22, 16, %s34_s24, [#allocation5]  }
   0x7   :  { %254 = dma.done.wait [#allocation3], 16  }
   0x8   :  { %255 = vsyncadd [#allocation3], 4294967280 }
   0x9   :  { %256 = dma.done.wait [#allocation5], 16  }
   0xa   :  { %257 = vsyncadd [#allocation5], 4294967280  ;;  %v201_v0 = vld [vmem:[%s328_s1 + $0x38] sm:$0xff]  ;;  %v200_v1 = vld [vmem:[%s328_s1 + $0x30] sm:$0xff] }
   0xb   :  { %117 = vmatpush.bf16.msra.mxu0 %v201_v0  ;;  %v199_v2 = vld [vmem:[%s328_s1 + $0x28] sm:$0xff]  ;;  %v198_v3 = vld [vmem:[%s328_s1 + $0x20] sm:$0xff]  ;;  %v197_v4 = vld [vmem:[%s328_s1 + $0x18] sm:$0xff] }
   0xc   :  { %v196_v5 = vld [vmem:[%s328_s1 + $0x10] sm:$0xff]  ;;  %v195_v6 = vld [vmem:[%s328_s1 + $0x8] sm:$0xff]  ;;  %v194_v7 = vld [vmem:[%s328_s1] sm:$0xff] }
   0xd   :  { %v159_v8 = vld [vmem:[%s327_s0] sm:$0xf]  ;;  %v193_v9 = vld [vmem:[%s327_s0] sm:$0x10] }
   0xe   :  { %v160_v10 = vor.u32 %v193_v9, %v159_v8  ;;  %v204_v11 = vld [vmem:[#allocation2] ss:$0 sm:$0xff]  ;;  %v205_v12 = vld [vmem:[#allocation4] ss:$0 sm:$0xff] }
   0xf   :  { %118 = vmatpush.bf16.msra.mxu0 %v200_v1 }
  0x13   :  { %119 = vmatpush.bf16.msra.mxu0 %v199_v2 }
  0x17   :  { %120 = vmatpush.bf16.msra.mxu0 %v198_v3 }
  0x1b   :  { %121 = vmatpush.bf16.msra.mxu0 %v197_v4 }
  0x1f   :  { %122 = vmatpush.bf16.msra.mxu0 %v196_v5 }
  0x23   :  { %123 = vmatpush.bf16.msra.mxu0 %v195_v6 }
  0x27   :  { %124 = vmatpush.bf16.msra.mxu0 %v194_v7 }
  0x2a   :  { %125 = vmatmul.bf16.vlgmr.msra.gmra.mxu0 %v160_v10 }
  0xa7   :  { %v126_v13 = vpop.f32.mrf.mxu0 }
  0xa8   :  { %v135_v14 = vmul.f32 %v204_v11, %v126_v13 }
  0xaa   :  { %v141_v15 = vadd.f32 %v205_v12, %v135_v14 }
  0xac   :  { %v143_v16 = vmax.f32 %v141_v15, 0.0 }
  0xae   :  { %v145_v17 = vmin.f32 %v143_v16, 20.0 }
  0xaf   :  { %v128_v18 = vpop.f32.mrf.mxu0 }
  0xb0   :  { %v147_v19 = vpack.c.bf16 %v145_v17, %v145_v17  ;;  %v136_v20 = vmul.f32 %v204_v11, %v128_v18 }
  0xb2   :  { %149 = vst [vmem:[%s331_s4] sm:$0xf] %v147_v19  ;;  %v142_v21 = vadd.f32 %v205_v12, %v136_v20 }
  0xb4   :  { %v144_v22 = vmax.f32 %v142_v21, 0.0 }
  0xb6   :  { %v146_v23 = vmin.f32 %v144_v22, 20.0 }
  0xb8   :  { %v148_v24 = vpack.c.bf16 %v146_v23, %v146_v23 }
  0xba   :  { %150 = vst [vmem:[%s331_s4 + $0x4] sm:$0x1] %v148_v24 }
  0xbb   :  { %155 = vsyncpa [#allocation3], 1 }
  0xbc   :  { %156 = vsyncpa [#allocation5], 1 }

// kernel: res2net_forward.68
= control target key start
LH: loop header
LB: loop body
LE: loop exit
PB: predicated region body
PF: predicated region fallthrough
CT: control target
= control target key end

     0   :  { %vm73_vm0 = vcmask 523264   ;;  %s271_s1 = inlined_call_operand.vmem [shape: bf16[64,256], index: 1, kind: input, shape index: {}]   ;;  %s272_s0 = inlined_call_operand.vmem [shape: bf16[10,64], index: 0, kind: input, shape index: {}]   ;;  %s273_s2 = inlined_call_operand.vmem [shape: f32[1,256], index: 2, kind: input, shape index: {}]   ;;  %s274_s3 = inlined_call_operand.vmem [shape: f32[1,256], index: 3, kind: input, shape index: {}]   ;;  %s275_s4 = inlined_call_operand.vmem [shape: bf16[10,256], index: 4, kind: output, shape index: {}]  }
   0x1   :  { %v163_v0 = vld [vmem:[%s271_s1 + $0x30] sm:$0xf]  ;;  %v179_v1 = vld [vmem:[%s271_s1 + $0x34] sm:$0xf0]  ;;  %v178_v2 = vld [vmem:[%s271_s1 + $0x34] sm:$0xf] }
   0x2   :  { %v164_v3 = vor.u32 %v179_v1, %v163_v0  ;;  %v165_v4 = vld [vmem:[%s271_s1 + $0x38] sm:$0xf0]  ;;  %v155_v5 = vld [vmem:[%s271_s1 + $0x20] sm:$0xf]  ;;  %v177_v6 = vld [vmem:[%s271_s1 + $0x24] sm:$0xf0] }
   0x3   :  { %v168_v7 = vor.u32 %v178_v2, %v165_v4  ;;  %v176_v8 = vld [vmem:[%s271_s1 + $0x24] sm:$0xf]  ;;  %v157_v9 = vld [vmem:[%s271_s1 + $0x28] sm:$0xf0]  ;;  %v156_v10 = vor.u32 %v177_v6, %v155_v5  ;;  %v147_v12 = vld [vmem:[%s271_s1 + $0x10] sm:$0xf] }
   0x4   :  { %81 = vmatpush.bf16.msra.mxu0 %v164_v3  ;;  %v160_v11 = vor.u32 %v176_v8, %v157_v9  ;;  %v175_v13 = vld [vmem:[%s271_s1 + $0x14] sm:$0xf0]  ;;  %v174_v14 = vld [vmem:[%s271_s1 + $0x14] sm:$0xf]  ;;  %v149_v15 = vld [vmem:[%s271_s1 + $0x18] sm:$0xf0] }
   0x5   :  { %95 = vmatpush.bf16.msra.mxu1 %v168_v7  ;;  %v148_v16 = vor.u32 %v175_v13, %v147_v12  ;;  %v152_v17 = vor.u32 %v174_v14, %v149_v15  ;;  %v139_v18 = vld [vmem:[%s271_s1] sm:$0xf]  ;;  %v173_v19 = vld [vmem:[%s271_s1 + $0x4] sm:$0xf0]  ;;  %v172_v20 = vld [vmem:[%s271_s1 + $0x4] sm:$0xf] }
   0x6   :  { %v141_v21 = vld [vmem:[%s271_s1 + $0x8] sm:$0xf0]  ;;  %v140_v22 = vor.u32 %v173_v19, %v139_v18  ;;  %v135_v23 = vld [vmem:[%s272_s0] sm:$0xf]  ;;  %v171_v24 = vld [vmem:[%s272_s0] sm:$0x10] }
   0x7   :  { %v144_v25 = vor.u32 %v172_v20, %v141_v21  ;;  %v136_v26 = vor.u32 %v171_v24, %v135_v23  ;;  %v105_v27 = vld [vmem:[%s273_s2] sm:$0x3] }
   0x8   :  { %82 = vmatpush.bf16.msra.mxu0 %v156_v10  ;;  %v115_v28 = vld [vmem:[%s274_s3] sm:$0x3]  ;;  %v107_v29 = vperm.slane %v105_v27, 0  ;;  %v108_v30 = vperm.slane %v105_v27, 1 }
   0x9   :  { %96 = vmatpush.bf16.msra.mxu1 %v160_v11  ;;  %v117_v31 = vperm.slane %v115_v28, 0  ;;  %v118_v33 = vperm.slane %v115_v28, 1 }
   0xc   :  { %83 = vmatpush.bf16.msra.mxu0 %v148_v16 }
   0xd   :  { %97 = vmatpush.bf16.msra.mxu1 %v152_v17 }
  0x10   :  { %84 = vmatpush.bf16.msra.mxu0 %v140_v22 }
  0x11   :  { %98 = vmatpush.bf16.msra.mxu1 %v144_v25 }
  0x13   :  { %169 = vmatmul.msk.bf16.vlgmr.msra.gmra.mxu0 %vm73_vm0, %v136_v26 }
  0x14   :  { %170 = vmatmul.msk.bf16.vlgmr.msra.gmra.mxu1 %vm73_vm0, %v136_v26 }
  0x90   :  { %v86_v32 = vpop.f32.mrf.mxu0 }
  0x91   :  { %v111_v34 = vmul.f32 %v107_v29, %v86_v32  ;;  %v100_v35 = vpop.f32.mrf.mxu1 }
  0x92   :  { %v112_v36 = vmul.f32 %v108_v30, %v100_v35 }
  0x93   :  { %v121_v37 = vadd.f32 %v117_v31, %v111_v34 }
  0x94   :  { %v122_v38 = vadd.f32 %v118_v33, %v112_v36 }
  0x96   :  { %v125_v39 = vpack.c.bf16 %v122_v38, %v121_v37 }
  0x98   :  { %127 = vst [vmem:[%s275_s4] sm:$0xff] %v125_v39  ;;  %v88_v40 = vpop.f32.mrf.mxu0 }
  0x99   :  { %v113_v41 = vmul.f32 %v107_v29, %v88_v40  ;;  %v102_v42 = vpop.f32.mrf.mxu1 }
  0x9a   :  { %v114_v43 = vmul.f32 %v108_v30, %v102_v42 }
  0x9b   :  { %v123_v44 = vadd.f32 %v117_v31, %v113_v41 }
  0x9c   :  { %v124_v45 = vadd.f32 %v118_v33, %v114_v43 }
  0x9e   :  { %v126_v46 = vpack.c.bf16 %v124_v45, %v123_v44 }
  0xa0   :  { %128 = vst [vmem:[%s275_s4 + $0x8] sm:$0x11] %v126_v46 }

// kernel: res2net_forward.71
= control target key start
LH: loop header
LB: loop body
LE: loop exit
PB: predicated region body
PF: predicated region fallthrough
CT: control target
= control target key end

     0   :  { %10 = vsyncpa [#allocation3], 0  ;;  %s519_s0 = inlined_call_operand.vmem [shape: bf16[10,128], index: 0, kind: input, shape index: {}]   ;;  %s520_s1 = inlined_call_operand.vmem [shape: bf16[128,256], index: 1, kind: input, shape index: {}]   ;;  %s521_s2 = inlined_call_operand.hbm [shape: f32[1,256], index: 2, kind: input, shape index: {}]   ;;  %s522_s3 = inlined_call_operand.hbm [shape: f32[1,256], index: 3, kind: input, shape index: {}]   ;;  %s523_s4 = inlined_call_operand.vmem [shape: bf16[10,256], index: 4, kind: input, shape index: {}]   ;;  %s524_s5 = inlined_call_operand.vmem [shape: bf16[10,256], index: 5, kind: output, shape index: {}]  }
   0x1   :  { %s21_s20 = sshll.u32 %s521_s2, 4  ;;  %s22_s20 = int_to_ptr.hbm [resolvable:$true] %s21_s20 }
   0x2   :  { %11 = vsyncpa [#allocation5], 0  ;;  %s367_s21 = smov [#allocation2]   ;;  %s32_s25 = sshll.u32 %s522_s3, 4  ;;  %s33_s25 = int_to_ptr.hbm [resolvable:$true] %s32_s25 }
   0x3   :  { %s23_s22 = sshll.u32 %s367_s21, 4  ;;  %s368_s26 = smov [#allocation4]   ;;  %s24_s22 = int_to_ptr.vmem [resolvable:$true] %s23_s22 }
   0x4   :  { %26 = dma.hbm_to_vmem [thread:$0]  %s22_s20, 32, %s24_s22, [#allocation3]  }
   0x5   :  { %s34_s27 = sshll.u32 %s368_s26, 4  ;;  %s35_s27 = int_to_ptr.vmem [resolvable:$true] %s34_s27 }
   0x6   :  { %37 = dma.hbm_to_vmem [thread:$0]  %s33_s25, 32, %s35_s27, [#allocation5]  }
   0x7   :  { %363 = dma.done.wait [#allocation3], 32  }
   0x8   :  { %364 = vsyncadd [#allocation3], 4294967264 }
   0x9   :  { %365 = dma.done.wait [#allocation5], 32  }
   0xa   :  { %366 = vsyncadd [#allocation5], 4294967264  ;;  %v290_v0 = vld [vmem:[%s520_s1 + $0x70] sm:$0xf]  ;;  %v312_v1 = vld [vmem:[%s520_s1 + $0x74] sm:$0xf0] }
   0xb   :  { %v311_v2 = vld [vmem:[%s520_s1 + $0x74] sm:$0xf]  ;;  %v291_v3 = vor.u32 %v312_v1, %v290_v0  ;;  %v292_v4 = vld [vmem:[%s520_s1 + $0x78] sm:$0xf0]  ;;  %v282_v5 = vld [vmem:[%s520_s1 + $0x60] sm:$0xf] }
   0xc   :  { %v310_v6 = vld [vmem:[%s520_s1 + $0x64] sm:$0xf0]  ;;  %v295_v7 = vor.u32 %v311_v2, %v292_v4  ;;  %v309_v8 = vld [vmem:[%s520_s1 + $0x64] sm:$0xf]  ;;  %v284_v9 = vld [vmem:[%s520_s1 + $0x68] sm:$0xf0] }
   0xd   :  { %152 = vmatpush.bf16.msra.mxu0 %v291_v3  ;;  %v283_v10 = vor.u32 %v310_v6, %v282_v5  ;;  %v287_v11 = vor.u32 %v309_v8, %v284_v9  ;;  %v274_v12 = vld [vmem:[%s520_s1 + $0x50] sm:$0xf]  ;;  %v308_v13 = vld [vmem:[%s520_s1 + $0x54] sm:$0xf0]  ;;  %v307_v14 = vld [vmem:[%s520_s1 + $0x54] sm:$0xf] }
   0xe   :  { %166 = vmatpush.bf16.msra.mxu1 %v295_v7  ;;  %v276_v15 = vld [vmem:[%s520_s1 + $0x58] sm:$0xf0]  ;;  %v275_v16 = vor.u32 %v308_v13, %v274_v12  ;;  %v266_v18 = vld [vmem:[%s520_s1 + $0x40] sm:$0xf]  ;;  %v306_v19 = vld [vmem:[%s520_s1 + $0x44] sm:$0xf0] }
   0xf   :  { %v279_v17 = vor.u32 %v307_v14, %v276_v15  ;;  %v305_v20 = vld [vmem:[%s520_s1 + $0x44] sm:$0xf]  ;;  %v268_v21 = vld [vmem:[%s520_s1 + $0x48] sm:$0xf0]  ;;  %v267_v22 = vor.u32 %v306_v19, %v266_v18  ;;  %v258_v24 = vld [vmem:[%s520_s1 + $0x30] sm:$0xf] }
  0x10   :  { %v271_v23 = vor.u32 %v305_v20, %v268_v21  ;;  %v304_v25 = vld [vmem:[%s520_s1 + $0x34] sm:$0xf0]  ;;  %v303_v26 = vld [vmem:[%s520_s1 + $0x34] sm:$0xf]  ;;  %v260_v27 = vld [vmem:[%s520_s1 + $0x38] sm:$0xf0] }
  0x11   :  { %153 = vmatpush.bf16.msra.mxu0 %v283_v10  ;;  %v259_v28 = vor.u32 %v304_v25, %v258_v24  ;;  %v263_v29 = vor.u32 %v303_v26, %v260_v27  ;;  %v250_v30 = vld [vmem:[%s520_s1 + $0x20] sm:$0xf]  ;;  %v302_v31 = vld [vmem:[%s520_s1 + $0x24] sm:$0xf0]  ;;  %v301_v32 = vld [vmem:[%s520_s1 + $0x24] sm:$0xf] }
  0x12   :  { %167 = vmatpush.bf16.msra.mxu1 %v287_v11  ;;  %v252_v33 = vld [vmem:[%s520_s1 + $0x28] sm:$0xf0]  ;;  %v251_v34 = vor.u32 %v302_v31, %v250_v30  ;;  %v242_v36 = vld [vmem:[%s520_s1 + $0x10] sm:$0xf]  ;;  %v300_v37 = vld [vmem:[%s520_s1 + $0x14] sm:$0xf0] }
  0x13   :  { %v255_v35 = vor.u32 %v301_v32, %v252_v33  ;;  %v299_v38 = vld [vmem:[%s520_s1 + $0x14] sm:$0xf]  ;;  %v244_v39 = vld [vmem:[%s520_s1 + $0x18] sm:$0xf0]  ;;  %v243_v40 = vor.u32 %v300_v37, %v242_v36  ;;  %v234_v42 = vld [vmem:[%s520_s1] sm:$0xf] }
  0x14   :  { %v247_v41 = vor.u32 %v299_v38, %v244_v39  ;;  %v298_v43 = vld [vmem:[%s520_s1 + $0x4] sm:$0xf0]  ;;  %v297_v44 = vld [vmem:[%s520_s1 + $0x4] sm:$0xf]  ;;  %v236_v45 = vld [vmem:[%s520_s1 + $0x8] sm:$0xf0] }
  0x15   :  { %154 = vmatpush.bf16.msra.mxu0 %v275_v16  ;;  %v235_v46 = vor.u32 %v298_v43, %v234_v42  ;;  %v230_v47 = vld [vmem:[%s519_s0] sm:$0xf]  ;;  %v296_v48 = vld [vmem:[%s519_s0] sm:$0x10]  ;;  %v239_v49 = vor.u32 %v297_v44, %v236_v45  ;;  %v201_v4 = vld [vmem:[%s523_s4 + $0x8] sm:$0x11] }
  0x16   :  { %168 = vmatpush.bf16.msra.mxu1 %v279_v17  ;;  %v231_v50 = vor.u32 %v296_v48, %v230_v47  ;;  %v180_v51 = vld [vmem:[#allocation2] sm:$0x3]  ;;  %v190_v52 = vld [vmem:[#allocation4] sm:$0x3]  ;;  %v204_v10 = vunpack.c.l.bf16 %v201_v4  ;;  %v205_v14 = vunpack.c.h.bf16 %v201_v4 }
  0x17   :  { %v182_v53 = vperm.slane %v180_v51, 0  ;;  %v200_v54 = vld [vmem:[%s523_s4] sm:$0xff]  ;;  %v183_v55 = vperm.slane %v180_v51, 1  ;;  %v192_v56 = vperm.slane %v190_v52, 0  ;;  %v193_v58 = vperm.slane %v190_v52, 1 }
  0x18   :  { %v202_v60 = vunpack.c.l.bf16 %v200_v54  ;;  %v203_v63 = vunpack.c.h.bf16 %v200_v54 }
  0x19   :  { %155 = vmatpush.bf16.msra.mxu0 %v267_v22 }
  0x1a   :  { %169 = vmatpush.bf16.msra.mxu1 %v271_v23 }
  0x1d   :  { %156 = vmatpush.bf16.msra.mxu0 %v259_v28 }
  0x1e   :  { %170 = vmatpush.bf16.msra.mxu1 %v263_v29 }
  0x21   :  { %157 = vmatpush.bf16.msra.mxu0 %v251_v34 }
  0x22   :  { %171 = vmatpush.bf16.msra.mxu1 %v255_v35 }
  0x25   :  { %158 = vmatpush.bf16.msra.mxu0 %v243_v40 }
  0x26   :  { %172 = vmatpush.bf16.msra.mxu1 %v247_v41 }
  0x29   :  { %159 = vmatpush.bf16.msra.mxu0 %v235_v46 }
  0x2a   :  { %173 = vmatpush.bf16.msra.mxu1 %v239_v49 }
  0x2c   :  { %160 = vmatmul.bf16.vlgmr.msra.gmra.mxu0 %v231_v50 }
  0x2d   :  { %174 = vmatmul.bf16.vlgmr.msra.gmra.mxu1 %v231_v50 }
  0xa9   :  { %v161_v57 = vpop.f32.mrf.mxu0 }
  0xaa   :  { %v186_v59 = vmul.f32 %v182_v53, %v161_v57  ;;  %v175_v61 = vpop.f32.mrf.mxu1 }
  0xab   :  { %v187_v62 = vmul.f32 %v183_v55, %v175_v61 }
  0xac   :  { %v196_v0 = vadd.f32 %v192_v56, %v186_v59 }
  0xad   :  { %v197_v1 = vadd.f32 %v193_v58, %v187_v62 }
  0xae   :  { %v206_v2 = vadd.f32 %v202_v60, %v196_v0 }
  0xaf   :  { %v207_v3 = vadd.f32 %v203_v63, %v197_v1 }
  0xb0   :  { %v210_v5 = vmax.f32 %v206_v2, 0.0 }
  0xb1   :  { %v211_v6 = vmax.f32 %v207_v3, 0.0  ;;  %v163_v7 = vpop.f32.mrf.mxu0 }
  0xb2   :  { %v214_v8 = vmin.f32 %v210_v5, 20.0  ;;  %v188_v9 = vmul.f32 %v182_v53, %v163_v7  ;;  %v177_v11 = vpop.f32.mrf.mxu1 }
  0xb3   :  { %v215_v12 = vmin.f32 %v211_v6, 20.0  ;;  %v189_v13 = vmul.f32 %v183_v55, %v177_v11 }
  0xb4   :  { %v198_v15 = vadd.f32 %v192_v56, %v188_v9 }
  0xb5   :  { %v218_v16 = vpack.c.bf16 %v215_v12, %v214_v8  ;;  %v199_v17 = vadd.f32 %v193_v58, %v189_v13 }
  0xb6   :  { %v208_v18 = vadd.f32 %v204_v10, %v198_v15 }
  0xb7   :  { %220 = vst [vmem:[%s524_s5] sm:$0xff] %v218_v16  ;;  %v209_v19 = vadd.f32 %v205_v14, %v199_v17 }
  0xb8   :  { %v212_v20 = vmax.f32 %v208_v18, 0.0 }
  0xb9   :  { %v213_v21 = vmax.f32 %v209_v19, 0.0 }
  0xba   :  { %v216_v22 = vmin.f32 %v212_v20, 20.0 }
  0xbb   :  { %v217_v23 = vmin.f32 %v213_v21, 20.0 }
  0xbd   :  { %v219_v24 = vpack.c.bf16 %v217_v23, %v216_v22 }
  0xbf   :  { %221 = vst [vmem:[%s524_s5 + $0x8] sm:$0x11] %v219_v24 }
  0xc0   :  { %226 = vsyncpa [#allocation3], 1 }
  0xc1   :  { %227 = vsyncpa [#allocation5], 1 }

// kernel: res2net_forward.69
= control target key start
LH: loop header
LB: loop body
LE: loop exit
PB: predicated region body
PF: predicated region fallthrough
CT: control target
= control target key end

     0   :  { %9 = vsyncpa [#allocation3], 0  ;;  %s718_s0 = inlined_call_operand.vmem [shape: bf16[5,2,256], index: 0, kind: input, shape index: {}]   ;;  %s719_s1 = inlined_call_operand.vmem [shape: bf16[64,256], index: 1, kind: input, shape index: {}]   ;;  %s720_s2 = inlined_call_operand.hbm [shape: f32[1,64], index: 2, kind: input, shape index: {}]   ;;  %s721_s3 = inlined_call_operand.hbm [shape: f32[1,64], index: 3, kind: input, shape index: {}]   ;;  %s722_s4 = inlined_call_operand.vmem [shape: bf16[5,2,64], index: 4, kind: output, shape index: {}]  }
   0x1   :  { %s20_s17 = sshll.u32 %s720_s2, 4  ;;  %s21_s17 = int_to_ptr.hbm [resolvable:$true] %s20_s17 }
   0x2   :  { %10 = vsyncpa [#allocation5], 0  ;;  %s515_s18 = smov [#allocation2]   ;;  %s31_s22 = sshll.u32 %s721_s3, 4  ;;  %s32_s22 = int_to_ptr.hbm [resolvable:$true] %s31_s22 }
   0x3   :  { %s22_s19 = sshll.u32 %s515_s18, 4  ;;  %s516_s23 = smov [#allocation4]   ;;  %s23_s19 = int_to_ptr.vmem [resolvable:$true] %s22_s19 }
   0x4   :  { %25 = dma.hbm_to_vmem [thread:$0]  %s21_s17, 16, %s23_s19, [#allocation3]  }
   0x5   :  { %s33_s24 = sshll.u32 %s516_s23, 4  ;;  %s34_s24 = int_to_ptr.vmem [resolvable:$true] %s33_s24 }
   0x6   :  { %36 = dma.hbm_to_vmem [thread:$0]  %s32_s22, 16, %s34_s24, [#allocation5]  }
   0x7   :  { %491 = dma.done.wait [#allocation3], 16  }
   0x8   :  { %492 = vsyncadd [#allocation3], 4294967280 }
   0x9   :  { %493 = dma.done.wait [#allocation5], 16  }
   0xa   :  { %494 = vsyncadd [#allocation5], 4294967280  ;;  %v554_v0 = vld [vmem:[%s719_s1 + $0x4] sm:$0xf]  ;;  %v559_v1 = vld [vmem:[%s719_s1] sm:$0xf] }
   0xb   :  { %v564_v2 = vld [vmem:[%s719_s1 + $0x8] sm:$0xf0]  ;;  %v569_v3 = vld [vmem:[%s719_s1 + $0x4] sm:$0xf0]  ;;  %v574_v4 = vld [vmem:[%s719_s1 + $0x14] sm:$0xf] }
   0xc   :  { %v579_v5 = vld [vmem:[%s719_s1 + $0x10] sm:$0xf]  ;;  %v584_v6 = vld [vmem:[%s719_s1 + $0x18] sm:$0xf0]  ;;  %v589_v7 = vld [vmem:[%s719_s1 + $0x14] sm:$0xf0] }
   0xd   :  { %v594_v8 = vld [vmem:[%s719_s1 + $0x24] sm:$0xf]  ;;  %v599_v9 = vld [vmem:[%s719_s1 + $0x20] sm:$0xf]  ;;  %v604_v10 = vld [vmem:[%s719_s1 + $0x28] sm:$0xf0] }
   0xe   :  { %v609_v11 = vld [vmem:[%s719_s1 + $0x24] sm:$0xf0]  ;;  %v614_v12 = vld [vmem:[%s719_s1 + $0x34] sm:$0xf]  ;;  %v619_v13 = vld [vmem:[%s719_s1 + $0x30] sm:$0xf] }
   0xf   :  { %v624_v14 = vld [vmem:[%s719_s1 + $0x38] sm:$0xf0]  ;;  %v629_v15 = vld [vmem:[%s719_s1 + $0x34] sm:$0xf0]  ;;  %v631_v16 = vld [vmem:[#allocation2] sm:$0x1] }
  0x10   :  { %v633_v17 = vld [vmem:[#allocation4] sm:$0x1]  ;;  %v635_v18 = vmov 0.0   ;;  %v637_v19 = vmov 0.0   ;;  %v639_v20 = vmov 0.0   ;;  %v641_v21 = vmov 0.0  }
  0x11   :  { %s643_s3 = smov 0  }
  0x12 LB: > { %v343_v22 = vor.u32 %v629_v15, %v619_v13  ;;  %v347_v23 = vor.u32 %v614_v12, %v624_v14  ;;  %68 = vst [vmem:[#allocation1] ss:$4 sm:$0xff] %v509_v21  ;;  %s517_s1 = smov 32   ;;  %s518_s28 = smov 64   ;;  %v335_v26 = vor.u32 %v609_v11, %v599_v9  ;;  %v339_v27 = vor.u32 %v594_v8, %v604_v10  ;;  %s513_s3 = sphi %s643_s3, %s61_s3   ;;  %v509_v21 = vphi %v641_v21, %v198_v21   ;;  %v505_v20 = vphi %v639_v20, %v192_v20   ;;  %v501_v19 = vphi %v637_v19, %v235_v19   ;;  %v497_v18 = vphi %v635_v18, %v229_v18  }
  0x13   : > { %v327_v28 = vor.u32 %v589_v7, %v579_v5  ;;  %v331_v29 = vor.u32 %v574_v4, %v584_v6  ;;  %v319_v30 = vor.u32 %v569_v3, %v559_v1  ;;  %v323_v31 = vor.u32 %v554_v0, %v564_v2  ;;  %s350_s29 = sshll.u32 %s513_s3, 1  ;;  %s66_s7 = ssub.s32 4, %s513_s3 }
  0x14   : > { %130 = vmatpush.bf16.msra.mxu0 %v343_v22  ;;  %143 = vmatpush.bf16.msra.mxu1 %v347_v23  ;;  %vm79_vm0 = vcmask 261120   ;;  %vm122_vm1 = vcmask 523264   ;;  %s153_s6 = scalar_lea.vmem %s718_s0, %s350_s29  ;;  %s351_s8 = sshll.u32 %s66_s7, 1  ;;  %vm253_vm10 = vcmask 1040384   ;;  %vm262_vm11 = vcmask 253952  }
  0x15   : > { %v154_v36 = vld [vmem:[%s153_s6] sm:$0x1]  ;;  %s158_s11 = scalar_lea.vmem %s718_s0, %s351_s8  ;;  %s519_s12 = smov 96   ;;  %vm285_vm12 = vcmask 516352  }
  0x16   : > { %v155_v37 = vunpack.c.l.bf16 %v154_v36  ;;  %v159_v40 = vld [vmem:[%s158_s11 + $0x1] sm:$0x1]  ;;  %s261_s15 = scalar_lea.vmem %s722_s4, %s513_s3  ;;  %s284_s18 = scalar_lea.vmem %s722_s4, %s66_s7 }
  0x17   : > { %v160_v42 = vunpack.c.l.bf16 %v159_v40  ;;  %s61_s3 = sadd.s32 1, %s513_s3  }
  0x18   : > { %131 = vmatpush.bf16.msra.mxu0 %v335_v26  ;;  %144 = vmatpush.bf16.msra.mxu1 %v339_v27  ;;  %p58_p0 = scmp.ge.s32.totalorder %s61_s3, 5  }
  0x19   : > { %v69_v24 = vld.sshfl [vmem:[#allocation1] sm:$0xff pattern:$0x73625140] }
  0x1a   : > { %70 = vrot.lane.b32.xlu0 %v69_v24, %s517_s1  ;;  %74 = vst [vmem:[#allocation1] ss:$4 sm:$0xff] %v501_v19 }
  0x1c   : > { %132 = vmatpush.bf16.msra.mxu0 %v327_v28  ;;  %145 = vmatpush.bf16.msra.mxu1 %v331_v29 }
  0x20   : > { %133 = vmatpush.bf16.msra.mxu0 %v319_v30  ;;  %146 = vmatpush.bf16.msra.mxu1 %v323_v31 }
  0x21   : > { %v75_v25 = vld.sshfl [vmem:[#allocation1] sm:$0xff pattern:$0x73625140] }
  0x22   : > { %76 = vrot.lane.b32.xlu0 %v75_v25, %s518_s28 }
  0x8c   : > { %v71_v32 = vpop.permute.xlu0 %70 }
  0x94   : > { %v77_v33 = vpop.permute.xlu0 %76 }
  0x95   : > { %v80_v34 = vsel %vm79_vm0, %v71_v32, %v77_v33 }
  0x96   : > { %v81_v35 = vpack.c.bf16 %v80_v34, %v80_v34  ;;  %v237_v34 = vperm.slane %v631_v16, 0 }
  0x98   : > { %348 = vmatmul.msk.bf16.vlgmr.msra.gmra.mxu0 %vm122_vm1, %v81_v35  ;;  %349 = vmatmul.msk.bf16.vlgmr.msra.gmra.mxu1 %vm122_vm1, %v81_v35  ;;  %v243_v35 = vperm.slane %v633_v17, 0 }
 0x115   : > { %v135_v38 = vpop.f32.mrf.mxu0  ;;  %v148_v39 = vpop.f32.mrf.mxu1 }
 0x116   : > { %v156_v41 = vadd.f32 %v155_v37, %v135_v38  ;;  %v161_v43 = vadd.f32 %v160_v42, %v148_v39 }
 0x118   : > { %407 = vtanh.f32 %v156_v41  ;;  %v352_v48 = vmul.f32 -1.442695, %v156_v41  ;;  %v353_v49 = vmul.f32 -1.442695, %v161_v43 }
 0x119   : > { %409 = vtanh.f32 %v161_v43 }
 0x11a   : > { %411 = vpow2.f32 %v352_v48 }
 0x11b   : > { %413 = vpow2.f32 %v353_v49 }
 0x11d   : > { %v137_v44 = vpop.f32.mrf.mxu0  ;;  %v150_v45 = vpop.f32.mrf.mxu1 }
 0x11e   : > { %v408_v46 = vpop.eup %407 }
 0x11f   : > { %184 = vrot.lane.b32.xlu1 %v408_v46, %s518_s28  ;;  %v410_v47 = vpop.eup %409 }
 0x120   : > { %v412_v50 = vpop.eup %411 }
 0x121   : > { %v165_v51 = vadd.f32 1.0, %v412_v50  ;;  %v414_v52 = vpop.eup %413 }
 0x122   : > { %v202_v53 = vadd.f32 1.0, %v414_v52 }
 0x123   : > { %415 = vrcp.f32 %v165_v51  ;;  %v177_v62 = vand.u32 2147483648, %v165_v51  ;;  %vm171_vm3 = vweird.f32 %v165_v51  ;;  %v175_v63 = vand.u32 2147483647, %v165_v51 }
 0x124   : > { %417 = vrcp.f32 %v202_v53  ;;  %v214_v27 = vand.u32 2147483648, %v202_v53  ;;  %vm208_vm7 = vweird.f32 %v202_v53  ;;  %v212_v28 = vand.u32 2147483647, %v202_v53 }
 0x125   : > { %v178_v22 = vor.u32 1.1754944e-38, %v177_v62  ;;  %vm176_vm5 = vcmp.eq.f32.partialorder %v175_v63, 8.507059e+37 }
 0x126   : > { %v215_v30 = vor.u32 1.1754944e-38, %v214_v27  ;;  %vm213_vm9 = vcmp.eq.f32.partialorder %v212_v28, 8.507059e+37 }
 0x127   : > { %221 = vrot.lane.b32.xlu1 %v410_v47, %s518_s28 }
 0x129   : > { %v416_v54 = vpop.eup %415 }
 0x12a   : > { %v167_v55 = vmul.f32 %v416_v54, %v165_v51  ;;  %v418_v57 = vpop.eup %417  ;;  %vm172_vm2 = vweird.f32 %v416_v54 }
 0x12b   : > { %v204_v59 = vmul.f32 %v418_v57, %v202_v53  ;;  %vm173_vm4 = vmor %vm171_vm3, %vm172_vm2  ;;  %vm209_vm6 = vweird.f32 %v418_v57 }
 0x12c   : > { %v168_v56 = vsub.f32 1.0, %v167_v55  ;;  %vm210_vm8 = vmor %vm208_vm7, %vm209_vm6 }
 0x12d   : > { %v205_v61 = vsub.f32 1.0, %v204_v59 }
 0x12e   : > { %v169_v58 = vmul.f32 %v416_v54, %v168_v56 }
 0x12f   : > { %v206_v21 = vmul.f32 %v418_v57, %v205_v61 }
 0x130   : > { %v170_v60 = vadd.f32 %v416_v54, %v169_v58 }
 0x131   : > { %v207_v26 = vadd.f32 %v418_v57, %v206_v21 }
 0x132   : > { %v174_v19 = vsel %vm173_vm4, %v416_v54, %v170_v60 }
 0x133   : > { %v179_v24 = vsel %vm176_vm5, %v178_v22, %v174_v19  ;;  %v211_v29 = vsel %vm210_vm8, %v418_v57, %v207_v26 }
 0x134   : > { %v216_v31 = vsel %vm213_vm9, %v215_v30, %v211_v29  ;;  %v182_v36 = vmul.f32 %v505_v20, %v179_v24 }
 0x135   : > { %v219_v38 = vmul.f32 %v497_v18, %v216_v31 }
 0x191   : > { %v185_v23 = vpop.permute.xlu1 %184 }
 0x192   : > { %v187_v25 = vmul.f32 %v185_v23, %v179_v24 }
 0x194   : > { %189 = vrot.lane.b32.xlu2 %v187_v25, %s517_s1 }
 0x199   : > { %v222_v32 = vpop.permute.xlu1 %221 }
 0x19a   : > { %v224_v33 = vmul.f32 %v222_v32, %v216_v31 }
 0x19c   : > { %226 = vrot.lane.b32.xlu2 %v224_v33, %s517_s1 }
 0x1a4   : > { %238 = vrot.lane.b32.xlu2 %v237_v34, %s519_s12 }
 0x1ac   : > { %268 = vrot.lane.b32.xlu2 %v243_v35, %s518_s28 }
 0x1ee   : > { %v190_v37 = vpop.permute.xlu2 %189 }
 0x1ef   : > { %v192_v20 = vadd.f32 %v190_v37, %v182_v36  }
 0x1f1   : > { %419 = vtanh.f32 %v192_v20 }
 0x1f6   : > { %v227_v39 = vpop.permute.xlu2 %226 }
 0x1f7   : > { %v420_v40 = vpop.eup %419  ;;  %v229_v18 = vadd.f32 %v227_v39, %v219_v38  }
 0x1f8   : > { %195 = vrot.lane.b32.xlu0 %v420_v40, %s518_s28 }
 0x1f9   : > { %421 = vtanh.f32 %v229_v18 }
 0x1fe   : > { %v239_v43 = vpop.permute.xlu2 %238 }
 0x1ff   : > { %v422_v41 = vpop.eup %421 }
 0x200   : > { %232 = vrot.lane.b32.xlu1 %v422_v41, %s518_s28  ;;  %264 = vrot.lane.b32.xlu0 %v237_v34, %s518_s28 }
 0x206   : > { %v269_v46 = vpop.permute.xlu2 %268 }
 0x208   : > { %244 = vrot.lane.b32.xlu1 %v243_v35, %s519_s12 }
 0x26a   : > { %v196_v42 = vpop.permute.xlu0 %195 }
 0x26b   : > { %v198_v21 = vmul.f32 %v196_v42, %v179_v24  }
 0x26d   : > { %v241_v49 = vmul.f32 %v239_v43, %v198_v21 }
 0x272   : > { %v233_v44 = vpop.permute.xlu1 %232  ;;  %v265_v45 = vpop.permute.xlu0 %264 }
 0x273   : > { %v235_v19 = vmul.f32 %v233_v44, %v216_v31  }
 0x275   : > { %v267_v47 = vmul.f32 %v265_v45, %v235_v19 }
 0x277   : > { %v271_v48 = vadd.f32 %v269_v46, %v267_v47 }
 0x279   : > { %v272_v50 = vmax.f32 %v271_v48, 0.0 }
 0x27a   : > { %v245_v51 = vpop.permute.xlu1 %244 }
 0x27b   : > { %v273_v52 = vmin.f32 %v272_v50, 20.0  ;;  %v247_v53 = vadd.f32 %v245_v51, %v241_v49 }
 0x27d   : > { %v274_v54 = vpack.c.bf16 %v273_v52, %v273_v52  ;;  %v248_v55 = vmax.f32 %v247_v53, 0.0 }
 0x27f   : > { %v276_v56 = vrot.slane %v274_v54, 3  ;;  %v249_v57 = vmin.f32 %v248_v55, 20.0 }
 0x281   : > { %v250_v58 = vpack.c.bf16 %v249_v57, %v249_v57  ;;  %v279_v59 = vsel %vm253_vm10, %v274_v54, %v276_v56 }
 0x282   : > { %281 = vrot.lane.b32.xlu1 %v279_v59, %s518_s28 }
 0x283   : > { %v252_v60 = vrot.slane %v250_v58, 3 }
 0x285   : > { %v256_v61 = vsel %vm253_vm10, %v250_v58, %v252_v60 }
 0x286   : > { %258 = vrot.lane.b32.xlu0 %v256_v61, %s517_s1 }
 0x2f4   : > { %v282_v63 = vpop.permute.xlu1 %281 }
 0x2f6   :  { %60 = sbr.rel (!%p58_p0) target bundleno = 18 (0x12), region = 55 }
 0x2f8   : > { %v259_v62 = vpop.permute.xlu0 %258 }
 0x2f9   : > { %263 = vst.msk [vmem:[%s261_s15] sm:$0x1] %vm262_vm11, %v259_v62 }
 0x2fa   : > { %286 = vst.msk [vmem:[%s284_s18] sm:$0x1] %vm285_vm12, %v282_v63 }
 0x2fb   :  { %291 = vsyncpa [#allocation3], 1 }
 0x2fc   :  { %292 = vsyncpa [#allocation5], 1 }

// kernel: res2net_forward.70
= control target key start
LH: loop header
LB: loop body
LE: loop exit
PB: predicated region body
PF: predicated region fallthrough
CT: control target
= control target key end

     0   :  { %9 = vsyncpa [#allocation3], 0  ;;  %s487_s0 = inlined_call_operand.vmem [shape: bf16[10,128], index: 0, kind: input, shape index: {}]   ;;  %s488_s1 = inlined_call_operand.vmem [shape: bf16[128,256], index: 1, kind: input, shape index: {}]   ;;  %s489_s2 = inlined_call_operand.hbm [shape: f32[1,256], index: 2, kind: input, shape index: {}]   ;;  %s490_s3 = inlined_call_operand.hbm [shape: f32[1,256], index: 3, kind: input, shape index: {}]   ;;  %s491_s4 = inlined_call_operand.vmem [shape: bf16[10,256], index: 4, kind: output, shape index: {}]  }
   0x1   :  { %s20_s17 = sshll.u32 %s489_s2, 4  ;;  %s21_s17 = int_to_ptr.hbm [resolvable:$true] %s20_s17 }
   0x2   :  { %10 = vsyncpa [#allocation5], 0  ;;  %s346_s18 = smov [#allocation2]   ;;  %s31_s22 = sshll.u32 %s490_s3, 4  ;;  %s32_s22 = int_to_ptr.hbm [resolvable:$true] %s31_s22 }
   0x3   :  { %s22_s19 = sshll.u32 %s346_s18, 4  ;;  %s347_s23 = smov [#allocation4]   ;;  %s23_s19 = int_to_ptr.vmem [resolvable:$true] %s22_s19 }
   0x4   :  { %25 = dma.hbm_to_vmem [thread:$0]  %s21_s17, 32, %s23_s19, [#allocation3]  }
   0x5   :  { %s33_s24 = sshll.u32 %s347_s23, 4  ;;  %s34_s24 = int_to_ptr.vmem [resolvable:$true] %s33_s24 }
   0x6   :  { %36 = dma.hbm_to_vmem [thread:$0]  %s32_s22, 32, %s34_s24, [#allocation5]  }
   0x7   :  { %342 = dma.done.wait [#allocation3], 32  }
   0x8   :  { %343 = vsyncadd [#allocation3], 4294967264 }
   0x9   :  { %344 = dma.done.wait [#allocation5], 32  }
   0xa   :  { %345 = vsyncadd [#allocation5], 4294967264  ;;  %v269_v0 = vld [vmem:[%s488_s1 + $0x70] sm:$0xf]  ;;  %v291_v1 = vld [vmem:[%s488_s1 + $0x74] sm:$0xf0] }
   0xb   :  { %v290_v2 = vld [vmem:[%s488_s1 + $0x74] sm:$0xf]  ;;  %v270_v3 = vor.u32 %v291_v1, %v269_v0  ;;  %v271_v4 = vld [vmem:[%s488_s1 + $0x78] sm:$0xf0]  ;;  %v261_v5 = vld [vmem:[%s488_s1 + $0x60] sm:$0xf] }
   0xc   :  { %v289_v6 = vld [vmem:[%s488_s1 + $0x64] sm:$0xf0]  ;;  %v274_v7 = vor.u32 %v290_v2, %v271_v4  ;;  %v288_v8 = vld [vmem:[%s488_s1 + $0x64] sm:$0xf]  ;;  %v263_v9 = vld [vmem:[%s488_s1 + $0x68] sm:$0xf0] }
   0xd   :  { %149 = vmatpush.bf16.msra.mxu0 %v270_v3  ;;  %v262_v10 = vor.u32 %v289_v6, %v261_v5  ;;  %v266_v11 = vor.u32 %v288_v8, %v263_v9  ;;  %v253_v12 = vld [vmem:[%s488_s1 + $0x50] sm:$0xf]  ;;  %v287_v13 = vld [vmem:[%s488_s1 + $0x54] sm:$0xf0]  ;;  %v286_v14 = vld [vmem:[%s488_s1 + $0x54] sm:$0xf] }
   0xe   :  { %163 = vmatpush.bf16.msra.mxu1 %v274_v7  ;;  %v255_v15 = vld [vmem:[%s488_s1 + $0x58] sm:$0xf0]  ;;  %v254_v16 = vor.u32 %v287_v13, %v253_v12  ;;  %v245_v18 = vld [vmem:[%s488_s1 + $0x40] sm:$0xf]  ;;  %v285_v19 = vld [vmem:[%s488_s1 + $0x44] sm:$0xf0] }
   0xf   :  { %v258_v17 = vor.u32 %v286_v14, %v255_v15  ;;  %v284_v20 = vld [vmem:[%s488_s1 + $0x44] sm:$0xf]  ;;  %v247_v21 = vld [vmem:[%s488_s1 + $0x48] sm:$0xf0]  ;;  %v246_v22 = vor.u32 %v285_v19, %v245_v18  ;;  %v237_v24 = vld [vmem:[%s488_s1 + $0x30] sm:$0xf] }
  0x10   :  { %v250_v23 = vor.u32 %v284_v20, %v247_v21  ;;  %v283_v25 = vld [vmem:[%s488_s1 + $0x34] sm:$0xf0]  ;;  %v282_v26 = vld [vmem:[%s488_s1 + $0x34] sm:$0xf]  ;;  %v239_v27 = vld [vmem:[%s488_s1 + $0x38] sm:$0xf0] }
  0x11   :  { %150 = vmatpush.bf16.msra.mxu0 %v262_v10  ;;  %v238_v28 = vor.u32 %v283_v25, %v237_v24  ;;  %v242_v29 = vor.u32 %v282_v26, %v239_v27  ;;  %v229_v30 = vld [vmem:[%s488_s1 + $0x20] sm:$0xf]  ;;  %v281_v31 = vld [vmem:[%s488_s1 + $0x24] sm:$0xf0]  ;;  %v280_v32 = vld [vmem:[%s488_s1 + $0x24] sm:$0xf] }
  0x12   :  { %164 = vmatpush.bf16.msra.mxu1 %v266_v11  ;;  %v231_v33 = vld [vmem:[%s488_s1 + $0x28] sm:$0xf0]  ;;  %v230_v34 = vor.u32 %v281_v31, %v229_v30  ;;  %v221_v36 = vld [vmem:[%s488_s1 + $0x10] sm:$0xf]  ;;  %v279_v37 = vld [vmem:[%s488_s1 + $0x14] sm:$0xf0] }
  0x13   :  { %v234_v35 = vor.u32 %v280_v32, %v231_v33  ;;  %v278_v38 = vld [vmem:[%s488_s1 + $0x14] sm:$0xf]  ;;  %v223_v39 = vld [vmem:[%s488_s1 + $0x18] sm:$0xf0]  ;;  %v222_v40 = vor.u32 %v279_v37, %v221_v36  ;;  %v213_v42 = vld [vmem:[%s488_s1] sm:$0xf] }
  0x14   :  { %v226_v41 = vor.u32 %v278_v38, %v223_v39  ;;  %v277_v43 = vld [vmem:[%s488_s1 + $0x4] sm:$0xf0]  ;;  %v276_v44 = vld [vmem:[%s488_s1 + $0x4] sm:$0xf]  ;;  %v215_v45 = vld [vmem:[%s488_s1 + $0x8] sm:$0xf0] }
  0x15   :  { %151 = vmatpush.bf16.msra.mxu0 %v254_v16  ;;  %v214_v46 = vor.u32 %v277_v43, %v213_v42  ;;  %v209_v47 = vld [vmem:[%s487_s0] sm:$0xf]  ;;  %v275_v48 = vld [vmem:[%s487_s0] sm:$0x10]  ;;  %v218_v49 = vor.u32 %v276_v44, %v215_v45 }
  0x16   :  { %165 = vmatpush.bf16.msra.mxu1 %v258_v17  ;;  %v210_v50 = vor.u32 %v275_v48, %v209_v47  ;;  %v177_v51 = vld [vmem:[#allocation2] sm:$0x3]  ;;  %v187_v52 = vld [vmem:[#allocation4] sm:$0x3] }
  0x17   :  { %v179_v53 = vperm.slane %v177_v51, 0  ;;  %v180_v54 = vperm.slane %v177_v51, 1  ;;  %v189_v55 = vperm.slane %v187_v52, 0  ;;  %v190_v57 = vperm.slane %v187_v52, 1 }
  0x19   :  { %152 = vmatpush.bf16.msra.mxu0 %v246_v22 }
  0x1a   :  { %166 = vmatpush.bf16.msra.mxu1 %v250_v23 }
  0x1d   :  { %153 = vmatpush.bf16.msra.mxu0 %v238_v28 }
  0x1e   :  { %167 = vmatpush.bf16.msra.mxu1 %v242_v29 }
  0x21   :  { %154 = vmatpush.bf16.msra.mxu0 %v230_v34 }
  0x22   :  { %168 = vmatpush.bf16.msra.mxu1 %v234_v35 }
  0x25   :  { %155 = vmatpush.bf16.msra.mxu0 %v222_v40 }
  0x26   :  { %169 = vmatpush.bf16.msra.mxu1 %v226_v41 }
  0x29   :  { %156 = vmatpush.bf16.msra.mxu0 %v214_v46 }
  0x2a   :  { %170 = vmatpush.bf16.msra.mxu1 %v218_v49 }
  0x2c   :  { %157 = vmatmul.bf16.vlgmr.msra.gmra.mxu0 %v210_v50 }
  0x2d   :  { %171 = vmatmul.bf16.vlgmr.msra.gmra.mxu1 %v210_v50 }
  0xa9   :  { %v158_v56 = vpop.f32.mrf.mxu0 }
  0xaa   :  { %v183_v58 = vmul.f32 %v179_v53, %v158_v56  ;;  %v172_v59 = vpop.f32.mrf.mxu1 }
  0xab   :  { %v184_v60 = vmul.f32 %v180_v54, %v172_v59 }
  0xac   :  { %v193_v61 = vadd.f32 %v189_v55, %v183_v58 }
  0xad   :  { %v194_v62 = vadd.f32 %v190_v57, %v184_v60 }
  0xaf   :  { %v197_v63 = vpack.c.bf16 %v194_v62, %v193_v61 }
  0xb1   :  { %199 = vst [vmem:[%s491_s4] sm:$0xff] %v197_v63  ;;  %v160_v0 = vpop.f32.mrf.mxu0 }
  0xb2   :  { %v185_v1 = vmul.f32 %v179_v53, %v160_v0  ;;  %v174_v2 = vpop.f32.mrf.mxu1 }
  0xb3   :  { %v186_v3 = vmul.f32 %v180_v54, %v174_v2 }
  0xb4   :  { %v195_v4 = vadd.f32 %v189_v55, %v185_v1 }
  0xb5   :  { %v196_v5 = vadd.f32 %v190_v57, %v186_v3 }
  0xb7   :  { %v198_v6 = vpack.c.bf16 %v196_v5, %v195_v4 }
  0xb9   :  { %200 = vst [vmem:[%s491_s4 + $0x8] sm:$0x11] %v198_v6 }
  0xba   :  { %205 = vsyncpa [#allocation3], 1 }
  0xbb   :  { %206 = vsyncpa [#allocation5], 1 }

// kernel: res2net_forward.72
= control target key start
LH: loop header
LB: loop body
LE: loop exit
PB: predicated region body
PF: predicated region fallthrough
CT: control target
= control target key end

     0   :  { %9 = vsyncpa [#allocation3], 0  ;;  %s484_s0 = inlined_call_operand.vmem [shape: bf16[10,256], index: 0, kind: input, shape index: {}]   ;;  %s485_s1 = inlined_call_operand.vmem [shape: bf16[256,128], index: 1, kind: input, shape index: {}]   ;;  %s486_s2 = inlined_call_operand.hbm [shape: f32[1,128], index: 2, kind: input, shape index: {}]   ;;  %s487_s3 = inlined_call_operand.hbm [shape: f32[1,128], index: 3, kind: input, shape index: {}]   ;;  %s488_s4 = inlined_call_operand.vmem [shape: bf16[10,128], index: 4, kind: output, shape index: {}]  }
   0x1   :  { %s20_s17 = sshll.u32 %s486_s2, 4  ;;  %s21_s17 = int_to_ptr.hbm [resolvable:$true] %s20_s17 }
   0x2   :  { %10 = vsyncpa [#allocation5], 0  ;;  %s385_s18 = smov [#allocation2]   ;;  %s31_s22 = sshll.u32 %s487_s3, 4  ;;  %s32_s22 = int_to_ptr.hbm [resolvable:$true] %s31_s22 }
   0x3   :  { %s22_s19 = sshll.u32 %s385_s18, 4  ;;  %s386_s23 = smov [#allocation4]   ;;  %s23_s19 = int_to_ptr.vmem [resolvable:$true] %s22_s19 }
   0x4   :  { %25 = dma.hbm_to_vmem [thread:$0]  %s21_s17, 16, %s23_s19, [#allocation3]  }
   0x5   :  { %s33_s24 = sshll.u32 %s386_s23, 4  ;;  %s34_s24 = int_to_ptr.vmem [resolvable:$true] %s33_s24 }
   0x6   :  { %36 = dma.hbm_to_vmem [thread:$0]  %s32_s22, 16, %s34_s24, [#allocation5]  }
   0x7   :  { %381 = dma.done.wait [#allocation3], 16  }
   0x8   :  { %382 = vsyncadd [#allocation3], 4294967280 }
   0x9   :  { %383 = dma.done.wait [#allocation5], 16  }
   0xa   :  { %384 = vsyncadd [#allocation5], 4294967280  ;;  %v320_v0 = vld [vmem:[%s485_s1 + $0x38] sm:$0xff]  ;;  %v319_v2 = vld [vmem:[%s485_s1 + $0x30] sm:$0xff] }
   0xb   :  { %v328_v1 = vld [vmem:[%s485_s1 + $0x78] sm:$0xff]  ;;  %185 = vmatpush.bf16.msra.mxu0 %v320_v0  ;;  %v327_v3 = vld [vmem:[%s485_s1 + $0x70] sm:$0xff]  ;;  %v318_v4 = vld [vmem:[%s485_s1 + $0x28] sm:$0xff] }
   0xc   :  { %199 = vmatpush.bf16.msra.mxu1 %v328_v1  ;;  %v326_v5 = vld [vmem:[%s485_s1 + $0x68] sm:$0xff]  ;;  %v317_v6 = vld [vmem:[%s485_s1 + $0x20] sm:$0xff]  ;;  %v316_v8 = vld [vmem:[%s485_s1 + $0x18] sm:$0xff] }
   0xd   :  { %v325_v7 = vld [vmem:[%s485_s1 + $0x60] sm:$0xff]  ;;  %v324_v9 = vld [vmem:[%s485_s1 + $0x58] sm:$0xff]  ;;  %v315_v10 = vld [vmem:[%s485_s1 + $0x10] sm:$0xff] }
   0xe   :  { %v323_v11 = vld [vmem:[%s485_s1 + $0x50] sm:$0xff]  ;;  %v314_v12 = vld [vmem:[%s485_s1 + $0x8] sm:$0xff]  ;;  %v313_v14 = vld [vmem:[%s485_s1] sm:$0xff] }
   0xf   :  { %186 = vmatpush.bf16.msra.mxu0 %v319_v2  ;;  %v322_v13 = vld [vmem:[%s485_s1 + $0x48] sm:$0xff]  ;;  %v321_v15 = vld [vmem:[%s485_s1 + $0x40] sm:$0xff] }
  0x10   :  { %200 = vmatpush.bf16.msra.mxu1 %v327_v3  ;;  %v241_v16 = vld [vmem:[%s484_s0] sm:$0xf]  ;;  %v312_v17 = vld [vmem:[%s484_s0 + $0x4] sm:$0x10]  ;;  %v311_v18 = vld [vmem:[%s484_s0 + $0x4] sm:$0xf] }
  0x11   :  { %v243_v19 = vld [vmem:[%s484_s0 + $0x8] sm:$0x10]  ;;  %v242_v20 = vor.u32 %v312_v17, %v241_v16  ;;  %v331_v22 = vld [vmem:[#allocation2] ss:$0 sm:$0xff]  ;;  %v332_v26 = vld [vmem:[#allocation4] ss:$0 sm:$0xff] }
  0x12   :  { %v246_v21 = vor.u32 %v311_v18, %v243_v19 }
  0x13   :  { %187 = vmatpush.bf16.msra.mxu0 %v318_v4 }
  0x14   :  { %201 = vmatpush.bf16.msra.mxu1 %v326_v5 }
  0x17   :  { %188 = vmatpush.bf16.msra.mxu0 %v317_v6 }
  0x18   :  { %202 = vmatpush.bf16.msra.mxu1 %v325_v7 }
  0x1b   :  { %189 = vmatpush.bf16.msra.mxu0 %v316_v8 }
  0x1c   :  { %203 = vmatpush.bf16.msra.mxu1 %v324_v9 }
  0x1f   :  { %190 = vmatpush.bf16.msra.mxu0 %v315_v10 }
  0x20   :  { %204 = vmatpush.bf16.msra.mxu1 %v323_v11 }
  0x23   :  { %191 = vmatpush.bf16.msra.mxu0 %v314_v12 }
  0x24   :  { %205 = vmatpush.bf16.msra.mxu1 %v322_v13 }
  0x27   :  { %192 = vmatpush.bf16.msra.mxu0 %v313_v14 }
  0x28   :  { %206 = vmatpush.bf16.msra.mxu1 %v321_v15 }
  0x2a   :  { %193 = vmatmul.bf16.vlgmr.msra.gmra.mxu0 %v242_v20 }
  0x2b   :  { %207 = vmatmul.bf16.vlgmr.msra.gmra.mxu1 %v246_v21 }
  0xa7   :  { %v194_v23 = vpop.f32.mrf.mxu0 }
  0xa8   :  { %v208_v24 = vpop.f32.mrf.mxu1 }
  0xa9   :  { %v209_v25 = vadd.f32 %v208_v24, %v194_v23 }
  0xab   :  { %v217_v27 = vmul.f32 %v331_v22, %v209_v25 }
  0xad   :  { %v223_v28 = vadd.f32 %v332_v26, %v217_v27 }
  0xaf   :  { %v225_v29 = vmax.f32 %v223_v28, 0.0  ;;  %v196_v30 = vpop.f32.mrf.mxu0 }
  0xb0   :  { %v210_v31 = vpop.f32.mrf.mxu1 }
  0xb1   :  { %v227_v32 = vmin.f32 %v225_v29, 20.0  ;;  %v211_v33 = vadd.f32 %v210_v31, %v196_v30 }
  0xb3   :  { %v229_v34 = vpack.c.bf16 %v227_v32, %v227_v32  ;;  %v218_v35 = vmul.f32 %v331_v22, %v211_v33 }
  0xb5   :  { %231 = vst [vmem:[%s488_s4] sm:$0xf] %v229_v34  ;;  %v224_v36 = vadd.f32 %v332_v26, %v218_v35 }
  0xb7   :  { %v226_v37 = vmax.f32 %v224_v36, 0.0 }
  0xb9   :  { %v228_v38 = vmin.f32 %v226_v37, 20.0 }
  0xbb   :  { %v230_v39 = vpack.c.bf16 %v228_v38, %v228_v38 }
  0xbd   :  { %232 = vst [vmem:[%s488_s4 + $0x4] sm:$0x1] %v230_v39 }
  0xbe   :  { %237 = vsyncpa [#allocation3], 1 }
  0xbf   :  { %238 = vsyncpa [#allocation5], 1 }

// kernel: res2net_forward.73
= control target key start
LH: loop header
LB: loop body
LE: loop exit
PB: predicated region body
PF: predicated region fallthrough
CT: control target
= control target key end

     0   :  { %9 = vsyncpa [#allocation3], 0  ;;  %s222_s18 = smov [#allocation2]   ;;  %s314_s0 = inlined_call_operand.vmem [shape: bf16[10,64], index: 0, kind: input, shape index: {}]   ;;  %s315_s1 = inlined_call_operand.vmem [shape: bf16[64,256], index: 1, kind: input, shape index: {}]   ;;  %s316_s2 = inlined_call_operand.vmem [shape: f32[1,256], index: 2, kind: input, shape index: {}]   ;;  %s317_s3 = inlined_call_operand.hbm [shape: f32[1,256], index: 3, kind: input, shape index: {}]   ;;  %s318_s4 = inlined_call_operand.vmem [shape: bf16[10,256], index: 4, kind: output, shape index: {}]  }
   0x1   :  { %s21_s17 = sshll.u32 %s317_s3, 4  ;;  %s23_s19 = sshll.u32 %s222_s18, 4  ;;  %s22_s17 = int_to_ptr.hbm [resolvable:$true] %s21_s17  ;;  %s24_s19 = int_to_ptr.vmem [resolvable:$true] %s23_s19 }
   0x2   :  { %26 = dma.hbm_to_vmem [thread:$0]  %s22_s17, 32, %s24_s19, [#allocation3]  }
   0x3   :  { %220 = dma.done.wait [#allocation3], 32  }
   0x4   :  { %221 = vsyncadd [#allocation3], 4294967264  ;;  %v178_v0 = vld [vmem:[%s315_s1 + $0x30] sm:$0xf]  ;;  %v194_v1 = vld [vmem:[%s315_s1 + $0x34] sm:$0xf0] }
   0x5   :  { %v193_v2 = vld [vmem:[%s315_s1 + $0x34] sm:$0xf]  ;;  %v179_v3 = vor.u32 %v194_v1, %v178_v0  ;;  %v180_v4 = vld [vmem:[%s315_s1 + $0x38] sm:$0xf0]  ;;  %v170_v5 = vld [vmem:[%s315_s1 + $0x20] sm:$0xf] }
   0x6   :  { %v192_v6 = vld [vmem:[%s315_s1 + $0x24] sm:$0xf0]  ;;  %v183_v7 = vor.u32 %v193_v2, %v180_v4  ;;  %v191_v8 = vld [vmem:[%s315_s1 + $0x24] sm:$0xf]  ;;  %v172_v9 = vld [vmem:[%s315_s1 + $0x28] sm:$0xf0] }
   0x7   :  { %95 = vmatpush.bf16.msra.mxu0 %v179_v3  ;;  %v171_v10 = vor.u32 %v192_v6, %v170_v5  ;;  %v175_v11 = vor.u32 %v191_v8, %v172_v9  ;;  %v162_v12 = vld [vmem:[%s315_s1 + $0x10] sm:$0xf]  ;;  %v190_v13 = vld [vmem:[%s315_s1 + $0x14] sm:$0xf0]  ;;  %v189_v14 = vld [vmem:[%s315_s1 + $0x14] sm:$0xf] }
   0x8   :  { %109 = vmatpush.bf16.msra.mxu1 %v183_v7  ;;  %v164_v15 = vld [vmem:[%s315_s1 + $0x18] sm:$0xf0]  ;;  %v163_v16 = vor.u32 %v190_v13, %v162_v12  ;;  %v154_v18 = vld [vmem:[%s315_s1] sm:$0xf]  ;;  %v188_v19 = vld [vmem:[%s315_s1 + $0x4] sm:$0xf0] }
   0x9   :  { %v167_v17 = vor.u32 %v189_v14, %v164_v15  ;;  %v187_v20 = vld [vmem:[%s315_s1 + $0x4] sm:$0xf]  ;;  %v156_v21 = vld [vmem:[%s315_s1 + $0x8] sm:$0xf0]  ;;  %v155_v22 = vor.u32 %v188_v19, %v154_v18  ;;  %v150_v23 = vld [vmem:[%s314_s0] sm:$0xf] }
   0xa   :  { %v186_v24 = vld [vmem:[%s314_s0] sm:$0x10]  ;;  %v159_v25 = vor.u32 %v187_v20, %v156_v21  ;;  %vm87_vm0 = vcmask 523264   ;;  %v119_v27 = vld [vmem:[%s316_s2] sm:$0x3] }
   0xb   :  { %96 = vmatpush.bf16.msra.mxu0 %v171_v10  ;;  %v151_v26 = vor.u32 %v186_v24, %v150_v23  ;;  %v129_v28 = vld [vmem:[#allocation2] sm:$0x3]  ;;  %v121_v29 = vperm.slane %v119_v27, 0  ;;  %v122_v30 = vperm.slane %v119_v27, 1 }
   0xc   :  { %110 = vmatpush.bf16.msra.mxu1 %v175_v11  ;;  %v131_v31 = vperm.slane %v129_v28, 0  ;;  %v132_v33 = vperm.slane %v129_v28, 1 }
   0xf   :  { %97 = vmatpush.bf16.msra.mxu0 %v163_v16 }
  0x10   :  { %111 = vmatpush.bf16.msra.mxu1 %v167_v17 }
  0x13   :  { %98 = vmatpush.bf16.msra.mxu0 %v155_v22 }
  0x14   :  { %112 = vmatpush.bf16.msra.mxu1 %v159_v25 }
  0x16   :  { %184 = vmatmul.msk.bf16.vlgmr.msra.gmra.mxu0 %vm87_vm0, %v151_v26 }
  0x17   :  { %185 = vmatmul.msk.bf16.vlgmr.msra.gmra.mxu1 %vm87_vm0, %v151_v26 }
  0x93   :  { %v100_v32 = vpop.f32.mrf.mxu0 }
  0x94   :  { %v125_v34 = vmul.f32 %v121_v29, %v100_v32  ;;  %v114_v35 = vpop.f32.mrf.mxu1 }
  0x95   :  { %v126_v36 = vmul.f32 %v122_v30, %v114_v35 }
  0x96   :  { %v135_v37 = vadd.f32 %v131_v31, %v125_v34 }
  0x97   :  { %v136_v38 = vadd.f32 %v132_v33, %v126_v36 }
  0x99   :  { %v139_v39 = vpack.c.bf16 %v136_v38, %v135_v37 }
  0x9b   :  { %141 = vst [vmem:[%s318_s4] sm:$0xff] %v139_v39  ;;  %v102_v40 = vpop.f32.mrf.mxu0 }
  0x9c   :  { %v127_v41 = vmul.f32 %v121_v29, %v102_v40  ;;  %v116_v42 = vpop.f32.mrf.mxu1 }
  0x9d   :  { %v128_v43 = vmul.f32 %v122_v30, %v116_v42 }
  0x9e   :  { %v137_v44 = vadd.f32 %v131_v31, %v127_v41 }
  0x9f   :  { %v138_v45 = vadd.f32 %v132_v33, %v128_v43 }
  0xa1   :  { %v140_v46 = vpack.c.bf16 %v138_v45, %v137_v44 }
  0xa3   :  { %142 = vst [vmem:[%s318_s4 + $0x8] sm:$0x11] %v140_v46 }
  0xa4   :  { %147 = vsyncpa [#allocation3], 1 }

// kernel: res2net_forward.76
= control target key start
LH: loop header
LB: loop body
LE: loop exit
PB: predicated region body
PF: predicated region fallthrough
CT: control target
= control target key end

     0   :  { %v200_v4 = vmov 5.0   ;;  %vm49_vm0 = vcmask 1041408   ;;  %v201_v53 = vmov 4.0   ;;  %vm180_vm7 = vcmask 1045508   ;;  %s259_s0 = inlined_call_operand.vmem [shape: bf16[5,2,256], index: 0, kind: input, shape index: {}]   ;;  %s260_s1 = inlined_call_operand.vmem [shape: f32[2,512], index: 1, kind: output, shape index: {}]  }
   0x1   :  { %v8_v0 = vld [vmem:[%s259_s0] sm:$0x3]  ;;  %v9_v1 = vld [vmem:[%s259_s0 + $0x2] sm:$0x3]  ;;  %192 = vrcp.f32 %v200_v4  ;;  %v10_v5 = vld [vmem:[%s259_s0 + $0x4] sm:$0x3] }
   0x2   :  { %v13_v2 = vunpack.c.l.bf16 %v8_v0  ;;  %v14_v3 = vunpack.c.l.bf16 %v9_v1  ;;  %v11_v6 = vld [vmem:[%s259_s0 + $0x6] sm:$0x3]  ;;  %v15_v7 = vunpack.c.l.bf16 %v10_v5  ;;  %v12_v12 = vld [vmem:[%s259_s0 + $0x8] sm:$0x3]  ;;  %194 = vrcp.f32 %v201_v53 }
   0x3   :  { %v16_v9 = vunpack.c.l.bf16 %v11_v6  ;;  %v17_v16 = vunpack.c.l.bf16 %v12_v12  ;;  %vm182_vm8 = vcmask 1043456  }
   0x4   :  { %23 = vst [vmem:[#allocation1] ss:$4 sm:$0xff] %v13_v2 }
   0x5   :  { %27 = vst [vmem:[#allocation1 + $0x20] ss:$4 sm:$0xff] %v14_v3 }
   0x7   :  { %v193_v8 = vpop.eup %192 }
   0x8   :  { %v69_v13 = vmul.f32 5.0, %v193_v8  ;;  %vm73_vm1 = vweird.f32 %v193_v8  ;;  %v195_v56 = vpop.eup %194 }
   0x9   :  { %v142_v62 = vmul.f32 4.0, %v195_v56  ;;  %vm146_vm2 = vweird.f32 %v195_v56 }
   0xa   :  { %v70_v17 = vsub.f32 1.0, %v69_v13 }
   0xb   :  { %v24_v10 = vld.sshfl [vmem:[#allocation1] sm:$0xff pattern:$0x73625140]  ;;  %v25_v11 = vld.sshfl [vmem:[#allocation1 + $0x8] sm:$0xff pattern:$0x73625140] }
   0xc   :  { %30 = vst [vmem:[#allocation1] ss:$4 sm:$0xff] %v15_v7  ;;  %v28_v14 = vld.sshfl [vmem:[#allocation1 + $0x20] sm:$0xff pattern:$0x73625140]  ;;  %v50_v18 = vsel %vm49_vm0, %v24_v10, 0.0  ;;  %v71_v26 = vmul.f32 %v193_v8, %v70_v17 }
   0xd   :  { %v29_v15 = vld.sshfl [vmem:[#allocation1 + $0x28] sm:$0xff pattern:$0x73625140]  ;;  %v51_v19 = vsel %vm49_vm0, %v28_v14, 0.0  ;;  %v59_v20 = vsel %vm49_vm0, %v25_v11, 0.0  ;;  %v143_v1 = vsub.f32 1.0, %v142_v62 }
   0xe   :  { %33 = vst [vmem:[#allocation1 + $0x20] ss:$4 sm:$0xff] %v16_v9  ;;  %v60_v21 = vsel %vm49_vm0, %v29_v15, 0.0  ;;  %v52_v27 = vadd.f32 %v51_v19, %v50_v18  ;;  %v72_v35 = vadd.f32 %v193_v8, %v71_v26 }
   0xf   :  { %v61_v28 = vadd.f32 %v60_v21, %v59_v20  ;;  %v144_v11 = vmul.f32 %v195_v56, %v143_v1 }
  0x10   :  { %v74_v42 = vsel %vm73_vm1, %v193_v8, %v72_v35 }
  0x11   :  { %v145_v18 = vadd.f32 %v195_v56, %v144_v11 }
  0x13   :  { %v31_v22 = vld.sshfl [vmem:[#allocation1] sm:$0xff pattern:$0x73625140]  ;;  %v32_v23 = vld.sshfl [vmem:[#allocation1 + $0x8] sm:$0xff pattern:$0x73625140] }
  0x14   :  { %36 = vst [vmem:[#allocation1] ss:$4 sm:$0xff] %v17_v16  ;;  %v53_v24 = vsel %vm49_vm0, %v31_v22, 0.0  ;;  %v62_v25 = vsel %vm49_vm0, %v32_v23, 0.0 }
  0x15   :  { %v34_v29 = vld.sshfl [vmem:[#allocation1 + $0x20] sm:$0xff pattern:$0x73625140]  ;;  %v35_v30 = vld.sshfl [vmem:[#allocation1 + $0x28] sm:$0xff pattern:$0x73625140]  ;;  %v54_v31 = vadd.f32 %v53_v24, %v52_v27  ;;  %v63_v32 = vadd.f32 %v62_v25, %v61_v28  ;;  %v147_v27 = vsel %vm146_vm2, %v195_v56, %v145_v18 }
  0x16   :  { %v55_v33 = vsel %vm49_vm0, %v34_v29, 0.0  ;;  %v64_v34 = vsel %vm49_vm0, %v35_v30, 0.0 }
  0x17   :  { %v56_v36 = vadd.f32 %v55_v33, %v54_v31  ;;  %v65_v37 = vadd.f32 %v64_v34, %v63_v32 }
  0x1b   :  { %v37_v38 = vld.sshfl [vmem:[#allocation1] sm:$0xff pattern:$0x73625140]  ;;  %v38_v39 = vld.sshfl [vmem:[#allocation1 + $0x8] sm:$0xff pattern:$0x73625140] }
  0x1c   :  { %v57_v40 = vsel %vm49_vm0, %v37_v38, 0.0  ;;  %v66_v41 = vsel %vm49_vm0, %v38_v39, 0.0 }
  0x1d   :  { %v58_v43 = vadd.f32 %v57_v40, %v56_v36  ;;  %v67_v44 = vadd.f32 %v66_v41, %v65_v37 }
  0x1f   :  { %v76_v45 = vmul.f32 %v74_v42, %v67_v44  ;;  %v75_v46 = vmul.f32 %v74_v42, %v58_v43 }
  0x21   :  { %v79_v47 = vrot.slane %v76_v45, 6 }
  0x23   :  { %v238_v48 = vsel %vm49_vm0, %v75_v46, %v79_v47 }
  0x24   :  { %v82_v49 = vsub.f32 %v13_v2, %v238_v48  ;;  %v83_v50 = vsub.f32 %v14_v3, %v238_v48  ;;  %v84_v54 = vsub.f32 %v15_v7, %v238_v48  ;;  %v85_v55 = vsub.f32 %v16_v9, %v238_v48 }
  0x25   :  { %v86_v63 = vsub.f32 %v17_v16, %v238_v48 }
  0x26   :  { %v87_v51 = vmul.f32 %v82_v49, %v82_v49  ;;  %v88_v52 = vmul.f32 %v83_v50, %v83_v50  ;;  %v89_v57 = vmul.f32 %v84_v54, %v84_v54  ;;  %v90_v60 = vmul.f32 %v85_v55, %v85_v55 }
  0x27   :  { %v91_v2 = vmul.f32 %v86_v63, %v86_v63 }
  0x28   :  { %97 = vst [vmem:[#allocation1] ss:$4 sm:$0xff] %v87_v51 }
  0x29   :  { %101 = vst [vmem:[#allocation1 + $0x20] ss:$4 sm:$0xff] %v88_v52 }
  0x2f   :  { %v98_v58 = vld.sshfl [vmem:[#allocation1] sm:$0xff pattern:$0x73625140]  ;;  %v99_v59 = vld.sshfl [vmem:[#allocation1 + $0x8] sm:$0xff pattern:$0x73625140] }
  0x30   :  { %104 = vst [vmem:[#allocation1] ss:$4 sm:$0xff] %v89_v57  ;;  %v102_v61 = vld.sshfl [vmem:[#allocation1 + $0x20] sm:$0xff pattern:$0x73625140]  ;;  %v123_v3 = vsel %vm49_vm0, %v98_v58, 0.0 }
  0x31   :  { %v103_v0 = vld.sshfl [vmem:[#allocation1 + $0x28] sm:$0xff pattern:$0x73625140]  ;;  %v124_v4 = vsel %vm49_vm0, %v102_v61, 0.0  ;;  %v132_v5 = vsel %vm49_vm0, %v99_v59, 0.0 }
  0x32   :  { %107 = vst [vmem:[#allocation1 + $0x20] ss:$4 sm:$0xff] %v90_v60  ;;  %v133_v6 = vsel %vm49_vm0, %v103_v0, 0.0  ;;  %v125_v12 = vadd.f32 %v124_v4, %v123_v3 }
  0x33   :  { %v134_v13 = vadd.f32 %v133_v6, %v132_v5 }
  0x37   :  { %v105_v7 = vld.sshfl [vmem:[#allocation1] sm:$0xff pattern:$0x73625140]  ;;  %v106_v8 = vld.sshfl [vmem:[#allocation1 + $0x8] sm:$0xff pattern:$0x73625140] }
  0x38   :  { %v126_v9 = vsel %vm49_vm0, %v105_v7, 0.0  ;;  %v135_v10 = vsel %vm49_vm0, %v106_v8, 0.0  ;;  %110 = vst [vmem:[#allocation1] ss:$4 sm:$0xff] %v91_v2 }
  0x39   :  { %v108_v14 = vld.sshfl [vmem:[#allocation1 + $0x20] sm:$0xff pattern:$0x73625140]  ;;  %v109_v15 = vld.sshfl [vmem:[#allocation1 + $0x28] sm:$0xff pattern:$0x73625140]  ;;  %v127_v16 = vadd.f32 %v126_v9, %v125_v12  ;;  %v136_v17 = vadd.f32 %v135_v10, %v134_v13 }
  0x3a   :  { %v128_v19 = vsel %vm49_vm0, %v108_v14, 0.0  ;;  %v137_v20 = vsel %vm49_vm0, %v109_v15, 0.0 }
  0x3b   :  { %v129_v21 = vadd.f32 %v128_v19, %v127_v16  ;;  %v138_v22 = vadd.f32 %v137_v20, %v136_v17 }
  0x3f   :  { %v111_v23 = vld.sshfl [vmem:[#allocation1] sm:$0xff pattern:$0x73625140]  ;;  %v112_v24 = vld.sshfl [vmem:[#allocation1 + $0x8] sm:$0xff pattern:$0x73625140] }
  0x40   :  { %v130_v25 = vsel %vm49_vm0, %v111_v23, 0.0  ;;  %v139_v26 = vsel %vm49_vm0, %v112_v24, 0.0 }
  0x41   :  { %v131_v28 = vadd.f32 %v130_v25, %v129_v21  ;;  %v140_v29 = vadd.f32 %v139_v26, %v138_v22 }
  0x43   :  { %v148_v30 = vmul.f32 %v147_v27, %v131_v28  ;;  %v149_v31 = vmul.f32 %v147_v27, %v140_v29 }
  0x45   :  { %v150_v32 = vadd.f32 1e-07, %v148_v30  ;;  %v151_v33 = vadd.f32 1e-07, %v149_v31 }
  0x47   :  { %196 = vrsqrt.f32 %v150_v32  ;;  %vm159_vm3 = vcmp.eq.f32.partialorder %v150_v32, inf  ;;  %v162_v47 = vand.u32 2147483648, %v150_v32  ;;  %vm161_vm4 = vcmp.eq.f32.partialorder %v150_v32, 0.0 }
  0x48   :  { %198 = vrsqrt.f32 %v151_v33  ;;  %vm171_vm5 = vcmp.eq.f32.partialorder %v151_v33, inf  ;;  %v174_v51 = vand.u32 2147483648, %v151_v33  ;;  %vm173_vm6 = vcmp.eq.f32.partialorder %v151_v33, 0.0 }
  0x4d   :  { %v197_v34 = vpop.eup %196 }
  0x4e   :  { %v199_v35 = vpop.eup %198  ;;  %v153_v36 = vmul.f32 %v197_v34, %v150_v32 }
  0x4f   :  { %v165_v37 = vmul.f32 %v199_v35, %v151_v33 }
  0x50   :  { %v154_v38 = vmul.f32 %v197_v34, %v153_v36 }
  0x51   :  { %v166_v39 = vmul.f32 %v199_v35, %v165_v37 }
  0x52   :  { %v155_v40 = vmul.f32 0.5, %v154_v38 }
  0x53   :  { %v167_v41 = vmul.f32 0.5, %v166_v39 }
  0x54   :  { %v156_v42 = vsub.f32 1.5, %v155_v40 }
  0x55   :  { %v168_v43 = vsub.f32 1.5, %v167_v41 }
  0x56   :  { %v157_v44 = vmul.f32 %v197_v34, %v156_v42 }
  0x57   :  { %v169_v45 = vmul.f32 %v199_v35, %v168_v43 }
  0x58   :  { %v158_v46 = vmul.f32 %v157_v44, %v150_v32 }
  0x59   :  { %v170_v49 = vmul.f32 %v169_v45, %v151_v33 }
  0x5a   :  { %v160_v50 = vsel %vm159_vm3, %v150_v32, %v158_v46 }
  0x5b   :  { %v163_v52 = vsel %vm161_vm4, %v162_v47, %v160_v50  ;;  %v172_v53 = vsel %vm171_vm5, %v151_v33, %v170_v49 }
  0x5c   :  { %v175_v54 = vsel %vm173_vm6, %v174_v51, %v172_v53  ;;  %v178_v55 = vrot.slane %v163_v52, 4 }
  0x5d   :  { %v179_v56 = vrot.slane %v175_v54, 2 }
  0x5f   :  { %v181_v57 = vsel %vm180_vm7, %v178_v55, %v179_v56 }
  0x60   :  { %v183_v58 = vsel %vm182_vm8, %v238_v48, %v181_v57 }
  0x61   :  { %185 = vst [vmem:[%s260_s1] sm:$0xff] %v183_v58 }

// kernel: res2net_forward.77
= control target key start
LH: loop header
LB: loop body
LE: loop exit
PB: predicated region body
PF: predicated region fallthrough
CT: control target
= control target key end

     0   :  { %9 = vsyncpa [#allocation3], 0  ;;  %s1386_s0 = inlined_call_operand.vmem [shape: bf16[2,512], index: 0, kind: input, shape index: {}]   ;;  %s1387_s1 = inlined_call_operand.vmem [shape: bf16[512,192], index: 1, kind: input, shape index: {}]   ;;  %s1388_s2 = inlined_call_operand.vmem [shape: f32[1,192], index: 2, kind: input, shape index: {}]   ;;  %s1389_s3 = inlined_call_operand.hbm [shape: f32[1,192], index: 3, kind: input, shape index: {}]   ;;  %s1390_s4 = inlined_call_operand.hbm [shape: f32[2,192], index: 4, kind: output, shape index: {}]  }
   0x1   :  { %10 = vsyncpa [#allocation4], 0  ;;  %s22_s17 = sshll.u32 %s1389_s3, 4  ;;  %s947_s18 = smov [#allocation2]   ;;  %s23_s17 = int_to_ptr.hbm [resolvable:$true] %s22_s17 }
   0x2   :  { %s24_s19 = sshll.u32 %s947_s18, 4  ;;  %s25_s19 = int_to_ptr.vmem [resolvable:$true] %s24_s19 }
   0x3   :  { %27 = dma.hbm_to_vmem [thread:$0]  %s23_s17, 32, %s25_s19, [#allocation3]  }
   0x4   :  { %943 = dma.done.wait [#allocation3], 32  }
   0x5   :  { %944 = vsyncadd [#allocation3], 4294967264  ;;  %v631_v0 = vld [vmem:[%s1387_s1 + $0x70] sm:$0xf]  ;;  %v844_v1 = vld [vmem:[%s1387_s1 + $0x74] sm:$0xf0] }
   0x6   :  { %v695_v2 = vld [vmem:[%s1387_s1 + $0xf0] sm:$0xf]  ;;  %v632_v3 = vor.u32 %v844_v1, %v631_v0  ;;  %v860_v4 = vld [vmem:[%s1387_s1 + $0xf4] sm:$0xf0]  ;;  %v623_v11 = vld [vmem:[%s1387_s1 + $0x60] sm:$0xf] }
   0x7   :  { %v759_v5 = vld [vmem:[%s1387_s1 + $0x170] sm:$0xf]  ;;  %v876_v6 = vld [vmem:[%s1387_s1 + $0x174] sm:$0xf0]  ;;  %v696_v7 = vor.u32 %v860_v4, %v695_v2  ;;  %v842_v13 = vld [vmem:[%s1387_s1 + $0x64] sm:$0xf0] }
   0x8   :  { %v760_v8 = vor.u32 %v876_v6, %v759_v5  ;;  %v823_v9 = vld [vmem:[%s1387_s1 + $0x1f0] sm:$0xf]  ;;  %v892_v10 = vld [vmem:[%s1387_s1 + $0x1f4] sm:$0xf0]  ;;  %427 = vmatpush.bf16.msra.mxu0 %v632_v3  ;;  %v687_v14 = vld [vmem:[%s1387_s1 + $0xe0] sm:$0xf]  ;;  %v624_v16 = vor.u32 %v842_v13, %v623_v11 }
   0x9   :  { %v824_v12 = vor.u32 %v892_v10, %v823_v9  ;;  %v858_v15 = vld [vmem:[%s1387_s1 + $0xe4] sm:$0xf0]  ;;  %440 = vmatpush.bf16.msra.mxu1 %v696_v7  ;;  %v751_v18 = vld [vmem:[%s1387_s1 + $0x160] sm:$0xf]  ;;  %v615_v23 = vld [vmem:[%s1387_s1 + $0x50] sm:$0xf] }
   0xa   :  { %453 = vmatpush.bf16.msra.mxu2 %v760_v8  ;;  %v688_v17 = vor.u32 %v858_v15, %v687_v14  ;;  %v874_v19 = vld [vmem:[%s1387_s1 + $0x164] sm:$0xf0]  ;;  %v815_v20 = vld [vmem:[%s1387_s1 + $0x1e0] sm:$0xf]  ;;  %v840_v24 = vld [vmem:[%s1387_s1 + $0x54] sm:$0xf0] }
   0xb   :  { %466 = vmatpush.bf16.msra.mxu3 %v824_v12  ;;  %v752_v21 = vor.u32 %v874_v19, %v751_v18  ;;  %v890_v22 = vld [vmem:[%s1387_s1 + $0x1e4] sm:$0xf0]  ;;  %v679_v26 = vld [vmem:[%s1387_s1 + $0xd0] sm:$0xf]  ;;  %v856_v27 = vld [vmem:[%s1387_s1 + $0xd4] sm:$0xf0]  ;;  %v616_v29 = vor.u32 %v840_v24, %v615_v23 }
   0xc   :  { %v816_v25 = vor.u32 %v890_v22, %v815_v20  ;;  %v743_v28 = vld [vmem:[%s1387_s1 + $0x150] sm:$0xf]  ;;  %428 = vmatpush.bf16.msra.mxu0 %v624_v16  ;;  %v872_v30 = vld [vmem:[%s1387_s1 + $0x154] sm:$0xf0]  ;;  %v680_v33 = vor.u32 %v856_v27, %v679_v26  ;;  %v607_v35 = vld [vmem:[%s1387_s1 + $0x40] sm:$0xf] }
   0xd   :  { %v807_v31 = vld [vmem:[%s1387_s1 + $0x1d0] sm:$0xf]  ;;  %v888_v32 = vld [vmem:[%s1387_s1 + $0x1d4] sm:$0xf0]  ;;  %441 = vmatpush.bf16.msra.mxu1 %v688_v17  ;;  %v744_v34 = vor.u32 %v872_v30, %v743_v28  ;;  %v838_v36 = vld [vmem:[%s1387_s1 + $0x44] sm:$0xf0] }
   0xe   :  { %454 = vmatpush.bf16.msra.mxu2 %v752_v21  ;;  %v671_v37 = vld [vmem:[%s1387_s1 + $0xc0] sm:$0xf]  ;;  %v808_v38 = vor.u32 %v888_v32, %v807_v31  ;;  %v854_v39 = vld [vmem:[%s1387_s1 + $0xc4] sm:$0xf0]  ;;  %v608_v44 = vor.u32 %v838_v36, %v607_v35  ;;  %v599_v47 = vld [vmem:[%s1387_s1 + $0x30] sm:$0xf] }
   0xf   :  { %467 = vmatpush.bf16.msra.mxu3 %v816_v25  ;;  %v735_v40 = vld [vmem:[%s1387_s1 + $0x140] sm:$0xf]  ;;  %v870_v41 = vld [vmem:[%s1387_s1 + $0x144] sm:$0xf0]  ;;  %v672_v45 = vor.u32 %v854_v39, %v671_v37  ;;  %v836_v48 = vld [vmem:[%s1387_s1 + $0x34] sm:$0xf0] }
  0x10   :  { %v799_v42 = vld [vmem:[%s1387_s1 + $0x1c0] sm:$0xf]  ;;  %v886_v43 = vld [vmem:[%s1387_s1 + $0x1c4] sm:$0xf0]  ;;  %429 = vmatpush.bf16.msra.mxu0 %v616_v29  ;;  %v736_v46 = vor.u32 %v870_v41, %v735_v40  ;;  %v663_v49 = vld [vmem:[%s1387_s1 + $0xb0] sm:$0xf]  ;;  %v600_v56 = vor.u32 %v836_v48, %v599_v47 }
  0x11   :  { %442 = vmatpush.bf16.msra.mxu1 %v680_v33  ;;  %v800_v50 = vor.u32 %v886_v43, %v799_v42  ;;  %v852_v51 = vld [vmem:[%s1387_s1 + $0xb4] sm:$0xf0]  ;;  %v727_v52 = vld [vmem:[%s1387_s1 + $0x130] sm:$0xf]  ;;  %v591_v59 = vld [vmem:[%s1387_s1 + $0x20] sm:$0xf] }
  0x12   :  { %455 = vmatpush.bf16.msra.mxu2 %v744_v34  ;;  %v868_v53 = vld [vmem:[%s1387_s1 + $0x134] sm:$0xf0]  ;;  %v791_v54 = vld [vmem:[%s1387_s1 + $0x1b0] sm:$0xf]  ;;  %v664_v57 = vor.u32 %v852_v51, %v663_v49  ;;  %v834_v60 = vld [vmem:[%s1387_s1 + $0x24] sm:$0xf0] }
  0x13   :  { %468 = vmatpush.bf16.msra.mxu3 %v808_v38  ;;  %v884_v55 = vld [vmem:[%s1387_s1 + $0x1b4] sm:$0xf0]  ;;  %v728_v58 = vor.u32 %v868_v53, %v727_v52  ;;  %v655_v61 = vld [vmem:[%s1387_s1 + $0xa0] sm:$0xf]  ;;  %v850_v63 = vld [vmem:[%s1387_s1 + $0xa4] sm:$0xf0]  ;;  %v592_v4 = vor.u32 %v834_v60, %v591_v59 }
  0x14   :  { %430 = vmatpush.bf16.msra.mxu0 %v608_v44  ;;  %v792_v62 = vor.u32 %v884_v55, %v791_v54  ;;  %v719_v0 = vld [vmem:[%s1387_s1 + $0x120] sm:$0xf]  ;;  %v866_v1 = vld [vmem:[%s1387_s1 + $0x124] sm:$0xf0]  ;;  %v656_v5 = vor.u32 %v850_v63, %v655_v61  ;;  %v583_v7 = vld [vmem:[%s1387_s1 + $0x10] sm:$0xf] }
  0x15   :  { %443 = vmatpush.bf16.msra.mxu1 %v672_v45  ;;  %v783_v2 = vld [vmem:[%s1387_s1 + $0x1a0] sm:$0xf]  ;;  %v882_v3 = vld [vmem:[%s1387_s1 + $0x1a4] sm:$0xf0]  ;;  %v720_v6 = vor.u32 %v866_v1, %v719_v0  ;;  %v832_v8 = vld [vmem:[%s1387_s1 + $0x14] sm:$0xf0] }
  0x16   :  { %456 = vmatpush.bf16.msra.mxu2 %v736_v46  ;;  %v647_v9 = vld [vmem:[%s1387_s1 + $0x90] sm:$0xf]  ;;  %v784_v10 = vor.u32 %v882_v3, %v783_v2  ;;  %v848_v11 = vld [vmem:[%s1387_s1 + $0x94] sm:$0xf0]  ;;  %v575_v16 = vld [vmem:[%s1387_s1] sm:$0xf]  ;;  %v584_v17 = vor.u32 %v832_v8, %v583_v7 }
  0x17   :  { %469 = vmatpush.bf16.msra.mxu3 %v800_v50  ;;  %v711_v12 = vld [vmem:[%s1387_s1 + $0x110] sm:$0xf]  ;;  %v864_v13 = vld [vmem:[%s1387_s1 + $0x114] sm:$0xf0]  ;;  %v830_v18 = vld [vmem:[%s1387_s1 + $0x4] sm:$0xf0]  ;;  %v648_v21 = vor.u32 %v848_v11, %v647_v9 }
  0x18   :  { %431 = vmatpush.bf16.msra.mxu0 %v600_v56  ;;  %v775_v14 = vld [vmem:[%s1387_s1 + $0x190] sm:$0xf]  ;;  %v880_v15 = vld [vmem:[%s1387_s1 + $0x194] sm:$0xf0]  ;;  %v639_v19 = vld [vmem:[%s1387_s1 + $0x80] sm:$0xf]  ;;  %v712_v22 = vor.u32 %v864_v13, %v711_v12  ;;  %v576_v33 = vor.u32 %v830_v18, %v575_v16 }
  0x19   :  { %444 = vmatpush.bf16.msra.mxu1 %v664_v57  ;;  %v846_v20 = vld [vmem:[%s1387_s1 + $0x84] sm:$0xf0]  ;;  %v703_v23 = vld [vmem:[%s1387_s1 + $0x100] sm:$0xf]  ;;  %v776_v26 = vor.u32 %v880_v15, %v775_v14  ;;  %v843_v28 = vld [vmem:[%s1387_s1 + $0x74] sm:$0xf] }
  0x1a   :  { %457 = vmatpush.bf16.msra.mxu2 %v728_v58  ;;  %v862_v24 = vld [vmem:[%s1387_s1 + $0x104] sm:$0xf0]  ;;  %v767_v25 = vld [vmem:[%s1387_s1 + $0x180] sm:$0xf]  ;;  %v633_v29 = vld [vmem:[%s1387_s1 + $0x78] sm:$0xf0]  ;;  %v640_v36 = vor.u32 %v846_v20, %v639_v19 }
  0x1b   :  { %470 = vmatpush.bf16.msra.mxu3 %v792_v62  ;;  %v878_v27 = vld [vmem:[%s1387_s1 + $0x184] sm:$0xf0]  ;;  %v859_v30 = vld [vmem:[%s1387_s1 + $0xf4] sm:$0xf]  ;;  %v697_v31 = vld [vmem:[%s1387_s1 + $0xf8] sm:$0xf0]  ;;  %v704_v37 = vor.u32 %v862_v24, %v703_v23  ;;  %v636_v41 = vor.u32 %v843_v28, %v633_v29 }
  0x1c   :  { %432 = vmatpush.bf16.msra.mxu0 %v592_v4  ;;  %v32_v32 = vld [vmem:[%s1386_s0] sm:$0xf]  ;;  %v875_v34 = vld [vmem:[%s1387_s1 + $0x174] sm:$0xf]  ;;  %v761_v35 = vld [vmem:[%s1387_s1 + $0x178] sm:$0xf0]  ;;  %v768_v40 = vor.u32 %v878_v27, %v767_v25  ;;  %v700_v42 = vor.u32 %v859_v30, %v697_v31 }
  0x1d   :  { %445 = vmatpush.bf16.msra.mxu1 %v656_v5  ;;  %98 = vst [vmem:[#allocation1] ss:$9 sm:$0xff] %v32_v32  ;;  %v891_v38 = vld [vmem:[%s1387_s1 + $0x1f4] sm:$0xf]  ;;  %v825_v39 = vld [vmem:[%s1387_s1 + $0x1f8] sm:$0xf0]  ;;  %v764_v43 = vor.u32 %v875_v34, %v761_v35 }
  0x1e   :  { %458 = vmatpush.bf16.msra.mxu2 %v720_v6  ;;  %v841_v44 = vld [vmem:[%s1387_s1 + $0x64] sm:$0xf]  ;;  %v625_v45 = vld [vmem:[%s1387_s1 + $0x68] sm:$0xf0]  ;;  %v828_v47 = vor.u32 %v891_v38, %v825_v39  ;;  %v839_v53 = vld [vmem:[%s1387_s1 + $0x54] sm:$0xf] }
  0x1f   :  { %471 = vmatpush.bf16.msra.mxu3 %v784_v10  ;;  %v857_v46 = vld [vmem:[%s1387_s1 + $0xe4] sm:$0xf]  ;;  %v689_v48 = vld [vmem:[%s1387_s1 + $0xe8] sm:$0xf0]  ;;  %v628_v54 = vor.u32 %v841_v44, %v625_v45  ;;  %v617_v55 = vld [vmem:[%s1387_s1 + $0x58] sm:$0xf0] }
  0x20   :  { %433 = vmatpush.bf16.msra.mxu0 %v584_v17  ;;  %v873_v49 = vld [vmem:[%s1387_s1 + $0x164] sm:$0xf]  ;;  %v753_v50 = vld [vmem:[%s1387_s1 + $0x168] sm:$0xf0]  ;;  %v855_v56 = vld [vmem:[%s1387_s1 + $0xd4] sm:$0xf]  ;;  %v692_v58 = vor.u32 %v857_v46, %v689_v48  ;;  %v620_v5 = vor.u32 %v839_v53, %v617_v55 }
  0x21   :  { %446 = vmatpush.bf16.msra.mxu1 %v648_v21  ;;  %v889_v51 = vld [vmem:[%s1387_s1 + $0x1e4] sm:$0xf]  ;;  %v817_v52 = vld [vmem:[%s1387_s1 + $0x1e8] sm:$0xf0]  ;;  %v681_v57 = vld [vmem:[%s1387_s1 + $0xd8] sm:$0xf0]  ;;  %v756_v59 = vor.u32 %v873_v49, %v753_v50 }
  0x22   :  { %459 = vmatpush.bf16.msra.mxu2 %v712_v22  ;;  %v820_v63 = vor.u32 %v889_v51, %v817_v52  ;;  %v871_v0 = vld [vmem:[%s1387_s1 + $0x154] sm:$0xf]  ;;  %v745_v1 = vld [vmem:[%s1387_s1 + $0x158] sm:$0xf0]  ;;  %v684_v6 = vor.u32 %v855_v56, %v681_v57  ;;  %v837_v8 = vld [vmem:[%s1387_s1 + $0x44] sm:$0xf] }
  0x23   :  { %472 = vmatpush.bf16.msra.mxu3 %v776_v26  ;;  %v887_v3 = vld [vmem:[%s1387_s1 + $0x1d4] sm:$0xf]  ;;  %v809_v4 = vld [vmem:[%s1387_s1 + $0x1d8] sm:$0xf0]  ;;  %v748_v7 = vor.u32 %v871_v0, %v745_v1  ;;  %v609_v9 = vld [vmem:[%s1387_s1 + $0x48] sm:$0xf0] }
  0x24   :  { %434 = vmatpush.bf16.msra.mxu0 %v576_v33  ;;  %v1232_v60 = vld [vmem:[#allocation1 + $0x12] sm:$0xff]  ;;  %v1234_v61 = vld [vmem:[#allocation1 + $0x1b] sm:$0xff]  ;;  %v1245_v2 = vld [vmem:[#allocation1 + $0x9] sm:$0xff]  ;;  %v812_v11 = vor.u32 %v887_v3, %v809_v4  ;;  %v612_v17 = vor.u32 %v837_v8, %v609_v9  ;;  %vm550_vm0 = vcmask 1041408   ;;  %vm553_vm1 = vcmask 519170   ;;  %s948_s30 = smov [#allocation5]  }
  0x25   :  { %447 = vmatpush.bf16.msra.mxu1 %v640_v36  ;;  %v1236_v62 = vld [vmem:[#allocation1] sm:$0xff]  ;;  %v673_v12 = vld [vmem:[%s1387_s1 + $0xc8] sm:$0xf0]  ;;  %v835_v20 = vld [vmem:[%s1387_s1 + $0x34] sm:$0xf]  ;;  %s561_s5 = sshll.u32 %s948_s30, 4  ;;  %s562_s5 = int_to_ptr.vmem [resolvable:$true] %s561_s5 }
  0x26   :  { %460 = vmatpush.bf16.msra.mxu2 %v704_v37  ;;  %v853_v10 = vld [vmem:[%s1387_s1 + $0xc4] sm:$0xf]  ;;  %v737_v14 = vld [vmem:[%s1387_s1 + $0x148] sm:$0xf0]  ;;  %v601_v21 = vld [vmem:[%s1387_s1 + $0x38] sm:$0xf0] }
  0x27   :  { %473 = vmatpush.bf16.msra.mxu3 %v768_v40  ;;  %435 = vmatmul.bf16.vlgmr.msra.gmra.mxu0 %v1236_v62  ;;  %v869_v13 = vld [vmem:[%s1387_s1 + $0x144] sm:$0xf]  ;;  %v801_v16 = vld [vmem:[%s1387_s1 + $0x1c8] sm:$0xf0]  ;;  %v676_v18 = vor.u32 %v853_v10, %v673_v12  ;;  %v851_v22 = vld [vmem:[%s1387_s1 + $0xb4] sm:$0xf]  ;;  %v604_v29 = vor.u32 %v835_v20, %v601_v21 }
  0x28   :  { %479 = vmatpush.bf16.msrb.mxu0 %v636_v41  ;;  %448 = vmatmul.bf16.vlgmr.msra.gmra.mxu1 %v1245_v2  ;;  %v885_v15 = vld [vmem:[%s1387_s1 + $0x1c4] sm:$0xf]  ;;  %v740_v19 = vor.u32 %v869_v13, %v737_v14  ;;  %v665_v24 = vld [vmem:[%s1387_s1 + $0xb8] sm:$0xf0]  ;;  %v867_v25 = vld [vmem:[%s1387_s1 + $0x134] sm:$0xf] }
  0x29   :  { %492 = vmatpush.bf16.msrb.mxu1 %v700_v42  ;;  %461 = vmatmul.bf16.vlgmr.msra.gmra.mxu2 %v1232_v60  ;;  %v804_v23 = vor.u32 %v885_v15, %v801_v16  ;;  %v729_v26 = vld [vmem:[%s1387_s1 + $0x138] sm:$0xf0]  ;;  %v883_v27 = vld [vmem:[%s1387_s1 + $0x1b4] sm:$0xf]  ;;  %v668_v30 = vor.u32 %v851_v22, %v665_v24  ;;  %v833_v32 = vld [vmem:[%s1387_s1 + $0x24] sm:$0xf] }
  0x2a   :  { %505 = vmatpush.bf16.msrb.mxu2 %v764_v43  ;;  %474 = vmatmul.bf16.vlgmr.msra.gmra.mxu3 %v1234_v61  ;;  %v793_v28 = vld [vmem:[%s1387_s1 + $0x1b8] sm:$0xf0]  ;;  %v732_v31 = vor.u32 %v867_v25, %v729_v26  ;;  %v593_v33 = vld [vmem:[%s1387_s1 + $0x28] sm:$0xf0]  ;;  %v849_v34 = vld [vmem:[%s1387_s1 + $0xa4] sm:$0xf] }
  0x2b   :  { %518 = vmatpush.bf16.msrb.mxu3 %v828_v47  ;;  %v796_v35 = vor.u32 %v883_v27, %v793_v28  ;;  %v657_v36 = vld [vmem:[%s1387_s1 + $0xa8] sm:$0xf0]  ;;  %v865_v37 = vld [vmem:[%s1387_s1 + $0x124] sm:$0xf]  ;;  %v596_v41 = vor.u32 %v833_v32, %v593_v33  ;;  %v831_v44 = vld [vmem:[%s1387_s1 + $0x14] sm:$0xf] }
  0x2c   :  { %480 = vmatpush.bf16.msrb.mxu0 %v628_v54  ;;  %v721_v38 = vld [vmem:[%s1387_s1 + $0x128] sm:$0xf0]  ;;  %v881_v39 = vld [vmem:[%s1387_s1 + $0x1a4] sm:$0xf]  ;;  %v660_v42 = vor.u32 %v849_v34, %v657_v36  ;;  %v585_v45 = vld [vmem:[%s1387_s1 + $0x18] sm:$0xf0] }
  0x2d   :  { %493 = vmatpush.bf16.msrb.mxu1 %v692_v58  ;;  %v785_v40 = vld [vmem:[%s1387_s1 + $0x1a8] sm:$0xf0]  ;;  %v724_v43 = vor.u32 %v865_v37, %v721_v38  ;;  %v847_v46 = vld [vmem:[%s1387_s1 + $0x94] sm:$0xf]  ;;  %v649_v48 = vld [vmem:[%s1387_s1 + $0x98] sm:$0xf0]  ;;  %v588_v53 = vor.u32 %v831_v44, %v585_v45 }
  0x2e   :  { %506 = vmatpush.bf16.msrb.mxu2 %v756_v59  ;;  %v788_v47 = vor.u32 %v881_v39, %v785_v40  ;;  %v863_v49 = vld [vmem:[%s1387_s1 + $0x114] sm:$0xf]  ;;  %v713_v50 = vld [vmem:[%s1387_s1 + $0x118] sm:$0xf0]  ;;  %v652_v54 = vor.u32 %v847_v46, %v649_v48  ;;  %v829_v56 = vld [vmem:[%s1387_s1 + $0x4] sm:$0xf] }
  0x2f   :  { %519 = vmatpush.bf16.msrb.mxu3 %v820_v63  ;;  %v879_v51 = vld [vmem:[%s1387_s1 + $0x194] sm:$0xf]  ;;  %v777_v52 = vld [vmem:[%s1387_s1 + $0x198] sm:$0xf0]  ;;  %v716_v55 = vor.u32 %v863_v49, %v713_v50  ;;  %v577_v57 = vld [vmem:[%s1387_s1 + $0x8] sm:$0xf0] }
  0x30   :  { %481 = vmatpush.bf16.msrb.mxu0 %v620_v5  ;;  %v845_v58 = vld [vmem:[%s1387_s1 + $0x84] sm:$0xf]  ;;  %v780_v59 = vor.u32 %v879_v51, %v777_v52  ;;  %v641_v63 = vld [vmem:[%s1387_s1 + $0x88] sm:$0xf0]  ;;  %v580_v5 = vor.u32 %v829_v56, %v577_v57  ;;  %v539_v26 = vld [vmem:[#allocation2] sm:$0x3] }
  0x31   :  { %494 = vmatpush.bf16.msrb.mxu1 %v684_v6  ;;  %v861_v0 = vld [vmem:[%s1387_s1 + $0x104] sm:$0xf]  ;;  %v705_v1 = vld [vmem:[%s1387_s1 + $0x108] sm:$0xf0]  ;;  %v644_v6 = vor.u32 %v845_v58, %v641_v63  ;;  %s563_s7 = sshll.u32 %s1390_s4, 4  ;;  %vm554_vm2 = vmor %vm553_vm1, %vm550_vm0  ;;  %s564_s7 = int_to_ptr.hbm [resolvable:$true] %s563_s7 }
  0x32   :  { %507 = vmatpush.bf16.msrb.mxu2 %v748_v7  ;;  %v877_v3 = vld [vmem:[%s1387_s1 + $0x184] sm:$0xf]  ;;  %v769_v4 = vld [vmem:[%s1387_s1 + $0x188] sm:$0xf0]  ;;  %v708_v7 = vor.u32 %v861_v0, %v705_v1 }
  0x33   :  { %520 = vmatpush.bf16.msrb.mxu3 %v812_v11  ;;  %v772_v8 = vor.u32 %v877_v3, %v769_v4 }
  0x34   :  { %482 = vmatpush.bf16.msrb.mxu0 %v612_v17 }
  0x35   :  { %495 = vmatpush.bf16.msrb.mxu1 %v676_v18 }
  0x36   :  { %508 = vmatpush.bf16.msrb.mxu2 %v740_v19 }
  0x37   :  { %521 = vmatpush.bf16.msrb.mxu3 %v804_v23 }
  0x38   :  { %483 = vmatpush.bf16.msrb.mxu0 %v604_v29  ;;  %v542_v29 = vperm.slane %v539_v26, 1 }
  0x39   :  { %496 = vmatpush.bf16.msrb.mxu1 %v668_v30 }
  0x3a   :  { %509 = vmatpush.bf16.msrb.mxu2 %v732_v31  ;;  %v541_v31 = vperm.slane %v539_v26, 0 }
  0x3b   :  { %522 = vmatpush.bf16.msrb.mxu3 %v796_v35 }
  0x3c   :  { %484 = vmatpush.bf16.msrb.mxu0 %v596_v41 }
  0x3d   :  { %497 = vmatpush.bf16.msrb.mxu1 %v660_v42 }
  0x3e   :  { %510 = vmatpush.bf16.msrb.mxu2 %v724_v43 }
  0x3f   :  { %523 = vmatpush.bf16.msrb.mxu3 %v788_v47 }
  0x40   :  { %485 = vmatpush.bf16.msrb.mxu0 %v588_v53 }
  0x41   :  { %498 = vmatpush.bf16.msrb.mxu1 %v652_v54 }
  0x42   :  { %511 = vmatpush.bf16.msrb.mxu2 %v716_v55 }
  0x43   :  { %524 = vmatpush.bf16.msrb.mxu3 %v780_v59 }
  0x44   :  { %486 = vmatpush.bf16.msrb.mxu0 %v580_v5 }
  0x45   :  { %499 = vmatpush.bf16.msrb.mxu1 %v644_v6 }
  0x46   :  { %512 = vmatpush.bf16.msrb.mxu2 %v708_v7 }
  0x47   :  { %525 = vmatpush.bf16.msrb.mxu3 %v772_v8  ;;  %487 = vmatmul.bf16.vlgmr.msrb.gmra.mxu0 %v1236_v62  ;;  %v531_v62 = vld [vmem:[%s1388_s2] sm:$0x3] }
  0x48   :  { %500 = vmatmul.bf16.vlgmr.msrb.gmra.mxu1 %v1245_v2  ;;  %v534_v24 = vperm.slane %v531_v62, 1 }
  0x49   :  { %513 = vmatmul.bf16.vlgmr.msrb.gmra.mxu2 %v1232_v60 }
  0x4a   :  { %526 = vmatmul.bf16.vlgmr.msrb.gmra.mxu3 %v1234_v61  ;;  %v533_v61 = vperm.slane %v531_v62, 0 }
  0xa4   :  { %v436_v9 = vpop.f32.mrf.mxu0 }
  0xa5   :  { %v449_v10 = vpop.f32.mrf.mxu1 }
  0xa6   :  { %v450_v17 = vadd.f32 %v449_v10, %v436_v9 }
  0xac   :  { %v462_v11 = vpop.f32.mrf.mxu2  ;;  %v438_v13 = vpop.f32.mrf.mxu0 }
  0xad   :  { %v475_v12 = vpop.f32.mrf.mxu3  ;;  %v451_v14 = vpop.f32.mrf.mxu1  ;;  %v463_v20 = vadd.f32 %v462_v11, %v450_v17 }
  0xaf   :  { %v476_v2 = vadd.f32 %v475_v12, %v463_v20 }
  0xb1   :  { %v537_v30 = vmul.f32 %v533_v61, %v476_v2 }
  0xb3   :  { %v545_v35 = vadd.f32 %v541_v31, %v537_v30 }
  0xb4   :  { %v464_v15 = vpop.f32.mrf.mxu2 }
  0xb5   :  { %v477_v16 = vpop.f32.mrf.mxu3 }
  0xc4   :  { %v488_v18 = vpop.f32.mrf.mxu0 }
  0xc5   :  { %v501_v19 = vpop.f32.mrf.mxu1 }
  0xc6   :  { %v502_v21 = vadd.f32 %v501_v19, %v488_v18 }
  0xcc   :  { %v514_v60 = vpop.f32.mrf.mxu2  ;;  %v490_v25 = vpop.f32.mrf.mxu0 }
  0xcd   :  { %v515_v22 = vadd.f32 %v514_v60, %v502_v21  ;;  %v527_v23 = vpop.f32.mrf.mxu3  ;;  %v503_v27 = vpop.f32.mrf.mxu1 }
  0xcf   :  { %v528_v28 = vadd.f32 %v527_v23, %v515_v22 }
  0xd1   :  { %v538_v32 = vmul.f32 %v534_v24, %v528_v28 }
  0xd3   :  { %v546_v33 = vadd.f32 %v542_v29, %v538_v32 }
  0xd4   :  { %v516_v34 = vpop.f32.mrf.mxu2 }
  0xd5   :  { %v549_v36 = vrot.slane %v546_v33, 6  ;;  %v529_v37 = vpop.f32.mrf.mxu3 }
  0xd7   :  { %v551_v38 = vsel %vm550_vm0, %v545_v35, %v549_v36 }
  0xd8   :  { %555 = vst.msk [vmem:[#allocation5] sm:$0xf] %vm554_vm2, %v551_v38 }
  0xd9   :  { %566 = dma.vmem_to_hbm [thread:$0]  %s562_s5, 64, %s564_s7, [#allocation4]  }
  0xda   :  { %945 = dma.done.wait [#allocation4], 64  }
  0xdb   :  { %946 = vsyncadd [#allocation4], 4294967232 }
  0xdc   :  { %571 = vsyncpa [#allocation3], 1 }
  0xdd   :  { %572 = vsyncpa [#allocation4], 1 }

</bundles_post_ra>
